<compile_context>
chip_gen: v7x
topology: tpu7x:2x2x1
jax: 0.10.0
libtpu: 0.0.40
codegen_flags: <defaults>
</compile_context>

<pallas_src>
import functools

import jax
import jax.numpy as jnp
from jax import lax
from jax.experimental import pallas as pl
from jax.experimental.pallas import tpu as pltpu

_INV_SQRT2 = 0.7071067811865476        # 1/sqrt(2)
_SQRT_2_OVER_PI = 0.7978845608028654   # sqrt(2/pi)
_GELU_TANH_C = 0.044715


# ---------------------------------------------------------------------------
# Shared GELU (kernel + reference use the exact same formula)
# ---------------------------------------------------------------------------
def _gelu(h, approximate):
    if approximate:
        # tanh-approx GELU: tanh goes to the EUP slot (free under the MXU on
        # v6e/v7x).  Small accuracy delta vs torch.nn.GELU() exact (erf).
        return 0.5 * h * (1.0 + jnp.tanh(_SQRT_2_OVER_PI * (h + _GELU_TANH_C * h * h * h)))
    # Exact erf GELU, matching torch.nn.GELU() default.
    return 0.5 * h * (1.0 + lax.erf(h * _INV_SQRT2))


# ---------------------------------------------------------------------------
# Kernel
# ---------------------------------------------------------------------------
def _ffn_kernel(x_ref, w1_ref, b1_ref, w2_ref, b2_ref, o_ref, *, approximate_gelu):
    # In-kernel cast of x to bf16 (VPU, hidden under MXU) -- avoids a separate
    # XLA cast pass over HBM in the wrapper.
    x = x_ref[...].astype(jnp.bfloat16)
    # First linear: bf16 operands, f32 accumulation on the MXU.
    h = jnp.dot(x, w1_ref[...], preferred_element_type=jnp.float32)
    h = h + b1_ref[...]                       # bias add in f32
    h = _gelu(h, approximate_gelu)            # GELU (generation-dispatched)
    # Dropout(p=0.0) == identity (no-op).
    # Second linear: cast activations to bf16 for the MXU, accumulate in f32.
    y = jnp.dot(h.astype(w2_ref.dtype), w2_ref[...], preferred_element_type=jnp.float32)
    y = y + b2_ref[...]                       # bias add in f32
    o_ref[...] = y.astype(o_ref.dtype)


# ---------------------------------------------------------------------------
# Helpers
# ---------------------------------------------------------------------------
def _round_up(n, m):
    return ((n + m - 1) // m) * m


def _device_kind():
    try:
        return jax.devices()[0].device_kind.lower()
    except Exception:
        return ""


def _default_approximate_gelu():
    """tanh-approx GELU (EUP) on v6e/v7x and newer; exact erf on v2..v5."""
    kind = _device_kind()
    for old in ("v2", "v3", "v4", "v5"):
        if old in kind:
            return False
    return True


def _vmem_capacity_bytes():
    try:
        cap = getattr(pltpu.get_tpu_info(), "vmem_capacity_bytes", None)
        if cap:
            return int(cap)
    except Exception:
        pass
    kind = _device_kind()
    if "7" in kind:                       # v7x: 64 MiB per TensorCore
        return 64 * 1024 * 1024
    return 128 * 1024 * 1024              # v5e / v6e: 128 MiB


def _vmem_limit_bytes(tm, dim, hidden, xbytes, obytes, weight_bufs):
    need = (
        2 * tm * dim * xbytes                       # x tiles (double-buffered, native dtype)
        + 2 * tm * dim * obytes                     # out tiles (double-buffered)
        + weight_bufs * 2 * dim * hidden * 2        # resident W1/W2 in bf16
        + weight_bufs * (hidden + dim) * 4          # resident b1/b2 in f32
        + tm * hidden * 4                           # f32 `h` intermediate
        + tm * dim * 2                              # bf16 cast of the x tile
    )
    # 2x headroom for compiler temporaries; never request the full physical VMEM
    # (v7x only has 64 MiB) -- cap at 85% of capacity, floor at 32 MiB.
    cap = int(0.85 * _vmem_capacity_bytes())
    return int(min(max(2 * need, 32 * 1024 * 1024), cap))


def _select_tm(M, tm_max):
    # Aim for >= ~4 grid steps per TensorCore (assume up to 2 TCs, e.g. v7x) so
    # the x/out double-buffer pipeline overlaps and the resident-weight DMA is
    # hidden, while never dropping below 8 rows (sublane) or exceeding tm_max.
    target_steps = 8
    tm = _round_up(max(pl.cdiv(M, target_steps), 8), 8)
    return int(max(8, min(tm, tm_max, _round_up(M, 8))))


def prepare_ffn_params(w1, b1, w2, b2):
    """One-time parameter prep (call OUTSIDE jit / once per model load):
    casts W1/W2 to bf16 and reshapes biases to (1, .) f32 so the per-call
    wrapper does no redundant HBM passes over the weights."""
    return (jnp.asarray(w1, jnp.bfloat16),
            jnp.asarray(b1, jnp.float32).reshape(1, -1),
            jnp.asarray(w2, jnp.bfloat16),
            jnp.asarray(b2, jnp.float32).reshape(1, -1))


# ---------------------------------------------------------------------------
# pallas_call wrapper
# ---------------------------------------------------------------------------
@functools.partial(jax.jit,
                   static_argnames=("tm_max", "single_buffer_weights", "approximate_gelu"))
def feed_forward(x, w1, b1, w2, b2, *, tm_max=512, single_buffer_weights=True,
                 approximate_gelu=True):
    """x: (B, N, dim) in its native dtype. w1: (dim, hidden), b1: (hidden,) or (1, hidden),
    w2: (hidden, dim), b2: (dim,) or (1, dim).  Use prepare_ffn_params() once to
    pre-cast the weights; the casts below are then no-ops."""
    B, N, dim = x.shape
    hidden = w1.shape[1]
    M = B * N

    out_dtype = x.dtype
    xbytes = x.dtype.itemsize
    obytes = out_dtype.itemsize

    tm = _select_tm(M, tm_max)
    grid = (pl.cdiv(M, tm),)

    x2d = x.reshape(M, dim)                            # no cast: done in-kernel
    w1c = w1.astype(jnp.bfloat16)                      # no-ops if pre-prepared
    w2c = w2.astype(jnp.bfloat16)
    b1r = b1.reshape(1, hidden).astype(jnp.float32)
    b2r = b2.reshape(1, dim).astype(jnp.float32)

    # Weights/biases are grid-invariant: request a single VMEM buffer for them;
    # keep the default double-buffering on the streaming x / out tiles.
    resident = (dict(pipeline_mode=pl.Buffered(buffer_count=1))
                if single_buffer_weights else {})
    weight_bufs = 1 if single_buffer_weights else 2

    cost = pl.CostEstimate(
        flops=4 * M * dim * hidden,                    # two matmuls, 2*M*K*N each
        transcendentals=M * hidden,                    # tanh or erf
        bytes_accessed=(M * dim * (xbytes + obytes)
                        + 2 * dim * hidden * 2
                        + (hidden + dim) * 4),
    )

    kernel = functools.partial(_ffn_kernel, approximate_gelu=approximate_gelu)

    out2d = pl.pallas_call(
        kernel,
        out_shape=jax.ShapeDtypeStruct((M, dim), out_dtype),
        grid_spec=pltpu.PrefetchScalarGridSpec(
            num_scalar_prefetch=0,
            grid=grid,
            in_specs=[
                pl.BlockSpec((tm, dim), lambda i: (i, 0)),                  # x tile (streams)
                pl.BlockSpec((dim, hidden), lambda i: (0, 0), **resident),  # W1 (resident)
                pl.BlockSpec((1, hidden), lambda i: (0, 0), **resident),    # b1 (resident)
                pl.BlockSpec((hidden, dim), lambda i: (0, 0), **resident),  # W2 (resident)
                pl.BlockSpec((1, dim), lambda i: (0, 0), **resident),       # b2 (resident)
            ],
            out_specs=pl.BlockSpec((tm, dim), lambda i: (i, 0)),
        ),
        compiler_params=pltpu.CompilerParams(
            dimension_semantics=("parallel",),
            vmem_limit_bytes=_vmem_limit_bytes(tm, dim, hidden, xbytes, obytes,
                                               weight_bufs),
        ),
        cost_estimate=cost,
    )(x2d, w1c, b1r, w2c, b2r)
    return out2d.reshape(B, N, dim)


def feed_forward_auto(x, w1, b1, w2, b2, *, tm_max=512, approximate_gelu=None):
    """Prefers single-buffered resident weights; falls back to default buffering
    only if the installed jax/Mosaic rejects pl.Buffered(buffer_count=1)."""
    if approximate_gelu is None:
        approximate_gelu = _default_approximate_gelu()
    try:
        return feed_forward(x, w1, b1, w2, b2, tm_max=tm_max,
                            single_buffer_weights=True,
                            approximate_gelu=approximate_gelu)
    except Exception as e:  # narrowed: only swallow Buffered/pipeline_mode rejections
        msg = str(e).lower()
        if ("buffer" not in msg) and ("pipeline_mode" not in msg):
            raise
        return feed_forward(x, w1, b1, w2, b2, tm_max=tm_max,
                            single_buffer_weights=False,
                            approximate_gelu=approximate_gelu)


# ---------------------------------------------------------------------------
# Reference (emulates the kernel's numerics: bf16 MXU operands, f32 accumulation,
# same GELU variant)
# ---------------------------------------------------------------------------
def _reference(x, w1, b1, w2, b2, *, approximate_gelu):
    xb = x.astype(jnp.bfloat16).astype(jnp.float32)
    w1b = w1.astype(jnp.bfloat16).astype(jnp.float32)
    w2b = w2.astype(jnp.bfloat16).astype(jnp.float32)
    h = jnp.einsum("bnd,dh->bnh", xb, w1b, precision=lax.Precision.HIGHEST) + b1
    h = _gelu(h, approximate_gelu)
    hb = h.astype(jnp.bfloat16).astype(jnp.float32)
    y = jnp.einsum("bnh,hd->bnd", hb, w2b, precision=lax.Precision.HIGHEST) + b2
    return y


if __name__ == "__main__":
    # Real TransMIL width: dim=512 (so the 256-wide v6e/v7x MXU tiles are full),
    # hidden = 4*dim = 2048.  M = B*N = 512 rows keeps the demo small/fast while
    # still giving the adaptive tiler >= 8 grid steps.
    B, N, dim, mult = 1, 512, 512, 4
    hidden = dim * mult

    key = jax.random.PRNGKey(0)
    kx, kw1, kb1, kw2, kb2 = jax.random.split(key, 5)

    x = jax.random.normal(kx, (B, N, dim), dtype=jnp.float32)
    # Deterministic param init (uniform +-1/sqrt(fan_in), like nn.Linear default).
    w1 = jax.random.uniform(kw1, (dim, hidden), jnp.float32,
                            minval=-1.0 / jnp.sqrt(dim), maxval=1.0 / jnp.sqrt(dim))
    b1 = jax.random.uniform(kb1, (hidden,), jnp.float32,
                            minval=-1.0 / jnp.sqrt(dim), maxval=1.0 / jnp.sqrt(dim))
    w2 = jax.random.uniform(kw2, (hidden, dim), jnp.float32,
                            minval=-1.0 / jnp.sqrt(hidden), maxval=1.0 / jnp.sqrt(hidden))
    b2 = jax.random.uniform(kb2, (dim,), jnp.float32,
                            minval=-1.0 / jnp.sqrt(hidden), maxval=1.0 / jnp.sqrt(hidden))

    # One-time parameter prep (outside jit): bf16 weights, (1, .) f32 biases.
    w1p, b1p, w2p, b2p = prepare_ffn_params(w1, b1, w2, b2)

    approx = _default_approximate_gelu()   # tanh-approx on v6e/v7x, exact erf on <= v5
    out = feed_forward_auto(x, w1p, b1p, w2p, b2p, approximate_gelu=approx)
    out = jax.block_until_ready(out)

    ref = jax.block_until_ready(_reference(x, w1, b1, w2, b2, approximate_gelu=approx))
    assert out.shape == (B, N, dim)
    assert jnp.allclose(out, ref, atol=2e-2, rtol=2e-2), "mismatch vs reference"

    # TODO(synk): the rest of TransMIL (Nystrom attention with Moore-Penrose
    # pinv iterations, PPEG depthwise convs, LayerNorm, classifier/softmax head)
    # stays in plain JAX/XLA; only the Linear->GELU->Dropout(0)->Linear FFN path
    # is a Pallas kernel here.
    print("KERNEL_OK")
</pallas_src>

<mosaic_0001>
module attributes {stable_mosaic.version = 11 : i64} {
  func.func @_ffn_kernel(%arg0: i32, %arg1: memref<64x512xf32, #tpu.memory_space<vmem>>, %arg2: memref<512x2048xbf16, #tpu.memory_space<vmem>>, %arg3: memref<1x2048xf32, #tpu.memory_space<vmem>>, %arg4: memref<2048x512xbf16, #tpu.memory_space<vmem>>, %arg5: memref<1x512xf32, #tpu.memory_space<vmem>>, %arg6: memref<64x512xf32, #tpu.memory_space<vmem>>) attributes {dimension_semantics = [#tpu.dimension_semantics<parallel>], iteration_bounds = array<i64: 8>, scalar_prefetch = 0 : i64, scratch_operands = 0 : i64, tpu.core_type = #tpu.core_type<tc>, window_params = [{transform_indices = @transform_0, window_bounds = array<i64: 64, 512>}, {pipeline_mode = #tpu.pipeline_mode<synchronous>, transform_indices = @transform_1, window_bounds = array<i64: 512, 2048>}, {pipeline_mode = #tpu.pipeline_mode<synchronous>, transform_indices = @transform_2, window_bounds = array<i64: 1, 2048>}, {pipeline_mode = #tpu.pipeline_mode<synchronous>, transform_indices = @transform_3, window_bounds = array<i64: 2048, 512>}, {pipeline_mode = #tpu.pipeline_mode<synchronous>, transform_indices = @transform_4, window_bounds = array<i64: 1, 512>}, {transform_indices = @transform_5, window_bounds = array<i64: 64, 512>}]} {
    %c0 = arith.constant 0 : index
    %c0_0 = arith.constant 0 : index
    %0 = vector.load %arg1[%c0, %c0_0] : memref<64x512xf32, #tpu.memory_space<vmem>>, vector<64x512xf32>
    %1 = arith.truncf %0 : vector<64x512xf32> to vector<64x512xbf16>
    %c0_1 = arith.constant 0 : index
    %c0_2 = arith.constant 0 : index
    %2 = vector.load %arg2[%c0_1, %c0_2] : memref<512x2048xbf16, #tpu.memory_space<vmem>>, vector<512x2048xbf16>
    %cst = arith.constant dense<0.000000e+00> : vector<64x2048xf32>
    %3 = tpu.matmul %1, %2, %cst {dimension_numbers = #tpu.dot_dimension_numbers<[1], [0], [0], [1], [0, 0, 1, 1], [], []>} : vector<64x512xbf16>, vector<512x2048xbf16>, vector<64x2048xf32> -> vector<64x2048xf32>
    %c0_3 = arith.constant 0 : index
    %c0_4 = arith.constant 0 : index
    %4 = vector.load %arg3[%c0_3, %c0_4] : memref<1x2048xf32, #tpu.memory_space<vmem>>, vector<1x2048xf32>
    %5 = vector.broadcast %4 : vector<1x2048xf32> to vector<64x2048xf32>
    %6 = arith.addf %3, %5 : vector<64x2048xf32>
    %cst_5 = arith.constant 5.000000e-01 : f32
    %7 = vector.broadcast %cst_5 : f32 to vector<64x2048xf32>
    %8 = arith.mulf %7, %6 : vector<64x2048xf32>
    %cst_6 = arith.constant 4.471500e-02 : f32
    %9 = vector.broadcast %cst_6 : f32 to vector<64x2048xf32>
    %10 = arith.mulf %9, %6 : vector<64x2048xf32>
    %11 = arith.mulf %10, %6 : vector<64x2048xf32>
    %12 = arith.mulf %11, %6 : vector<64x2048xf32>
    %13 = arith.addf %6, %12 : vector<64x2048xf32>
    %cst_7 = arith.constant 0.797884583 : f32
    %14 = vector.broadcast %cst_7 : f32 to vector<64x2048xf32>
    %15 = arith.mulf %14, %13 : vector<64x2048xf32>
    %16 = math.tanh %15 : vector<64x2048xf32>
    %cst_8 = arith.constant 1.000000e+00 : f32
    %17 = vector.broadcast %cst_8 : f32 to vector<64x2048xf32>
    %18 = arith.addf %17, %16 : vector<64x2048xf32>
    %19 = arith.mulf %8, %18 : vector<64x2048xf32>
    %20 = arith.truncf %19 : vector<64x2048xf32> to vector<64x2048xbf16>
    %c0_9 = arith.constant 0 : index
    %c0_10 = arith.constant 0 : index
    %21 = vector.load %arg4[%c0_9, %c0_10] : memref<2048x512xbf16, #tpu.memory_space<vmem>>, vector<2048x512xbf16>
    %cst_11 = arith.constant dense<0.000000e+00> : vector<64x512xf32>
    %22 = tpu.matmul %20, %21, %cst_11 {dimension_numbers = #tpu.dot_dimension_numbers<[1], [0], [0], [1], [0, 0, 1, 1], [], []>} : vector<64x2048xbf16>, vector<2048x512xbf16>, vector<64x512xf32> -> vector<64x512xf32>
    %c0_12 = arith.constant 0 : index
    %c0_13 = arith.constant 0 : index
    %23 = vector.load %arg5[%c0_12, %c0_13] : memref<1x512xf32, #tpu.memory_space<vmem>>, vector<1x512xf32>
    %24 = vector.broadcast %23 : vector<1x512xf32> to vector<64x512xf32>
    %25 = arith.addf %22, %24 : vector<64x512xf32>
    %c0_14 = arith.constant 0 : index
    %c0_15 = arith.constant 0 : index
    %26 = vector.load %arg6[%c0_14, %c0_15] : memref<64x512xf32, #tpu.memory_space<vmem>>, vector<64x512xf32>
    tpu.vector_store %arg6[%c0_14, %c0_15], %25 {strides = array<i32>} : memref<64x512xf32, #tpu.memory_space<vmem>>, vector<64x512xf32>,
    return
  }
  func.func @transform_0(%arg0: i32) -> (i32, i32) {
    %c0_i32 = arith.constant 0 : i32
    %c0_i32_0 = arith.constant 0 : i32
    return %arg0, %c0_i32 : i32, i32
  }
  func.func @transform_1(%arg0: i32) -> (i32, i32) {
    %c0_i32 = arith.constant 0 : i32
    %c0_i32_0 = arith.constant 0 : i32
    %c0_i32_1 = arith.constant 0 : i32
    return %c0_i32, %c0_i32_0 : i32, i32
  }
  func.func @transform_2(%arg0: i32) -> (i32, i32) {
    %c0_i32 = arith.constant 0 : i32
    %c0_i32_0 = arith.constant 0 : i32
    %c0_i32_1 = arith.constant 0 : i32
    return %c0_i32, %c0_i32_0 : i32, i32
  }
  func.func @transform_3(%arg0: i32) -> (i32, i32) {
    %c0_i32 = arith.constant 0 : i32
    %c0_i32_0 = arith.constant 0 : i32
    %c0_i32_1 = arith.constant 0 : i32
    return %c0_i32, %c0_i32_0 : i32, i32
  }
  func.func @transform_4(%arg0: i32) -> (i32, i32) {
    %c0_i32 = arith.constant 0 : i32
    %c0_i32_0 = arith.constant 0 : i32
    %c0_i32_1 = arith.constant 0 : i32
    return %c0_i32, %c0_i32_0 : i32, i32
  }
  func.func @transform_5(%arg0: i32) -> (i32, i32) {
    %c0_i32 = arith.constant 0 : i32
    %c0_i32_0 = arith.constant 0 : i32
    return %arg0, %c0_i32 : i32, i32
  }
}

</mosaic_0001>

<bundles_post_ra>
// kernel: feed_forward.1
= control target key start
LH: loop header
LB: loop body
LE: loop exit
PB: predicated region body
PF: predicated region fallthrough
CT: control target
= control target key end

     0   :  { %10 = vsyncpa [#allocation3], 0  ;;  %s16803_s0 = inlined_call_operand.hbm [shape: f32[512,512], index: 0, kind: input, shape index: {}]   ;;  %s16804_s1 = inlined_call_operand.hbm [shape: bf16[512,2048], index: 1, kind: input, shape index: {}]   ;;  %s16805_s2 = inlined_call_operand.hbm [shape: f32[1,2048], index: 2, kind: input, shape index: {}]   ;;  %s16806_s3 = inlined_call_operand.hbm [shape: bf16[2048,512], index: 3, kind: input, shape index: {}]   ;;  %s16807_s4 = inlined_call_operand.hbm [shape: f32[1,512], index: 4, kind: input, shape index: {}]   ;;  %s16808_s5 = inlined_call_operand.hbm [shape: f32[512,512], index: 5, kind: output, shape index: {}]  }
   0x1   :  { %12 = vsyncpa [#allocation3 + $0x1], 0 }
   0x2   :  { %13 = vsyncpa [#allocation6], 0 }
   0x3   :  { %14 = vsyncpa [#allocation9], 0 }
   0x4   :  { %15 = vsyncpa [#allocation4], 0 }
   0x5   :  { %17 = vsyncpa [#allocation4 + $0x1], 0  ;;  %s13255_s18 = smov 0   ;;  %s13257_s19 = smov 0  }
   0x6   :  { %s13259_s20 = smov 0   ;;  %s13261_s21 = smov 0  }
   0x7 LB: > { %s13276_s22 = sadd.s32 4294967295, %s13209_s21   ;;  %s10308_s23 = sadd.s32 4294967294, %s13209_s21   ;;  %s13209_s21 = sphi %s13261_s21, %s17656_s21   ;;  %s13205_s20 = sphi %s13259_s20, %s17655_s20   ;;  %s13201_s19 = sphi %s13257_s19, %s17654_s19   ;;  %s13197_s18 = sphi %s13255_s18, %s17653_s18  }
   0x8   : > { %p43_p0 = scmp.ne.s32.totalorder %s13201_s19, %s13197_s18  ;;  %p16809_p1 = scmp.eq.s32.totalorder %s13276_s22, 0 }
   0x9   : > { %p157_p3 = scmp.eq.s32.totalorder %s10308_s23, 7  ;;  %p10309_p5 = scmp.ge.s32.totalorder %s13209_s21, 1 }
   0xa   : > { %p13285_p4 = por %p16809_p1, %p43_p0  ;;  %p164_p7 = scmp.lt.s32.totalorder %s13209_s21, 9 }
   0xb   : > { %p13290_p6 = por %p157_p3, %p43_p0  ;;  %s13211_s27 = smov [#allocation5]  }
   0xc   : > { %s17094_s24 = scalar_select %p13285_p4, 1, 0 }
   0xd   : > { %s17095_s25 = scalar_select %p13290_p6, 1, 0 }
   0xe   : > { %p13295_p8 = pnand %p10309_p5, %p164_p7  ;;  %s176_s28 = sshll.u32 %s13211_s27, 4  ;;  %s177_s28 = int_to_ptr.vmem [resolvable:$true] %s176_s28 }
   0xf   : > { %s13212_s30 = smov [#allocation8]   ;;  %s12993_s9 = scalar_lea.hbm %s16804_s1, 65536 }
  0x10   : > { %s17096_s26 = scalar_select %p13295_p8, 1, 0 }
  0x11   : > { %p11892_p9 = pneg %p13295_p8  ;;  %s200_s6 = sshll.u32 %s13212_s30, 4  ;;  %s13307_s6 = int_to_ptr.vmem [resolvable:$true] %s200_s6 }
  0x12   : > { %p12994_p11 = scmp.ne.s32.totalorder %s16804_s1, %s12993_s9  ;;  %p13000_p3 = scmp.lt.u32.totalorder %s12993_s9, %s16804_s1 }
  0x13   : > { %p13303_p10 = pnand %p11892_p9, %p16809_p1 }
  0x15   : > { %p13317_p12 = pneg %p13303_p10 }
  0x17   : > { %p12996_p13 = pnand %p13317_p12, %p12994_p11 }
  0x19   : > { %p12997_p0 = pneg %p12996_p13 }
  0x1b   : > { %p13002_p5 = pnand %p13000_p3, %p12997_p0 }
  0x1d   : > { %13005 = shalt.err (!%p13002_p5)
}
  0x1e   : > { %s13006_s15 = scalar_lea.vmem %s177_s28, 65536  ;;  %p13014_p2 = scmp.lt.s32.totalorder %s177_s28, %s177_s28 }
  0x1f   : > { %p13007_p7 = scmp.ne.s32.totalorder %s177_s28, %s13006_s15  ;;  %p13015_p6 = scmp.lt.s32.totalorder %s13006_s15, %s13006_s15 }
  0x21   : > { %p13009_p9 = pnand %p13007_p7, %p13317_p12  ;;  %p13016_p4 = por %p13015_p6, %p13014_p2 }
  0x23   : > { %p13010_p1 = pneg %p13009_p9 }
  0x25   : > { %p13017_p8 = pnand %p13016_p4, %p13010_p1 }
  0x27   : > { %13020 = shalt.err (!%p13017_p8)
}
  0x28   : > { %s13213_s16 = smov 1024   ;;  %s13214_s17 = smov 64  }
  0x29   : > { %11895 = dma.hbm_to_vmem [thread:$0]  (!%p13303_p10), %s16804_s1, 65536, %s177_s28, [#allocation6], %s13213_s16, %s13213_s16, %s13214_s17  }
  0x2a   : > { %s13021_s8 = scalar_lea.hbm %s16806_s3, 65536 }
  0x2b   : > { %p13022_p11 = scmp.ne.s32.totalorder %s16806_s3, %s13021_s8  ;;  %p13028_p4 = scmp.lt.u32.totalorder %s13021_s8, %s16806_s3 }
  0x2d   : > { %p13024_p1 = pnand %p13022_p11, %p13317_p12 }
  0x2f   : > { %p13025_p2 = pneg %p13024_p1 }
  0x31   : > { %p13030_p6 = pnand %p13028_p4, %p13025_p2 }
  0x33   : > { %13033 = shalt.err (!%p13030_p6)
}
  0x34   : > { %s13034_s28 = scalar_lea.vmem %s13307_s6, 65536  ;;  %p13042_p3 = scmp.lt.s32.totalorder %s13307_s6, %s13307_s6 }
  0x35   : > { %p13035_p8 = scmp.ne.s32.totalorder %s13307_s6, %s13034_s28  ;;  %p13043_p5 = scmp.lt.s32.totalorder %s13034_s28, %s13034_s28 }
  0x37   : > { %p13037_p13 = pnand %p13035_p8, %p13317_p12  ;;  %p13044_p7 = por %p13043_p5, %p13042_p3 }
  0x39   : > { %p13038_p0 = pneg %p13037_p13 }
  0x3b   : > { %p13045_p9 = pnand %p13044_p7, %p13038_p0 }
  0x3d   : > { %13048 = shalt.err (!%p13045_p9)
}
  0x3e   : > { %s13215_s14 = smov 256   ;;  %s13216_s15 = smov 16  }
  0x3f   : > { %11901 = dma.hbm_to_vmem [thread:$0]  (!%p13303_p10), %s16806_s3, 65536, %s13307_s6, [#allocation9], %s13215_s14, %s13215_s14, %s13216_s15  }
  0x40   : > { %s13217_s23 = smov [#allocation7]   ;;  %s13218_s30 = smov [#allocation10]  }
  0x41   : > { %s190_s27 = sshll.u32 %s13217_s23, 4  ;;  %s214_s7 = sshll.u32 %s13218_s30, 4  ;;  %s191_s27 = int_to_ptr.vmem [resolvable:$true] %s190_s27  ;;  %s13356_s7 = int_to_ptr.vmem [resolvable:$true] %s214_s7 }
  0x42   : > { %s13049_s10 = scalar_lea.hbm %s16805_s2, 256 }
  0x43   : > { %p13050_p11 = scmp.ne.s32.totalorder %s16805_s2, %s13049_s10  ;;  %p13056_p4 = scmp.lt.u32.totalorder %s13049_s10, %s16805_s2 }
  0x45   : > { %p13052_p1 = pnand %p13050_p11, %p13317_p12 }
  0x47   : > { %p13053_p2 = pneg %p13052_p1 }
  0x49   : > { %p13058_p6 = pnand %p13056_p4, %p13053_p2 }
  0x4b   : > { %13061 = shalt.err (!%p13058_p6)
}
  0x4c   : > { %s13062_s14 = scalar_lea.vmem %s191_s27, 256  ;;  %p13070_p3 = scmp.lt.s32.totalorder %s191_s27, %s191_s27 }
  0x4d   : > { %p13063_p8 = scmp.ne.s32.totalorder %s191_s27, %s13062_s14  ;;  %p13071_p5 = scmp.lt.s32.totalorder %s13062_s14, %s13062_s14 }
  0x4f   : > { %p13065_p13 = pnand %p13063_p8, %p13317_p12  ;;  %p13072_p7 = por %p13071_p5, %p13070_p3 }
  0x51   : > { %p13066_p0 = pneg %p13065_p13 }
  0x53   : > { %p13073_p9 = pnand %p13072_p7, %p13066_p0 }
  0x55   : > { %13076 = shalt.err (!%p13073_p9)
}
  0x56   : > { %11898 = dma.hbm_to_vmem [thread:$0]  (!%p13303_p10), %s16805_s2, 256, %s191_s27, [#allocation6]  }
  0x57   : > { %s13077_s30 = scalar_lea.hbm %s16807_s4, 64 }
  0x58   : > { %p13078_p11 = scmp.ne.s32.totalorder %s16807_s4, %s13077_s30  ;;  %p13084_p4 = scmp.lt.u32.totalorder %s13077_s30, %s16807_s4 }
  0x5a   : > { %p13080_p1 = pnand %p13078_p11, %p13317_p12 }
  0x5c   : > { %p13081_p2 = pneg %p13080_p1 }
  0x5e   : > { %p13086_p6 = pnand %p13084_p4, %p13081_p2 }
  0x60   : > { %13089 = shalt.err (!%p13086_p6)
}
  0x61   : > { %s13090_s27 = scalar_lea.vmem %s13356_s7, 64  ;;  %p13098_p3 = scmp.lt.s32.totalorder %s13356_s7, %s13356_s7 }
  0x62   : > { %p13091_p8 = scmp.ne.s32.totalorder %s13356_s7, %s13090_s27  ;;  %p13099_p5 = scmp.lt.s32.totalorder %s13090_s27, %s13090_s27 }
  0x64   : > { %p13093_p13 = pnand %p13091_p8, %p13317_p12  ;;  %p13100_p7 = por %p13099_p5, %p13098_p3 }
  0x66   : > { %p13094_p0 = pneg %p13093_p13 }
  0x68   : > { %p13101_p9 = pnand %p13100_p7, %p13094_p0 }
  0x6a   : > { %13104 = shalt.err (!%p13101_p9)
}
  0x6b   : > { %11904 = dma.hbm_to_vmem [thread:$0]  (!%p13303_p10), %s16807_s4, 64, %s13356_s7, [#allocation9]  }
  0x6c   : > { %s13400_s12 = sadd.s32 1, %s13209_s21   ;;  %s30_s6 = sadd.s32 1, %s13205_s20 }
  0x6d   : > { %s27_s29 = ssub.s32 %s13209_s21, %s13400_s12  ;;  %p37_p11 = scmp.ne.s32.totalorder %s13205_s20, %s13201_s19 }
  0x6e   : > { %p28_p12 = scmp.eq.s32.totalorder %s27_s29, 0  ;;  %p38_p1 = scmp.eq.s32.totalorder %s13209_s21, 0 }
  0x6f   : > { %p17099_p4 = scmp.eq.s32.totalorder %s13276_s22, 7  ;;  %p11917_p8 = scmp.lt.s32.totalorder %s13209_s21, 8 }
  0x70   : > { %s13409_s14 = scalar_select %p28_p12, %s13205_s20, %s30_s6  }
  0x71   : > { %p39_p2 = por %p38_p1, %p37_p11  ;;  %p13413_p6 = por %p17099_p4, %p37_p11 }
  0x72   : > { %s225_s16 = sand.u32 1, %s13205_s20   ;;  %s11357_s7 = sshll.u32 %s13209_s21, 12 }
  0x73   : > { %s10315_s17 = sshll.u32 %s225_s16, 8  ;;  %s13423_s8 = scalar_lea.hbm %s16803_s0, %s11357_s7 }
  0x74   : > { %s229_s9 = scalar_lea.vmem [#allocation2], %s10315_s17  ;;  %p13427_p10 = pnand %p11917_p8, %p39_p2 }
  0x75   : > { %s237_s10 = sshll.u32 %s229_s9, 4  ;;  %s13431_s27 = scalar_lea.sflag [#allocation3], %s225_s16  ;;  %s13425_s10 = int_to_ptr.vmem [resolvable:$true] %s237_s10 }
  0x76   : > { %s13105_s13 = scalar_lea.hbm %s13423_s8, 4096  ;;  %p13107_p0 = pneg %p13427_p10 }
  0x77   : > { %p13106_p13 = scmp.ne.s32.totalorder %s13423_s8, %s13105_s13  ;;  %s13110_s6 = scalar_lea.hbm %s16803_s0, 32768 }
  0x78   : > { %p13111_p7 = scmp.lt.u32.totalorder %s13423_s8, %s16803_s0  ;;  %p13112_p9 = scmp.lt.u32.totalorder %s13110_s6, %s13105_s13 }
  0x79   : > { %p13108_p3 = pnand %p13107_p0, %p13106_p13  ;;  %p13114_p11 = scmp.lt.u32.totalorder %s13105_s13, %s13423_s8 }
  0x7a   : > { %p13113_p12 = por %p13112_p9, %p13111_p7 }
  0x7b   : > { %p13109_p5 = pneg %p13108_p3 }
  0x7c   : > { %p13115_p1 = por %p13114_p11, %p13113_p12 }
  0x7e   : > { %p13116_p2 = pnand %p13115_p1, %p13109_p5 }
  0x80   : > { %13119 = shalt.err (!%p13116_p2)
}
  0x81   : > { %s13120_s16 = scalar_lea.vmem %s13425_s10, 4096  ;;  %s13219_s23 = smov [#allocation2]  }
  0x82   : > { %p13121_p4 = scmp.ne.s32.totalorder %s13425_s10, %s13120_s16  ;;  %s13125_s30 = sshll.u32 %s13219_s23, 4  ;;  %s13126_s30 = int_to_ptr.vmem [resolvable:$false] %s13125_s30 }
  0x83   : > { %s13127_s9 = scalar_lea.vmem %s13126_s30, 8192  ;;  %p13128_p3 = scmp.lt.s32.totalorder %s13425_s10, %s13126_s30 }
  0x84   : > { %p13123_p8 = pnand %p13121_p4, %p13107_p0  ;;  %p13129_p7 = scmp.lt.s32.totalorder %s13127_s9, %s13120_s16 }
  0x86   : > { %p13124_p13 = pneg %p13123_p8  ;;  %p13130_p9 = por %p13129_p7, %p13128_p3 }
  0x88   : > { %p13131_p12 = pnand %p13130_p9, %p13124_p13 }
  0x8a   : > { %13134 = shalt.err (!%p13131_p12)
}
  0x8b   : > { %s13220_s13 = smov 512   ;;  %s13221_s28 = smov 32  }
  0x8c   : > { %11908 = dma.hbm_to_vmem [thread:$0]  (!%p13427_p10), %s13423_s8, 4096, %s13425_s10, %s13431_s27, %s13220_s13, %s13220_s13, %s13221_s28  }
  0x8d   : > { %p17102_p0 = scmp.ne.s32.totalorder %s17096_s26, 0 }
  0x8f   : > { %249 = sbr.rel (%p17102_p0) target bundleno = 1471 (0x5bf), region = 40 }
  0x96   : > { %s13462_s29 = sand.u32 1, %s13201_s19   ;;  %p17103_p5 = scmp.ne.s32.totalorder %s17094_s24, 0 }
  0x97   : > { %s10320_s6 = sshll.u32 %s13462_s29, 8  ;;  %s252_s17 = scalar_lea.sflag [#allocation3], %s13462_s29 }
  0x98   : > { %s13468_s7 = scalar_lea.vmem [#allocation2], %s10320_s6 }
  0x99   : > { %13180 = dma.done.wait (%p17103_p5), %s252_s17, 4096  }
  0x9a   : > { %13182 = vsyncadd (%p17103_p5), %s252_s17, 4294963200  ;;  %p17104_p10 = scmp.eq.s32.totalorder %s13276_s22, 0 }
  0x9c   : > { %13184 = dma.done.wait (%p17104_p10), [#allocation6], 65792   ;;  %p17105_p11 = pmov %p17104_p10 }
  0x9d   : > { %p17106_p1 = pmov %p17104_p10 }
  0x9e   : > { %13186 = vsyncadd (%p17105_p11), [#allocation6], 4294901504 }
  0x9f   : > { %13188 = dma.done.wait (%p17106_p1), [#allocation9], 65600   ;;  %p17107_p2 = pmov %p17106_p1 }
  0xa0   : > { %v348_v0 = vld [vmem:[#allocation5] sm:$0xff]  ;;  %v349_v2 = vld [vmem:[#allocation5 + $0x8] sm:$0xff]  ;;  %s16690_s24 = scalar_lea.vmem [#allocation11], %s10320_s6  ;;  %s11359_s26 = sshll.u32 %s13276_s22, 12 }
  0xa1   : > { %13190 = vsyncadd (%p17107_p2), [#allocation9], 4294901696  ;;  %v356_v1 = vld [vmem:[#allocation5 + $0x40] sm:$0xff]  ;;  %v357_v4 = vld [vmem:[#allocation5 + $0x48] sm:$0xff]  ;;  %s10197_s8 = sshll.u32 %s16690_s24, 4  ;;  %s16752_s11 = scalar_lea.hbm %s16808_s5, %s11359_s26  ;;  %s16754_s8 = int_to_ptr.vmem [resolvable:$true] %s10197_s8 }
  0xa2   : > { %v10327_v3 = vcombine.high %v348_v0, %v356_v1  ;;  %v10326_v5 = vcombine.low %v348_v0, %v356_v1  ;;  %v364_v6 = vld [vmem:[#allocation5 + $0x80] sm:$0xff]  ;;  %v10329_v8 = vcombine.high %v349_v2, %v357_v4  ;;  %v10328_v9 = vcombine.low %v349_v2, %v357_v4  ;;  %v365_v11 = vld [vmem:[#allocation5 + $0x88] sm:$0xff]  ;;  %s10183_s27 = scalar_lea.sflag [#allocation4], %s13462_s29  ;;  %s13135_s16 = scalar_lea.vmem %s16754_s8, 4096 }
  0xa3   : > { %v372_v7 = vld [vmem:[#allocation5 + $0xc0] sm:$0xff]  ;;  %v373_v12 = vld [vmem:[#allocation5 + $0xc8] sm:$0xff]  ;;  %p13136_p4 = scmp.ne.s32.totalorder %s16754_s8, %s13135_s16  ;;  %s13222_s23 = smov [#allocation11]  }
  0xa4   : > { %v10343_v10 = vcombine.high %v364_v6, %v372_v7  ;;  %v380_v13 = vld [vmem:[#allocation5 + $0x100] sm:$0xff]  ;;  %3504 = vmatprep.subr.bf16.mxu0 %v10327_v3  ;;  %v10345_v14 = vcombine.high %v365_v11, %v373_v12  ;;  %v381_v16 = vld [vmem:[#allocation5 + $0x108] sm:$0xff]  ;;  %3650 = vmatprep.subr.bf16.mxu1 %v10329_v8  ;;  %v10342_v18 = vcombine.low %v364_v6, %v372_v7  ;;  %s13139_s30 = sshll.u32 %s13222_s23, 4  ;;  %s13140_s30 = int_to_ptr.vmem [resolvable:$false] %s13139_s30 }
  0xa5   : > { %v388_v15 = vld [vmem:[#allocation5 + $0x140] sm:$0xff]  ;;  %v389_v17 = vld [vmem:[#allocation5 + $0x148] sm:$0xff]  ;;  %3505 = vmatpush1.bf16.msra.mxu0 %v10326_v5  ;;  %3651 = vmatpush1.bf16.msra.mxu1 %v10328_v9  ;;  %v10344_v19 = vcombine.low %v365_v11, %v373_v12  ;;  %p13137_p8 = pnand %p13136_p4, %p13413_p6  ;;  %s13141_s9 = scalar_lea.vmem %s13140_s30, 8192 }
  0xa6   : > { %3506 = vmatprep.subr.bf16.mxu0 %v10343_v10  ;;  %v10359_v20 = vcombine.high %v380_v13, %v388_v15  ;;  %3652 = vmatprep.subr.bf16.mxu1 %v10345_v14  ;;  %v10361_v21 = vcombine.high %v381_v16, %v389_v17  ;;  %v396_v22 = vld [vmem:[#allocation5 + $0x180] sm:$0xff]  ;;  %v397_v24 = vld [vmem:[#allocation5 + $0x188] sm:$0xff]  ;;  %v10358_v26 = vcombine.low %v380_v13, %v388_v15  ;;  %p13142_p3 = scmp.lt.s32.totalorder %s16754_s8, %s13140_s30  ;;  %p13143_p7 = scmp.lt.s32.totalorder %s13141_s9, %s13135_s16 }
  0xa7   : > { %v404_v23 = vld [vmem:[#allocation5 + $0x1c0] sm:$0xff]  ;;  %v405_v25 = vld [vmem:[#allocation5 + $0x1c8] sm:$0xff]  ;;  %v10360_v27 = vcombine.low %v381_v16, %v389_v17  ;;  %p13138_p13 = pneg %p13137_p8 }
  0xa8   : > { %v10375_v28 = vcombine.high %v396_v22, %v404_v23  ;;  %v10377_v29 = vcombine.high %v397_v24, %v405_v25  ;;  %v412_v30 = vld [vmem:[#allocation5 + $0x200] sm:$0xff]  ;;  %v413_v32 = vld [vmem:[#allocation5 + $0x208] sm:$0xff]  ;;  %v10374_v34 = vcombine.low %v396_v22, %v404_v23  ;;  %v10376_v35 = vcombine.low %v397_v24, %v405_v25  ;;  %p13144_p9 = por %p13143_p7, %p13142_p3 }
  0xa9   : > { %3507 = vmatpush1.bf16.msra.mxu0 %v10342_v18  ;;  %3653 = vmatpush1.bf16.msra.mxu1 %v10344_v19  ;;  %v420_v31 = vld [vmem:[#allocation5 + $0x240] sm:$0xff]  ;;  %v421_v33 = vld [vmem:[#allocation5 + $0x248] sm:$0xff] }
  0xaa   : > { %3508 = vmatprep.subr.bf16.mxu0 %v10359_v20  ;;  %3654 = vmatprep.subr.bf16.mxu1 %v10361_v21  ;;  %v10391_v36 = vcombine.high %v412_v30, %v420_v31  ;;  %v10393_v37 = vcombine.high %v413_v32, %v421_v33  ;;  %v428_v38 = vld [vmem:[#allocation5 + $0x280] sm:$0xff]  ;;  %v429_v40 = vld [vmem:[#allocation5 + $0x288] sm:$0xff]  ;;  %v10390_v42 = vcombine.low %v412_v30, %v420_v31  ;;  %p13145_p12 = pnand %p13144_p9, %p13138_p13 }
  0xab   : > { %v436_v39 = vld [vmem:[#allocation5 + $0x2c0] sm:$0xff]  ;;  %v437_v41 = vld [vmem:[#allocation5 + $0x2c8] sm:$0xff]  ;;  %v10392_v43 = vcombine.low %v413_v32, %v421_v33 }
  0xac   : > { %v10407_v44 = vcombine.high %v428_v38, %v436_v39  ;;  %v10409_v45 = vcombine.high %v429_v40, %v437_v41  ;;  %v444_v46 = vld [vmem:[#allocation5 + $0x300] sm:$0xff]  ;;  %v445_v48 = vld [vmem:[#allocation5 + $0x308] sm:$0xff]  ;;  %v10406_v50 = vcombine.low %v428_v38, %v436_v39  ;;  %v10408_v51 = vcombine.low %v429_v40, %v437_v41 }
  0xad   : > { %3509 = vmatpush1.bf16.msra.mxu0 %v10358_v26  ;;  %3655 = vmatpush1.bf16.msra.mxu1 %v10360_v27  ;;  %v452_v47 = vld [vmem:[#allocation5 + $0x340] sm:$0xff]  ;;  %v453_v49 = vld [vmem:[#allocation5 + $0x348] sm:$0xff] }
  0xae   : > { %3510 = vmatprep.subr.bf16.mxu0 %v10375_v28  ;;  %3656 = vmatprep.subr.bf16.mxu1 %v10377_v29  ;;  %v10423_v52 = vcombine.high %v444_v46, %v452_v47  ;;  %v301_v53 = vld [vmem:[%s13468_s7 + $0x8] sm:$0xff]  ;;  %v10425_v55 = vcombine.high %v445_v48, %v453_v49  ;;  %v460_v56 = vld [vmem:[#allocation5 + $0x380] sm:$0xff]  ;;  %v10422_v61 = vcombine.low %v444_v46, %v452_v47 }
  0xaf   : > { %v305_v54 = vld [vmem:[%s13468_s7 + $0x28] sm:$0xff]  ;;  %v468_v57 = vld [vmem:[#allocation5 + $0x3c0] sm:$0xff]  ;;  %v10424_v62 = vcombine.low %v445_v48, %v453_v49 }
  0xb0   : > { %v13484_v58 = vpack.c.bf16 %v305_v54, %v301_v53  ;;  %v461_v59 = vld [vmem:[#allocation5 + $0x388] sm:$0xff]  ;;  %v10439_v63 = vcombine.high %v460_v56, %v468_v57  ;;  %v476_v1 = vld [vmem:[#allocation5 + $0x400] sm:$0xff]  ;;  %v10438_v5 = vcombine.low %v460_v56, %v468_v57 }
  0xb1   : > { %3511 = vmatpush1.bf16.msra.mxu0 %v10374_v34  ;;  %3657 = vmatpush1.bf16.msra.mxu1 %v10376_v35  ;;  %v469_v60 = vld [vmem:[#allocation5 + $0x3c8] sm:$0xff]  ;;  %v484_v2 = vld [vmem:[#allocation5 + $0x440] sm:$0xff] }
  0xb2   : > { %3512 = vmatprep.subr.bf16.mxu0 %v10391_v36  ;;  %3658 = vmatprep.subr.bf16.mxu1 %v10393_v37  ;;  %17108 = vst [vmem:[#allocation16_spill] sm:$0xff] %v13484_v58  ;;  %v10441_v0 = vcombine.high %v461_v59, %v469_v60  ;;  %v477_v3 = vld [vmem:[#allocation5 + $0x408] sm:$0xff]  ;;  %v10440_v6 = vcombine.low %v461_v59, %v469_v60  ;;  %v492_v9 = vld [vmem:[#allocation5 + $0x480] sm:$0xff] }
  0xb3   : > { %3536 = vmatprep.mubr.bf16.mxu0 %v13484_v58  ;;  %3682 = vmatprep.mubr.bf16.mxu1 %v13484_v58  ;;  %v485_v4 = vld [vmem:[#allocation5 + $0x448] sm:$0xff]  ;;  %v10455_v7 = vcombine.high %v476_v1, %v484_v2  ;;  %v500_v10 = vld [vmem:[#allocation5 + $0x4c0] sm:$0xff]  ;;  %v10454_v13 = vcombine.low %v476_v1, %v484_v2 }
  0xb4   : > { %v10457_v8 = vcombine.high %v477_v3, %v485_v4  ;;  %v493_v11 = vld [vmem:[#allocation5 + $0x488] sm:$0xff]  ;;  %v10456_v14 = vcombine.low %v477_v3, %v485_v4  ;;  %v10471_v15 = vcombine.high %v492_v9, %v500_v10  ;;  %v508_v17 = vld [vmem:[#allocation5 + $0x500] sm:$0xff]  ;;  %v10470_v21 = vcombine.low %v492_v9, %v500_v10 }
  0xb5   : > { %3513 = vmatpush1.bf16.msra.mxu0 %v10390_v42  ;;  %3659 = vmatpush1.bf16.msra.mxu1 %v10392_v43  ;;  %v501_v12 = vld [vmem:[#allocation5 + $0x4c8] sm:$0xff]  ;;  %v516_v18 = vld [vmem:[#allocation5 + $0x540] sm:$0xff] }
  0xb6   : > { %3514 = vmatprep.subr.bf16.mxu0 %v10407_v44  ;;  %3660 = vmatprep.subr.bf16.mxu1 %v10409_v45  ;;  %v10473_v16 = vcombine.high %v493_v11, %v501_v12  ;;  %v509_v19 = vld [vmem:[#allocation5 + $0x508] sm:$0xff]  ;;  %v10472_v22 = vcombine.low %v493_v11, %v501_v12  ;;  %v10487_v23 = vcombine.high %v508_v17, %v516_v18  ;;  %v524_v25 = vld [vmem:[#allocation5 + $0x580] sm:$0xff] }
  0xb7   : > { %v517_v20 = vld [vmem:[#allocation5 + $0x548] sm:$0xff]  ;;  %v532_v26 = vld [vmem:[#allocation5 + $0x5c0] sm:$0xff]  ;;  %v10486_v29 = vcombine.low %v508_v17, %v516_v18 }
  0xb8   : > { %v10489_v24 = vcombine.high %v509_v19, %v517_v20  ;;  %v525_v27 = vld [vmem:[#allocation5 + $0x588] sm:$0xff]  ;;  %v10488_v30 = vcombine.low %v509_v19, %v517_v20  ;;  %v10503_v31 = vcombine.high %v524_v25, %v532_v26  ;;  %v540_v33 = vld [vmem:[#allocation5 + $0x600] sm:$0xff]  ;;  %v10502_v37 = vcombine.low %v524_v25, %v532_v26 }
  0xb9   : > { %3515 = vmatpush1.bf16.msra.mxu0 %v10406_v50  ;;  %3661 = vmatpush1.bf16.msra.mxu1 %v10408_v51  ;;  %v533_v28 = vld [vmem:[#allocation5 + $0x5c8] sm:$0xff]  ;;  %v548_v34 = vld [vmem:[#allocation5 + $0x640] sm:$0xff] }
  0xba   : > { %3516 = vmatprep.subr.bf16.mxu0 %v10423_v52  ;;  %3662 = vmatprep.subr.bf16.mxu1 %v10425_v55  ;;  %v10505_v32 = vcombine.high %v525_v27, %v533_v28  ;;  %v541_v35 = vld [vmem:[#allocation5 + $0x608] sm:$0xff]  ;;  %v10504_v38 = vcombine.low %v525_v27, %v533_v28  ;;  %v10519_v39 = vcombine.high %v540_v33, %v548_v34  ;;  %v556_v41 = vld [vmem:[#allocation5 + $0x680] sm:$0xff] }
  0xbb   : > { %v549_v36 = vld [vmem:[#allocation5 + $0x648] sm:$0xff]  ;;  %v564_v42 = vld [vmem:[#allocation5 + $0x6c0] sm:$0xff]  ;;  %v10518_v45 = vcombine.low %v540_v33, %v548_v34 }
  0xbc   : > { %v10521_v40 = vcombine.high %v541_v35, %v549_v36  ;;  %v557_v43 = vld [vmem:[#allocation5 + $0x688] sm:$0xff]  ;;  %v10520_v46 = vcombine.low %v541_v35, %v549_v36  ;;  %v10535_v47 = vcombine.high %v556_v41, %v564_v42  ;;  %v572_v49 = vld [vmem:[#allocation5 + $0x700] sm:$0xff]  ;;  %v10534_v53 = vcombine.low %v556_v41, %v564_v42 }
  0xbd   : > { %3517 = vmatpush1.bf16.msra.mxu0 %v10422_v61  ;;  %3663 = vmatpush1.bf16.msra.mxu1 %v10424_v62  ;;  %v565_v44 = vld [vmem:[#allocation5 + $0x6c8] sm:$0xff]  ;;  %v580_v50 = vld [vmem:[#allocation5 + $0x740] sm:$0xff] }
  0xbe   : > { %3518 = vmatprep.subr.bf16.mxu0 %v10439_v63  ;;  %3664 = vmatprep.subr.bf16.mxu1 %v10441_v0  ;;  %v10537_v48 = vcombine.high %v557_v43, %v565_v44  ;;  %v573_v51 = vld [vmem:[#allocation5 + $0x708] sm:$0xff]  ;;  %v10536_v54 = vcombine.low %v557_v43, %v565_v44  ;;  %v10551_v55 = vcombine.high %v572_v49, %v580_v50  ;;  %v588_v57 = vld [vmem:[#allocation5 + $0x780] sm:$0xff] }
  0xbf   : > { %v581_v52 = vld [vmem:[#allocation5 + $0x748] sm:$0xff]  ;;  %v596_v59 = vld [vmem:[#allocation5 + $0x7c0] sm:$0xff]  ;;  %v10550_v62 = vcombine.low %v572_v49, %v580_v50 }
  0xc0   : > { %v10553_v56 = vcombine.high %v573_v51, %v581_v52  ;;  %v589_v60 = vld [vmem:[#allocation5 + $0x788] sm:$0xff]  ;;  %v10552_v63 = vcombine.low %v573_v51, %v581_v52  ;;  %v10567_v0 = vcombine.high %v588_v57, %v596_v59  ;;  %v604_v2 = vld [vmem:[#allocation5 + $0x800] sm:$0xff] }
  0xc1   : > { %3519 = vmatpush1.bf16.msra.mxu0 %v10438_v5  ;;  %3665 = vmatpush1.bf16.msra.mxu1 %v10440_v6  ;;  %v597_v61 = vld [vmem:[#allocation5 + $0x7c8] sm:$0xff]  ;;  %v612_v3 = vld [vmem:[#allocation5 + $0x840] sm:$0xff]  ;;  %v10566_v6 = vcombine.low %v588_v57, %v596_v59 }
  0xc2   : > { %3520 = vmatprep.subr.bf16.mxu0 %v10455_v7  ;;  %3666 = vmatprep.subr.bf16.mxu1 %v10457_v8  ;;  %v10569_v1 = vcombine.high %v589_v60, %v597_v61  ;;  %v605_v4 = vld [vmem:[#allocation5 + $0x808] sm:$0xff]  ;;  %v300_v7 = vld [vmem:[%s13468_s7] sm:$0xff]  ;;  %v10568_v9 = vcombine.low %v589_v60, %v597_v61  ;;  %v10583_v10 = vcombine.high %v604_v2, %v612_v3 }
  0xc3   : > { %v613_v5 = vld [vmem:[#allocation5 + $0x848] sm:$0xff]  ;;  %v304_v8 = vld [vmem:[%s13468_s7 + $0x20] sm:$0xff]  ;;  %v10582_v19 = vcombine.low %v604_v2, %v612_v3 }
  0xc4   : > { %v10585_v11 = vcombine.high %v605_v4, %v613_v5  ;;  %v620_v12 = vld [vmem:[#allocation5 + $0x880] sm:$0xff]  ;;  %v309_v17 = vld [vmem:[%s13468_s7 + $0x48] sm:$0xff]  ;;  %v10584_v20 = vcombine.low %v605_v4, %v613_v5 }
  0xc5   : > { %3521 = vmatpush1.bf16.msra.mxu0 %v10454_v13  ;;  %3667 = vmatpush1.bf16.msra.mxu1 %v10456_v14  ;;  %v628_v13 = vld [vmem:[#allocation5 + $0x8c0] sm:$0xff]  ;;  %v621_v14 = vld [vmem:[#allocation5 + $0x888] sm:$0xff] }
  0xc6   : > { %3522 = vmatprep.subr.bf16.mxu0 %v10471_v15  ;;  %3668 = vmatprep.subr.bf16.mxu1 %v10473_v16  ;;  %v13490_v15 = vpack.c.bf16 %v304_v8, %v300_v7  ;;  %v629_v16 = vld [vmem:[#allocation5 + $0x8c8] sm:$0xff]  ;;  %v10598_v28 = vcombine.low %v620_v12, %v628_v13  ;;  %v652_v34 = vld [vmem:[#allocation5 + $0x980] sm:$0xff] }
  0xc7   : > { %v313_v18 = vld [vmem:[%s13468_s7 + $0x68] sm:$0xff]  ;;  %v660_v35 = vld [vmem:[#allocation5 + $0x9c0] sm:$0xff] }
  0xc8   : > { %17109 = vst [vmem:[#allocation17_spill] sm:$0xff] %v13490_v15  ;;  %v13494_v25 = vpack.c.bf16 %v313_v18, %v309_v17  ;;  %v637_v26 = vld [vmem:[#allocation5 + $0x908] sm:$0xff]  ;;  %v10631_v43 = vcombine.high %v652_v34, %v660_v35  ;;  %v10630_v50 = vcombine.low %v652_v34, %v660_v35  ;;  %v316_v51 = vld [vmem:[%s13468_s7 + $0x80] sm:$0xff] }
  0xc9   : > { %3523 = vmatpush1.bf16.msra.mxu0 %v10470_v21  ;;  %3669 = vmatpush1.bf16.msra.mxu1 %v10472_v22  ;;  %v10599_v21 = vcombine.high %v620_v12, %v628_v13  ;;  %v10601_v22 = vcombine.high %v621_v14, %v629_v16  ;;  %v645_v27 = vld [vmem:[#allocation5 + $0x948] sm:$0xff]  ;;  %v320_v52 = vld [vmem:[%s13468_s7 + $0xa0] sm:$0xff] }
  0xca   : > { %3524 = vmatprep.subr.bf16.mxu0 %v10487_v23  ;;  %3670 = vmatprep.subr.bf16.mxu1 %v10489_v24  ;;  %v636_v23 = vld [vmem:[#allocation5 + $0x900] sm:$0xff]  ;;  %17110 = vst [vmem:[#allocation18_spill] sm:$0xff] %v13494_v25  ;;  %v10617_v33 = vcombine.high %v637_v26, %v645_v27  ;;  %v653_v36 = vld [vmem:[#allocation5 + $0x988] sm:$0xff]  ;;  %v10616_v42 = vcombine.low %v637_v26, %v645_v27 }
  0xcb   : > { %v644_v24 = vld [vmem:[#allocation5 + $0x940] sm:$0xff]  ;;  %v677_v49 = vld [vmem:[#allocation5 + $0xa48] sm:$0xff]  ;;  %v13514_v61 = vpack.c.bf16 %v320_v52, %v316_v51 }
  0xcc   : > { %v10614_v41 = vcombine.low %v636_v23, %v644_v24  ;;  %v692_v57 = vld [vmem:[#allocation5 + $0xac0] sm:$0xff]  ;;  %v685_v59 = vld [vmem:[#allocation5 + $0xa88] sm:$0xff] }
  0xcd   : > { %3525 = vmatpush1.bf16.msra.mxu0 %v10486_v29  ;;  %3671 = vmatpush1.bf16.msra.mxu1 %v10488_v30  ;;  %v308_v29 = vld [vmem:[%s13468_s7 + $0x40] sm:$0xff]  ;;  %v693_v60 = vld [vmem:[#allocation5 + $0xac8] sm:$0xff]  ;;  %17113 = vst [vmem:[#allocation21_spill] sm:$0xff] %v13514_v61 }
  0xce   : > { %3526 = vmatprep.subr.bf16.mxu0 %v10503_v31  ;;  %3672 = vmatprep.subr.bf16.mxu1 %v10505_v32  ;;  %v312_v30 = vld [vmem:[%s13468_s7 + $0x60] sm:$0xff]  ;;  %v10600_v31 = vcombine.low %v621_v14, %v629_v16  ;;  %v10615_v32 = vcombine.high %v636_v23, %v644_v24  ;;  %v701_v5 = vld [vmem:[#allocation5 + $0xb08] sm:$0xff]  ;;  %v10665_v7 = vcombine.high %v685_v59, %v693_v60 }
  0xcf   : > { %v708_v4 = vld [vmem:[#allocation5 + $0xb40] sm:$0xff]  ;;  %v10664_v14 = vcombine.low %v685_v59, %v693_v60  ;;  %v717_v17 = vld [vmem:[#allocation5 + $0xb88] sm:$0xff] }
  0xd0   : > { %v716_v12 = vld [vmem:[#allocation5 + $0xb80] sm:$0xff]  ;;  %v725_v18 = vld [vmem:[#allocation5 + $0xbc8] sm:$0xff] }
  0xd1   : > { %3527 = vmatpush1.bf16.msra.mxu0 %v10502_v37  ;;  %3673 = vmatpush1.bf16.msra.mxu1 %v10504_v38  ;;  %v661_v37 = vld [vmem:[#allocation5 + $0x9c8] sm:$0xff]  ;;  %v13502_v38 = vpack.c.bf16 %v312_v30, %v308_v29  ;;  %v724_v13 = vld [vmem:[#allocation5 + $0xbc0] sm:$0xff]  ;;  %v10697_v30 = vcombine.high %v717_v17, %v725_v18  ;;  %v10696_v34 = vcombine.low %v717_v17, %v725_v18 }
  0xd2   : > { %3528 = vmatprep.subr.bf16.mxu0 %v10519_v39  ;;  %3674 = vmatprep.subr.bf16.mxu1 %v10521_v40  ;;  %v317_v39 = vld [vmem:[%s13468_s7 + $0x88] sm:$0xff]  ;;  %v10633_v44 = vcombine.high %v653_v36, %v661_v37  ;;  %v10695_v26 = vcombine.high %v716_v12, %v724_v13  ;;  %v732_v27 = vld [vmem:[#allocation5 + $0xc00] sm:$0xff] }
  0xd3   : > { %17111 = vst [vmem:[#allocation19_spill] sm:$0xff] %v13502_v38  ;;  %v321_v40 = vld [vmem:[%s13468_s7 + $0xa8] sm:$0xff]  ;;  %v828_v18 = vld [vmem:[#allocation5 + $0xf00] sm:$0xff] }
  0xd4   : > { %v733_v29 = vld [vmem:[#allocation5 + $0xc08] sm:$0xff] }
  0xd5   : > { %3529 = vmatpush1.bf16.msra.mxu0 %v10518_v45  ;;  %3675 = vmatpush1.bf16.msra.mxu1 %v10520_v46  ;;  %v668_v45 = vld [vmem:[#allocation5 + $0xa00] sm:$0xff]  ;;  %v789_v59 = vld [vmem:[#allocation5 + $0xdc8] sm:$0xff] }
  0xd6   : > { %3530 = vmatprep.subr.bf16.mxu0 %v10535_v47  ;;  %3676 = vmatprep.subr.bf16.mxu1 %v10537_v48  ;;  %v676_v46 = vld [vmem:[#allocation5 + $0xa40] sm:$0xff]  ;;  %v13506_v47 = vpack.c.bf16 %v321_v40, %v317_v39  ;;  %v669_v48 = vld [vmem:[#allocation5 + $0xa08] sm:$0xff] }
  0xd7   : > { %v10648_v2 = vcombine.low %v669_v48, %v677_v49  ;;  %v749_v39 = vld [vmem:[#allocation5 + $0xc88] sm:$0xff] }
  0xd8   : > { %17112 = vst [vmem:[#allocation20_spill] sm:$0xff] %v13506_v47 }
  0xd9   : > { %3531 = vmatpush1.bf16.msra.mxu0 %v10534_v53  ;;  %3677 = vmatpush1.bf16.msra.mxu1 %v10536_v54  ;;  %v10632_v53 = vcombine.low %v653_v36, %v661_v37  ;;  %v10647_v54 = vcombine.high %v668_v45, %v676_v46  ;;  %v748_v36 = vld [vmem:[#allocation5 + $0xc80] sm:$0xff] }
  0xda   : > { %3532 = vmatprep.subr.bf16.mxu0 %v10551_v55  ;;  %3678 = vmatprep.subr.bf16.mxu1 %v10553_v56  ;;  %v10649_v55 = vcombine.high %v669_v48, %v677_v49  ;;  %v684_v56 = vld [vmem:[#allocation5 + $0xa80] sm:$0xff]  ;;  %v765_v48 = vld [vmem:[#allocation5 + $0xd08] sm:$0xff] }
  0xdb   : > { %v10663_v3 = vcombine.high %v684_v56, %v692_v57  ;;  %v756_v37 = vld [vmem:[#allocation5 + $0xcc0] sm:$0xff] }
  0xdc   : > { %v10726_v51 = vcombine.low %v748_v36, %v756_v37 }
  0xdd   : > { %3533 = vmatpush1.bf16.msra.mxu0 %v10550_v62  ;;  %3679 = vmatpush1.bf16.msra.mxu1 %v10552_v63  ;;  %v325_v62 = vld [vmem:[%s13468_s7 + $0xc8] sm:$0xff] }
  0xde   : > { %3534 = vmatprep.subr.bf16.mxu0 %v10567_v0  ;;  %3680 = vmatprep.subr.bf16.mxu1 %v10569_v1  ;;  %v329_v63 = vld [vmem:[%s13468_s7 + $0xe8] sm:$0xff]  ;;  %v10646_v0 = vcombine.low %v668_v45, %v676_v46  ;;  %v700_v1 = vld [vmem:[#allocation5 + $0xb00] sm:$0xff] }
  0xdf   : > { %v13518_v8 = vpack.c.bf16 %v329_v63, %v325_v62  ;;  %v10679_v16 = vcombine.high %v700_v1, %v708_v4  ;;  %v10678_v23 = vcombine.low %v700_v1, %v708_v4  ;;  %v764_v45 = vld [vmem:[#allocation5 + $0xd00] sm:$0xff]  ;;  %v805_v4 = vld [vmem:[#allocation5 + $0xe48] sm:$0xff] }
  0xe0   : > { %v772_v46 = vld [vmem:[#allocation5 + $0xd40] sm:$0xff] }
  0xe1   : > { %3535 = vmatpush1.bf16.msra.mxu0 %v10566_v6  ;;  %3681 = vmatpush1.bf16.msra.mxu1 %v10568_v9  ;;  %v709_v6 = vld [vmem:[#allocation5 + $0xb48] sm:$0xff]  ;;  %17114 = vst [vmem:[#allocation22_spill] sm:$0xff] %v13518_v8  ;;  %v324_v9 = vld [vmem:[%s13468_s7 + $0xc0] sm:$0xff]  ;;  %v10742_v60 = vcombine.low %v764_v45, %v772_v46 }
  0xe2   : > { %3577 = vmatprep.subr.bf16.mxu0 %v10583_v10  ;;  %3723 = vmatprep.subr.bf16.mxu1 %v10585_v11  ;;  %v328_v10 = vld [vmem:[%s13468_s7 + $0xe0] sm:$0xff]  ;;  %v10662_v11 = vcombine.low %v684_v56, %v692_v57  ;;  %v10680_v24 = vcombine.low %v701_v5, %v709_v6  ;;  %v781_v56 = vld [vmem:[#allocation5 + $0xd88] sm:$0xff] }
  0xe3   : > { %v804_v1 = vld [vmem:[#allocation5 + $0xe40] sm:$0xff] }
  0xe4   : > { %3537 = vmatmul.mubr.bf16.vlgmr.msra.gmra.mrb[0].mxu0 %v13490_v15  ;;  %3683 = vmatmul.mubr.bf16.vlgmr.msra.gmra.mrb[0].mxu1 %v13490_v15 }
  0xe5   : > { %3578 = vmatpush1.bf16.msra.mxu0 %v10582_v19  ;;  %3724 = vmatpush1.bf16.msra.mxu1 %v10584_v20  ;;  %v303_v19 = vld [vmem:[%s13468_s7 + $0x18] sm:$0xff]  ;;  %v10681_v20 = vcombine.high %v701_v5, %v709_v6  ;;  %v10760_v6 = vcombine.low %v781_v56, %v789_v59 }
  0xe6   : > { %3579 = vmatprep.subr.bf16.mxu0 %v10599_v21  ;;  %3725 = vmatprep.subr.bf16.mxu1 %v10601_v22  ;;  %v307_v21 = vld [vmem:[%s13468_s7 + $0x38] sm:$0xff]  ;;  %v13528_v22 = vpack.c.bf16 %v328_v10, %v324_v9  ;;  %v812_v9 = vld [vmem:[#allocation5 + $0xe80] sm:$0xff] }
  0xe7   : > { %3546 = vmatprep.mubr.bf16.mxu0 %v13494_v25  ;;  %3692 = vmatprep.mubr.bf16.mxu1 %v13494_v25  ;;  %v820_v10 = vld [vmem:[#allocation5 + $0xec0] sm:$0xff] }
  0xe8   : > { %17115 = vst [vmem:[#allocation23_spill] sm:$0xff] %v13528_v22  ;;  %v10791_v17 = vcombine.high %v812_v9, %v820_v10 }
  0xe9   : > { %3580 = vmatpush1.bf16.msra.mxu0 %v10598_v28  ;;  %3726 = vmatpush1.bf16.msra.mxu1 %v10600_v31  ;;  %v740_v28 = vld [vmem:[#allocation5 + $0xc40] sm:$0xff]  ;;  %v741_v31 = vld [vmem:[#allocation5 + $0xc48] sm:$0xff] }
  0xea   : > { %3581 = vmatprep.subr.bf16.mxu0 %v10615_v32  ;;  %3727 = vmatprep.subr.bf16.mxu1 %v10617_v33  ;;  %v13530_v32 = vpack.c.bf16 %v307_v21, %v303_v19  ;;  %v10694_v33 = vcombine.low %v716_v12, %v724_v13  ;;  %v10711_v35 = vcombine.high %v732_v27, %v740_v28  ;;  %v821_v13 = vld [vmem:[#allocation5 + $0xec8] sm:$0xff]  ;;  %v836_v19 = vld [vmem:[#allocation5 + $0xf40] sm:$0xff] }
  0xeb   : > { %v10713_v40 = vcombine.high %v733_v29, %v741_v31 }
  0xec   : > { %3547 = vmatmul.mubr.bf16.gmra.mrb[4].mxu0 %v13502_v38  ;;  %3693 = vmatmul.mubr.bf16.gmra.mrb[4].mxu1 %v13502_v38  ;;  %17116 = vst [vmem:[#allocation24_spill] sm:$0xff] %v13530_v32 }
  0xed   : > { %3582 = vmatpush1.bf16.msra.mxu0 %v10614_v41  ;;  %3728 = vmatpush1.bf16.msra.mxu1 %v10616_v42  ;;  %v757_v41 = vld [vmem:[#allocation5 + $0xcc8] sm:$0xff]  ;;  %v10710_v42 = vcombine.low %v732_v27, %v740_v28  ;;  %v10807_v27 = vcombine.high %v828_v18, %v836_v19  ;;  %v844_v28 = vld [vmem:[#allocation5 + $0xf80] sm:$0xff] }
  0xee   : > { %3583 = vmatprep.subr.bf16.mxu0 %v10631_v43  ;;  %3729 = vmatprep.subr.bf16.mxu1 %v10633_v44  ;;  %v10712_v43 = vcombine.low %v733_v29, %v741_v31  ;;  %v10727_v44 = vcombine.high %v748_v36, %v756_v37  ;;  %v10729_v49 = vcombine.high %v749_v39, %v757_v41  ;;  %v852_v29 = vld [vmem:[#allocation5 + $0xfc0] sm:$0xff]  ;;  %v350_v37 = vld [vmem:[#allocation5 + $0x10] sm:$0xff] }
  0xef   : > { %3556 = vmatprep.mubr.bf16.mxu0 %v13506_v47  ;;  %3702 = vmatprep.mubr.bf16.mxu1 %v13506_v47  ;;  %v10728_v52 = vcombine.low %v749_v39, %v757_v41  ;;  %v10823_v36 = vcombine.high %v844_v28, %v852_v29  ;;  %v358_v39 = vld [vmem:[#allocation5 + $0x50] sm:$0xff] }
  0xf1   : > { %3584 = vmatpush1.bf16.msra.mxu0 %v10630_v50  ;;  %3730 = vmatpush1.bf16.msra.mxu1 %v10632_v53  ;;  %v773_v50 = vld [vmem:[#allocation5 + $0xd48] sm:$0xff]  ;;  %v10743_v53 = vcombine.high %v764_v45, %v772_v46  ;;  %v10822_v45 = vcombine.low %v844_v28, %v852_v29  ;;  %v366_v46 = vld [vmem:[#allocation5 + $0x90] sm:$0xff] }
  0xf2   : > { %3585 = vmatprep.subr.bf16.mxu0 %v10647_v54  ;;  %3731 = vmatprep.subr.bf16.mxu1 %v10649_v55  ;;  %v780_v54 = vld [vmem:[#allocation5 + $0xd80] sm:$0xff]  ;;  %v10745_v57 = vcombine.high %v765_v48, %v773_v50  ;;  %v10744_v62 = vcombine.low %v765_v48, %v773_v50  ;;  %v374_v48 = vld [vmem:[#allocation5 + $0xd0] sm:$0xff]  ;;  %v10331_v50 = vcombine.high %v350_v37, %v358_v39 }
  0xf3   : > { %v788_v55 = vld [vmem:[#allocation5 + $0xdc0] sm:$0xff]  ;;  %v318_v29 = vld [vmem:[%s13468_s7 + $0x90] sm:$0xff] }
  0xf4   : > { %3557 = vmatmul.mubr.bf16.gmra.mrb[8].mxu0 %v13514_v61  ;;  %3703 = vmatmul.mubr.bf16.gmra.mrb[8].mxu1 %v13514_v61  ;;  %v10759_v63 = vcombine.high %v780_v54, %v788_v55  ;;  %v10758_v5 = vcombine.low %v780_v54, %v788_v55  ;;  %v315_v55 = vld [vmem:[%s13468_s7 + $0x78] sm:$0xff] }
  0xf5   : > { %3586 = vmatpush1.bf16.msra.mxu0 %v10646_v0  ;;  %3732 = vmatpush1.bf16.msra.mxu1 %v10648_v2  ;;  %v796_v0 = vld [vmem:[#allocation5 + $0xe00] sm:$0xff]  ;;  %v797_v2 = vld [vmem:[#allocation5 + $0xe08] sm:$0xff] }
  0xf6   : > { %3587 = vmatprep.subr.bf16.mxu0 %v10663_v3  ;;  %3733 = vmatprep.subr.bf16.mxu1 %v10665_v7  ;;  %v10761_v3 = vcombine.high %v781_v56, %v789_v59  ;;  %v10775_v7 = vcombine.high %v796_v0, %v804_v1  ;;  %v10777_v12 = vcombine.high %v797_v2, %v805_v4 }
  0xf7   : > { %3566 = vmatprep.mubr.bf16.mxu0 %v13518_v8  ;;  %3712 = vmatprep.mubr.bf16.mxu1 %v13518_v8 }
  0xf9   : > { %3588 = vmatpush1.bf16.msra.mxu0 %v10662_v11  ;;  %3734 = vmatpush1.bf16.msra.mxu1 %v10664_v14  ;;  %v813_v11 = vld [vmem:[#allocation5 + $0xe88] sm:$0xff]  ;;  %v10774_v14 = vcombine.low %v796_v0, %v804_v1  ;;  %v383_v0 = vld [vmem:[#allocation5 + $0x118] sm:$0xff] }
  0xfa   : > { %3589 = vmatprep.subr.bf16.mxu0 %v10679_v16  ;;  %3735 = vmatprep.subr.bf16.mxu1 %v10681_v20  ;;  %v10776_v16 = vcombine.low %v797_v2, %v805_v4  ;;  %v829_v20 = vld [vmem:[#allocation5 + $0xf08] sm:$0xff]  ;;  %v10793_v21 = vcombine.high %v813_v11, %v821_v13  ;;  %v314_v4 = vld [vmem:[%s13468_s7 + $0x70] sm:$0xff] }
  0xfc   : > { %3567 = vmatmul.mubr.bf16.gmra.mrb[12].mxu0 %v13528_v22  ;;  %3713 = vmatmul.mubr.bf16.gmra.mrb[12].mxu1 %v13528_v22 }
  0xfd   : > { %3590 = vmatpush1.bf16.msra.mxu0 %v10678_v23  ;;  %3736 = vmatpush1.bf16.msra.mxu1 %v10680_v24  ;;  %v837_v23 = vld [vmem:[#allocation5 + $0xf48] sm:$0xff]  ;;  %v10790_v24 = vcombine.low %v812_v9, %v820_v10  ;;  %v406_v9 = vld [vmem:[#allocation5 + $0x1d0] sm:$0xff] }
  0xfe   : > { %3591 = vmatprep.subr.bf16.mxu0 %v10695_v26  ;;  %3737 = vmatprep.subr.bf16.mxu1 %v10697_v30  ;;  %v10792_v26 = vcombine.low %v813_v11, %v821_v13  ;;  %v845_v30 = vld [vmem:[#allocation5 + $0xf88] sm:$0xff]  ;;  %v10809_v31 = vcombine.high %v829_v20, %v837_v23  ;;  %v407_v13 = vld [vmem:[#allocation5 + $0x1d8] sm:$0xff] }
  0xff   : > { %3609 = vmatprep.mubr.bf16.mxu0 %v13530_v32  ;;  %3755 = vmatprep.mubr.bf16.mxu1 %v13530_v32 }
 0x101   : > { %3592 = vmatpush1.bf16.msra.mxu0 %v10694_v33  ;;  %3738 = vmatpush1.bf16.msra.mxu1 %v10696_v34  ;;  %v853_v33 = vld [vmem:[#allocation5 + $0xfc8] sm:$0xff]  ;;  %v10806_v34 = vcombine.low %v828_v18, %v836_v19 }
 0x102   : > { %3593 = vmatprep.subr.bf16.mxu0 %v10711_v35  ;;  %3739 = vmatprep.subr.bf16.mxu1 %v10713_v40  ;;  %v10808_v35 = vcombine.low %v829_v20, %v837_v23  ;;  %v351_v40 = vld [vmem:[#allocation5 + $0x18] sm:$0xff]  ;;  %v10825_v41 = vcombine.high %v845_v30, %v853_v33  ;;  %v414_v23 = vld [vmem:[#allocation5 + $0x210] sm:$0xff] }
 0x105   : > { %3594 = vmatpush1.bf16.msra.mxu0 %v10710_v42  ;;  %3740 = vmatpush1.bf16.msra.mxu1 %v10712_v43  ;;  %v302_v42 = vld [vmem:[%s13468_s7 + $0x10] sm:$0xff] }
 0x106   : > { %3595 = vmatprep.subr.bf16.mxu0 %v10727_v44  ;;  %3741 = vmatprep.subr.bf16.mxu1 %v10729_v49  ;;  %v306_v43 = vld [vmem:[%s13468_s7 + $0x30] sm:$0xff]  ;;  %v359_v44 = vld [vmem:[#allocation5 + $0x58] sm:$0xff]  ;;  %v10824_v49 = vcombine.low %v845_v30, %v853_v33 }
 0x107   : > { %v10333_v54 = vcombine.high %v351_v40, %v359_v44  ;;  %v13540_v56 = vpack.c.bf16 %v306_v43, %v302_v42  ;;  %v10332_v59 = vcombine.low %v351_v40, %v359_v44  ;;  %v322_v30 = vld [vmem:[%s13468_s7 + $0xb0] sm:$0xff]  ;;  %v439_v40 = vld [vmem:[#allocation5 + $0x2d8] sm:$0xff] }
 0x108   : > { %v331_v43 = vld [vmem:[%s13468_s7 + $0xf8] sm:$0xff]  ;;  %v13564_v44 = vpack.c.bf16 %v322_v30, %v318_v29 }
 0x109   : > { %3596 = vmatpush1.bf16.msra.mxu0 %v10726_v51  ;;  %3742 = vmatpush1.bf16.msra.mxu1 %v10728_v52  ;;  %v367_v51 = vld [vmem:[#allocation5 + $0x98] sm:$0xff]  ;;  %17117 = vst [vmem:[#allocation25_spill] sm:$0xff] %v13540_v56 }
 0x10a   : > { %3597 = vmatprep.subr.bf16.mxu0 %v10743_v53  ;;  %3743 = vmatprep.subr.bf16.mxu1 %v10745_v57  ;;  %v375_v52 = vld [vmem:[#allocation5 + $0xd8] sm:$0xff]  ;;  %v10330_v57 = vcombine.low %v350_v37, %v358_v39  ;;  %17121 = vst [vmem:[#allocation29_spill] sm:$0xff] %v13564_v44 }
 0x10b   : > { %v311_v53 = vld [vmem:[%s13468_s7 + $0x58] sm:$0xff]  ;;  %v10349_v1 = vcombine.high %v367_v51, %v375_v52  ;;  %v10348_v10 = vcombine.low %v367_v51, %v375_v52 }
 0x10c   : > { %v13542_v2 = vpack.c.bf16 %v315_v55, %v311_v53  ;;  %v431_v39 = vld [vmem:[#allocation5 + $0x298] sm:$0xff]  ;;  %v330_v55 = vld [vmem:[%s13468_s7 + $0xf0] sm:$0xff] }
 0x10d   : > { %3598 = vmatpush1.bf16.msra.mxu0 %v10742_v60  ;;  %3744 = vmatpush1.bf16.msra.mxu1 %v10744_v62  ;;  %v10347_v60 = vcombine.high %v366_v46, %v374_v48  ;;  %v382_v62 = vld [vmem:[#allocation5 + $0x110] sm:$0xff]  ;;  %v447_v51 = vld [vmem:[#allocation5 + $0x318] sm:$0xff]  ;;  %v10413_v52 = vcombine.high %v431_v39, %v439_v40 }
 0x10e   : > { %3599 = vmatprep.subr.bf16.mxu0 %v10759_v63  ;;  %3745 = vmatprep.subr.bf16.mxu1 %v10761_v3  ;;  %v390_v63 = vld [vmem:[#allocation5 + $0x150] sm:$0xff]  ;;  %17118 = vst [vmem:[#allocation26_spill] sm:$0xff] %v13542_v2 }
 0x10f   : > { %v310_v3 = vld [vmem:[%s13468_s7 + $0x50] sm:$0xff]  ;;  %v10363_v11 = vcombine.high %v382_v62, %v390_v63  ;;  %v10362_v19 = vcombine.low %v382_v62, %v390_v63 }
 0x110   : > { %v13552_v18 = vpack.c.bf16 %v314_v4, %v310_v3  ;;  %v462_v63 = vld [vmem:[#allocation5 + $0x390] sm:$0xff]  ;;  %v471_v4 = vld [vmem:[#allocation5 + $0x3d8] sm:$0xff] }
 0x111   : > { %3600 = vmatpush1.bf16.msra.mxu0 %v10758_v5  ;;  %3746 = vmatpush1.bf16.msra.mxu1 %v10760_v6  ;;  %v391_v5 = vld [vmem:[#allocation5 + $0x158] sm:$0xff]  ;;  %v10346_v6 = vcombine.low %v366_v46, %v374_v48 }
 0x112   : > { %3601 = vmatprep.subr.bf16.mxu0 %v10775_v7  ;;  %3747 = vmatprep.subr.bf16.mxu1 %v10777_v12  ;;  %v398_v7 = vld [vmem:[#allocation5 + $0x190] sm:$0xff]  ;;  %v399_v12 = vld [vmem:[#allocation5 + $0x198] sm:$0xff]  ;;  %17119 = vst [vmem:[#allocation27_spill] sm:$0xff] %v13552_v18  ;;  %v10364_v20 = vcombine.low %v383_v0, %v391_v5 }
 0x113   : > { %v10378_v33 = vcombine.low %v398_v7, %v406_v9 }
 0x115   : > { %3602 = vmatpush1.bf16.msra.mxu0 %v10774_v14  ;;  %3748 = vmatpush1.bf16.msra.mxu1 %v10776_v16  ;;  %v319_v14 = vld [vmem:[%s13468_s7 + $0x98] sm:$0xff]  ;;  %v10365_v16 = vcombine.high %v383_v0, %v391_v5  ;;  %v470_v0 = vld [vmem:[#allocation5 + $0x3d0] sm:$0xff] }
 0x116   : > { %3603 = vmatprep.subr.bf16.mxu0 %v10791_v17  ;;  %3749 = vmatprep.subr.bf16.mxu1 %v10793_v21  ;;  %v323_v17 = vld [vmem:[%s13468_s7 + $0xb8] sm:$0xff]  ;;  %v10379_v21 = vcombine.high %v398_v7, %v406_v9  ;;  %v10443_v9 = vcombine.high %v462_v63, %v470_v0 }
 0x117   : > { %v13554_v28 = vpack.c.bf16 %v323_v17, %v319_v14  ;;  %v487_v14 = vld [vmem:[#allocation5 + $0x458] sm:$0xff] }
 0x119   : > { %3604 = vmatpush1.bf16.msra.mxu0 %v10790_v24  ;;  %3750 = vmatpush1.bf16.msra.mxu1 %v10792_v26  ;;  %v422_v24 = vld [vmem:[#allocation5 + $0x250] sm:$0xff]  ;;  %v415_v26 = vld [vmem:[#allocation5 + $0x218] sm:$0xff]  ;;  %17120 = vst [vmem:[#allocation28_spill] sm:$0xff] %v13554_v28 }
 0x11a   : > { %3605 = vmatprep.subr.bf16.mxu0 %v10807_v27  ;;  %3751 = vmatprep.subr.bf16.mxu1 %v10809_v31  ;;  %v10381_v27 = vcombine.high %v399_v12, %v407_v13  ;;  %v423_v31 = vld [vmem:[#allocation5 + $0x258] sm:$0xff]  ;;  %v10395_v37 = vcombine.high %v414_v23, %v422_v24 }
 0x11b   : > { %v10397_v42 = vcombine.high %v415_v26, %v423_v31  ;;  %v10396_v46 = vcombine.low %v415_v26, %v423_v31  ;;  %v503_v26 = vld [vmem:[#allocation5 + $0x4d8] sm:$0xff]  ;;  %v510_v31 = vld [vmem:[#allocation5 + $0x510] sm:$0xff] }
 0x11d   : > { %3606 = vmatpush1.bf16.msra.mxu0 %v10806_v34  ;;  %3752 = vmatpush1.bf16.msra.mxu1 %v10808_v35  ;;  %v430_v34 = vld [vmem:[#allocation5 + $0x290] sm:$0xff] }
 0x11e   : > { %3607 = vmatprep.subr.bf16.mxu0 %v10823_v36  ;;  %3753 = vmatprep.subr.bf16.mxu1 %v10825_v41  ;;  %v438_v35 = vld [vmem:[#allocation5 + $0x2d0] sm:$0xff]  ;;  %v10380_v36 = vcombine.low %v399_v12, %v407_v13  ;;  %v327_v41 = vld [vmem:[%s13468_s7 + $0xd8] sm:$0xff] }
 0x11f   : > { %v10411_v48 = vcombine.high %v430_v34, %v438_v35  ;;  %v13566_v53 = vpack.c.bf16 %v331_v43, %v327_v41  ;;  %v479_v12 = vld [vmem:[#allocation5 + $0x418] sm:$0xff]  ;;  %v526_v41 = vld [vmem:[#allocation5 + $0x590] sm:$0xff] }
 0x120   : > { %v10460_v29 = vcombine.low %v479_v12, %v487_v14  ;;  %v527_v43 = vld [vmem:[#allocation5 + $0x598] sm:$0xff] }
 0x121   : > { %3608 = vmatpush1.bf16.msra.mxu0 %v10822_v45  ;;  %3754 = vmatpush1.bf16.msra.mxu1 %v10824_v49  ;;  %v10394_v45 = vcombine.low %v414_v23, %v422_v24  ;;  %v446_v49 = vld [vmem:[#allocation5 + $0x310] sm:$0xff]  ;;  %17122 = vst [vmem:[#allocation30_spill] sm:$0xff] %v13566_v53  ;;  %v495_v23 = vld [vmem:[#allocation5 + $0x498] sm:$0xff]  ;;  %v10461_v24 = vcombine.high %v479_v12, %v487_v14 }
 0x122   : > { %3796 = vmatprep.subr.bf16.mxu0 %v10331_v50  ;;  %3942 = vmatprep.subr.bf16.mxu1 %v10333_v54  ;;  %v454_v50 = vld [vmem:[#allocation5 + $0x350] sm:$0xff]  ;;  %v575_v12 = vld [vmem:[#allocation5 + $0x718] sm:$0xff] }
 0x123   : > { %v326_v54 = vld [vmem:[%s13468_s7 + $0xd0] sm:$0xff]  ;;  %v10427_v62 = vcombine.high %v446_v49, %v454_v50  ;;  %v583_v14 = vld [vmem:[#allocation5 + $0x758] sm:$0xff] }
 0x124   : > { %3610 = vmatmul.mubr.bf16.vlgmr.msra.gmra.mrb[0].mxu0 %v13540_v56  ;;  %3756 = vmatmul.mubr.bf16.vlgmr.msra.gmra.mrb[0].mxu1 %v13540_v56  ;;  %v13574_v5 = vpack.c.bf16 %v330_v55, %v326_v54  ;;  %v543_v54 = vld [vmem:[#allocation5 + $0x618] sm:$0xff] }
 0x125   : > { %3797 = vmatpush1.bf16.msra.mxu0 %v10330_v57  ;;  %3943 = vmatpush1.bf16.msra.mxu1 %v10332_v59  ;;  %v455_v57 = vld [vmem:[#allocation5 + $0x358] sm:$0xff]  ;;  %v10410_v59 = vcombine.low %v430_v34, %v438_v35  ;;  %v10477_v35 = vcombine.high %v495_v23, %v503_v26 }
 0x126   : > { %3798 = vmatprep.subr.bf16.mxu0 %v10347_v60  ;;  %3944 = vmatprep.subr.bf16.mxu1 %v10349_v1  ;;  %v10412_v60 = vcombine.low %v431_v39, %v439_v40  ;;  %v463_v1 = vld [vmem:[#allocation5 + $0x398] sm:$0xff]  ;;  %v10429_v3 = vcombine.high %v447_v51, %v455_v57  ;;  %17123 = vst [vmem:[#allocation31_spill] sm:$0xff] %v13574_v5 }
 0x127   : > { %3619 = vmatprep.mubr.bf16.mxu0 %v13542_v2  ;;  %3765 = vmatprep.mubr.bf16.mxu1 %v13542_v2  ;;  %v10428_v7 = vcombine.low %v447_v51, %v455_v57  ;;  %v10445_v13 = vcombine.high %v463_v1, %v471_v4  ;;  %v10444_v17 = vcombine.low %v463_v1, %v471_v4  ;;  %v511_v34 = vld [vmem:[#allocation5 + $0x518] sm:$0xff]  ;;  %v542_v51 = vld [vmem:[#allocation5 + $0x610] sm:$0xff] }
 0x128   : > { %v10476_v39 = vcombine.low %v495_v23, %v503_v26  ;;  %v551_v57 = vld [vmem:[#allocation5 + $0x658] sm:$0xff] }
 0x129   : > { %3799 = vmatpush1.bf16.msra.mxu0 %v10346_v6  ;;  %3945 = vmatpush1.bf16.msra.mxu1 %v10348_v10  ;;  %v10426_v6 = vcombine.low %v446_v49, %v454_v50  ;;  %v478_v10 = vld [vmem:[#allocation5 + $0x410] sm:$0xff]  ;;  %v559_v1 = vld [vmem:[#allocation5 + $0x698] sm:$0xff] }
 0x12a   : > { %3800 = vmatprep.subr.bf16.mxu0 %v10363_v11  ;;  %3946 = vmatprep.subr.bf16.mxu1 %v10365_v16  ;;  %v486_v11 = vld [vmem:[#allocation5 + $0x450] sm:$0xff]  ;;  %v10442_v16 = vcombine.low %v462_v63, %v470_v0  ;;  %v567_v4 = vld [vmem:[#allocation5 + $0x6d8] sm:$0xff] }
 0x12b   : > { %v558_v63 = vld [vmem:[#allocation5 + $0x690] sm:$0xff]  ;;  %v591_v23 = vld [vmem:[#allocation5 + $0x798] sm:$0xff] }
 0x12c   : > { %3620 = vmatmul.mubr.bf16.gmra.mrb[4].mxu0 %v13552_v18  ;;  %3766 = vmatmul.mubr.bf16.gmra.mrb[4].mxu1 %v13552_v18  ;;  %v566_v0 = vld [vmem:[#allocation5 + $0x6d0] sm:$0xff]  ;;  %v599_v26 = vld [vmem:[#allocation5 + $0x7d8] sm:$0xff] }
 0x12d   : > { %3801 = vmatpush1.bf16.msra.mxu0 %v10362_v19  ;;  %3947 = vmatpush1.bf16.msra.mxu1 %v10364_v20  ;;  %v10459_v19 = vcombine.high %v478_v10, %v486_v11  ;;  %v494_v20 = vld [vmem:[#allocation5 + $0x490] sm:$0xff] }
 0x12e   : > { %3802 = vmatprep.subr.bf16.mxu0 %v10379_v21  ;;  %3948 = vmatprep.subr.bf16.mxu1 %v10381_v27  ;;  %v502_v21 = vld [vmem:[#allocation5 + $0x4d0] sm:$0xff]  ;;  %v10458_v27 = vcombine.low %v478_v10, %v486_v11 }
 0x12f   : > { %3629 = vmatprep.mubr.bf16.mxu0 %v13554_v28  ;;  %3775 = vmatprep.mubr.bf16.mxu1 %v13554_v28  ;;  %v10475_v30 = vcombine.high %v494_v20, %v502_v21  ;;  %v574_v10 = vld [vmem:[#allocation5 + $0x710] sm:$0xff] }
 0x130   : > { %v582_v11 = vld [vmem:[#allocation5 + $0x750] sm:$0xff] }
 0x131   : > { %3803 = vmatpush1.bf16.msra.mxu0 %v10378_v33  ;;  %3949 = vmatpush1.bf16.msra.mxu1 %v10380_v36  ;;  %v518_v33 = vld [vmem:[#allocation5 + $0x550] sm:$0xff]  ;;  %v519_v36 = vld [vmem:[#allocation5 + $0x558] sm:$0xff] }
 0x132   : > { %3804 = vmatprep.subr.bf16.mxu0 %v10395_v37  ;;  %3950 = vmatprep.subr.bf16.mxu1 %v10397_v42  ;;  %v10474_v37 = vcombine.low %v494_v20, %v502_v21  ;;  %v10491_v40 = vcombine.high %v510_v31, %v518_v33  ;;  %v534_v42 = vld [vmem:[#allocation5 + $0x5d0] sm:$0xff]  ;;  %v10492_v49 = vcombine.low %v511_v34, %v519_v36 }
 0x133   : > { %v10507_v50 = vcombine.high %v526_v41, %v534_v42  ;;  %v590_v20 = vld [vmem:[#allocation5 + $0x790] sm:$0xff] }
 0x134   : > { %3630 = vmatmul.mubr.bf16.gmra.mrb[8].mxu0 %v13564_v44  ;;  %3776 = vmatmul.mubr.bf16.gmra.mrb[8].mxu1 %v13564_v44  ;;  %v598_v21 = vld [vmem:[#allocation5 + $0x7d0] sm:$0xff] }
 0x135   : > { %3805 = vmatpush1.bf16.msra.mxu0 %v10394_v45  ;;  %3951 = vmatpush1.bf16.msra.mxu1 %v10396_v46  ;;  %v10493_v45 = vcombine.high %v511_v34, %v519_v36  ;;  %v535_v46 = vld [vmem:[#allocation5 + $0x5d8] sm:$0xff] }
 0x136   : > { %3806 = vmatprep.subr.bf16.mxu0 %v10411_v48  ;;  %3952 = vmatprep.subr.bf16.mxu1 %v10413_v52  ;;  %v10490_v48 = vcombine.low %v510_v31, %v518_v33  ;;  %v550_v52 = vld [vmem:[#allocation5 + $0x650] sm:$0xff]  ;;  %v10509_v55 = vcombine.high %v527_v43, %v535_v46  ;;  %v607_v34 = vld [vmem:[#allocation5 + $0x818] sm:$0xff] }
 0x137   : > { %3639 = vmatprep.mubr.bf16.mxu0 %v13566_v53  ;;  %3785 = vmatprep.mubr.bf16.mxu1 %v13566_v53  ;;  %v606_v31 = vld [vmem:[#allocation5 + $0x810] sm:$0xff]  ;;  %v615_v36 = vld [vmem:[#allocation5 + $0x858] sm:$0xff] }
 0x138   : > { %v614_v33 = vld [vmem:[#allocation5 + $0x850] sm:$0xff] }
 0x139   : > { %3807 = vmatpush1.bf16.msra.mxu0 %v10410_v59  ;;  %3953 = vmatpush1.bf16.msra.mxu1 %v10412_v60  ;;  %v10506_v59 = vcombine.low %v526_v41, %v534_v42  ;;  %v10508_v60 = vcombine.low %v527_v43, %v535_v46  ;;  %v622_v41 = vld [vmem:[#allocation5 + $0x890] sm:$0xff]  ;;  %v623_v43 = vld [vmem:[#allocation5 + $0x898] sm:$0xff] }
 0x13a   : > { %3808 = vmatprep.subr.bf16.mxu0 %v10427_v62  ;;  %3954 = vmatprep.subr.bf16.mxu1 %v10429_v3  ;;  %v10523_v62 = vcombine.high %v542_v51, %v550_v52  ;;  %v10525_v3 = vcombine.high %v543_v54, %v551_v57  ;;  %v630_v42 = vld [vmem:[#allocation5 + $0x8d0] sm:$0xff]  ;;  %v631_v46 = vld [vmem:[#allocation5 + $0x8d8] sm:$0xff] }
 0x13c   : > { %3640 = vmatmul.mubr.bf16.gmra.mrb[12].mxu0 %v13574_v5  ;;  %3786 = vmatmul.mubr.bf16.gmra.mrb[12].mxu1 %v13574_v5 }
 0x13d   : > { %3809 = vmatpush1.bf16.msra.mxu0 %v10426_v6  ;;  %3955 = vmatpush1.bf16.msra.mxu1 %v10428_v7  ;;  %v10522_v6 = vcombine.low %v542_v51, %v550_v52  ;;  %v10524_v7 = vcombine.low %v543_v54, %v551_v57  ;;  %v638_v51 = vld [vmem:[#allocation5 + $0x910] sm:$0xff]  ;;  %v639_v54 = vld [vmem:[#allocation5 + $0x918] sm:$0xff] }
 0x13e   : > { %3810 = vmatprep.subr.bf16.mxu0 %v10443_v9  ;;  %3956 = vmatprep.subr.bf16.mxu1 %v10445_v13  ;;  %v10539_v9 = vcombine.high %v558_v63, %v566_v0  ;;  %v10541_v13 = vcombine.high %v559_v1, %v567_v4  ;;  %v646_v52 = vld [vmem:[#allocation5 + $0x950] sm:$0xff]  ;;  %v647_v57 = vld [vmem:[#allocation5 + $0x958] sm:$0xff] }
 0x13f   : > { %3828 = vmatprep.mubr.bf16.mxu0 %v13484_v58  ;;  %3974 = vmatprep.mubr.bf16.mxu1 %v13484_v58 }
 0x141   : > { %3811 = vmatpush1.bf16.msra.mxu0 %v10442_v16  ;;  %3957 = vmatpush1.bf16.msra.mxu1 %v10444_v17  ;;  %v10538_v16 = vcombine.low %v558_v63, %v566_v0  ;;  %v10540_v17 = vcombine.low %v559_v1, %v567_v4  ;;  %v654_v63 = vld [vmem:[#allocation5 + $0x990] sm:$0xff]  ;;  %v655_v1 = vld [vmem:[#allocation5 + $0x998] sm:$0xff] }
 0x142   : > { %3812 = vmatprep.subr.bf16.mxu0 %v10459_v19  ;;  %3958 = vmatprep.subr.bf16.mxu1 %v10461_v24  ;;  %v10555_v19 = vcombine.high %v574_v10, %v582_v11  ;;  %v10557_v24 = vcombine.high %v575_v12, %v583_v14  ;;  %v662_v0 = vld [vmem:[#allocation5 + $0x9d0] sm:$0xff]  ;;  %v663_v4 = vld [vmem:[#allocation5 + $0x9d8] sm:$0xff] }
 0x145   : > { %3813 = vmatpush1.bf16.msra.mxu0 %v10458_v27  ;;  %3959 = vmatpush1.bf16.msra.mxu1 %v10460_v29  ;;  %v10554_v27 = vcombine.low %v574_v10, %v582_v11  ;;  %v10556_v29 = vcombine.low %v575_v12, %v583_v14  ;;  %v670_v10 = vld [vmem:[#allocation5 + $0xa10] sm:$0xff]  ;;  %v671_v12 = vld [vmem:[#allocation5 + $0xa18] sm:$0xff] }
 0x146   : > { %3814 = vmatprep.subr.bf16.mxu0 %v10475_v30  ;;  %3960 = vmatprep.subr.bf16.mxu1 %v10477_v35  ;;  %v10571_v30 = vcombine.high %v590_v20, %v598_v21  ;;  %v10573_v35 = vcombine.high %v591_v23, %v599_v26  ;;  %v678_v11 = vld [vmem:[#allocation5 + $0xa50] sm:$0xff]  ;;  %v679_v14 = vld [vmem:[#allocation5 + $0xa58] sm:$0xff] }
 0x149   : > { %3815 = vmatpush1.bf16.msra.mxu0 %v10474_v37  ;;  %3961 = vmatpush1.bf16.msra.mxu1 %v10476_v39  ;;  %v10570_v37 = vcombine.low %v590_v20, %v598_v21  ;;  %v10572_v39 = vcombine.low %v591_v23, %v599_v26  ;;  %v686_v20 = vld [vmem:[#allocation5 + $0xa90] sm:$0xff]  ;;  %v687_v23 = vld [vmem:[#allocation5 + $0xa98] sm:$0xff] }
 0x14a   : > { %3816 = vmatprep.subr.bf16.mxu0 %v10491_v40  ;;  %3962 = vmatprep.subr.bf16.mxu1 %v10493_v45  ;;  %v10587_v40 = vcombine.high %v606_v31, %v614_v33  ;;  %v10589_v45 = vcombine.high %v607_v34, %v615_v36  ;;  %v694_v21 = vld [vmem:[#allocation5 + $0xad0] sm:$0xff]  ;;  %v695_v26 = vld [vmem:[#allocation5 + $0xad8] sm:$0xff] }
 0x14d   : > { %3817 = vmatpush1.bf16.msra.mxu0 %v10490_v48  ;;  %3963 = vmatpush1.bf16.msra.mxu1 %v10492_v49  ;;  %v10586_v48 = vcombine.low %v606_v31, %v614_v33  ;;  %v10588_v49 = vcombine.low %v607_v34, %v615_v36  ;;  %v702_v31 = vld [vmem:[#allocation5 + $0xb10] sm:$0xff]  ;;  %v703_v34 = vld [vmem:[#allocation5 + $0xb18] sm:$0xff] }
 0x14e   : > { %3818 = vmatprep.subr.bf16.mxu0 %v10507_v50  ;;  %3964 = vmatprep.subr.bf16.mxu1 %v10509_v55  ;;  %v10603_v50 = vcombine.high %v622_v41, %v630_v42  ;;  %v10605_v55 = vcombine.high %v623_v43, %v631_v46  ;;  %v710_v33 = vld [vmem:[#allocation5 + $0xb50] sm:$0xff]  ;;  %v711_v36 = vld [vmem:[#allocation5 + $0xb58] sm:$0xff] }
 0x151   : > { %3819 = vmatpush1.bf16.msra.mxu0 %v10506_v59  ;;  %3965 = vmatpush1.bf16.msra.mxu1 %v10508_v60  ;;  %v10602_v59 = vcombine.low %v622_v41, %v630_v42  ;;  %v10604_v60 = vcombine.low %v623_v43, %v631_v46  ;;  %v718_v41 = vld [vmem:[#allocation5 + $0xb90] sm:$0xff]  ;;  %v10685_v43 = vcombine.high %v703_v34, %v711_v36  ;;  %v727_v46 = vld [vmem:[#allocation5 + $0xbd8] sm:$0xff] }
 0x152   : > { %3820 = vmatprep.subr.bf16.mxu0 %v10523_v62  ;;  %3966 = vmatprep.subr.bf16.mxu1 %v10525_v3  ;;  %v10619_v62 = vcombine.high %v638_v51, %v646_v52  ;;  %v10621_v3 = vcombine.high %v639_v54, %v647_v57  ;;  %v726_v42 = vld [vmem:[#allocation5 + $0xbd0] sm:$0xff] }
 0x155   : > { %3821 = vmatpush1.bf16.msra.mxu0 %v10522_v6  ;;  %3967 = vmatpush1.bf16.msra.mxu1 %v10524_v7  ;;  %v10618_v6 = vcombine.low %v638_v51, %v646_v52  ;;  %v10620_v7 = vcombine.low %v639_v54, %v647_v57  ;;  %v10684_v51 = vcombine.low %v703_v34, %v711_v36  ;;  %v735_v54 = vld [vmem:[#allocation5 + $0xc18] sm:$0xff]  ;;  %v806_v34 = vld [vmem:[#allocation5 + $0xe50] sm:$0xff] }
 0x156   : > { %3822 = vmatprep.subr.bf16.mxu0 %v10539_v9  ;;  %3968 = vmatprep.subr.bf16.mxu1 %v10541_v13  ;;  %v10635_v9 = vcombine.high %v654_v63, %v662_v0  ;;  %v10637_v13 = vcombine.high %v655_v1, %v663_v4  ;;  %v10699_v52 = vcombine.high %v718_v41, %v726_v42  ;;  %v807_v36 = vld [vmem:[#allocation5 + $0xe58] sm:$0xff] }
 0x159   : > { %3823 = vmatpush1.bf16.msra.mxu0 %v10538_v16  ;;  %3969 = vmatpush1.bf16.msra.mxu1 %v10540_v17  ;;  %v10634_v16 = vcombine.low %v654_v63, %v662_v0  ;;  %v10636_v17 = vcombine.low %v655_v1, %v663_v4  ;;  %v751_v1 = vld [vmem:[#allocation5 + $0xc98] sm:$0xff] }
 0x15a   : > { %3824 = vmatprep.subr.bf16.mxu0 %v10555_v19  ;;  %3970 = vmatprep.subr.bf16.mxu1 %v10557_v24  ;;  %v10651_v19 = vcombine.high %v670_v10, %v678_v11  ;;  %v10653_v24 = vcombine.high %v671_v12, %v679_v14 }
 0x15d   : > { %3825 = vmatpush1.bf16.msra.mxu0 %v10554_v27  ;;  %3971 = vmatpush1.bf16.msra.mxu1 %v10556_v29  ;;  %v10650_v27 = vcombine.low %v670_v10, %v678_v11  ;;  %v10652_v29 = vcombine.low %v671_v12, %v679_v14  ;;  %v766_v10 = vld [vmem:[#allocation5 + $0xd10] sm:$0xff]  ;;  %v767_v12 = vld [vmem:[#allocation5 + $0xd18] sm:$0xff] }
 0x15e   : > { %3826 = vmatprep.subr.bf16.mxu0 %v10571_v30  ;;  %3972 = vmatprep.subr.bf16.mxu1 %v10573_v35  ;;  %v10667_v30 = vcombine.high %v686_v20, %v694_v21  ;;  %v10669_v35 = vcombine.high %v687_v23, %v695_v26  ;;  %v774_v11 = vld [vmem:[#allocation5 + $0xd50] sm:$0xff]  ;;  %v775_v14 = vld [vmem:[#allocation5 + $0xd58] sm:$0xff] }
 0x161   : > { %3827 = vmatpush1.bf16.msra.mxu0 %v10570_v37  ;;  %3973 = vmatpush1.bf16.msra.mxu1 %v10572_v39  ;;  %v10666_v37 = vcombine.low %v686_v20, %v694_v21  ;;  %v10668_v39 = vcombine.low %v687_v23, %v695_v26  ;;  %v10749_v20 = vcombine.high %v767_v12, %v775_v14  ;;  %v782_v21 = vld [vmem:[#allocation5 + $0xd90] sm:$0xff]  ;;  %v791_v26 = vld [vmem:[#allocation5 + $0xdd8] sm:$0xff] }
 0x162   : > { %3869 = vmatprep.subr.bf16.mxu0 %v10587_v40  ;;  %4015 = vmatprep.subr.bf16.mxu1 %v10589_v45  ;;  %v10683_v40 = vcombine.high %v702_v31, %v710_v33  ;;  %v719_v45 = vld [vmem:[#allocation5 + $0xb98] sm:$0xff]  ;;  %v790_v23 = vld [vmem:[#allocation5 + $0xdd0] sm:$0xff] }
 0x163   : > { %v10701_v57 = vcombine.high %v719_v45, %v727_v46  ;;  %v10700_v63 = vcombine.low %v719_v45, %v727_v46  ;;  %v815_v45 = vld [vmem:[#allocation5 + $0xe98] sm:$0xff] }
 0x164   : > { %3829 = vmatmul.mubr.bf16.vlgmr.msra.gmra.mrb[16].mxu0 %v13490_v15  ;;  %3975 = vmatmul.mubr.bf16.vlgmr.msra.gmra.mrb[16].mxu1 %v13490_v15  ;;  %v823_v46 = vld [vmem:[#allocation5 + $0xed8] sm:$0xff] }
 0x165   : > { %3870 = vmatpush1.bf16.msra.mxu0 %v10586_v48  ;;  %4016 = vmatpush1.bf16.msra.mxu1 %v10588_v49  ;;  %v10682_v48 = vcombine.low %v702_v31, %v710_v33  ;;  %v734_v49 = vld [vmem:[#allocation5 + $0xc10] sm:$0xff] }
 0x166   : > { %3871 = vmatprep.subr.bf16.mxu0 %v10603_v50  ;;  %4017 = vmatprep.subr.bf16.mxu1 %v10605_v55  ;;  %v742_v50 = vld [vmem:[#allocation5 + $0xc50] sm:$0xff]  ;;  %v743_v55 = vld [vmem:[#allocation5 + $0xc58] sm:$0xff] }
 0x167   : > { %3838 = vmatprep.mubr.bf16.mxu0 %v13494_v25  ;;  %3984 = vmatprep.mubr.bf16.mxu1 %v13494_v25  ;;  %v10715_v0 = vcombine.high %v734_v49, %v742_v50  ;;  %v10717_v4 = vcombine.high %v735_v54, %v743_v55  ;;  %v798_v33 = vld [vmem:[#allocation5 + $0xe10] sm:$0xff] }
 0x169   : > { %3872 = vmatpush1.bf16.msra.mxu0 %v10602_v59  ;;  %4018 = vmatpush1.bf16.msra.mxu1 %v10604_v60  ;;  %v10698_v59 = vcombine.low %v718_v41, %v726_v42  ;;  %v750_v60 = vld [vmem:[#allocation5 + $0xc90] sm:$0xff] }
 0x16a   : > { %3873 = vmatprep.subr.bf16.mxu0 %v10619_v62  ;;  %4019 = vmatprep.subr.bf16.mxu1 %v10621_v3  ;;  %v758_v62 = vld [vmem:[#allocation5 + $0xcd0] sm:$0xff]  ;;  %v759_v3 = vld [vmem:[#allocation5 + $0xcd8] sm:$0xff] }
 0x16b   : > { %v814_v42 = vld [vmem:[#allocation5 + $0xe90] sm:$0xff] }
 0x16c   : > { %3839 = vmatmul.mubr.bf16.gmra.mrb[20].mxu0 %v13502_v38  ;;  %3985 = vmatmul.mubr.bf16.gmra.mrb[20].mxu1 %v13502_v38 }
 0x16d   : > { %3874 = vmatpush1.bf16.msra.mxu0 %v10618_v6  ;;  %4020 = vmatpush1.bf16.msra.mxu1 %v10620_v7  ;;  %v10714_v6 = vcombine.low %v734_v49, %v742_v50  ;;  %v10716_v7 = vcombine.low %v735_v54, %v743_v55  ;;  %v838_v54 = vld [vmem:[#allocation5 + $0xf50] sm:$0xff]  ;;  %v831_v55 = vld [vmem:[#allocation5 + $0xf18] sm:$0xff] }
 0x16e   : > { %3875 = vmatprep.subr.bf16.mxu0 %v10635_v9  ;;  %4021 = vmatprep.subr.bf16.mxu1 %v10637_v13  ;;  %v10731_v9 = vcombine.high %v750_v60, %v758_v62  ;;  %v10733_v13 = vcombine.high %v751_v1, %v759_v3 }
 0x16f   : > { %3848 = vmatprep.mubr.bf16.mxu0 %v13506_v47  ;;  %3994 = vmatprep.mubr.bf16.mxu1 %v13506_v47 }
 0x171   : > { %3876 = vmatpush1.bf16.msra.mxu0 %v10634_v16  ;;  %4022 = vmatpush1.bf16.msra.mxu1 %v10636_v17  ;;  %v10730_v16 = vcombine.low %v750_v60, %v758_v62  ;;  %v10732_v17 = vcombine.low %v751_v1, %v759_v3  ;;  %v10796_v60 = vcombine.low %v815_v45, %v823_v46  ;;  %v854_v1 = vld [vmem:[#allocation5 + $0xfd0] sm:$0xff]  ;;  %v847_v3 = vld [vmem:[#allocation5 + $0xf98] sm:$0xff] }
 0x172   : > { %3877 = vmatprep.subr.bf16.mxu0 %v10651_v19  ;;  %4023 = vmatprep.subr.bf16.mxu1 %v10653_v24  ;;  %v10747_v19 = vcombine.high %v766_v10, %v774_v11  ;;  %v783_v24 = vld [vmem:[#allocation5 + $0xd98] sm:$0xff] }
 0x173   : > { %v10765_v31 = vcombine.high %v783_v24, %v791_v26 }
 0x174   : > { %3849 = vmatmul.mubr.bf16.gmra.mrb[24].mxu0 %v13514_v61  ;;  %3995 = vmatmul.mubr.bf16.gmra.mrb[24].mxu1 %v13514_v61 }
 0x175   : > { %3878 = vmatpush1.bf16.msra.mxu0 %v10650_v27  ;;  %4024 = vmatpush1.bf16.msra.mxu1 %v10652_v29  ;;  %v10746_v27 = vcombine.low %v766_v10, %v774_v11  ;;  %v10748_v29 = vcombine.low %v767_v12, %v775_v14  ;;  %v352_v11 = vld [vmem:[#allocation5 + $0x20] sm:$0xff]  ;;  %v361_v14 = vld [vmem:[#allocation5 + $0x68] sm:$0xff] }
 0x176   : > { %3879 = vmatprep.subr.bf16.mxu0 %v10667_v30  ;;  %4025 = vmatprep.subr.bf16.mxu1 %v10669_v35  ;;  %v10763_v30 = vcombine.high %v782_v21, %v790_v23  ;;  %v799_v35 = vld [vmem:[#allocation5 + $0xe18] sm:$0xff]  ;;  %v360_v12 = vld [vmem:[#allocation5 + $0x60] sm:$0xff] }
 0x177   : > { %3858 = vmatprep.mubr.bf16.mxu0 %v13518_v8  ;;  %4004 = vmatprep.mubr.bf16.mxu1 %v13518_v8  ;;  %v10781_v41 = vcombine.high %v799_v35, %v807_v36  ;;  %v10780_v49 = vcombine.low %v799_v35, %v807_v36  ;;  %v393_v35 = vld [vmem:[#allocation5 + $0x168] sm:$0xff] }
 0x179   : > { %3880 = vmatpush1.bf16.msra.mxu0 %v10666_v37  ;;  %4026 = vmatpush1.bf16.msra.mxu1 %v10668_v39  ;;  %v10762_v37 = vcombine.low %v782_v21, %v790_v23  ;;  %v10764_v39 = vcombine.low %v783_v24, %v791_v26  ;;  %v368_v21 = vld [vmem:[#allocation5 + $0xa0] sm:$0xff]  ;;  %v369_v24 = vld [vmem:[#allocation5 + $0xa8] sm:$0xff] }
 0x17a   : > { %3881 = vmatprep.subr.bf16.mxu0 %v10683_v40  ;;  %4027 = vmatprep.subr.bf16.mxu1 %v10685_v43  ;;  %v10779_v40 = vcombine.high %v798_v33, %v806_v34  ;;  %v822_v43 = vld [vmem:[#allocation5 + $0xed0] sm:$0xff]  ;;  %v376_v23 = vld [vmem:[#allocation5 + $0xe0] sm:$0xff]  ;;  %v377_v26 = vld [vmem:[#allocation5 + $0xe8] sm:$0xff] }
 0x17b   : > { %v10795_v50 = vcombine.high %v814_v42, %v822_v43  ;;  %v10353_v36 = vcombine.high %v369_v24, %v377_v26 }
 0x17c   : > { %3859 = vmatmul.mubr.bf16.gmra.mrb[28].mxu0 %v13528_v22  ;;  %4005 = vmatmul.mubr.bf16.gmra.mrb[28].mxu1 %v13528_v22 }
 0x17d   : > { %3882 = vmatpush1.bf16.msra.mxu0 %v10682_v48  ;;  %4028 = vmatpush1.bf16.msra.mxu1 %v10684_v51  ;;  %v10778_v48 = vcombine.low %v798_v33, %v806_v34  ;;  %v10797_v51 = vcombine.high %v815_v45, %v823_v46  ;;  %v10351_v33 = vcombine.high %v368_v21, %v376_v23  ;;  %v385_v34 = vld [vmem:[#allocation5 + $0x128] sm:$0xff] }
 0x17e   : > { %3883 = vmatprep.subr.bf16.mxu0 %v10699_v52  ;;  %4029 = vmatprep.subr.bf16.mxu1 %v10701_v57  ;;  %v830_v52 = vld [vmem:[#allocation5 + $0xf10] sm:$0xff]  ;;  %v839_v57 = vld [vmem:[#allocation5 + $0xf58] sm:$0xff]  ;;  %v401_v45 = vld [vmem:[#allocation5 + $0x1a8] sm:$0xff] }
 0x17f   : > { %3901 = vmatprep.mubr.bf16.mxu0 %v13530_v32  ;;  %4047 = vmatprep.mubr.bf16.mxu1 %v13530_v32  ;;  %v10811_v62 = vcombine.high %v830_v52, %v838_v54  ;;  %v409_v46 = vld [vmem:[#allocation5 + $0x1e8] sm:$0xff] }
 0x181   : > { %3884 = vmatpush1.bf16.msra.mxu0 %v10698_v59  ;;  %4030 = vmatpush1.bf16.msra.mxu1 %v10700_v63  ;;  %v10794_v59 = vcombine.low %v814_v42, %v822_v43  ;;  %v10813_v63 = vcombine.high %v831_v55, %v839_v57  ;;  %v408_v42 = vld [vmem:[#allocation5 + $0x1e0] sm:$0xff]  ;;  %v10369_v43 = vcombine.high %v385_v34, %v393_v35 }
 0x182   : > { %3885 = vmatprep.subr.bf16.mxu0 %v10715_v0  ;;  %4031 = vmatprep.subr.bf16.mxu1 %v10717_v4  ;;  %v846_v0 = vld [vmem:[#allocation5 + $0xf90] sm:$0xff]  ;;  %v855_v4 = vld [vmem:[#allocation5 + $0xfd8] sm:$0xff] }
 0x183   : > { %v10829_v10 = vcombine.high %v847_v3, %v855_v4 }
 0x185   : > { %3886 = vmatpush1.bf16.msra.mxu0 %v10714_v6  ;;  %4032 = vmatpush1.bf16.msra.mxu1 %v10716_v7  ;;  %v10810_v6 = vcombine.low %v830_v52, %v838_v54  ;;  %v10812_v7 = vcombine.low %v831_v55, %v839_v57  ;;  %v417_v54 = vld [vmem:[#allocation5 + $0x228] sm:$0xff]  ;;  %v10385_v57 = vcombine.high %v401_v45, %v409_v46 }
 0x186   : > { %3887 = vmatprep.subr.bf16.mxu0 %v10731_v9  ;;  %4033 = vmatprep.subr.bf16.mxu1 %v10733_v13  ;;  %v10827_v9 = vcombine.high %v846_v0, %v854_v1  ;;  %v353_v13 = vld [vmem:[#allocation5 + $0x28] sm:$0xff] }
 0x187   : > { %v425_v55 = vld [vmem:[#allocation5 + $0x268] sm:$0xff] }
 0x189   : > { %3888 = vmatpush1.bf16.msra.mxu0 %v10730_v16  ;;  %4034 = vmatpush1.bf16.msra.mxu1 %v10732_v17  ;;  %v10826_v16 = vcombine.low %v846_v0, %v854_v1  ;;  %v10828_v17 = vcombine.low %v847_v3, %v855_v4  ;;  %v440_v0 = vld [vmem:[#allocation5 + $0x2e0] sm:$0xff]  ;;  %v10401_v1 = vcombine.high %v417_v54, %v425_v55  ;;  %v433_v3 = vld [vmem:[#allocation5 + $0x2a8] sm:$0xff] }
 0x18a   : > { %3889 = vmatprep.subr.bf16.mxu0 %v10747_v19  ;;  %4035 = vmatprep.subr.bf16.mxu1 %v10749_v20  ;;  %v10335_v19 = vcombine.high %v352_v11, %v360_v12  ;;  %v10337_v20 = vcombine.high %v353_v13, %v361_v14  ;;  %v441_v4 = vld [vmem:[#allocation5 + $0x2e8] sm:$0xff] }
 0x18d   : > { %3890 = vmatpush1.bf16.msra.mxu0 %v10746_v27  ;;  %4036 = vmatpush1.bf16.msra.mxu1 %v10748_v29  ;;  %v10334_v27 = vcombine.low %v352_v11, %v360_v12  ;;  %v384_v29 = vld [vmem:[#allocation5 + $0x120] sm:$0xff]  ;;  %v449_v12 = vld [vmem:[#allocation5 + $0x328] sm:$0xff] }
 0x18e   : > { %3891 = vmatprep.subr.bf16.mxu0 %v10763_v30  ;;  %4037 = vmatprep.subr.bf16.mxu1 %v10765_v31  ;;  %v392_v30 = vld [vmem:[#allocation5 + $0x160] sm:$0xff]  ;;  %v10336_v31 = vcombine.low %v353_v13, %v361_v14  ;;  %v457_v13 = vld [vmem:[#allocation5 + $0x368] sm:$0xff]  ;;  %v10417_v14 = vcombine.high %v433_v3, %v441_v4 }
 0x191   : > { %3892 = vmatpush1.bf16.msra.mxu0 %v10762_v37  ;;  %4038 = vmatpush1.bf16.msra.mxu1 %v10764_v39  ;;  %v10350_v37 = vcombine.low %v368_v21, %v376_v23  ;;  %v10352_v39 = vcombine.low %v369_v24, %v377_v26  ;;  %v472_v21 = vld [vmem:[#allocation5 + $0x3e0] sm:$0xff]  ;;  %v10433_v23 = vcombine.high %v449_v12, %v457_v13  ;;  %v465_v24 = vld [vmem:[#allocation5 + $0x3a8] sm:$0xff] }
 0x192   : > { %3893 = vmatprep.subr.bf16.mxu0 %v10779_v40  ;;  %4039 = vmatprep.subr.bf16.mxu1 %v10781_v41  ;;  %v10367_v40 = vcombine.high %v384_v29, %v392_v30  ;;  %v400_v41 = vld [vmem:[#allocation5 + $0x1a0] sm:$0xff]  ;;  %v473_v26 = vld [vmem:[#allocation5 + $0x3e8] sm:$0xff] }
 0x193   : > { %v10383_v52 = vcombine.high %v400_v41, %v408_v42 }
 0x195   : > { %3894 = vmatpush1.bf16.msra.mxu0 %v10778_v48  ;;  %4040 = vmatpush1.bf16.msra.mxu1 %v10780_v49  ;;  %v10366_v48 = vcombine.low %v384_v29, %v392_v30  ;;  %v416_v49 = vld [vmem:[#allocation5 + $0x220] sm:$0xff] }
 0x196   : > { %3895 = vmatprep.subr.bf16.mxu0 %v10795_v50  ;;  %4041 = vmatprep.subr.bf16.mxu1 %v10797_v51  ;;  %v424_v50 = vld [vmem:[#allocation5 + $0x260] sm:$0xff]  ;;  %v10368_v51 = vcombine.low %v385_v34, %v393_v35  ;;  %v481_v34 = vld [vmem:[#allocation5 + $0x428] sm:$0xff] }
 0x197   : > { %v480_v29 = vld [vmem:[#allocation5 + $0x420] sm:$0xff]  ;;  %v489_v35 = vld [vmem:[#allocation5 + $0x468] sm:$0xff] }
 0x198   : > { %v488_v30 = vld [vmem:[#allocation5 + $0x460] sm:$0xff] }
 0x199   : > { %3896 = vmatpush1.bf16.msra.mxu0 %v10794_v59  ;;  %4042 = vmatpush1.bf16.msra.mxu1 %v10796_v60  ;;  %v10382_v59 = vcombine.low %v400_v41, %v408_v42  ;;  %v10384_v60 = vcombine.low %v401_v45, %v409_v46  ;;  %v496_v41 = vld [vmem:[#allocation5 + $0x4a0] sm:$0xff]  ;;  %v497_v45 = vld [vmem:[#allocation5 + $0x4a8] sm:$0xff] }
 0x19a   : > { %3897 = vmatprep.subr.bf16.mxu0 %v10811_v62  ;;  %4043 = vmatprep.subr.bf16.mxu1 %v10813_v63  ;;  %v10399_v62 = vcombine.high %v416_v49, %v424_v50  ;;  %v432_v63 = vld [vmem:[#allocation5 + $0x2a0] sm:$0xff]  ;;  %v505_v46 = vld [vmem:[#allocation5 + $0x4e8] sm:$0xff] }
 0x19b   : > { %v10415_v11 = vcombine.high %v432_v63, %v440_v0  ;;  %v504_v42 = vld [vmem:[#allocation5 + $0x4e0] sm:$0xff] }
 0x19d   : > { %3898 = vmatpush1.bf16.msra.mxu0 %v10810_v6  ;;  %4044 = vmatpush1.bf16.msra.mxu1 %v10812_v7  ;;  %v10398_v6 = vcombine.low %v416_v49, %v424_v50  ;;  %v448_v7 = vld [vmem:[#allocation5 + $0x320] sm:$0xff]  ;;  %v10464_v49 = vcombine.low %v481_v34, %v489_v35  ;;  %v10479_v50 = vcombine.high %v496_v41, %v504_v42 }
 0x19e   : > { %3899 = vmatprep.subr.bf16.mxu0 %v10827_v9  ;;  %4045 = vmatprep.subr.bf16.mxu1 %v10829_v10  ;;  %v456_v9 = vld [vmem:[#allocation5 + $0x360] sm:$0xff]  ;;  %v10400_v10 = vcombine.low %v417_v54, %v425_v55  ;;  %v513_v54 = vld [vmem:[#allocation5 + $0x528] sm:$0xff]  ;;  %v10481_v55 = vcombine.high %v497_v45, %v505_v46 }
 0x1a1   : > { %3900 = vmatpush1.bf16.msra.mxu0 %v10826_v16  ;;  %4046 = vmatpush1.bf16.msra.mxu1 %v10828_v17  ;;  %v10414_v16 = vcombine.low %v432_v63, %v440_v0  ;;  %v10416_v17 = vcombine.low %v433_v3, %v441_v4  ;;  %v528_v63 = vld [vmem:[#allocation5 + $0x5a0] sm:$0xff]  ;;  %v537_v4 = vld [vmem:[#allocation5 + $0x5e8] sm:$0xff] }
 0x1a2   : > { %4088 = vmatprep.subr.bf16.mxu0 %v10335_v19  ;;  %4234 = vmatprep.subr.bf16.mxu1 %v10337_v20  ;;  %v10431_v19 = vcombine.high %v448_v7, %v456_v9  ;;  %v464_v20 = vld [vmem:[#allocation5 + $0x3a0] sm:$0xff] }
 0x1a3   : > { %v536_v0 = vld [vmem:[#allocation5 + $0x5e0] sm:$0xff] }
 0x1a4   : > { %3902 = vmatmul.mubr.bf16.vlgmr.msra.gmra.mrb[16].mxu0 %v13540_v56  ;;  %4048 = vmatmul.mubr.bf16.vlgmr.msra.gmra.mrb[16].mxu1 %v13540_v56  ;;  %v13880_v56 = vld [vmem:[#allocation5 + $0xf0] sm:$0xff] }
 0x1a5   : > { %4089 = vmatpush1.bf16.msra.mxu0 %v10334_v27  ;;  %4235 = vmatpush1.bf16.msra.mxu1 %v10336_v31  ;;  %v10430_v27 = vcombine.low %v448_v7, %v456_v9  ;;  %v10432_v31 = vcombine.low %v449_v12, %v457_v13  ;;  %v10511_v9 = vcombine.high %v528_v63, %v536_v0  ;;  %v545_v12 = vld [vmem:[#allocation5 + $0x628] sm:$0xff] }
 0x1a6   : > { %4090 = vmatprep.subr.bf16.mxu0 %v10351_v33  ;;  %4236 = vmatprep.subr.bf16.mxu1 %v10353_v36  ;;  %v10447_v33 = vcombine.high %v464_v20, %v472_v21  ;;  %v10449_v36 = vcombine.high %v465_v24, %v473_v26 }
 0x1a7   : > { %3911 = vmatprep.mubr.bf16.mxu0 %v13542_v2  ;;  %4057 = vmatprep.mubr.bf16.mxu1 %v13542_v2 }
 0x1a9   : > { %4091 = vmatpush1.bf16.msra.mxu0 %v10350_v37  ;;  %4237 = vmatpush1.bf16.msra.mxu1 %v10352_v39  ;;  %v10446_v37 = vcombine.low %v464_v20, %v472_v21  ;;  %v10448_v39 = vcombine.low %v465_v24, %v473_v26  ;;  %v560_v20 = vld [vmem:[#allocation5 + $0x6a0] sm:$0xff]  ;;  %v569_v26 = vld [vmem:[#allocation5 + $0x6e8] sm:$0xff] }
 0x1aa   : > { %4092 = vmatprep.subr.bf16.mxu0 %v10367_v40  ;;  %4238 = vmatprep.subr.bf16.mxu1 %v10369_v43  ;;  %v10463_v40 = vcombine.high %v480_v29, %v488_v30  ;;  %v10465_v43 = vcombine.high %v481_v34, %v489_v35  ;;  %v568_v21 = vld [vmem:[#allocation5 + $0x6e0] sm:$0xff]  ;;  %v577_v34 = vld [vmem:[#allocation5 + $0x728] sm:$0xff] }
 0x1ac   : > { %3912 = vmatmul.mubr.bf16.gmra.mrb[20].mxu0 %v13552_v18  ;;  %4058 = vmatmul.mubr.bf16.gmra.mrb[20].mxu1 %v13552_v18 }
 0x1ad   : > { %4093 = vmatpush1.bf16.msra.mxu0 %v10366_v48  ;;  %4239 = vmatpush1.bf16.msra.mxu1 %v10368_v51  ;;  %v10462_v48 = vcombine.low %v480_v29, %v488_v30  ;;  %v512_v51 = vld [vmem:[#allocation5 + $0x520] sm:$0xff]  ;;  %v10543_v30 = vcombine.high %v560_v20, %v568_v21 }
 0x1ae   : > { %4094 = vmatprep.subr.bf16.mxu0 %v10383_v52  ;;  %4240 = vmatprep.subr.bf16.mxu1 %v10385_v57  ;;  %v520_v52 = vld [vmem:[#allocation5 + $0x560] sm:$0xff]  ;;  %v521_v57 = vld [vmem:[#allocation5 + $0x568] sm:$0xff] }
 0x1af   : > { %3921 = vmatprep.mubr.bf16.mxu0 %v13554_v28  ;;  %4067 = vmatprep.mubr.bf16.mxu1 %v13554_v28  ;;  %v10497_v3 = vcombine.high %v513_v54, %v521_v57  ;;  %v10496_v7 = vcombine.low %v513_v54, %v521_v57  ;;  %v609_v54 = vld [vmem:[#allocation5 + $0x828] sm:$0xff]  ;;  %v13865_v28 = vld [vmem:[#allocation5 + $0xb0] sm:$0xff] }
 0x1b0   : > { %v617_v57 = vld [vmem:[#allocation5 + $0x868] sm:$0xff] }
 0x1b1   : > { %4095 = vmatpush1.bf16.msra.mxu0 %v10382_v59  ;;  %4241 = vmatpush1.bf16.msra.mxu1 %v10384_v60  ;;  %v10478_v59 = vcombine.low %v496_v41, %v504_v42  ;;  %v10480_v60 = vcombine.low %v497_v45, %v505_v46  ;;  %v592_v41 = vld [vmem:[#allocation5 + $0x7a0] sm:$0xff]  ;;  %v601_v46 = vld [vmem:[#allocation5 + $0x7e8] sm:$0xff] }
 0x1b2   : > { %4096 = vmatprep.subr.bf16.mxu0 %v10399_v62  ;;  %4242 = vmatprep.subr.bf16.mxu1 %v10401_v1  ;;  %v10495_v62 = vcombine.high %v512_v51, %v520_v52  ;;  %v529_v1 = vld [vmem:[#allocation5 + $0x5a8] sm:$0xff]  ;;  %v600_v42 = vld [vmem:[#allocation5 + $0x7e0] sm:$0xff] }
 0x1b3   : > { %v10513_v13 = vcombine.high %v529_v1, %v537_v4 }
 0x1b4   : > { %3922 = vmatmul.mubr.bf16.gmra.mrb[24].mxu0 %v13564_v44  ;;  %4068 = vmatmul.mubr.bf16.gmra.mrb[24].mxu1 %v13564_v44  ;;  %v13847_v44 = vld [vmem:[#allocation5 + $0x70] sm:$0xff] }
 0x1b5   : > { %4097 = vmatpush1.bf16.msra.mxu0 %v10398_v6  ;;  %4243 = vmatpush1.bf16.msra.mxu1 %v10400_v10  ;;  %v10494_v6 = vcombine.low %v512_v51, %v520_v52  ;;  %v544_v10 = vld [vmem:[#allocation5 + $0x620] sm:$0xff]  ;;  %17144 = vst [vmem:[#allocation49_spill] sm:$0xff] %v13847_v44 }
 0x1b6   : > { %4098 = vmatprep.subr.bf16.mxu0 %v10415_v11  ;;  %4244 = vmatprep.subr.bf16.mxu1 %v10417_v14  ;;  %v552_v11 = vld [vmem:[#allocation5 + $0x660] sm:$0xff]  ;;  %v553_v14 = vld [vmem:[#allocation5 + $0x668] sm:$0xff] }
 0x1b7   : > { %3931 = vmatprep.mubr.bf16.mxu0 %v13566_v53  ;;  %4077 = vmatprep.mubr.bf16.mxu1 %v13566_v53  ;;  %v10529_v24 = vcombine.high %v545_v12, %v553_v14  ;;  %v10528_v29 = vcombine.low %v545_v12, %v553_v14  ;;  %v608_v51 = vld [vmem:[#allocation5 + $0x820] sm:$0xff]  ;;  %v13829_v53 = vld [vmem:[#allocation5 + $0xfa8] sm:$0xff] }
 0x1b8   : > { %v616_v52 = vld [vmem:[#allocation5 + $0x860] sm:$0xff]  ;;  %17140 = vst [vmem:[#allocation47_spill] sm:$0xff] %v13829_v53  ;;  %v13944_v53 = vld [vmem:[#allocation5 + $0x1f8] sm:$0xff] }
 0x1b9   : > { %4099 = vmatpush1.bf16.msra.mxu0 %v10414_v16  ;;  %4245 = vmatpush1.bf16.msra.mxu1 %v10416_v17  ;;  %v10510_v16 = vcombine.low %v528_v63, %v536_v0  ;;  %v10512_v17 = vcombine.low %v529_v1, %v537_v4  ;;  %v624_v63 = vld [vmem:[#allocation5 + $0x8a0] sm:$0xff]  ;;  %v625_v1 = vld [vmem:[#allocation5 + $0x8a8] sm:$0xff]  ;;  %17161 = vst [vmem:[#allocation61_spill] sm:$0xff] %v13944_v53 }
 0x1ba   : > { %4100 = vmatprep.subr.bf16.mxu0 %v10431_v19  ;;  %4246 = vmatprep.subr.bf16.mxu1 %v10433_v23  ;;  %v10527_v19 = vcombine.high %v544_v10, %v552_v11  ;;  %v561_v23 = vld [vmem:[#allocation5 + $0x6a8] sm:$0xff]  ;;  %v632_v0 = vld [vmem:[#allocation5 + $0x8e0] sm:$0xff] }
 0x1bb   : > { %v10545_v35 = vcombine.high %v561_v23, %v569_v26  ;;  %v633_v4 = vld [vmem:[#allocation5 + $0x8e8] sm:$0xff]  ;;  %v648_v12 = vld [vmem:[#allocation5 + $0x960] sm:$0xff] }
 0x1bc   : > { %3932 = vmatmul.mubr.bf16.gmra.mrb[28].mxu0 %v13574_v5  ;;  %4078 = vmatmul.mubr.bf16.gmra.mrb[28].mxu1 %v13574_v5  ;;  %v10609_v14 = vcombine.high %v625_v1, %v633_v4  ;;  %v13827_v5 = vld [vmem:[#allocation5 + $0xfe0] sm:$0xff] }
 0x1bd   : > { %4101 = vmatpush1.bf16.msra.mxu0 %v10430_v27  ;;  %4247 = vmatpush1.bf16.msra.mxu1 %v10432_v31  ;;  %v10526_v27 = vcombine.low %v544_v10, %v552_v11  ;;  %v576_v31 = vld [vmem:[#allocation5 + $0x720] sm:$0xff]  ;;  %v10607_v10 = vcombine.high %v624_v63, %v632_v0  ;;  %17139 = vst [vmem:[#allocation46_spill] sm:$0xff] %v13827_v5  ;;  %v13946_v5 = vld [vmem:[#allocation5 + $0x230] sm:$0xff] }
 0x1be   : > { %4102 = vmatprep.subr.bf16.mxu0 %v10447_v33  ;;  %4248 = vmatprep.subr.bf16.mxu1 %v10449_v36  ;;  %v584_v33 = vld [vmem:[#allocation5 + $0x760] sm:$0xff]  ;;  %v585_v36 = vld [vmem:[#allocation5 + $0x768] sm:$0xff]  ;;  %17162 = vst [vmem:[#allocation62_spill] sm:$0xff] %v13946_v5  ;;  %v14031_v5 = vld [vmem:[#allocation5 + $0x3f0] sm:$0xff] }
 0x1bf   : > { %4120 = vmatprep.mubr.bf16.mxu0 %v13484_v58  ;;  %4266 = vmatprep.mubr.bf16.mxu1 %v13484_v58  ;;  %v10561_v45 = vcombine.high %v577_v34, %v585_v36  ;;  %v640_v11 = vld [vmem:[#allocation5 + $0x920] sm:$0xff]  ;;  %17179 = vst [vmem:[#allocation75_spill] sm:$0xff] %v14031_v5  ;;  %v14121_v5 = vld [vmem:[#allocation5 + $0x570] sm:$0xff] }
 0x1c0   : > { %v13825_v58 = vld [vmem:[#allocation5 + $0xfa0] sm:$0xff]  ;;  %17196 = vst [vmem:[#allocation87_spill] sm:$0xff] %v14121_v5 }
 0x1c1   : > { %4103 = vmatpush1.bf16.msra.mxu0 %v10446_v37  ;;  %4249 = vmatpush1.bf16.msra.mxu1 %v10448_v39  ;;  %v10542_v37 = vcombine.low %v560_v20, %v568_v21  ;;  %v10544_v39 = vcombine.low %v561_v23, %v569_v26  ;;  %v10608_v21 = vcombine.low %v625_v1, %v633_v4  ;;  %v13624_v26 = vld [vmem:[#allocation5 + $0x9a8] sm:$0xff]  ;;  %v13753_v1 = vld [vmem:[#allocation5 + $0xde0] sm:$0xff] }
 0x1c2   : > { %4104 = vmatprep.subr.bf16.mxu0 %v10463_v40  ;;  %4250 = vmatprep.subr.bf16.mxu1 %v10465_v43  ;;  %v10559_v40 = vcombine.high %v576_v31, %v584_v33  ;;  %v593_v43 = vld [vmem:[#allocation5 + $0x7a8] sm:$0xff]  ;;  %v10623_v23 = vcombine.high %v640_v11, %v648_v12 }
 0x1c3   : > { %v13690_v4 = vld [vmem:[#allocation5 + $0xba8] sm:$0xff] }
 0x1c5   : > { %4105 = vmatpush1.bf16.msra.mxu0 %v10462_v48  ;;  %4251 = vmatpush1.bf16.msra.mxu1 %v10464_v49  ;;  %v10558_v48 = vcombine.low %v576_v31, %v584_v33  ;;  %v10560_v49 = vcombine.low %v577_v34, %v585_v36  ;;  %v13632_v31 = vld [vmem:[#allocation5 + $0xa60] sm:$0xff]  ;;  %v13634_v33 = vld [vmem:[#allocation5 + $0xa28] sm:$0xff] }
 0x1c6   : > { %4106 = vmatprep.subr.bf16.mxu0 %v10479_v50  ;;  %4252 = vmatprep.subr.bf16.mxu1 %v10481_v55  ;;  %v10575_v50 = vcombine.high %v592_v41, %v600_v42  ;;  %v10577_v55 = vcombine.high %v593_v43, %v601_v46  ;;  %v13636_v34 = vld [vmem:[#allocation5 + $0xa68] sm:$0xff]  ;;  %v13639_v36 = vld [vmem:[#allocation5 + $0xaa0] sm:$0xff] }
 0x1c9   : > { %4107 = vmatpush1.bf16.msra.mxu0 %v10478_v59  ;;  %4253 = vmatpush1.bf16.msra.mxu1 %v10480_v60  ;;  %v10574_v59 = vcombine.low %v592_v41, %v600_v42  ;;  %v10576_v60 = vcombine.low %v593_v43, %v601_v46 }
 0x1ca   : > { %4108 = vmatprep.subr.bf16.mxu0 %v10495_v62  ;;  %4254 = vmatprep.subr.bf16.mxu1 %v10497_v3  ;;  %v10591_v62 = vcombine.high %v608_v51, %v616_v52  ;;  %v10593_v3 = vcombine.high %v609_v54, %v617_v57 }
 0x1cd   : > { %4109 = vmatpush1.bf16.msra.mxu0 %v10494_v6  ;;  %4255 = vmatpush1.bf16.msra.mxu1 %v10496_v7  ;;  %v10590_v6 = vcombine.low %v608_v51, %v616_v52  ;;  %v864_v7 = vlaneseq  ;;  %v13666_v51 = vld [vmem:[#allocation5 + $0xb60] sm:$0xff] }
 0x1ce   : > { %4110 = vmatprep.subr.bf16.mxu0 %v10511_v9  ;;  %4256 = vmatprep.subr.bf16.mxu1 %v10513_v13  ;;  %v10592_v9 = vcombine.low %v609_v54, %v617_v57  ;;  %v13612_v13 = vld [vmem:[#allocation5 + $0x928] sm:$0xff] }
 0x1cf   : > { %v13620_v20 = vshrl.u32 %v864_v7, 7  ;;  %v13674_v57 = vld [vmem:[#allocation5 + $0xb28] sm:$0xff]  ;;  %v13694_v7 = vld [vmem:[#allocation5 + $0xc20] sm:$0xff] }
 0x1d1   : > { %4111 = vmatpush1.bf16.msra.mxu0 %v10510_v16  ;;  %4257 = vmatpush1.bf16.msra.mxu1 %v10512_v17  ;;  %v13614_v16 = vld [vmem:[#allocation5 + $0x968] sm:$0xff]  ;;  %v10606_v17 = vcombine.low %v624_v63, %v632_v0  ;;  %17124 = vst [vmem:[#allocation32_spill] sm:$0xff] %v13620_v20  ;;  %v13648_v41 = vsub.s32 2, %v13620_v20  ;;  %v13658_v46 = vsub.s32 3, %v13620_v20 }
 0x1d2   : > { %4112 = vmatprep.subr.bf16.mxu0 %v10527_v19  ;;  %4258 = vmatprep.subr.bf16.mxu1 %v10529_v24  ;;  %v13618_v19 = vld [vmem:[#allocation5 + $0x9a0] sm:$0xff]  ;;  %v10624_v42 = vcombine.low %v13612_v13, %v13614_v16  ;;  %v13755_v63 = vld [vmem:[#allocation5 + $0xda8] sm:$0xff] }
 0x1d3   : > { %v13622_v24 = vld [vmem:[#allocation5 + $0x9e0] sm:$0xff]  ;;  %17126 = vst [vmem:[#allocation34_spill] sm:$0xff] %v13648_v41  ;;  %17128 = vst [vmem:[#allocation36_spill] sm:$0xff] %v13658_v46 }
 0x1d4   : > { %v10639_v43 = vcombine.high %v13618_v19, %v13622_v24  ;;  %v10638_v52 = vcombine.low %v13618_v19, %v13622_v24  ;;  %v13724_v24 = vld [vmem:[#allocation5 + $0xca8] sm:$0xff] }
 0x1d5   : > { %4113 = vmatpush1.bf16.msra.mxu0 %v10526_v27  ;;  %4259 = vmatpush1.bf16.msra.mxu1 %v10528_v29  ;;  %v13626_v27 = vld [vmem:[#allocation5 + $0x9e8] sm:$0xff]  ;;  %v10625_v29 = vcombine.high %v13612_v13, %v13614_v16 }
 0x1d6   : > { %4114 = vmatprep.subr.bf16.mxu0 %v10543_v30  ;;  %4260 = vmatprep.subr.bf16.mxu1 %v10545_v35  ;;  %v13630_v30 = vld [vmem:[#allocation5 + $0xa20] sm:$0xff]  ;;  %v10640_v54 = vcombine.low %v13624_v26, %v13626_v27  ;;  %v13707_v13 = vld [vmem:[#allocation5 + $0xc28] sm:$0xff] }
 0x1d7   : > { %v860_v35 = vld [vmem:[#allocation7] sm:$0xff]  ;;  %v10655_v0 = vcombine.high %v13630_v30, %v13632_v31  ;;  %v13740_v19 = vld [vmem:[#allocation5 + $0xd68] sm:$0xff] }
 0x1d9   : > { %4115 = vmatpush1.bf16.msra.mxu0 %v10542_v37  ;;  %4261 = vmatpush1.bf16.msra.mxu1 %v10544_v39  ;;  %v13641_v37 = vld [vmem:[#allocation5 + $0xae0] sm:$0xff]  ;;  %v10622_v39 = vcombine.low %v640_v11, %v648_v12  ;;  %v13703_v11 = vrot.slane %v860_v35, %v13648_v41 }
 0x1da   : > { %4116 = vmatprep.subr.bf16.mxu0 %v10559_v40  ;;  %4262 = vmatprep.subr.bf16.mxu1 %v10561_v45  ;;  %v13645_v40 = vsub.s32 0, %v13620_v20  ;;  %v13655_v45 = vsub.s32 1, %v13620_v20  ;;  %v13751_v12 = vld [vmem:[#allocation5 + $0xda0] sm:$0xff] }
 0x1db   : > { %v13770_v41 = vld [vmem:[#allocation5 + $0xe60] sm:$0xff] }
 0x1dc   : > { %17125 = vst [vmem:[#allocation33_spill] sm:$0xff] %v13645_v40  ;;  %17127 = vst [vmem:[#allocation35_spill] sm:$0xff] %v13655_v45  ;;  %v13713_v16 = vrot.slane %v860_v35, %v13655_v45  ;;  %v13768_v45 = vld [vmem:[#allocation5 + $0xe20] sm:$0xff] }
 0x1dd   : > { %4117 = vmatpush1.bf16.msra.mxu0 %v10558_v48  ;;  %4263 = vmatpush1.bf16.msra.mxu1 %v10560_v49  ;;  %v13660_v48 = vld [vmem:[#allocation5 + $0xaa8] sm:$0xff]  ;;  %17129 = vst [vmem:[#allocation37_spill] sm:$0xff] %v13770_v41  ;;  %v13798_v20 = vld [vmem:[#allocation5 + $0xf20] sm:$0xff] }
 0x1de   : > { %4118 = vmatprep.subr.bf16.mxu0 %v10575_v50  ;;  %4264 = vmatprep.subr.bf16.mxu1 %v10577_v55  ;;  %v13662_v49 = vld [vmem:[#allocation5 + $0xae8] sm:$0xff]  ;;  %v13664_v50 = vld [vmem:[#allocation5 + $0xb20] sm:$0xff]  ;;  %v10641_v55 = vcombine.high %v13624_v26, %v13626_v27  ;;  %v13990_v27 = vld [vmem:[#allocation5 + $0x2f8] sm:$0xff] }
 0x1df   : > { %v13726_v26 = vld [vmem:[#allocation5 + $0xce8] sm:$0xff]  ;;  %v17155_v2 = vcombine.high %v13664_v50, %v13666_v51  ;;  %v17166_v44 = vcombine.low %v13664_v50, %v13666_v51  ;;  %17171 = vst [vmem:[#allocation69_spill] sm:$0xff] %v13990_v27  ;;  %v14005_v51 = vld [vmem:[#allocation5 + $0x330] sm:$0xff] }
 0x1e0   : > { %17173 = vst [vmem:[#allocation70_spill] sm:$0xff] %v14005_v51  ;;  %v14092_v51 = vld [vmem:[#allocation5 + $0x4b0] sm:$0xff] }
 0x1e1   : > { %4119 = vmatpush1.bf16.msra.mxu0 %v10574_v59  ;;  %4265 = vmatpush1.bf16.msra.mxu1 %v10576_v60  ;;  %v13676_v59 = vld [vmem:[#allocation5 + $0xb68] sm:$0xff]  ;;  %v13678_v60 = vld [vmem:[#allocation5 + $0xba0] sm:$0xff]  ;;  %17190 = vst [vmem:[#allocation82_spill] sm:$0xff] %v14092_v51  ;;  %v14119_v50 = vld [vmem:[#allocation5 + $0x530] sm:$0xff] }
 0x1e2   : > { %4161 = vmatprep.subr.bf16.mxu0 %v10591_v62  ;;  %4307 = vmatprep.subr.bf16.mxu1 %v10593_v3  ;;  %v13680_v62 = vld [vmem:[#allocation5 + $0xbe0] sm:$0xff]  ;;  %v10657_v3 = vcombine.high %v13634_v33, %v13636_v34  ;;  %17195 = vst [vmem:[#allocation86_spill] sm:$0xff] %v14119_v50 }
 0x1e4   : > { %4121 = vmatmul.mubr.bf16.vlgmr.msra.gmra.mrb[32].mxu0 %v13490_v15  ;;  %4267 = vmatmul.mubr.bf16.vlgmr.msra.gmra.mrb[32].mxu1 %v13490_v15  ;;  %v13813_v15 = vld [vmem:[#allocation5 + $0xf68] sm:$0xff] }
 0x1e5   : > { %4162 = vmatpush1.bf16.msra.mxu0 %v10590_v6  ;;  %4308 = vmatpush1.bf16.msra.mxu1 %v10592_v9  ;;  %v13692_v6 = vld [vmem:[#allocation5 + $0xbe8] sm:$0xff]  ;;  %v13696_v9 = vld [vmem:[#allocation5 + $0xc60] sm:$0xff]  ;;  %17137 = vst [vmem:[#allocation45_spill] sm:$0xff] %v13813_v15  ;;  %v13923_v15 = vld [vmem:[#allocation5 + $0x178] sm:$0xff] }
 0x1e6   : > { %4163 = vmatprep.subr.bf16.mxu0 %v10607_v10  ;;  %4309 = vmatprep.subr.bf16.mxu1 %v10609_v14  ;;  %v13700_v10 = vrot.slane %v860_v35, %v13645_v40  ;;  %v13709_v14 = vld [vmem:[#allocation5 + $0xc68] sm:$0xff]  ;;  %17156 = vst [vmem:[#allocation57_spill] sm:$0xff] %v13923_v15 }
 0x1e7   : > { %4130 = vmatprep.mubr.bf16.mxu0 %v13494_v25  ;;  %4276 = vmatprep.mubr.bf16.mxu1 %v13494_v25  ;;  %v13778_v40 = vld [vmem:[#allocation5 + $0xe28] sm:$0xff] }
 0x1e8   : > { %17130 = vst [vmem:[#allocation38_spill] sm:$0xff] %v13778_v40  ;;  %v13811_v25 = vld [vmem:[#allocation5 + $0xf28] sm:$0xff]  ;;  %v13884_v40 = vld [vmem:[#allocation5 + $0xf8] sm:$0xff] }
 0x1e9   : > { %4164 = vmatpush1.bf16.msra.mxu0 %v10606_v17  ;;  %4310 = vmatpush1.bf16.msra.mxu1 %v10608_v21  ;;  %v13716_v17 = vrot.slane %v860_v35, %v13658_v46  ;;  %v13720_v21 = vld [vmem:[#allocation5 + $0xca0] sm:$0xff]  ;;  %v13757_v46 = vld [vmem:[#allocation5 + $0xde8] sm:$0xff]  ;;  %17136 = vst [vmem:[#allocation44_spill] sm:$0xff] %v13811_v25  ;;  %17149 = vst [vmem:[#allocation53_spill] sm:$0xff] %v13884_v40 }
 0x1ea   : > { %4165 = vmatprep.subr.bf16.mxu0 %v10623_v23  ;;  %4311 = vmatprep.subr.bf16.mxu1 %v10625_v29  ;;  %v13722_v23 = vld [vmem:[#allocation5 + $0xce0] sm:$0xff]  ;;  %v13780_v35 = vld [vmem:[#allocation5 + $0xe68] sm:$0xff]  ;;  %v13925_v25 = vld [vmem:[#allocation5 + $0x1b0] sm:$0xff] }
 0x1eb   : > { %17131 = vst [vmem:[#allocation39_spill] sm:$0xff] %v13780_v35  ;;  %v13782_v29 = vld [vmem:[#allocation5 + $0xea0] sm:$0xff]  ;;  %v13882_v35 = vld [vmem:[#allocation5 + $0xb8] sm:$0xff]  ;;  %17157 = vst [vmem:[#allocation58_spill] sm:$0xff] %v13925_v25 }
 0x1ec   : > { %4131 = vmatmul.mubr.bf16.gmra.mrb[36].mxu0 %v13502_v38  ;;  %4277 = vmatmul.mubr.bf16.gmra.mrb[36].mxu1 %v13502_v38  ;;  %17132 = vst [vmem:[#allocation40_spill] sm:$0xff] %v13782_v29  ;;  %v13796_v38 = vld [vmem:[#allocation5 + $0xee8] sm:$0xff]  ;;  %17148 = vst [vmem:[#allocation52_spill] sm:$0xff] %v13882_v35  ;;  %v13905_v29 = vld [vmem:[#allocation5 + $0x138] sm:$0xff]  ;;  %v17169_v35 = vcombine.low %v13674_v57, %v13676_v59 }
 0x1ed   : > { %4166 = vmatpush1.bf16.msra.mxu0 %v10622_v39  ;;  %4312 = vmatpush1.bf16.msra.mxu1 %v10624_v42  ;;  %v13734_v39 = vld [vmem:[#allocation5 + $0xd20] sm:$0xff]  ;;  %17135 = vst [vmem:[#allocation43_spill] sm:$0xff] %v13796_v38  ;;  %17153 = vst [vmem:[#allocation56_spill] sm:$0xff] %v13905_v29  ;;  %v13975_v40 = vld [vmem:[#allocation5 + $0x2f0] sm:$0xff]  ;;  %v17180_v38 = vcombine.low %v13678_v60, %v13680_v62  ;;  %v17183_v29 = vcombine.low %v13690_v4, %v13692_v6 }
 0x1ee   : > { %4167 = vmatprep.subr.bf16.mxu0 %v10639_v43  ;;  %4313 = vmatprep.subr.bf16.mxu1 %v10641_v55  ;;  %v13736_v42 = vld [vmem:[#allocation5 + $0xd60] sm:$0xff]  ;;  %v13738_v43 = vld [vmem:[#allocation5 + $0xd28] sm:$0xff]  ;;  %17168 = vst [vmem:[#allocation67_spill] sm:$0xff] %v13975_v40  ;;  %v14071_v40 = vld [vmem:[#allocation5 + $0x470] sm:$0xff] }
 0x1ef   : > { %4140 = vmatprep.mubr.bf16.mxu0 %v13506_v47  ;;  %4286 = vmatprep.mubr.bf16.mxu1 %v13506_v47  ;;  %v13784_v47 = vld [vmem:[#allocation5 + $0xee0] sm:$0xff]  ;;  %v13794_v55 = vld [vmem:[#allocation5 + $0xea8] sm:$0xff]  ;;  %17186 = vst [vmem:[#allocation79_spill] sm:$0xff] %v14071_v40 }
 0x1f0   : > { %17133 = vst [vmem:[#allocation41_spill] sm:$0xff] %v13784_v47  ;;  %17134 = vst [vmem:[#allocation42_spill] sm:$0xff] %v13794_v55  ;;  %v13901_v55 = vld [vmem:[#allocation5 + $0x130] sm:$0xff] }
 0x1f1   : > { %4168 = vmatpush1.bf16.msra.mxu0 %v10638_v52  ;;  %4314 = vmatpush1.bf16.msra.mxu1 %v10640_v54  ;;  %v13809_v52 = vld [vmem:[#allocation5 + $0xf60] sm:$0xff]  ;;  %v13861_v54 = vld [vmem:[#allocation5 + $0x38] sm:$0xff]  ;;  %17151 = vst [vmem:[#allocation54_spill] sm:$0xff] %v13901_v55  ;;  %v13903_v47 = vld [vmem:[#allocation5 + $0x170] sm:$0xff] }
 0x1f2   : > { %4169 = vmatprep.subr.bf16.mxu0 %v10655_v0  ;;  %4315 = vmatprep.subr.bf16.mxu1 %v10657_v3  ;;  %v17138_v3 = vcombine.low %v13630_v30, %v13632_v31  ;;  %v17141_v30 = vcombine.low %v13634_v33, %v13636_v34  ;;  %v17142_v31 = vcombine.high %v13639_v36, %v13641_v37  ;;  %v13843_v0 = vld [vmem:[#allocation5 + $0xfe8] sm:$0xff] }
 0x1f3   : > { %17143 = vst [vmem:[#allocation48_spill] sm:$0xff] %v13843_v0  ;;  %v17145_v34 = vcombine.high %v13660_v48, %v13662_v49  ;;  %17146 = vst [vmem:[#allocation50_spill] sm:$0xff] %v13861_v54  ;;  %v13942_v0 = vld [vmem:[#allocation5 + $0x1b8] sm:$0xff] }
 0x1f4   : > { %4141 = vmatmul.mubr.bf16.gmra.mrb[40].mxu0 %v13514_v61  ;;  %4287 = vmatmul.mubr.bf16.gmra.mrb[40].mxu1 %v13514_v61  ;;  %v13845_v61 = vld [vmem:[#allocation5 + $0x30] sm:$0xff]  ;;  %17152 = vst [vmem:[#allocation55_spill] sm:$0xff] %v13903_v47  ;;  %17160 = vst [vmem:[#allocation60_spill] sm:$0xff] %v13942_v0  ;;  %v13961_v54 = vld [vmem:[#allocation5 + $0x278] sm:$0xff] }
 0x1f5   : > { %4170 = vmatpush1.bf16.msra.mxu0 %v17138_v3  ;;  %4316 = vmatpush1.bf16.msra.mxu1 %v17141_v30  ;;  %v13863_v3 = vld [vmem:[#allocation5 + $0x78] sm:$0xff]  ;;  %17165 = vst [vmem:[#allocation65_spill] sm:$0xff] %v13961_v54 }
 0x1f6   : > { %4171 = vmatprep.subr.bf16.mxu0 %v17142_v31  ;;  %4317 = vmatprep.subr.bf16.mxu1 %v17145_v34  ;;  %17147 = vst [vmem:[#allocation51_spill] sm:$0xff] %v13863_v3  ;;  %v17150_v31 = vcombine.low %v13639_v36, %v13641_v37  ;;  %v17154_v37 = vcombine.low %v13660_v48, %v13662_v49  ;;  %v13927_v48 = vld [vmem:[#allocation5 + $0x1f0] sm:$0xff]  ;;  %v13959_v3 = vld [vmem:[#allocation5 + $0x238] sm:$0xff] }
 0x1f7   : > { %v13849_v33 = vpop.f32.mrb[0].mxu0  ;;  %4150 = vmatprep.mubr.bf16.mxu0 %v13518_v8  ;;  %v13867_v18 = vpop.f32.mrb[0].mxu1  ;;  %4296 = vmatprep.mubr.bf16.mxu1 %v13518_v8  ;;  %17158 = vst [vmem:[#allocation59_spill] sm:$0xff] %v13927_v48  ;;  %v13957_v8 = vld [vmem:[#allocation5 + $0x270] sm:$0xff]  ;;  %17164 = vst [vmem:[#allocation64_spill] sm:$0xff] %v13959_v3  ;;  %v14009_v48 = vld [vmem:[#allocation5 + $0x338] sm:$0xff] }
 0x1f8   : > { %v13869_v34 = vpop.f32.mrb[1].mxu0  ;;  %v13886_v41 = vpop.f32.mrb[1].mxu1  ;;  %17163 = vst [vmem:[#allocation63_spill] sm:$0xff] %v13957_v8  ;;  %17175 = vst [vmem:[#allocation72_spill] sm:$0xff] %v14009_v48  ;;  %v14027_v8 = vld [vmem:[#allocation5 + $0x378] sm:$0xff] }
 0x1f9   : > { %v13888_v30 = vpop.f32.mrb[2].mxu0  ;;  %4172 = vmatpush1.bf16.msra.mxu0 %v17150_v31  ;;  %v13907_v36 = vpop.f32.mrb[2].mxu1  ;;  %4318 = vmatpush1.bf16.msra.mxu1 %v17154_v37  ;;  %v13973_v37 = vld [vmem:[#allocation5 + $0x2b0] sm:$0xff]  ;;  %17177 = vst [vmem:[#allocation73_spill] sm:$0xff] %v14027_v8  ;;  %v14049_v3 = vld [vmem:[#allocation5 + $0x3b8] sm:$0xff]  ;;  %v14191_v47 = vadd.f32 %v13886_v41, %v13716_v17 }
 0x1fa   : > { %v13912_v31 = vpop.f32.mrb[3].mxu0  ;;  %4173 = vmatprep.subr.bf16.mxu0 %v17155_v2  ;;  %v13929_v49 = vpop.f32.mrb[3].mxu1  ;;  %v17159_v2 = vcombine.high %v13674_v57, %v13676_v59  ;;  %17167 = vst [vmem:[#allocation66_spill] sm:$0xff] %v13973_v37  ;;  %v17172_v57 = vcombine.high %v13678_v60, %v13680_v62  ;;  %v14035_v0 = vadd.f32 %v13888_v30, %v13700_v10  ;;  %17181 = vst [vmem:[#allocation76_spill] sm:$0xff] %v14049_v3  ;;  %v14051_v30 = vld [vmem:[#allocation5 + $0x3f8] sm:$0xff] }
 0x1fb   : > { %17182 = vst [vmem:[#allocation77_spill] sm:$0xff] %v14051_v30  ;;  %v14105_v8 = vld [vmem:[#allocation5 + $0x4b8] sm:$0xff]  ;;  %v17207_v3 = vcombine.low %v13720_v21, %v13722_v23 }
 0x1fc   : > { %4319 = vmatprep.subr.bf16.mxu1 %v17159_v2  ;;  %4151 = vmatmul.mubr.bf16.gmra.mrb[44].mxu0 %v13528_v22  ;;  %v13988_v2 = vld [vmem:[#allocation5 + $0x2b8] sm:$0xff]  ;;  %17192 = vst [vmem:[#allocation84_spill] sm:$0xff] %v14105_v8  ;;  %v4816_v48 = vmul.f32 0.044715, %v14035_v0  ;;  %v14185_v8 = vld [vmem:[#allocation5 + $0x630] sm:$0xff] }
 0x1fd   : > { %4174 = vmatpush1.bf16.msra.mxu0 %v17166_v44  ;;  %4297 = vmatmul.mubr.bf16.gmra.mrb[44].mxu1 %v13528_v22  ;;  %17170 = vst [vmem:[#allocation68_spill] sm:$0xff] %v13988_v2  ;;  %v14007_v44 = vld [vmem:[#allocation5 + $0x370] sm:$0xff]  ;;  %v14107_v62 = vld [vmem:[#allocation5 + $0x4f8] sm:$0xff]  ;;  %v17194_v2 = vcombine.low %v13694_v7, %v13696_v9  ;;  %17208 = vst [vmem:[#allocation95_spill] sm:$0xff] %v14185_v8  ;;  %v17224_v8 = vcombine.low %v13751_v12, %v13753_v1 }
 0x1fe   : > { %4320 = vmatpush1.bf16.msra.mxu1 %v17169_v35  ;;  %4175 = vmatprep.subr.bf16.mxu0 %v17172_v57  ;;  %17174 = vst [vmem:[#allocation71_spill] sm:$0xff] %v14007_v44  ;;  %v14013_v57 = vadd.f32 %v13849_v33, %v13700_v10  ;;  %v17176_v35 = vcombine.high %v13690_v4, %v13692_v6  ;;  %v14029_v33 = vld [vmem:[#allocation5 + $0x3b0] sm:$0xff]  ;;  %v14073_v4 = vld [vmem:[#allocation5 + $0x438] sm:$0xff]  ;;  %17193 = vst [vmem:[#allocation85_spill] sm:$0xff] %v14107_v62 }
 0x1ff   : > { %v13992_v22 = vpop.f32.mrb[4].mxu0  ;;  %v14015_v59 = vpop.f32.mrb[4].mxu1  ;;  %4193 = vmatprep.mubr.bf16.mxu0 %v13530_v32  ;;  %17178 = vst [vmem:[#allocation74_spill] sm:$0xff] %v14029_v33  ;;  %4339 = vmatprep.mubr.bf16.mxu1 %v13530_v32  ;;  %v14069_v32 = vld [vmem:[#allocation5 + $0x430] sm:$0xff]  ;;  %17187 = vst [vmem:[#allocation80_spill] sm:$0xff] %v14073_v4  ;;  %v14077_v6 = vadd.f32 %v13867_v18, %v13703_v11  ;;  %v14090_v44 = vld [vmem:[#allocation5 + $0x478] sm:$0xff]  ;;  %v17197_v33 = vcombine.low %v13707_v13, %v13709_v14 }
 0x200   : > { %v14017_v53 = vpop.f32.mrb[5].mxu0  ;;  %4321 = vmatprep.subr.bf16.mxu1 %v17176_v35  ;;  %v14037_v25 = vpop.f32.mrb[5].mxu1  ;;  %17185 = vst [vmem:[#allocation78_spill] sm:$0xff] %v14069_v32  ;;  %17189 = vst [vmem:[#allocation81_spill] sm:$0xff] %v14090_v44  ;;  %v14094_v18 = vld [vmem:[#allocation5 + $0x4f0] sm:$0xff]  ;;  %v14135_v54 = vld [vmem:[#allocation5 + $0x538] sm:$0xff]  ;;  %v4944_v51 = vmul.f32 %v14035_v0, %v4816_v48 }
 0x201   : > { %v14039_v35 = vpop.f32.mrb[6].mxu0  ;;  %4176 = vmatpush1.bf16.msra.mxu0 %v17180_v38  ;;  %v14053_v15 = vpop.f32.mrb[6].mxu1  ;;  %v17184_v38 = vcombine.high %v13694_v7, %v13696_v9  ;;  %17191 = vst [vmem:[#allocation83_spill] sm:$0xff] %v14094_v18  ;;  %v4800_v27 = vmul.f32 0.044715, %v14013_v57  ;;  %v17198_v7 = vcombine.high %v13720_v21, %v13722_v23  ;;  %17199 = vst [vmem:[#allocation88_spill] sm:$0xff] %v14135_v54 }
 0x202   : > { %4322 = vmatpush1.bf16.msra.mxu1 %v17183_v29  ;;  %v14058_v60 = vpop.f32.mrb[7].mxu0  ;;  %v14079_v29 = vpop.f32.mrb[7].mxu1  ;;  %v14155_v44 = vld [vmem:[#allocation5 + $0x5f0] sm:$0xff]  ;;  %v14167_v18 = vld [vmem:[#allocation5 + $0x5b8] sm:$0xff]  ;;  %v17210_v21 = vcombine.low %v13724_v24, %v13726_v26  ;;  %v5072_v54 = vmul.f32 %v14035_v0, %v4944_v51  ;;  %v14248_v51 = vmul.f32 0.5, %v14077_v6 }
 0x203   : > { %4177 = vmatprep.subr.bf16.mxu0 %v17184_v38  ;;  %v17188_v38 = vcombine.high %v13707_v13, %v13709_v14  ;;  %v4802_v13 = vmul.f32 0.044715, %v14077_v6  ;;  %v14142_v14 = vadd.f32 %v13869_v34, %v13713_v16  ;;  %17204 = vst [vmem:[#allocation92_spill] sm:$0xff] %v14155_v44  ;;  %v4928_v4 = vmul.f32 %v14013_v57, %v4800_v27  ;;  %v14169_v37 = vld [vmem:[#allocation5 + $0x5f8] sm:$0xff]  ;;  %v14187_v48 = vld [vmem:[#allocation5 + $0x670] sm:$0xff] }
 0x204   : > { %17205 = vst [vmem:[#allocation93_spill] sm:$0xff] %v14167_v18  ;;  %17206 = vst [vmem:[#allocation94_spill] sm:$0xff] %v14169_v37  ;;  %v14207_v41 = vld [vmem:[#allocation5 + $0x638] sm:$0xff]  ;;  %v17227_v37 = vcombine.low %v13755_v63, %v13757_v46 }
 0x205   : > { %4323 = vmatprep.subr.bf16.mxu1 %v17188_v38  ;;  %v14099_v38 = vadd.f32 %v13907_v36, %v13703_v11  ;;  %4178 = vmatpush1.bf16.msra.mxu0 %v17194_v2  ;;  %v14137_v36 = vld [vmem:[#allocation5 + $0x578] sm:$0xff]  ;;  %17201 = vst [vmem:[#allocation90_spill] sm:$0xff] %v14142_v14  ;;  %v14153_v2 = vld [vmem:[#allocation5 + $0x5b0] sm:$0xff]  ;;  %17209 = vst [vmem:[#allocation96_spill] sm:$0xff] %v14187_v48  ;;  %v5056_v62 = vmul.f32 %v14013_v57, %v4928_v4 }
 0x206   : > { %4324 = vmatpush1.bf16.msra.mxu1 %v17197_v33  ;;  %4179 = vmatprep.subr.bf16.mxu0 %v17198_v7  ;;  %17200 = vst [vmem:[#allocation89_spill] sm:$0xff] %v14137_v36  ;;  %v17202_v7 = vcombine.high %v13724_v24, %v13726_v26  ;;  %17203 = vst [vmem:[#allocation91_spill] sm:$0xff] %v14153_v2  ;;  %v4930_v36 = vmul.f32 %v14077_v6, %v4802_v13  ;;  %v4801_v24 = vmul.f32 0.044715, %v14142_v14 }
 0x207   : > { %v14144_v33 = vpop.f32.mrb[8].mxu0  ;;  %v4818_v34 = vmul.f32 0.044715, %v14099_v38  ;;  %v14159_v40 = vpop.f32.mrb[8].mxu1  ;;  %17212 = vst [vmem:[#allocation97_spill] sm:$0xff] %v14207_v41  ;;  %v14226_v13 = vadd.f32 %v13912_v31, %v13713_v16  ;;  %v17215_v4 = vcombine.low %v13734_v39, %v13736_v42  ;;  %17217 = vst [vmem:[#allocation100_spill] sm:$0xff] %v14248_v51  ;;  %v14253_v2 = vadd.f32 %v14015_v59, %v13703_v11 }
 0x208   : > { %4325 = vmatprep.subr.bf16.mxu1 %v17202_v7  ;;  %v14161_v32 = vpop.f32.mrb[9].mxu0  ;;  %v14172_v30 = vpop.f32.mrb[9].mxu1  ;;  %v14209_v7 = vld [vmem:[#allocation5 + $0x678] sm:$0xff]  ;;  %v14266_v31 = vadd.f32 %v14037_v25, %v13716_v17  ;;  %v17221_v59 = vcombine.high %v13751_v12, %v13753_v1  ;;  %v17223_v25 = vcombine.high %v13755_v63, %v13757_v46  ;;  %v5200_v41 = vadd.f32 %v14035_v0, %v5072_v54  ;;  %v17231_v46 = vld [vmem:[#allocation39_spill] sm:$0xff] }
 0x209   : > { %v14174_v27 = vpop.f32.mrb[10].mxu0  ;;  %4180 = vmatpush1.bf16.msra.mxu0 %v17207_v3  ;;  %v14193_v55 = vpop.f32.mrb[10].mxu1  ;;  %v17211_v3 = vcombine.high %v13734_v39, %v13736_v42  ;;  %17213 = vst [vmem:[#allocation98_spill] sm:$0xff] %v14209_v7  ;;  %v4946_v44 = vmul.f32 %v14099_v38, %v4818_v34  ;;  %v14245_v34 = vmul.f32 0.5, %v14013_v57  ;;  %17218 = vst [vmem:[#allocation101_spill] sm:$0xff] %v14253_v2  ;;  %v14302_v54 = vmul.f32 0.5, %v14099_v38 }
 0x20a   : > { %4326 = vmatpush1.bf16.msra.mxu1 %v17210_v21  ;;  %v14198_v23 = vpop.f32.mrb[11].mxu0  ;;  %v14213_v26 = vpop.f32.mrb[11].mxu1  ;;  %v17214_v21 = vcombine.high %v13738_v43, %v13740_v19  ;;  %v5058_v39 = vmul.f32 %v14077_v6, %v4930_v36  ;;  %v4929_v42 = vmul.f32 %v14142_v14, %v4801_v24  ;;  %17220 = vst [vmem:[#allocation102_spill] sm:$0xff] %v14266_v31  ;;  %v4835_v5 = vmul.f32 0.044715, %v14266_v31 }
 0x20b   : > { %4181 = vmatprep.subr.bf16.mxu0 %v17211_v3  ;;  %v14237_v3 = vadd.f32 %v13992_v22, %v13700_v10  ;;  %17216 = vst [vmem:[#allocation99_spill] sm:$0xff] %v14245_v34  ;;  %v17219_v22 = vcombine.low %v13738_v43, %v13740_v19  ;;  %v5184_v19 = vadd.f32 %v14013_v57, %v5056_v62  ;;  %v14275_v43 = vmul.f32 0.5, %v14035_v0 }
 0x20c   : > { %4327 = vmatprep.subr.bf16.mxu1 %v17214_v21  ;;  %v14233_v21 = vadd.f32 %v13929_v49, %v13716_v17  ;;  %v4803_v49 = vmul.f32 0.044715, %v14191_v47  ;;  %v5074_v36 = vmul.f32 %v14099_v38, %v4946_v44  ;;  %v14291_v62 = vadd.f32 %v14039_v35, %v13700_v10  ;;  %17225 = vst [vmem:[#allocation104_spill] sm:$0xff] %v14302_v54  ;;  %v17230_v54 = vld [vmem:[#allocation38_spill] sm:$0xff] }
 0x20d   : > { %4182 = vmatpush1.bf16.msra.mxu0 %v17215_v4  ;;  %v14262_v4 = vadd.f32 %v14017_v53, %v13713_v16  ;;  %17222 = vst [vmem:[#allocation103_spill] sm:$0xff] %v14275_v43  ;;  %v4817_v53 = vmul.f32 0.044715, %v14226_v13  ;;  %v4832_v57 = vmul.f32 0.044715, %v14237_v3  ;;  %v14307_v48 = vadd.f32 %v14053_v15, %v13703_v11 }
 0x20e   : > { %4328 = vmatpush1.bf16.msra.mxu1 %v17219_v22  ;;  %4183 = vmatprep.subr.bf16.mxu0 %v17221_v59  ;;  %v4819_v59 = vmul.f32 0.044715, %v14233_v21  ;;  %v4834_v0 = vmul.f32 0.044715, %v14253_v2  ;;  %v5186_v12 = vadd.f32 %v14077_v6, %v5058_v39  ;;  %v17232_v63 = vcombine.high %v17230_v54, %v17231_v46 }
 0x20f   : > { %v14268_v9 = vpop.f32.mrb[12].mxu0  ;;  %v14279_v24 = vpop.f32.mrb[12].mxu1  ;;  %4329 = vmatprep.subr.bf16.mxu1 %v17223_v25  ;;  %v4931_v25 = vmul.f32 %v14191_v47, %v4803_v49  ;;  %17226 = vst [vmem:[#allocation105_spill] sm:$0xff] %v14307_v48  ;;  %v14321_v49 = vmul.f32 %v14142_v14, %v4929_v42  ;;  %v4833_v15 = vmul.f32 0.044715, %v14262_v4  ;;  %v5202_v51 = vadd.f32 %v14099_v38, %v5074_v36 }
 0x210   : > { %v14281_v22 = vpop.f32.mrb[13].mxu0  ;;  %v14293_v44 = vpop.f32.mrb[13].mxu1  ;;  %v14334_v6 = vadd.f32 %v14058_v60, %v13713_v16  ;;  %v5328_v39 = vmul.f32 0.7978846, %v5200_v41  ;;  %v4947_v42 = vmul.f32 %v14233_v21, %v4819_v59  ;;  %v4960_v43 = vmul.f32 %v14237_v3, %v4832_v57  ;;  %v17236_v57 = vld [vmem:[#allocation40_spill] sm:$0xff] }
 0x211   : > { %v14295_v7 = vpop.f32.mrb[14].mxu0  ;;  %4184 = vmatpush1.bf16.msra.mxu0 %v17224_v8  ;;  %v14309_v35 = vpop.f32.mrb[14].mxu1  ;;  %v17228_v8 = vld [vmem:[#allocation37_spill] sm:$0xff]  ;;  %v4848_v34 = vmul.f32 0.044715, %v14291_v62  ;;  %v4962_v38 = vmul.f32 %v14253_v2, %v4834_v0  ;;  %v14349_v60 = vadd.f32 %v14079_v29, %v13716_v17  ;;  %v17235_v41 = vcombine.low %v17230_v54, %v17231_v46 }
 0x212   : > { %4330 = vmatpush1.bf16.msra.mxu1 %v17227_v37  ;;  %v14314_v18 = vpop.f32.mrb[15].mxu0  ;;  %v17229_v1 = vcombine.high %v13768_v45, %v17228_v8  ;;  %v14325_v50 = vpop.f32.mrb[15].mxu1  ;;  %v5312_v37 = vmul.f32 0.7978846, %v5184_v19  ;;  %v17233_v14 = vcombine.low %v13768_v45, %v17228_v8  ;;  %v14343_v19 = vmul.f32 %v14191_v47, %v4931_v25  ;;  %v17237_v25 = vld [vmem:[#allocation41_spill] sm:$0xff] }
 0x213   : > { %4331 = vmatprep.subr.bf16.mxu1 %v17232_v63  ;;  %v4850_v36 = vmul.f32 0.044715, %v14307_v48  ;;  %17234 = vst [vmem:[#allocation37_spill] sm:$0xff] %v14349_v60  ;;  %v4961_v45 = vmul.f32 %v14262_v4, %v4833_v15  ;;  %v14360_v59 = vadd.f32 %v14144_v33, %v13700_v10  ;;  %v17238_v0 = vcombine.high %v17236_v57, %v17237_v25  ;;  %v17240_v15 = vld [vmem:[#allocation43_spill] sm:$0xff] }
 0x214   : > { %4185 = vmatprep.subr.bf16.mxu0 %v17229_v1  ;;  %v4945_v1 = vmul.f32 %v14226_v13, %v4817_v53  ;;  %v14354_v53 = vmul.f32 0.7978846, %v5186_v12  ;;  %12735 = vtanh.f32 %v5312_v37  ;;  %v14365_v29 = vmul.f32 0.7978846, %v5202_v51  ;;  %v17239_v12 = vld [vmem:[#allocation42_spill] sm:$0xff] }
 0x215   : > { %4186 = vmatpush1.bf16.msra.mxu0 %v17233_v14  ;;  %v4963_v14 = vmul.f32 %v14266_v31, %v4835_v5  ;;  %v4849_v8 = vmul.f32 0.044715, %v14334_v6  ;;  %v17241_v46 = vcombine.high %v17239_v12, %v17240_v15  ;;  %12737 = vtanh.f32 %v5328_v39 }
 0x216   : > { %4332 = vmatpush1.bf16.msra.mxu1 %v17235_v41  ;;  %4187 = vmatprep.subr.bf16.mxu0 %v17238_v0  ;;  %v14368_v54 = vmul.f32 %v14226_v13, %v4945_v1  ;;  %v14375_v5 = vmul.f32 %v14233_v21, %v4947_v42  ;;  %v14378_v33 = vmul.f32 %v14237_v3, %v4960_v43  ;;  %v4851_v41 = vmul.f32 0.044715, %v14349_v60 }
 0x217   : > { %4333 = vmatprep.subr.bf16.mxu1 %v17241_v46  ;;  %v4976_v63 = vmul.f32 %v14291_v62, %v4848_v34  ;;  %v17242_v51 = vcombine.low %v17236_v57, %v17237_v25  ;;  %v14385_v37 = vmul.f32 %v14253_v2, %v4962_v38  ;;  %v4978_v1 = vmul.f32 %v14307_v48, %v4850_v36  ;;  %v17247_v57 = vld [vmem:[#allocation44_spill] sm:$0xff]  ;;  %v17248_v25 = vld [vmem:[#allocation45_spill] sm:$0xff] }
 0x218   : > { %v14391_v39 = vadd.f32 %v14159_v40, %v13703_v11  ;;  %v17244_v43 = vcombine.low %v17239_v12, %v17240_v15  ;;  %v17245_v34 = vcombine.high %v13798_v20, %v13809_v52  ;;  %v14400_v42 = vmul.f32 %v14262_v4, %v4961_v45 }
 0x219   : > { %4188 = vmatpush1.bf16.msra.mxu0 %v17242_v51  ;;  %17243 = vst [vmem:[#allocation38_spill] sm:$0xff] %v14385_v37  ;;  %v14403_v38 = vmul.f32 %v14266_v31, %v4963_v14  ;;  %v4864_v36 = vmul.f32 0.044715, %v14360_v59  ;;  %v14408_v40 = vadd.f32 %v14161_v32, %v13713_v16  ;;  %v17249_v0 = vcombine.high %v17247_v57, %v17248_v25 }
 0x21a   : > { %4334 = vmatpush1.bf16.msra.mxu1 %v17244_v43  ;;  %4189 = vmatprep.subr.bf16.mxu0 %v17245_v34  ;;  %v4977_v12 = vmul.f32 %v14334_v6, %v4849_v8  ;;  %v14416_v15 = vadd.f32 %v14172_v30, %v13716_v17  ;;  %v14420_v45 = vadd.f32 %v14174_v27, %v13700_v10  ;;  %v17257_v34 = vld [vmem:[#allocation48_spill] sm:$0xff]  ;;  %12739 = vtanh.f32 %v14354_v53 }
 0x21b   : > { %17246 = vst [vmem:[#allocation39_spill] sm:$0xff] %v14403_v38  ;;  %4335 = vmatprep.subr.bf16.mxu1 %v17249_v0  ;;  %v14424_v14 = vadd.f32 %v14193_v55, %v13703_v11  ;;  %v14427_v32 = vmul.f32 %v14291_v62, %v4976_v63  ;;  %v14431_v46 = vadd.f32 %v14198_v23, %v13713_v16  ;;  %v4866_v23 = vmul.f32 0.044715, %v14391_v39 }
 0x21c   : > { %v14435_v8 = vadd.f32 %v14213_v26, %v13716_v17  ;;  %v14439_v30 = vadd.f32 %v14268_v9, %v13700_v10  ;;  %v17250_v27 = vcombine.low %v13798_v20, %v13809_v52  ;;  %v14445_v55 = vmul.f32 %v14307_v48, %v4978_v1  ;;  %v17254_v9 = vld [vmem:[#allocation46_spill] sm:$0xff] }
 0x21d   : > { %v4979_v63 = vmul.f32 %v14349_v60, %v4851_v41  ;;  %v14451_v51 = vadd.f32 %v14279_v24, %v13703_v11  ;;  %v17253_v26 = vcombine.low %v17247_v57, %v17248_v25  ;;  %v17255_v43 = vcombine.high %v13825_v58, %v17254_v9  ;;  %v17256_v41 = vld [vmem:[#allocation47_spill] sm:$0xff] }
 0x21e   : > { %4190 = vmatpush1.bf16.msra.mxu0 %v17250_v27  ;;  %17251 = vst [vmem:[#allocation40_spill] sm:$0xff] %v14445_v55  ;;  %v4992_v20 = vmul.f32 %v14360_v59, %v4864_v36  ;;  %v4865_v52 = vmul.f32 0.044715, %v14408_v40  ;;  %v14463_v1 = vadd.f32 %v14281_v22, %v13713_v16  ;;  %v14467_v24 = vadd.f32 %v14293_v44, %v13716_v17 }
 0x21f   : > { %17252 = vst [vmem:[#allocation41_spill] sm:$0xff] %v14451_v51  ;;  %4336 = vmatpush1.bf16.msra.mxu1 %v17253_v26  ;;  %4191 = vmatprep.subr.bf16.mxu0 %v17255_v43  ;;  %v17258_v57 = vcombine.high %v17256_v41, %v17257_v34  ;;  %v14473_v25 = vmul.f32 %v14334_v6, %v4977_v12  ;;  %v4867_v0 = vmul.f32 0.044715, %v14416_v15  ;;  %v4880_v36 = vmul.f32 0.044715, %v14420_v45 }
 0x220   : > { %v4882_v27 = vmul.f32 0.044715, %v14424_v14  ;;  %v4881_v22 = vmul.f32 0.044715, %v14431_v46  ;;  %v4883_v26 = vmul.f32 0.044715, %v14435_v8  ;;  %v14483_v43 = vadd.f32 %v14295_v7, %v13700_v10 }
 0x221   : > { %4337 = vmatprep.subr.bf16.mxu1 %v17258_v57  ;;  %v4896_v44 = vmul.f32 0.044715, %v14439_v30  ;;  %v17259_v12 = vcombine.low %v13825_v58, %v17254_v9  ;;  %v12736_v57 = vpop.eup %12735  ;;  %v14489_v48 = vmul.f32 %v14349_v60, %v4979_v63  ;;  %v4994_v55 = vmul.f32 %v14391_v39, %v4866_v23  ;;  %v17262_v7 = vld [vmem:[#allocation49_spill] sm:$0xff] }
 0x222   : > { %v4898_v2 = vmul.f32 0.044715, %v14451_v51  ;;  %v14495_v37 = vadd.f32 %v14309_v35, %v13703_v11  ;;  %v17261_v10 = vcombine.low %v17256_v41, %v17257_v34  ;;  %v17263_v58 = vcombine.high %v13845_v61, %v17262_v7  ;;  %v12738_v9 = vpop.eup %12737  ;;  %v17264_v11 = vld [vmem:[#allocation50_spill] sm:$0xff]  ;;  %v17265_v35 = vld [vmem:[#allocation51_spill] sm:$0xff] }
 0x223   : > { %4192 = vmatpush1.bf16.msra.mxu0 %v17259_v12  ;;  %17260 = vst [vmem:[#allocation42_spill] sm:$0xff] %v14489_v48  ;;  %v4993_v63 = vmul.f32 %v14408_v40, %v4865_v52  ;;  %v4897_v12 = vmul.f32 0.044715, %v14463_v1  ;;  %v4899_v23 = vmul.f32 0.044715, %v14467_v24  ;;  %v14508_v60 = vadd.f32 %v14314_v18, %v13713_v16 }
 0x224   : > { %4338 = vmatpush1.bf16.msra.mxu1 %v17261_v10  ;;  %4380 = vmatprep.subr.bf16.mxu0 %v17263_v58  ;;  %v17266_v48 = vcombine.high %v17264_v11, %v17265_v35  ;;  %v14514_v41 = vmul.f32 %v14360_v59, %v4992_v20  ;;  %v4995_v34 = vmul.f32 %v14416_v15, %v4867_v0  ;;  %v17267_v58 = vld [vmem:[#allocation25_spill] sm:$0xff]  ;;  %v4912_v38 = vmul.f32 0.044715, %v14483_v43 }
 0x225   : > { %v5008_v10 = vmul.f32 %v14420_v45, %v4880_v36  ;;  %v5010_v52 = vmul.f32 %v14424_v14, %v4882_v27  ;;  %v5009_v31 = vmul.f32 %v14431_v46, %v4881_v22  ;;  %v5011_v16 = vmul.f32 %v14435_v8, %v4883_v26 }
 0x226   : > { %4526 = vmatprep.subr.bf16.mxu1 %v17266_v48  ;;  %4194 = vmatmul.mubr.bf16.vlgmr.msra.gmra.mrb[32].mxu0 %v17267_v58  ;;  %v5024_v18 = vmul.f32 %v14439_v30, %v4896_v44  ;;  %v17268_v48 = vcombine.low %v13845_v61, %v17262_v7  ;;  %v14529_v20 = vmul.f32 %v14391_v39, %v4994_v55  ;;  %v4914_v36 = vmul.f32 0.044715, %v14495_v37  ;;  %v17271_v7 = vld [vmem:[#allocation52_spill] sm:$0xff] }
 0x227   : > { %4340 = vmatmul.mubr.bf16.vlgmr.msra.gmra.mrb[32].mxu1 %v17267_v58  ;;  %v5026_v0 = vmul.f32 %v14451_v51, %v4898_v2  ;;  %v14535_v27 = vadd.f32 %v14325_v50, %v13716_v17  ;;  %v17269_v22 = vcombine.low %v17264_v11, %v17265_v35  ;;  %v17270_v26 = vcombine.high %v13865_v28, %v13880_v56  ;;  %v17274_v50 = vld [vmem:[#allocation26_spill] sm:$0xff] }
 0x228   : > { %4381 = vmatpush1.bf16.msra.mxu0 %v17268_v48  ;;  %v5121_v61 = vmul.f32 %v14408_v40, %v4993_v63  ;;  %v5025_v55 = vmul.f32 %v14463_v1, %v4897_v12  ;;  %v5027_v2 = vmul.f32 %v14467_v24, %v4899_v23  ;;  %v4913_v44 = vmul.f32 0.044715, %v14508_v60  ;;  %v17272_v48 = vld [vmem:[#allocation53_spill] sm:$0xff]  ;;  %4203 = vmatprep.mubr.bf16.mxu0 %v17274_v50 }
 0x229   : > { %4527 = vmatpush1.bf16.msra.mxu1 %v17269_v22  ;;  %4382 = vmatprep.subr.bf16.mxu0 %v17270_v26  ;;  %v17273_v17 = vcombine.high %v17271_v7, %v17272_v48  ;;  %v14552_v11 = vmul.f32 %v14416_v15, %v4995_v34  ;;  %v5136_v35 = vmul.f32 %v14420_v45, %v5008_v10  ;;  %v5568_v63 = vadd.f32 1.0, %v12736_v57 }
 0x22a   : > { %v14556_v22 = vmul.f32 %v14424_v14, %v5010_v52  ;;  %4349 = vmatprep.mubr.bf16.mxu1 %v17274_v50  ;;  %v5137_v12 = vmul.f32 %v14431_v46, %v5009_v31  ;;  %v14561_v23 = vmul.f32 %v14435_v8, %v5011_v16  ;;  %v14564_v26 = vmul.f32 %v14439_v30, %v5024_v18  ;;  %v17278_v16 = vld [vmem:[#allocation54_spill] sm:$0xff]  ;;  %v17279_v18 = vld [vmem:[#allocation55_spill] sm:$0xff] }
 0x22b   : > { %4528 = vmatprep.subr.bf16.mxu1 %v17273_v17  ;;  %v5040_v17 = vmul.f32 %v14483_v43, %v4912_v38  ;;  %v17275_v34 = vcombine.low %v13865_v28, %v13880_v56  ;;  %v14571_v10 = vmul.f32 %v14451_v51, %v5026_v0  ;;  %v5042_v52 = vmul.f32 %v14495_v37, %v4914_v36  ;;  %v17281_v0 = vld [vmem:[#allocation56_spill] sm:$0xff]  ;;  %v17282_v36 = vld [vmem:[#allocation57_spill] sm:$0xff]  ;;  %v17284_v51 = vld [vmem:[#allocation90_spill] sm:$0xff] }
 0x22c   : > { %v4915_v57 = vmul.f32 0.044715, %v14535_v27  ;;  %v17277_v31 = vcombine.low %v17271_v7, %v17272_v48  ;;  %v17280_v50 = vcombine.high %v17278_v16, %v17279_v18  ;;  %v5584_v38 = vadd.f32 1.0, %v12738_v9  ;;  %v17285_v48 = vld [vmem:[#allocation27_spill] sm:$0xff] }
 0x22d   : > { %4383 = vmatpush1.bf16.msra.mxu0 %v17275_v34  ;;  %17276 = vst [vmem:[#allocation43_spill] sm:$0xff] %v14571_v10  ;;  %v5153_v58 = vmul.f32 %v14463_v1, %v5025_v55  ;;  %v14583_v56 = vmul.f32 %v14467_v24, %v5027_v2  ;;  %v5041_v28 = vmul.f32 %v14508_v60, %v4913_v44  ;;  %v17286_v9 = vld [vmem:[#allocation99_spill] sm:$0xff]  ;;  %12741 = vtanh.f32 %v14365_v29 }
 0x22e   : > { %4529 = vmatpush1.bf16.msra.mxu1 %v17277_v31  ;;  %4384 = vmatprep.subr.bf16.mxu0 %v17280_v50  ;;  %v17283_v34 = vcombine.high %v17281_v0, %v17282_v36  ;;  %v5185_v7 = vadd.f32 %v17284_v51, %v14321_v49  ;;  %v5201_v50 = vadd.f32 %v14226_v13, %v14368_v54  ;;  %v17287_v55 = vld [vmem:[#allocation103_spill] sm:$0xff] }
 0x22f   : > { %4204 = vmatmul.mubr.bf16.gmra.mrb[36].mxu0 %v17285_v48  ;;  %v5696_v31 = vmul.f32 %v5568_v63, %v17286_v9  ;;  %v5712_v10 = vmul.f32 %v5584_v38, %v17287_v55  ;;  %v5217_v2 = vadd.f32 %v14262_v4, %v14400_v42  ;;  %v5168_v44 = vmul.f32 %v14483_v43, %v5040_v17  ;;  %v17290_v17 = vld [vmem:[#allocation58_spill] sm:$0xff]  ;;  %v17291_v38 = vld [vmem:[#allocation59_spill] sm:$0xff] }
 0x230   : > { %4530 = vmatprep.subr.bf16.mxu1 %v17283_v34  ;;  %4350 = vmatmul.mubr.bf16.gmra.mrb[36].mxu1 %v17285_v48  ;;  %v17288_v49 = vcombine.low %v17278_v16, %v17279_v18  ;;  %v5233_v54 = vadd.f32 %v14334_v6, %v14473_v25  ;;  %v5216_v63 = vadd.f32 %v14237_v3, %v14378_v33  ;;  %v17294_v33 = vld [vmem:[#allocation60_spill] sm:$0xff] }
 0x231   : > { %v5043_v42 = vmul.f32 %v14535_v27, %v4915_v57  ;;  %v17289_v53 = vcombine.low %v17281_v0, %v17282_v36  ;;  %v17292_v34 = vcombine.high %v17290_v17, %v17291_v38  ;;  %v14616_v16 = vpack.c.bf16 %v5712_v10, %v5696_v31  ;;  %v17295_v57 = vld [vmem:[#allocation61_spill] sm:$0xff]  ;;  %v17297_v0 = vld [vmem:[#allocation28_spill] sm:$0xff] }
 0x232   : > { %4385 = vmatpush1.bf16.msra.mxu0 %v17288_v49  ;;  %v5232_v25 = vadd.f32 %v14291_v62, %v14427_v32  ;;  %v14621_v18 = vmul.f32 %v14495_v37, %v5042_v52  ;;  %v5169_v29 = vmul.f32 %v14508_v60, %v5041_v28  ;;  %v17296_v9 = vcombine.high %v17294_v33, %v17295_v57 }
 0x233   : > { %4531 = vmatpush1.bf16.msra.mxu1 %v17289_v53  ;;  %4386 = vmatprep.subr.bf16.mxu0 %v17292_v34  ;;  %17293 = vst [vmem:[#allocation44_spill] sm:$0xff] %v14616_v16  ;;  %v5313_v36 = vmul.f32 0.7978846, %v5185_v7  ;;  %v5249_v55 = vadd.f32 %v14408_v40, %v5121_v61  ;;  %v5329_v10 = vmul.f32 0.7978846, %v5201_v50  ;;  %v5265_v32 = vadd.f32 %v14431_v46, %v5137_v12  ;;  %v17300_v12 = vld [vmem:[#allocation62_spill] sm:$0xff] }
 0x234   : > { %4532 = vmatprep.subr.bf16.mxu1 %v17296_v9  ;;  %4213 = vmatprep.mubr.bf16.mxu0 %v17297_v0  ;;  %v5345_v31 = vmul.f32 0.7978846, %v5217_v2  ;;  %v5361_v49 = vmul.f32 0.7978846, %v5233_v54  ;;  %v17298_v52 = vcombine.low %v17290_v17, %v17291_v38  ;;  %v14635_v28 = vmul.f32 0.5, %v17284_v51  ;;  %v17301_v2 = vld [vmem:[#allocation63_spill] sm:$0xff] }
 0x235   : > { %4359 = vmatprep.mubr.bf16.mxu1 %v17297_v0  ;;  %12743 = vtanh.f32 %v5313_v36  ;;  %v5344_v53 = vmul.f32 0.7978846, %v5216_v63  ;;  %v5248_v7 = vadd.f32 %v14360_v59, %v14514_v41  ;;  %v14640_v61 = vmul.f32 %v14535_v27, %v5043_v42  ;;  %v17303_v38 = vld [vmem:[#allocation64_spill] sm:$0xff]  ;;  %v17304_v63 = vld [vmem:[#allocation65_spill] sm:$0xff] }
 0x236   : > { %4387 = vmatpush1.bf16.msra.mxu0 %v17298_v52  ;;  %v17299_v50 = vcombine.low %v17294_v33, %v17295_v57  ;;  %v17302_v54 = vcombine.high %v17300_v12, %v17301_v2  ;;  %12745 = vtanh.f32 %v5329_v10  ;;  %v5360_v17 = vmul.f32 0.7978846, %v5232_v25  ;;  %v17306_v57 = vld [vmem:[#allocation29_spill] sm:$0xff]  ;;  %v12740_v52 = vpop.eup %12739  ;;  %v17423_v0 = vld [vmem:[#allocation24_spill] sm:$0xff] }
 0x237   : > { %v5264_v51 = vadd.f32 %v14420_v45, %v5136_v35  ;;  %v17305_v34 = vcombine.high %v17303_v38, %v17304_v63  ;;  %v14653_v41 = vmul.f32 0.5, %v14226_v13  ;;  %v14656_v42 = vmul.f32 0.5, %v14262_v4  ;;  %4214 = vmatmul.mubr.bf16.gmra.mrb[40].mxu0 %v17306_v57 }
 0x238   : > { %4533 = vmatpush1.bf16.msra.mxu1 %v17299_v50  ;;  %4388 = vmatprep.subr.bf16.mxu0 %v17302_v54  ;;  %12747 = vtanh.f32 %v5345_v31  ;;  %v5377_v33 = vmul.f32 0.7978846, %v5249_v55  ;;  %v5393_v9 = vmul.f32 0.7978846, %v5265_v32  ;;  %v5281_v25 = vadd.f32 %v14463_v1, %v5153_v58  ;;  %v17309_v58 = vld [vmem:[#allocation66_spill] sm:$0xff]  ;;  %v12742_v54 = vpop.eup %12741 }
 0x239   : > { %4534 = vmatprep.subr.bf16.mxu1 %v17305_v34  ;;  %12749 = vtanh.f32 %v5361_v49  ;;  %v5297_v35 = vadd.f32 %v14508_v60, %v5169_v29  ;;  %4360 = vmatmul.mubr.bf16.gmra.mrb[40].mxu1 %v17306_v57  ;;  %v17307_v36 = vcombine.low %v17300_v12, %v17301_v2  ;;  %v14666_v13 = vmul.f32 0.5, %v14334_v6  ;;  %v17310_v29 = vld [vmem:[#allocation67_spill] sm:$0xff] }
 0x23a   : > { %12751 = vtanh.f32 %v5344_v53  ;;  %v5376_v4 = vmul.f32 0.7978846, %v5248_v7  ;;  %v5280_v55 = vadd.f32 %v14439_v30, %v14564_v26  ;;  %v17308_v10 = vcombine.low %v17303_v38, %v17304_v63  ;;  %v17312_v53 = vld [vmem:[#allocation68_spill] sm:$0xff]  ;;  %v17313_v7 = vld [vmem:[#allocation69_spill] sm:$0xff]  ;;  %v17315_v26 = vld [vmem:[#allocation30_spill] sm:$0xff] }
 0x23b   : > { %4389 = vmatpush1.bf16.msra.mxu0 %v17307_v36  ;;  %v17311_v31 = vcombine.high %v17309_v58, %v17310_v29  ;;  %v14677_v49 = vmul.f32 0.5, %v14237_v3  ;;  %12753 = vtanh.f32 %v5360_v17  ;;  %v5392_v32 = vmul.f32 0.7978846, %v5264_v51  ;;  %4223 = vmatprep.mubr.bf16.mxu0 %v17315_v26  ;;  %v17319_v34 = vld [vmem:[#allocation71_spill] sm:$0xff] }
 0x23c   : > { %4535 = vmatpush1.bf16.msra.mxu1 %v17308_v10  ;;  %v5296_v6 = vadd.f32 %v14483_v43, %v5168_v44  ;;  %v17314_v50 = vcombine.high %v17312_v53, %v17313_v7  ;;  %v14685_v12 = vmul.f32 0.5, %v14291_v62  ;;  %v14688_v2 = vmul.f32 0.5, %v14408_v40  ;;  %4369 = vmatprep.mubr.bf16.mxu1 %v17315_v26  ;;  %v17324_v10 = vld [vmem:[#allocation73_spill] sm:$0xff] }
 0x23d   : > { %4390 = vmatprep.subr.bf16.mxu0 %v17311_v31  ;;  %12755 = vtanh.f32 %v5377_v33  ;;  %v5187_v3 = vadd.f32 %v14191_v47, %v14343_v19  ;;  %v14694_v44 = vmul.f32 0.5, %v14431_v46  ;;  %v5409_v17 = vmul.f32 0.7978846, %v5281_v25  ;;  %v17318_v46 = vld [vmem:[#allocation70_spill] sm:$0xff] }
 0x23e   : > { %4536 = vmatprep.subr.bf16.mxu1 %v17314_v50  ;;  %12757 = vtanh.f32 %v5393_v9  ;;  %v5425_v51 = vmul.f32 0.7978846, %v5297_v35  ;;  %v17316_v62 = vcombine.low %v17309_v58, %v17310_v29  ;;  %v14700_v40 = vmul.f32 0.5, %v14360_v59  ;;  %v17321_v59 = vld [vmem:[#allocation39_spill] sm:$0xff]  ;;  %v17322_v35 = vld [vmem:[#allocation102_spill] sm:$0xff] }
 0x23f   : > { %12759 = vtanh.f32 %v5376_v4  ;;  %v5408_v38 = vmul.f32 0.7978846, %v5280_v55  ;;  %v5203_v19 = vadd.f32 %v14233_v21, %v14375_v5  ;;  %v17317_v63 = vcombine.low %v17312_v53, %v17313_v7  ;;  %v12744_v4 = vpop.eup %12743  ;;  %v17323_v55 = vld [vmem:[#allocation72_spill] sm:$0xff]  ;;  %v17326_v7 = vld [vmem:[#allocation31_spill] sm:$0xff] }
 0x240   : > { %4391 = vmatpush1.bf16.msra.mxu0 %v17316_v62  ;;  %v17320_v33 = vcombine.high %v17318_v46, %v17319_v34  ;;  %v14711_v9 = vmul.f32 0.5, %v14420_v45  ;;  %12761 = vtanh.f32 %v5392_v32  ;;  %v5424_v25 = vmul.f32 0.7978846, %v5296_v6  ;;  %v12746_v53 = vpop.eup %12745  ;;  %v17327_v32 = vld [vmem:[#allocation42_spill] sm:$0xff]  ;;  %v17328_v6 = vld [vmem:[#allocation37_spill] sm:$0xff] }
 0x241   : > { %4537 = vmatpush1.bf16.msra.mxu1 %v17317_v63  ;;  %v5219_v36 = vadd.f32 %v17322_v35, %v17321_v59  ;;  %v17325_v5 = vcombine.high %v17323_v55, %v17324_v10  ;;  %12763 = vtanh.f32 %v5409_v17  ;;  %v5315_v58 = vmul.f32 0.7978846, %v5187_v3  ;;  %4224 = vmatmul.mubr.bf16.gmra.mrb[44].mxu0 %v17326_v7  ;;  %v17330_v3 = vld [vmem:[#allocation100_spill] sm:$0xff] }
 0x242   : > { %4392 = vmatprep.subr.bf16.mxu0 %v17320_v33  ;;  %v5570_v29 = vadd.f32 1.0, %v12740_v52  ;;  %v5586_v31 = vadd.f32 1.0, %v12742_v54  ;;  %v5569_v50 = vadd.f32 1.0, %v12744_v4  ;;  %v14720_v45 = vmul.f32 0.5, %v14463_v1  ;;  %v12748_v63 = vpop.eup %12747  ;;  %4370 = vmatmul.mubr.bf16.gmra.mrb[44].mxu1 %v17326_v7  ;;  %v17331_v33 = vld [vmem:[#allocation104_spill] sm:$0xff] }
 0x243   : > { %4538 = vmatprep.subr.bf16.mxu1 %v17325_v5  ;;  %12765 = vtanh.f32 %v5425_v51  ;;  %v5235_v62 = vadd.f32 %v17328_v6, %v17327_v32  ;;  %v17329_v17 = vcombine.low %v17318_v46, %v17319_v34  ;;  %v5331_v52 = vmul.f32 0.7978846, %v5203_v19  ;;  %v12750_v4 = vpop.eup %12749  ;;  %v17333_v51 = vld [vmem:[#allocation74_spill] sm:$0xff]  ;;  %v17334_v5 = vld [vmem:[#allocation75_spill] sm:$0xff]  ;;  %v17336_v19 = vld [vmem:[#allocation76_spill] sm:$0xff] }
 0x244   : > { %12767 = vtanh.f32 %v5408_v38  ;;  %v5698_v54 = vmul.f32 %v5570_v29, %v17330_v3  ;;  %v5714_v59 = vmul.f32 %v5586_v31, %v17331_v33  ;;  %v17332_v1 = vcombine.low %v17323_v55, %v17324_v10  ;;  %v12752_v38 = vpop.eup %12751  ;;  %v17337_v34 = vld [vmem:[#allocation77_spill] sm:$0xff]  ;;  %v17339_v31 = vld [vmem:[#allocation16_spill] sm:$0xff] }
 0x245   : > { %4393 = vmatpush1.bf16.msra.mxu0 %v17329_v17  ;;  %v17335_v32 = vcombine.high %v17333_v51, %v17334_v5  ;;  %v5585_v16 = vadd.f32 1.0, %v12746_v53  ;;  %v5601_v7 = vadd.f32 1.0, %v12748_v63  ;;  %v14737_v46 = vmul.f32 0.5, %v14508_v60  ;;  %4412 = vmatprep.mubr.bf16.mxu0 %v17339_v31  ;;  %v17341_v17 = vld [vmem:[#allocation38_spill] sm:$0xff]  ;;  %v17342_v3 = vld [vmem:[#allocation101_spill] sm:$0xff]  ;;  %v12754_v63 = vpop.eup %12753 }
 0x246   : > { %4539 = vmatpush1.bf16.msra.mxu1 %v17332_v1  ;;  %12769 = vtanh.f32 %v5424_v25  ;;  %v17338_v29 = vcombine.high %v17336_v19, %v17337_v34  ;;  %v5697_v55 = vmul.f32 %v5569_v50, %v14635_v28  ;;  %v14744_v10 = vpack.c.bf16 %v5714_v59, %v5698_v54  ;;  %4558 = vmatprep.mubr.bf16.mxu1 %v17339_v31  ;;  %v17345_v31 = vld [vmem:[#allocation78_spill] sm:$0xff] }
 0x247   : > { %4394 = vmatprep.subr.bf16.mxu0 %v17335_v32  ;;  %12771 = vtanh.f32 %v5315_v58  ;;  %v5218_v53 = vadd.f32 %v17342_v3, %v17341_v17  ;;  %v5713_v60 = vmul.f32 %v5585_v16, %v14653_v41  ;;  %v5617_v25 = vadd.f32 1.0, %v12750_v4  ;;  %v12756_v32 = vpop.eup %12755  ;;  %v17346_v16 = vld [vmem:[#allocation79_spill] sm:$0xff] }
 0x248   : > { %4540 = vmatprep.subr.bf16.mxu1 %v17338_v29  ;;  %17340 = vst [vmem:[#allocation45_spill] sm:$0xff] %v14744_v10  ;;  %v5729_v33 = vmul.f32 %v5601_v7, %v14656_v42  ;;  %v5600_v1 = vadd.f32 1.0, %v12752_v38  ;;  %v17343_v29 = vcombine.low %v17333_v51, %v17334_v5  ;;  %v5616_v28 = vadd.f32 1.0, %v12754_v63  ;;  %v12758_v54 = vpop.eup %12757 }
 0x249   : > { %12773 = vtanh.f32 %v5331_v52  ;;  %v5347_v58 = vmul.f32 0.7978846, %v5219_v36  ;;  %v5363_v50 = vmul.f32 0.7978846, %v5235_v62  ;;  %v17344_v59 = vcombine.low %v17336_v19, %v17337_v34  ;;  %v12760_v52 = vpop.eup %12759  ;;  %v17349_v36 = vld [vmem:[#allocation80_spill] sm:$0xff]  ;;  %v17350_v62 = vld [vmem:[#allocation81_spill] sm:$0xff] }
 0x24a   : > { %4395 = vmatpush1.bf16.msra.mxu0 %v17343_v29  ;;  %v17347_v41 = vcombine.high %v17345_v31, %v17346_v16  ;;  %v14760_v42 = vpack.c.bf16 %v5713_v60, %v5697_v55  ;;  %v5745_v7 = vmul.f32 %v5617_v25, %v14666_v13  ;;  %v5728_v4 = vmul.f32 %v5600_v1, %v14677_v49  ;;  %v12762_v17 = vpop.eup %12761  ;;  %v17353_v13 = vld [vmem:[#allocation40_spill] sm:$0xff]  ;;  %v17354_v60 = vld [vmem:[#allocation105_spill] sm:$0xff] }
 0x24b   : > { %4541 = vmatpush1.bf16.msra.mxu1 %v17344_v59  ;;  %v4768_v51 = vmul.f32 0.5, %v14439_v30  ;;  %v17351_v5 = vcombine.high %v17349_v36, %v17350_v62  ;;  %v5744_v38 = vmul.f32 %v5616_v28, %v14685_v12  ;;  %v5633_v19 = vadd.f32 1.0, %v12756_v32  ;;  %v12764_v25 = vpop.eup %12763 }
 0x24c   : > { %4396 = vmatprep.subr.bf16.mxu0 %v17347_v41  ;;  %17348 = vst [vmem:[#allocation46_spill] sm:$0xff] %v14760_v42  ;;  %v5649_v34 = vadd.f32 1.0, %v12758_v54  ;;  %12775 = vtanh.f32 %v5347_v58  ;;  %v14769_v63 = vpack.c.bf16 %v5745_v7, %v5729_v33  ;;  %v5632_v55 = vadd.f32 1.0, %v12760_v52  ;;  %v17358_v58 = vld [vmem:[#allocation82_spill] sm:$0xff]  ;;  %v17361_v41 = vld [vmem:[#allocation84_spill] sm:$0xff]  ;;  %v17362_v7 = vld [vmem:[#allocation85_spill] sm:$0xff] }
 0x24d   : > { %4542 = vmatprep.subr.bf16.mxu1 %v17351_v5  ;;  %12777 = vtanh.f32 %v5363_v50  ;;  %v5234_v49 = vadd.f32 %v17354_v60, %v17353_v13  ;;  %v17355_v30 = vcombine.low %v17345_v31, %v17346_v16  ;;  %v14776_v1 = vpack.c.bf16 %v5744_v38, %v5728_v4  ;;  %v12766_v28 = vpop.eup %12765  ;;  %v17359_v50 = vld [vmem:[#allocation83_spill] sm:$0xff] }
 0x24e   : > { %17352 = vst [vmem:[#allocation47_spill] sm:$0xff] %v14769_v63  ;;  %v5761_v12 = vmul.f32 %v5633_v19, %v14688_v2  ;;  %v5777_v32 = vmul.f32 %v5649_v34, %v14694_v44  ;;  %v5648_v29 = vadd.f32 1.0, %v12762_v17  ;;  %v17357_v33 = vcombine.low %v17349_v36, %v17350_v62  ;;  %v12768_v44 = vpop.eup %12767  ;;  %v15150_v63 = vld [vmem:[#allocation5 + $0xff0] sm:$0xff] }
 0x24f   : > { %4397 = vmatpush1.bf16.msra.mxu0 %v17355_v30  ;;  %17356 = vst [vmem:[#allocation48_spill] sm:$0xff] %v14776_v1  ;;  %v17360_v54 = vcombine.high %v17358_v58, %v17359_v50  ;;  %v5760_v59 = vmul.f32 %v5632_v55, %v14700_v40  ;;  %v4784_v31 = vmul.f32 0.5, %v14483_v43  ;;  %v4675_v16 = vmul.f32 0.5, %v14191_v47  ;;  %17417 = vst [vmem:[#allocation61_spill] sm:$0xff] %v15150_v63 }
 0x250   : > { %4543 = vmatpush1.bf16.msra.mxu1 %v17357_v33  ;;  %v5251_v2 = vadd.f32 %v14416_v15, %v14552_v11  ;;  %v17363_v4 = vcombine.high %v17361_v41, %v17362_v7  ;;  %v14794_v52 = vpack.c.bf16 %v5777_v32, %v5761_v12  ;;  %v5776_v36 = vmul.f32 %v5648_v29, %v14711_v9  ;;  %v12770_v38 = vpop.eup %12769 }
 0x251   : > { %4398 = vmatprep.subr.bf16.mxu0 %v17360_v54  ;;  %v5665_v62 = vadd.f32 1.0, %v12764_v25  ;;  %v5681_v5 = vadd.f32 1.0, %v12766_v28  ;;  %v5664_v40 = vadd.f32 1.0, %v12768_v44  ;;  %v5346_v19 = vmul.f32 0.7978846, %v5218_v53  ;;  %v12772_v34 = vpop.eup %12771  ;;  %v17368_v53 = vld [vmem:[#allocation86_spill] sm:$0xff] }
 0x252   : > { %4544 = vmatprep.subr.bf16.mxu1 %v17363_v4  ;;  %17364 = vst [vmem:[#allocation49_spill] sm:$0xff] %v14794_v52  ;;  %v5362_v43 = vmul.f32 0.7978846, %v5234_v49  ;;  %v5267_v47 = vadd.f32 %v14435_v8, %v14561_v23  ;;  %v17365_v11 = vcombine.low %v17358_v58, %v17359_v50  ;;  %v14802_v17 = vpack.c.bf16 %v5776_v36, %v5760_v59  ;;  %v17369_v49 = vld [vmem:[#allocation87_spill] sm:$0xff]  ;;  %v17371_v28 = vld [vmem:[#allocation88_spill] sm:$0xff] }
 0x253   : > { %v5793_v55 = vmul.f32 %v5665_v62, %v14720_v45  ;;  %v5809_v9 = vmul.f32 %v5681_v5, %v14737_v46  ;;  %v5680_v13 = vadd.f32 1.0, %v12770_v38  ;;  %v17367_v25 = vcombine.low %v17361_v41, %v17362_v7  ;;  %v12774_v29 = vpop.eup %12773  ;;  %v17372_v45 = vld [vmem:[#allocation89_spill] sm:$0xff]  ;;  %v17378_v36 = vld [vmem:[#allocation91_spill] sm:$0xff] }
 0x254   : > { %4399 = vmatpush1.bf16.msra.mxu0 %v17365_v11  ;;  %17366 = vst [vmem:[#allocation50_spill] sm:$0xff] %v14802_v17  ;;  %v17370_v30 = vcombine.high %v17368_v53, %v17369_v49  ;;  %v5792_v23 = vmul.f32 %v5664_v40, %v4768_v51  ;;  %v4691_v12 = vmul.f32 0.5, %v14233_v21  ;;  %v4707_v32 = vmul.f32 0.5, %v17322_v35 }
 0x255   : > { %4545 = vmatpush1.bf16.msra.mxu1 %v17367_v25  ;;  %12779 = vtanh.f32 %v5346_v19  ;;  %v17373_v33 = vcombine.high %v17371_v28, %v17372_v45  ;;  %v14817_v46 = vpack.c.bf16 %v5809_v9, %v5793_v55  ;;  %v5808_v58 = vmul.f32 %v5680_v13, %v4784_v31  ;;  %v17382_v19 = vld [vmem:[#allocation94_spill] sm:$0xff]  ;;  %v17384_v55 = vld [vmem:[#allocation43_spill] sm:$0xff]  ;;  %v17385_v9 = vld [vmem:[#allocation41_spill] sm:$0xff] }
 0x256   : > { %4400 = vmatprep.subr.bf16.mxu0 %v17370_v30  ;;  %v5571_v50 = vadd.f32 1.0, %v12772_v34  ;;  %12781 = vtanh.f32 %v5362_v43  ;;  %v5587_v54 = vadd.f32 1.0, %v12774_v29  ;;  %v5379_v59 = vmul.f32 0.7978846, %v5251_v2  ;;  %v12776_v35 = vpop.eup %12775  ;;  %v563_v25 = vld [vmem:[#allocation5 + $0x6b8] sm:$0xff]  ;;  %v17389_v29 = vld [vmem:[#allocation95_spill] sm:$0xff] }
 0x257   : > { %4546 = vmatprep.subr.bf16.mxu1 %v17373_v33  ;;  %17374 = vst [vmem:[#allocation51_spill] sm:$0xff] %v14817_v46  ;;  %v5250_v51 = vadd.f32 %v14391_v39, %v14529_v20  ;;  %v5266_v21 = vadd.f32 %v14424_v14, %v14556_v22  ;;  %v17375_v44 = vcombine.low %v17368_v53, %v17369_v49  ;;  %v4723_v7 = vmul.f32 0.5, %v17328_v6  ;;  %v12778_v2 = vpop.eup %12777  ;;  %v17379_v22 = vld [vmem:[#allocation92_spill] sm:$0xff]  ;;  %v17381_v6 = vld [vmem:[#allocation93_spill] sm:$0xff] }
 0x258   : > { %v14826_v41 = vpack.c.bf16 %v5808_v58, %v5792_v23  ;;  %v5395_v31 = vmul.f32 0.7978846, %v5267_v47  ;;  %v5283_v4 = vadd.f32 %v14467_v24, %v14583_v56  ;;  %v17377_v20 = vcombine.low %v17371_v28, %v17372_v45  ;;  %v562_v56 = vld [vmem:[#allocation5 + $0x6b0] sm:$0xff]  ;;  %v571_v53 = vld [vmem:[#allocation5 + $0x6f8] sm:$0xff] }
 0x259   : > { %4401 = vmatpush1.bf16.msra.mxu0 %v17375_v44  ;;  %v17380_v62 = vcombine.high %v17378_v36, %v17379_v22  ;;  %v5699_v5 = vmul.f32 %v5571_v50, %v4675_v16  ;;  %v5715_v38 = vmul.f32 %v5587_v54, %v4691_v12  ;;  %12783 = vtanh.f32 %v5379_v59  ;;  %v570_v47 = vld [vmem:[#allocation5 + $0x6f0] sm:$0xff]  ;;  %v17392_v59 = vld [vmem:[#allocation98_spill] sm:$0xff]  ;;  %v15133_v46 = vld [vmem:[#allocation5 + $0xf38] sm:$0xff] }
 0x25a   : > { %17376 = vst [vmem:[#allocation52_spill] sm:$0xff] %v14826_v41  ;;  %4547 = vmatpush1.bf16.msra.mxu1 %v17377_v20  ;;  %v5299_v40 = vadd.f32 %v14535_v27, %v14640_v61  ;;  %v17383_v43 = vcombine.high %v17381_v6, %v17382_v19  ;;  %v5603_v34 = vadd.f32 1.0, %v12776_v35  ;;  %v5619_v11 = vadd.f32 1.0, %v12778_v2  ;;  %v17388_v12 = vld [vmem:[#allocation96_spill] sm:$0xff]  ;;  %17412 = vst [vmem:[#allocation103_spill] sm:$0xff] %v15133_v46 }
 0x25b   : > { %4402 = vmatprep.subr.bf16.mxu0 %v17380_v62  ;;  %12785 = vtanh.f32 %v5395_v31  ;;  %v5282_v13 = vadd.f32 %v17385_v9, %v17384_v55  ;;  %v14844_v16 = vpack.c.bf16 %v5715_v38, %v5699_v5  ;;  %v5378_v49 = vmul.f32 0.7978846, %v5250_v51  ;;  %v578_v35 = vld [vmem:[#allocation5 + $0x730] sm:$0xff]  ;;  %v579_v31 = vld [vmem:[#allocation5 + $0x738] sm:$0xff] }
 0x25c   : > { %4548 = vmatprep.subr.bf16.mxu1 %v17383_v43  ;;  %v5394_v30 = vmul.f32 0.7978846, %v5266_v21  ;;  %v5298_v61 = vadd.f32 %v14495_v37, %v14621_v18  ;;  %v17387_v23 = vcombine.low %v17378_v36, %v17379_v22  ;;  %v10530_v28 = vcombine.low %v17389_v29, %v17388_v12  ;;  %v17393_v18 = vld [vmem:[#allocation97_spill] sm:$0xff]  ;;  %v602_v55 = vld [vmem:[#allocation5 + $0x7f0] sm:$0xff] }
 0x25d   : > { %17386 = vst [vmem:[#allocation53_spill] sm:$0xff] %v14844_v16  ;;  %v5731_v45 = vmul.f32 %v5603_v34, %v4707_v32  ;;  %v5747_v33 = vmul.f32 %v5619_v11, %v4723_v7  ;;  %v5411_v58 = vmul.f32 0.7978846, %v5283_v4  ;;  %v17390_v50 = vcombine.low %v17381_v6, %v17382_v19  ;;  %v586_v7 = vld [vmem:[#allocation5 + $0x770] sm:$0xff]  ;;  %v587_v4 = vld [vmem:[#allocation5 + $0x778] sm:$0xff] }
 0x25e   : > { %4403 = vmatpush1.bf16.msra.mxu0 %v17387_v23  ;;  %v17391_v54 = vcombine.high %v17389_v29, %v17388_v12  ;;  %v10532_v51 = vcombine.low %v17393_v18, %v17392_v59  ;;  %v10547_v21 = vcombine.high %v562_v56, %v570_v47  ;;  %12787 = vtanh.f32 %v5378_v49  ;;  %v14866_v11 = vld [vmem:[#allocation5 + $0x7b0] sm:$0xff]  ;;  %v14870_v49 = vld [vmem:[#allocation5 + $0x7f8] sm:$0xff] }
 0x25f   : > { %4549 = vmatpush1.bf16.msra.mxu1 %v17390_v50  ;;  %v17394_v44 = vcombine.high %v17393_v18, %v17392_v59  ;;  %v10549_v32 = vcombine.high %v563_v25, %v571_v53  ;;  %v14864_v2 = vpack.c.bf16 %v5747_v33, %v5731_v45  ;;  %12789 = vtanh.f32 %v5394_v30  ;;  %v12780_v36 = vpop.eup %12779  ;;  %v14879_v33 = vld [vmem:[#allocation5 + $0x838] sm:$0xff]  ;;  %v15148_v41 = vld [vmem:[#allocation5 + $0xfb0] sm:$0xff] }
 0x260   : > { %4404 = vmatprep.subr.bf16.mxu0 %v17391_v54  ;;  %v5427_v20 = vmul.f32 0.7978846, %v5299_v40  ;;  %12791 = vtanh.f32 %v5411_v58  ;;  %v5410_v22 = vmul.f32 0.7978846, %v5282_v13  ;;  %v5426_v62 = vmul.f32 0.7978846, %v5298_v61  ;;  %v12782_v5 = vpop.eup %12781 }
 0x261   : > { %4550 = vmatprep.subr.bf16.mxu1 %v17394_v44  ;;  %17395 = vst [vmem:[#allocation54_spill] sm:$0xff] %v14864_v2  ;;  %v10546_v38 = vcombine.low %v562_v56, %v570_v47  ;;  %v5602_v6 = vadd.f32 1.0, %v12780_v36  ;;  %v10548_v19 = vcombine.low %v563_v25, %v571_v53  ;;  %v10563_v43 = vcombine.high %v578_v35, %v586_v7  ;;  %v14868_v40 = vld [vmem:[#allocation5 + $0x7b8] sm:$0xff] }
 0x262   : > { %4405 = vmatpush1.bf16.msra.mxu0 %v10530_v28  ;;  %12793 = vtanh.f32 %v5427_v20  ;;  %v10565_v34 = vcombine.high %v579_v31, %v587_v4  ;;  %v4706_v13 = vmul.f32 0.5, %v17342_v3  ;;  %v4722_v56 = vmul.f32 0.5, %v17354_v60  ;;  %v14877_v3 = vld [vmem:[#allocation5 + $0x830] sm:$0xff]  ;;  %v619_v58 = vld [vmem:[#allocation5 + $0x878] sm:$0xff]  ;;  %17416 = vst [vmem:[#allocation60_spill] sm:$0xff] %v15148_v41 }
 0x263   : > { %4551 = vmatpush1.bf16.msra.mxu1 %v10532_v51  ;;  %4406 = vmatprep.subr.bf16.mxu0 %v10547_v21  ;;  %12795 = vtanh.f32 %v5410_v22  ;;  %v5618_v47 = vadd.f32 1.0, %v12782_v5  ;;  %v12784_v30 = vpop.eup %12783  ;;  %v10562_v25 = vcombine.low %v578_v35, %v586_v7  ;;  %v10564_v29 = vcombine.low %v579_v31, %v587_v4  ;;  %v618_v60 = vld [vmem:[#allocation5 + $0x870] sm:$0xff] }
 0x264   : > { %4552 = vmatprep.subr.bf16.mxu1 %v10549_v32  ;;  %12797 = vtanh.f32 %v5426_v62  ;;  %v5730_v53 = vmul.f32 %v5602_v6, %v4706_v13  ;;  %v5635_v12 = vadd.f32 1.0, %v12784_v30  ;;  %v10579_v28 = vcombine.high %v14866_v11, %v602_v55  ;;  %v14889_v7 = vld [vmem:[#allocation5 + $0x8b0] sm:$0xff] }
 0x265   : > { %v12786_v61 = vpop.eup %12785  ;;  %v5746_v23 = vmul.f32 %v5618_v47, %v4722_v56  ;;  %v10581_v45 = vcombine.high %v14868_v40, %v14870_v49  ;;  %v4739_v54 = vmul.f32 0.5, %v14416_v15  ;;  %v4755_v59 = vmul.f32 0.5, %v14435_v8  ;;  %v14891_v31 = vld [vmem:[#allocation5 + $0x8f0] sm:$0xff] }
 0x266   : > { %4407 = vmatpush1.bf16.msra.mxu0 %v10546_v38  ;;  %v5651_v18 = vadd.f32 1.0, %v12786_v61  ;;  %v10578_v21 = vcombine.low %v14866_v11, %v602_v55  ;;  %v10580_v35 = vcombine.low %v14868_v40, %v14870_v49  ;;  %v10594_v32 = vcombine.low %v14877_v3, %v618_v60  ;;  %v627_v40 = vld [vmem:[#allocation5 + $0x8b8] sm:$0xff] }
 0x267   : > { %4553 = vmatpush1.bf16.msra.mxu1 %v10548_v19  ;;  %4408 = vmatprep.subr.bf16.mxu0 %v10563_v43  ;;  %v14881_v50 = vpack.c.bf16 %v5746_v23, %v5730_v53  ;;  %v5763_v4 = vmul.f32 %v5635_v12, %v4739_v54  ;;  %v10595_v8 = vcombine.high %v14877_v3, %v618_v60  ;;  %v4738_v5 = vmul.f32 0.5, %v14391_v39  ;;  %v635_v49 = vld [vmem:[#allocation5 + $0x8f8] sm:$0xff] }
 0x268   : > { %4554 = vmatprep.subr.bf16.mxu1 %v10565_v34  ;;  %v12788_v51 = vpop.eup %12787  ;;  %v5779_v20 = vmul.f32 %v5651_v18, %v4755_v59  ;;  %v10596_v22 = vcombine.low %v14879_v33, %v619_v58  ;;  %v10597_v62 = vcombine.high %v14879_v33, %v619_v58  ;;  %v4754_v19 = vmul.f32 0.5, %v14424_v14  ;;  %v17399_v3 = vld [vmem:[#allocation17_spill] sm:$0xff] }
 0x269   : > { %17396 = vst [vmem:[#allocation55_spill] sm:$0xff] %v14881_v50  ;;  %v12790_v44 = vpop.eup %12789  ;;  %v5634_v15 = vadd.f32 1.0, %v12788_v51  ;;  %v10611_v55 = vcombine.high %v14889_v7, %v14891_v31  ;;  %v4771_v13 = vmul.f32 0.5, %v14467_v24  ;;  %v4787_v56 = vmul.f32 0.5, %v14535_v27  ;;  %v642_v24 = vld [vmem:[#allocation5 + $0x930] sm:$0xff]  ;;  %v643_v60 = vld [vmem:[#allocation5 + $0x938] sm:$0xff] }
 0x26a   : > { %4409 = vmatpush1.bf16.msra.mxu0 %v10562_v25  ;;  %v12792_v36 = vpop.eup %12791  ;;  %v14897_v6 = vpack.c.bf16 %v5779_v20, %v5763_v4  ;;  %v5650_v43 = vadd.f32 1.0, %v12790_v44  ;;  %v4770_v25 = vmul.f32 0.5, %v17385_v9  ;;  %v4786_v12 = vmul.f32 0.5, %v14495_v37  ;;  %v651_v33 = vld [vmem:[#allocation5 + $0x978] sm:$0xff]  ;;  %v666_v44 = vld [vmem:[#allocation5 + $0x9f0] sm:$0xff]  ;;  %v17402_v4 = vld [vmem:[#allocation18_spill] sm:$0xff] }
 0x26b   : > { %4555 = vmatpush1.bf16.msra.mxu1 %v10564_v29  ;;  %4410 = vmatprep.subr.bf16.mxu0 %v10579_v28  ;;  %v5667_v34 = vadd.f32 1.0, %v12792_v36  ;;  %v5762_v30 = vmul.f32 %v5634_v15, %v4738_v5  ;;  %v10613_v28 = vcombine.high %v627_v40, %v635_v49  ;;  %v10610_v37 = vcombine.low %v14889_v7, %v14891_v31  ;;  %v659_v20 = vld [vmem:[#allocation5 + $0x9b8] sm:$0xff] }
 0x26c   : > { %v12794_v38 = vpop.eup %12793  ;;  %4556 = vmatprep.subr.bf16.mxu1 %v10581_v45  ;;  %17397 = vst [vmem:[#allocation56_spill] sm:$0xff] %v14897_v6  ;;  %v5778_v61 = vmul.f32 %v5650_v43, %v4754_v19  ;;  %v650_v45 = vld [vmem:[#allocation5 + $0x970] sm:$0xff]  ;;  %v10612_v59 = vcombine.low %v627_v40, %v635_v49  ;;  %v667_v15 = vld [vmem:[#allocation5 + $0x9f8] sm:$0xff]  ;;  %v10628_v7 = vcombine.low %v643_v60, %v651_v33 }
 0x26d   : > { %v12796_v11 = vpop.eup %12795  ;;  %v5683_v47 = vadd.f32 1.0, %v12794_v38  ;;  %v5795_v53 = vmul.f32 %v5667_v34, %v4771_v13  ;;  %v10627_v18 = vcombine.high %v642_v24, %v650_v45  ;;  %v10645_v36 = vcombine.high %v659_v20, %v667_v15  ;;  %v14924_v5 = vld [vmem:[#allocation5 + $0xa78] sm:$0xff]  ;;  %v17404_v34 = vld [vmem:[#allocation19_spill] sm:$0xff] }
 0x26e   : > { %v12798_v39 = vpop.eup %12797  ;;  %4411 = vmatpush1.bf16.msra.mxu0 %v10578_v21  ;;  %v5666_v14 = vadd.f32 1.0, %v12796_v11  ;;  %v14906_v27 = vpack.c.bf16 %v5778_v61, %v5762_v30  ;;  %v10629_v21 = vcombine.high %v643_v60, %v651_v33  ;;  %v17403_v38 = vld [vmem:[#allocation32_spill] sm:$0xff] }
 0x26f   : > { %4557 = vmatpush1.bf16.msra.mxu1 %v10580_v35  ;;  %4453 = vmatprep.subr.bf16.mxu0 %v10595_v8  ;;  %v5811_v23 = vmul.f32 %v5683_v47, %v4787_v56  ;;  %v5682_v29 = vadd.f32 1.0, %v12798_v39  ;;  %v658_v35 = vld [vmem:[#allocation5 + $0x9b0] sm:$0xff]  ;;  %v16995_v19 = vsub.s32 4, %v17403_v38  ;;  %v16994_v43 = vsub.s32 6, %v17403_v38  ;;  %v14938_v39 = vld [vmem:[#allocation5 + $0xab8] sm:$0xff] }
 0x270   : > { %4599 = vmatprep.subr.bf16.mxu1 %v10597_v62  ;;  %17398 = vst [vmem:[#allocation57_spill] sm:$0xff] %v14906_v27  ;;  %v5794_v9 = vmul.f32 %v5666_v14, %v4770_v25  ;;  %v10643_v31 = vcombine.high %v658_v35, %v666_v44  ;;  %v14918_v8 = vld [vmem:[#allocation5 + $0xa30] sm:$0xff]  ;;  %v14922_v62 = vld [vmem:[#allocation5 + $0xa38] sm:$0xff]  ;;  %v10642_v11 = vcombine.low %v658_v35, %v666_v44  ;;  %v16992_v40 = vsub.s32 7, %v17403_v38 }
 0x271   : > { %4413 = vmatmul.mubr.bf16.vlgmr.msra.gmra.mrb[48].mxu0 %v17399_v3  ;;  %v14909_v58 = vpack.c.bf16 %v5811_v23, %v5795_v53  ;;  %v5810_v54 = vmul.f32 %v5682_v29, %v4786_v12  ;;  %v14931_v49 = vld [vmem:[#allocation5 + $0xab0] sm:$0xff]  ;;  %v10644_v56 = vcombine.low %v659_v20, %v667_v15  ;;  %v14940_v30 = vld [vmem:[#allocation5 + $0xaf8] sm:$0xff]  ;;  %v10661_v25 = vcombine.high %v14922_v62, %v14924_v5 }
 0x272   : > { %4454 = vmatpush1.bf16.msra.mxu0 %v10594_v32  ;;  %4559 = vmatmul.mubr.bf16.vlgmr.msra.gmra.mrb[48].mxu1 %v17399_v3  ;;  %v10626_v32 = vcombine.low %v642_v24, %v650_v45  ;;  %v14933_v13 = vld [vmem:[#allocation5 + $0xaf0] sm:$0xff]  ;;  %v14948_v53 = vld [vmem:[#allocation5 + $0xb38] sm:$0xff]  ;;  %v12991_v24 = vld [vmem:[#allocation7] sm:$0xff]  ;;  %v10677_v20 = vcombine.high %v14938_v39, %v14940_v30 }
 0x273   : > { %17400 = vst [vmem:[#allocation90_spill] sm:$0xff] %v14909_v58  ;;  %4600 = vmatpush1.bf16.msra.mxu1 %v10596_v22  ;;  %4455 = vmatprep.subr.bf16.mxu0 %v10611_v55  ;;  %v14914_v51 = vpack.c.bf16 %v5810_v54, %v5794_v9  ;;  %v14920_v22 = vld [vmem:[#allocation5 + $0xa70] sm:$0xff]  ;;  %v16993_v55 = vsub.s32 5, %v17403_v38  ;;  %v14950_v23 = vld [vmem:[#allocation5 + $0xb78] sm:$0xff]  ;;  %v14959_v45 = vrot.slane %v12991_v24, %v16995_v19 }
 0x274   : > { %4601 = vmatprep.subr.bf16.mxu1 %v10613_v28  ;;  %4422 = vmatprep.mubr.bf16.mxu0 %v17402_v4  ;;  %v10659_v47 = vcombine.high %v14918_v8, %v14920_v22  ;;  %v14942_v61 = vld [vmem:[#allocation5 + $0xb30] sm:$0xff]  ;;  %v10658_v29 = vcombine.low %v14918_v8, %v14920_v22  ;;  %v10660_v28 = vcombine.low %v14922_v62, %v14924_v5  ;;  %v14969_v9 = vld [vmem:[#allocation5 + $0xbb8] sm:$0xff] }
 0x275   : > { %17401 = vst [vmem:[#allocation99_spill] sm:$0xff] %v14914_v51  ;;  %4568 = vmatprep.mubr.bf16.mxu1 %v17402_v4  ;;  %v14946_v14 = vld [vmem:[#allocation5 + $0xb70] sm:$0xff]  ;;  %v14963_v3 = vrot.slane %v12991_v24, %v16994_v43  ;;  %v14974_v54 = vrot.slane %v12991_v24, %v16993_v55  ;;  %v15028_v55 = vld [vmem:[#allocation5 + $0xd38] sm:$0xff]  ;;  %v17418_v42 = vcombine.low %v14948_v53, %v14950_v23 }
 0x276   : > { %4456 = vmatpush1.bf16.msra.mxu0 %v10610_v37  ;;  %v17405_v12 = vld [vmem:[#allocation20_spill] sm:$0xff]  ;;  %v14978_v37 = vrot.slane %v12991_v24, %v16992_v40  ;;  %v17406_v43 = vld [vmem:[#allocation21_spill] sm:$0xff]  ;;  %v17415_v1 = vcombine.low %v14942_v61, %v14946_v14 }
 0x277   : > { %4602 = vmatpush1.bf16.msra.mxu1 %v10612_v59  ;;  %4457 = vmatprep.subr.bf16.mxu0 %v10627_v18  ;;  %v14965_v60 = vld [vmem:[#allocation5 + $0xbb0] sm:$0xff]  ;;  %v10675_v18 = vcombine.high %v14931_v49, %v14933_v13  ;;  %v15050_v62 = vld [vmem:[#allocation5 + $0xdb8] sm:$0xff]  ;;  %v3903_v15 = vpop.f32.mrb[16].mxu0  ;;  %v4049_v4 = vpop.f32.mrb[16].mxu1 }
 0x278   : > { %4603 = vmatprep.subr.bf16.mxu1 %v10629_v21  ;;  %v14967_v33 = vld [vmem:[#allocation5 + $0xbf0] sm:$0xff]  ;;  %v14984_v21 = vld [vmem:[#allocation5 + $0xbf8] sm:$0xff]  ;;  %v15066_v22 = vadd.f32 %v3903_v15, %v14959_v45  ;;  %v15080_v15 = vadd.f32 %v4049_v4, %v14963_v3  ;;  %v4051_v58 = vpop.f32.mrb[17].mxu1 }
 0x279   : > { %4423 = vmatmul.mubr.bf16.gmra.mrb[52].mxu0 %v17404_v34  ;;  %v14986_v35 = vld [vmem:[#allocation5 + $0xc30] sm:$0xff]  ;;  %v15052_v8 = vld [vmem:[#allocation5 + $0xdf8] sm:$0xff]  ;;  %v4053_v50 = vpop.f32.mrb[18].mxu1  ;;  %v17424_v46 = vcombine.low %v14965_v60, %v14967_v33 }
 0x27a   : > { %4458 = vmatpush1.bf16.msra.mxu0 %v10626_v32  ;;  %4569 = vmatmul.mubr.bf16.gmra.mrb[52].mxu1 %v17404_v34  ;;  %v14988_v44 = vld [vmem:[#allocation5 + $0xc70] sm:$0xff]  ;;  %v14996_v32 = vld [vmem:[#allocation5 + $0xc38] sm:$0xff]  ;;  %v4804_v4 = vmul.f32 0.044715, %v15066_v22  ;;  %v4806_v2 = vmul.f32 0.044715, %v15080_v15 }
 0x27b   : > { %4604 = vmatpush1.bf16.msra.mxu1 %v10628_v7  ;;  %4459 = vmatprep.subr.bf16.mxu0 %v10643_v31  ;;  %v14998_v7 = vld [vmem:[#allocation5 + $0xc78] sm:$0xff]  ;;  %v15000_v31 = vld [vmem:[#allocation5 + $0xcb0] sm:$0xff]  ;;  %v4055_v10 = vpop.f32.mrb[19].mxu1 }
 0x27c   : > { %4605 = vmatprep.subr.bf16.mxu1 %v10645_v36  ;;  %4432 = vmatprep.mubr.bf16.mxu0 %v17405_v12  ;;  %v10691_v36 = vcombine.high %v14942_v61, %v14946_v14  ;;  %v15010_v5 = vld [vmem:[#allocation5 + $0xcf0] sm:$0xff]  ;;  %v15012_v34 = vld [vmem:[#allocation5 + $0xcb8] sm:$0xff]  ;;  %v4934_v17 = vmul.f32 %v15080_v15, %v4806_v2 }
 0x27d   : > { %4578 = vmatprep.mubr.bf16.mxu1 %v17405_v12  ;;  %v15024_v24 = vld [vmem:[#allocation5 + $0xd30] sm:$0xff]  ;;  %v15074_v59 = vld [vmem:[#allocation5 + $0xe38] sm:$0xff] }
 0x27e   : > { %4460 = vmatpush1.bf16.msra.mxu0 %v10642_v11  ;;  %v15014_v11 = vld [vmem:[#allocation5 + $0xcf8] sm:$0xff]  ;;  %v15026_v40 = vld [vmem:[#allocation5 + $0xd70] sm:$0xff] }
 0x27f   : > { %4606 = vmatpush1.bf16.msra.mxu1 %v10644_v56  ;;  %4461 = vmatprep.subr.bf16.mxu0 %v10659_v47  ;;  %v15039_v12 = vld [vmem:[#allocation5 + $0xdb0] sm:$0xff]  ;;  %v17407_v47 = vld [vmem:[#allocation22_spill] sm:$0xff]  ;;  %v15076_v38 = vld [vmem:[#allocation5 + $0xe78] sm:$0xff] }
 0x280   : > { %4607 = vmatprep.subr.bf16.mxu1 %v10661_v25  ;;  %v15037_v25 = vld [vmem:[#allocation5 + $0xd78] sm:$0xff]  ;;  %v15041_v56 = vld [vmem:[#allocation5 + $0xdf0] sm:$0xff] }
 0x281   : > { %4433 = vmatmul.mubr.bf16.gmra.mrb[56].mxu0 %v17406_v43  ;;  %v15062_v19 = vld [vmem:[#allocation5 + $0xe70] sm:$0xff]  ;;  %v15162_v14 = vld [vmem:[#allocation5 + $0xfb8] sm:$0xff] }
 0x282   : > { %4462 = vmatpush1.bf16.msra.mxu0 %v10658_v29  ;;  %4579 = vmatmul.mubr.bf16.gmra.mrb[56].mxu1 %v17406_v43  ;;  %v15060_v29 = vld [vmem:[#allocation5 + $0xe30] sm:$0xff]  ;;  %17419 = vst [vmem:[#allocation62_spill] sm:$0xff] %v15162_v14  ;;  %v17444_v14 = vcombine.low %v15024_v24, %v15026_v40 }
 0x283   : > { %4608 = vmatpush1.bf16.msra.mxu1 %v10660_v28  ;;  %4463 = vmatprep.subr.bf16.mxu0 %v10675_v18  ;;  %v17408_v28 = vcombine.low %v14931_v49, %v14933_v13  ;;  %v15092_v6 = vld [vmem:[#allocation5 + $0xeb0] sm:$0xff]  ;;  %v17409_v49 = vcombine.low %v14938_v39, %v14940_v30  ;;  %v15107_v18 = vld [vmem:[#allocation5 + $0xeb8] sm:$0xff]  ;;  %v17410_v39 = vcombine.high %v14948_v53, %v14950_v23 }
 0x284   : > { %4609 = vmatprep.subr.bf16.mxu1 %v10677_v20  ;;  %4442 = vmatprep.mubr.bf16.mxu0 %v17407_v47  ;;  %v3905_v20 = vpop.f32.mrb[17].mxu0  ;;  %v15122_v27 = vld [vmem:[#allocation5 + $0xf30] sm:$0xff]  ;;  %v17421_v53 = vcombine.high %v14965_v60, %v14967_v33  ;;  %v5062_v23 = vmul.f32 %v15080_v15, %v4934_v17  ;;  %v17426_v60 = vcombine.high %v14986_v35, %v14988_v44 }
 0x285   : > { %4588 = vmatprep.mubr.bf16.mxu1 %v17407_v47  ;;  %v15083_v51 = vadd.f32 %v3905_v20, %v14974_v54  ;;  %v3907_v43 = vpop.f32.mrb[18].mxu0  ;;  %v15094_v47 = vld [vmem:[#allocation5 + $0xef0] sm:$0xff] }
 0x286   : > { %4464 = vmatpush1.bf16.msra.mxu0 %v17408_v28  ;;  %v15098_v20 = vadd.f32 %v3907_v43, %v14959_v45  ;;  %v3909_v13 = vpop.f32.mrb[19].mxu0  ;;  %v15111_v43 = vadd.f32 %v4053_v50, %v14963_v3  ;;  %v15124_v28 = vld [vmem:[#allocation5 + $0xf70] sm:$0xff]  ;;  %v4932_v50 = vmul.f32 %v15066_v22, %v4804_v4  ;;  %v15140_v4 = vadd.f32 %v4051_v58, %v14978_v37 }
 0x287   : > { %4610 = vmatpush1.bf16.msra.mxu1 %v17409_v49  ;;  %4465 = vmatprep.subr.bf16.mxu0 %v10691_v36  ;;  %v15120_v49 = vld [vmem:[#allocation5 + $0xef8] sm:$0xff]  ;;  %v17411_v30 = vld [vmem:[#allocation23_spill] sm:$0xff]  ;;  %v4805_v52 = vmul.f32 0.044715, %v15083_v51  ;;  %v3913_v26 = vpop.f32.mrb[20].mxu0 }
 0x288   : > { %4611 = vmatprep.subr.bf16.mxu1 %v17410_v39  ;;  %v4820_v16 = vmul.f32 0.044715, %v15098_v20  ;;  %v15135_v36 = vld [vmem:[#allocation5 + $0xf78] sm:$0xff]  ;;  %17414 = vst [vmem:[#allocation59_spill] sm:$0xff] %v15140_v4  ;;  %v4822_v2 = vmul.f32 0.044715, %v15111_v43  ;;  %v5060_v39 = vmul.f32 %v15066_v22, %v4932_v50  ;;  %v17422_v50 = vcombine.high %v14969_v9, %v14984_v21 }
 0x289   : > { %4443 = vmatmul.mubr.bf16.gmra.mrb[60].mxu0 %v17411_v30  ;;  %17413 = vst [vmem:[#allocation58_spill] sm:$0xff] %v15135_v36  ;;  %v3915_v57 = vpop.f32.mrb[21].mxu0  ;;  %v4933_v61 = vmul.f32 %v15083_v51, %v4805_v52  ;;  %v17425_v52 = vcombine.low %v14969_v9, %v14984_v21  ;;  %v17429_v21 = vcombine.high %v14996_v32, %v14998_v7 }
 0x28a   : > { %4466 = vmatpush1.bf16.msra.mxu0 %v17415_v1  ;;  %4589 = vmatmul.mubr.bf16.gmra.mrb[60].mxu1 %v17411_v30  ;;  %v15164_v30 = vld [vmem:[#allocation5 + $0xff8] sm:$0xff]  ;;  %v4948_v58 = vmul.f32 %v15098_v20, %v4820_v16  ;;  %v4059_v1 = vpop.f32.mrb[20].mxu1  ;;  %v4807_v16 = vmul.f32 0.044715, %v15140_v4  ;;  %v3917_v36 = vpop.f32.mrb[22].mxu0  ;;  %v5188_v33 = vadd.f32 %v15066_v22, %v5060_v39  ;;  %v5190_v39 = vadd.f32 %v15080_v15, %v5062_v23 }
 0x28b   : > { %4612 = vmatpush1.bf16.msra.mxu1 %v17418_v42  ;;  %17420 = vst [vmem:[#allocation63_spill] sm:$0xff] %v15164_v30  ;;  %4467 = vmatprep.subr.bf16.mxu0 %v17421_v53  ;;  %v4061_v48 = vpop.f32.mrb[21].mxu1  ;;  %v4950_v53 = vmul.f32 %v15111_v43, %v4822_v2  ;;  %v15196_v42 = vadd.f32 %v3909_v13, %v14974_v54  ;;  %v3919_v63 = vpop.f32.mrb[23].mxu0  ;;  %v15211_v13 = vmul.f32 0.5, %v15080_v15 }
 0x28c   : > { %4613 = vmatprep.subr.bf16.mxu1 %v17422_v50  ;;  %4485 = vmatprep.mubr.bf16.mxu0 %v17423_v0  ;;  %v4063_v17 = vpop.f32.mrb[22].mxu1  ;;  %v15214_v2 = vadd.f32 %v4055_v10, %v14978_v37  ;;  %v15224_v50 = vadd.f32 %v3913_v26, %v14959_v45  ;;  %v15231_v10 = vmul.f32 %v15083_v51, %v4933_v61 }
 0x28d   : > { %4631 = vmatprep.mubr.bf16.mxu1 %v17423_v0  ;;  %v15207_v0 = vmul.f32 0.5, %v15066_v22  ;;  %17428 = vst [vmem:[#allocation65_spill] sm:$0xff] %v15211_v13  ;;  %v4065_v9 = vpop.f32.mrb[23].mxu1  ;;  %v15227_v22 = vadd.f32 %v4059_v1, %v14963_v3  ;;  %v17433_v13 = vcombine.low %v14986_v35, %v14988_v44  ;;  %v5078_v26 = vmul.f32 %v15111_v43, %v4950_v53 }
 0x28e   : > { %4468 = vmatpush1.bf16.msra.mxu0 %v17424_v46  ;;  %v4935_v46 = vmul.f32 %v15140_v4, %v4807_v16  ;;  %v15243_v1 = vadd.f32 %v3915_v57, %v14974_v54  ;;  %v15246_v15 = vadd.f32 %v4061_v48, %v14978_v37  ;;  %v17434_v61 = vcombine.low %v14996_v32, %v14998_v7  ;;  %v3923_v16 = vpop.f32.mrb[24].mxu0 }
 0x28f   : > { %4614 = vmatpush1.bf16.msra.mxu1 %v17425_v52  ;;  %4469 = vmatprep.subr.bf16.mxu0 %v17426_v60  ;;  %17427 = vst [vmem:[#allocation64_spill] sm:$0xff] %v15207_v0  ;;  %v15220_v52 = vmul.f32 0.5, %v15098_v20  ;;  %v5076_v60 = vmul.f32 %v15098_v20, %v4948_v58  ;;  %17431 = vst [vmem:[#allocation67_spill] sm:$0xff] %v15227_v22  ;;  %v4821_v58 = vmul.f32 0.044715, %v15196_v42 }
 0x290   : > { %4615 = vmatprep.subr.bf16.mxu1 %v17429_v21  ;;  %v15235_v21 = vmul.f32 0.5, %v15111_v43  ;;  %v17435_v23 = vcombine.high %v15000_v31, %v15010_v5  ;;  %v5316_v35 = vmul.f32 0.7978846, %v5188_v33  ;;  %v4823_v44 = vmul.f32 0.044715, %v15214_v2 }
 0x291   : > { %17430 = vst [vmem:[#allocation66_spill] sm:$0xff] %v15220_v52  ;;  %v15256_v53 = vadd.f32 %v3917_v36, %v14959_v45  ;;  %v15259_v57 = vadd.f32 %v4063_v17, %v14963_v3  ;;  %v17437_v48 = vcombine.high %v15012_v34, %v15014_v11  ;;  %v5204_v32 = vadd.f32 %v15098_v20, %v5076_v60  ;;  %v3925_v36 = vpop.f32.mrb[25].mxu0 }
 0x292   : > { %17432 = vst [vmem:[#allocation68_spill] sm:$0xff] %v15235_v21  ;;  %4470 = vmatpush1.bf16.msra.mxu0 %v17433_v13  ;;  %v4836_v7 = vmul.f32 0.044715, %v15224_v50  ;;  %v4838_v13 = vmul.f32 0.044715, %v15227_v22  ;;  %v15268_v33 = vadd.f32 %v3919_v63, %v14974_v54  ;;  %v15275_v21 = vadd.f32 %v4065_v9, %v14978_v37  ;;  %v3927_v60 = vpop.f32.mrb[26].mxu0 }
 0x293   : > { %4616 = vmatpush1.bf16.msra.mxu1 %v17434_v61  ;;  %4471 = vmatprep.subr.bf16.mxu0 %v17435_v23  ;;  %17436 = vst [vmem:[#allocation69_spill] sm:$0xff] %v15259_v57  ;;  %v4069_v61 = vpop.f32.mrb[24].mxu1  ;;  %v15271_v23 = vmul.f32 %v15140_v4, %v4935_v46  ;;  %v4837_v17 = vmul.f32 0.044715, %v15243_v1  ;;  %v17439_v52 = vcombine.low %v15000_v31, %v15010_v5  ;;  %v5318_v63 = vmul.f32 0.7978846, %v5190_v39 }
 0x294   : > { %4617 = vmatprep.subr.bf16.mxu1 %v17437_v48  ;;  %v15278_v48 = vadd.f32 %v3923_v16, %v14959_v45  ;;  %v4071_v20 = vpop.f32.mrb[25].mxu1  ;;  %v5206_v0 = vadd.f32 %v15111_v43, %v5078_v26  ;;  %v4949_v46 = vmul.f32 %v15196_v42, %v4821_v58  ;;  %v4839_v4 = vmul.f32 0.044715, %v15246_v15  ;;  %v3929_v16 = vpop.f32.mrb[27].mxu0 }
 0x295   : > { %17438 = vst [vmem:[#allocation70_spill] sm:$0xff] %v15271_v23  ;;  %v4073_v23 = vpop.f32.mrb[26].mxu1  ;;  %v17440_v9 = vcombine.low %v15012_v34, %v15014_v11  ;;  %v17441_v30 = vcombine.high %v15024_v24, %v15026_v40  ;;  %12799 = vtanh.f32 %v5316_v35  ;;  %v4951_v31 = vmul.f32 %v15214_v2, %v4823_v44  ;;  %v3933_v24 = vpop.f32.mrb[28].mxu0 }
 0x296   : > { %4472 = vmatpush1.bf16.msra.mxu0 %v17439_v52  ;;  %v4852_v5 = vmul.f32 0.044715, %v15256_v53  ;;  %v4854_v43 = vmul.f32 0.044715, %v15259_v57  ;;  %v4075_v52 = vpop.f32.mrb[27].mxu1  ;;  %v17442_v39 = vcombine.high %v15028_v55, %v15037_v25  ;;  %v4964_v34 = vmul.f32 %v15224_v50, %v4836_v7 }
 0x297   : > { %4618 = vmatpush1.bf16.msra.mxu1 %v17440_v9  ;;  %4473 = vmatprep.subr.bf16.mxu0 %v17441_v30  ;;  %v5332_v26 = vmul.f32 0.7978846, %v5204_v32  ;;  %v4966_v11 = vmul.f32 %v15227_v22, %v4838_v13  ;;  %v4853_v58 = vmul.f32 0.044715, %v15268_v33  ;;  %v4965_v30 = vmul.f32 %v15243_v1, %v4837_v17 }
 0x298   : > { %4619 = vmatprep.subr.bf16.mxu1 %v17442_v39  ;;  %v4855_v35 = vmul.f32 0.044715, %v15275_v21  ;;  %v4868_v44 = vmul.f32 0.044715, %v15278_v48  ;;  %v15305_v9 = vadd.f32 %v4069_v61, %v14963_v3  ;;  %12801 = vtanh.f32 %v5318_v63  ;;  %v3935_v63 = vpop.f32.mrb[29].mxu0 }
 0x299   : > { %v5334_v32 = vmul.f32 0.7978846, %v5206_v0  ;;  %v15311_v7 = vmul.f32 %v15196_v42, %v4949_v46  ;;  %v4967_v13 = vmul.f32 %v15246_v15, %v4839_v4  ;;  %v17445_v17 = vcombine.low %v15028_v55, %v15037_v25  ;;  %v4079_v0 = vpop.f32.mrb[28].mxu1 }
 0x29a   : > { %17443 = vst [vmem:[#allocation71_spill] sm:$0xff] %v15305_v9  ;;  %4474 = vmatpush1.bf16.msra.mxu0 %v17444_v14  ;;  %v15318_v39 = vmul.f32 %v15214_v2, %v4951_v31  ;;  %v4980_v61 = vmul.f32 %v15256_v53, %v4852_v5  ;;  %v4982_v41 = vmul.f32 %v15259_v57, %v4854_v43  ;;  %12803 = vtanh.f32 %v5332_v26  ;;  %v4081_v26 = vpop.f32.mrb[29].mxu1 }
 0x29b   : > { %4620 = vmatpush1.bf16.msra.mxu1 %v17445_v17  ;;  %v15323_v40 = vadd.f32 %v3925_v36, %v14974_v54  ;;  %v17446_v14 = vcombine.high %v15039_v12, %v15041_v56  ;;  %v15329_v4 = vmul.f32 %v15224_v50, %v4964_v34  ;;  %v15332_v55 = vmul.f32 %v15227_v22, %v4966_v11  ;;  %v3937_v34 = vpop.f32.mrb[30].mxu0 }
 0x29c   : > { %v4981_v25 = vmul.f32 %v15268_v33, %v4853_v58  ;;  %v17448_v36 = vcombine.high %v15050_v62, %v15052_v8  ;;  %v15339_v46 = vmul.f32 %v15243_v1, %v4965_v30  ;;  %v4983_v31 = vmul.f32 %v15275_v21, %v4855_v35  ;;  %v4083_v35 = vpop.f32.mrb[30].mxu1 }
 0x29d   : > { %4475 = vmatprep.subr.bf16.mxu0 %v17446_v14  ;;  %17447 = vst [vmem:[#allocation39_spill] sm:$0xff] %v15332_v55  ;;  %v4996_v5 = vmul.f32 %v15278_v48, %v4868_v44  ;;  %v4870_v43 = vmul.f32 0.044715, %v15305_v9  ;;  %v17449_v11 = vcombine.low %v15039_v12, %v15041_v56  ;;  %12805 = vtanh.f32 %v5334_v32  ;;  %v3939_v14 = vpop.f32.mrb[31].mxu0 }
 0x29e   : > { %4621 = vmatprep.subr.bf16.mxu1 %v17448_v36  ;;  %v15348_v58 = vmul.f32 %v15246_v15, %v4967_v13  ;;  %v15351_v17 = vadd.f32 %v4071_v20, %v14978_v37  ;;  %v15354_v30 = vadd.f32 %v3927_v60, %v14959_v45  ;;  %v17451_v44 = vcombine.low %v15050_v62, %v15052_v8  ;;  %v4085_v13 = vpop.f32.mrb[31].mxu1 }
 0x29f   : > { %4476 = vmatpush1.bf16.msra.mxu0 %v17449_v11  ;;  %v17452_v56 = vcombine.high %v15060_v29, %v15062_v19  ;;  %v15363_v12 = vmul.f32 %v15256_v53, %v4980_v61  ;;  %v15366_v32 = vmul.f32 %v15259_v57, %v4982_v41  ;;  %v4869_v20 = vmul.f32 0.044715, %v15323_v40  ;;  %v15387_v11 = vpop.eup %12799 }
 0x2a0   : > { %17450 = vst [vmem:[#allocation102_spill] sm:$0xff] %v15351_v17  ;;  %4622 = vmatpush1.bf16.msra.mxu1 %v17451_v44  ;;  %v15370_v60 = vadd.f32 %v4073_v23, %v14963_v3  ;;  %v17454_v8 = vcombine.high %v15074_v59, %v15076_v38  ;;  %v15376_v62 = vmul.f32 %v15268_v33, %v4981_v25 }
 0x2a1   : > { %4477 = vmatprep.subr.bf16.mxu0 %v17452_v56  ;;  %17453 = vst [vmem:[#allocation72_spill] sm:$0xff] %v15366_v32  ;;  %v15379_v36 = vadd.f32 %v3929_v16, %v14974_v54  ;;  %v15382_v61 = vadd.f32 %v4075_v52, %v14978_v37  ;;  %v15385_v41 = vadd.f32 %v3933_v24, %v14959_v45  ;;  %v4871_v52 = vmul.f32 0.044715, %v15351_v17 }
 0x2a2   : > { %4623 = vmatprep.subr.bf16.mxu1 %v17454_v8  ;;  %v15390_v23 = vmul.f32 %v15275_v21, %v4983_v31  ;;  %v15393_v44 = vmul.f32 %v15278_v48, %v4996_v5  ;;  %v4998_v25 = vmul.f32 %v15305_v9, %v4870_v43  ;;  %v15397_v56 = vadd.f32 %v4079_v0, %v14963_v3 }
 0x2a3   : > { %v17455_v16 = vcombine.low %v15060_v29, %v15062_v19  ;;  %v4884_v24 = vmul.f32 0.044715, %v15354_v30  ;;  %v15405_v8 = vadd.f32 %v3935_v63, %v14974_v54  ;;  %v15408_v31 = vadd.f32 %v4081_v26, %v14978_v37  ;;  %v15424_v26 = vpop.eup %12801 }
 0x2a4   : > { %v17456_v5 = vcombine.low %v15074_v59, %v15076_v38  ;;  %v4997_v0 = vmul.f32 %v15323_v40, %v4869_v20  ;;  %v4886_v43 = vmul.f32 0.044715, %v15370_v60  ;;  %v15416_v19 = vadd.f32 %v3937_v34, %v14959_v45  ;;  %17459 = vst [vmem:[#allocation42_spill] sm:$0xff] %v15424_v26  ;;  %v12804_v26 = vpop.eup %12803 }
 0x2a5   : > { %4478 = vmatpush1.bf16.msra.mxu0 %v17455_v16  ;;  %v15419_v29 = vadd.f32 %v4083_v35, %v14963_v3  ;;  %v17458_v63 = vcombine.high %v15092_v6, %v15094_v47  ;;  %v4885_v16 = vmul.f32 0.044715, %v15379_v36  ;;  %v4887_v38 = vmul.f32 0.044715, %v15382_v61 }
 0x2a6   : > { %4624 = vmatpush1.bf16.msra.mxu1 %v17456_v5  ;;  %v4900_v59 = vmul.f32 0.044715, %v15385_v41  ;;  %v15430_v20 = vadd.f32 %v3939_v14, %v14974_v54  ;;  %v17460_v45 = vcombine.high %v15107_v18, %v15120_v49  ;;  %v4902_v3 = vmul.f32 0.044715, %v15397_v56 }
 0x2a7   : > { %17457 = vst [vmem:[#allocation73_spill] sm:$0xff] %v15419_v29  ;;  %4479 = vmatprep.subr.bf16.mxu0 %v17458_v63  ;;  %v4901_v34 = vmul.f32 0.044715, %v15405_v8  ;;  %v4903_v35 = vmul.f32 0.044715, %v15408_v31  ;;  %v15439_v5 = vadd.f32 %v4085_v13, %v14978_v37  ;;  %v17461_v63 = vcombine.low %v15092_v6, %v15094_v47 }
 0x2a8   : > { %4625 = vmatprep.subr.bf16.mxu1 %v17460_v45  ;;  %v15445_v54 = vmul.f32 %v15305_v9, %v4998_v25  ;;  %v4999_v14 = vmul.f32 %v15351_v17, %v4871_v52  ;;  %v4916_v45 = vmul.f32 0.044715, %v15416_v19  ;;  %v4918_v57 = vmul.f32 0.044715, %v15419_v29  ;;  %v17465_v52 = vld [vmem:[#allocation103_spill] sm:$0xff] }
 0x2a9   : > { %4480 = vmatpush1.bf16.msra.mxu0 %v17461_v63  ;;  %v17463_v32 = vcombine.low %v15107_v18, %v15120_v49  ;;  %v17464_v37 = vcombine.high %v15122_v27, %v15124_v28  ;;  %v5012_v6 = vmul.f32 %v15354_v30, %v4884_v24  ;;  %v5014_v47 = vmul.f32 %v15370_v60, %v4886_v43  ;;  %v17466_v63 = vld [vmem:[#allocation58_spill] sm:$0xff] }
 0x2aa   : > { %17462 = vst [vmem:[#allocation37_spill] sm:$0xff] %v15445_v54  ;;  %v4917_v13 = vmul.f32 0.044715, %v15430_v20  ;;  %v4919_v25 = vmul.f32 0.044715, %v15439_v5  ;;  %v17467_v9 = vcombine.high %v17465_v52, %v17466_v63  ;;  %v15463_v54 = vpop.eup %12805  ;;  %v5013_v18 = vmul.f32 %v15379_v36, %v4885_v16 }
 0x2ab   : > { %4626 = vmatpush1.bf16.msra.mxu1 %v17463_v32  ;;  %4481 = vmatprep.subr.bf16.mxu0 %v17464_v37  ;;  %17468 = vst [vmem:[#allocation100_spill] sm:$0xff] %v15463_v54  ;;  %v5015_v49 = vmul.f32 %v15382_v61, %v4887_v38  ;;  %v5028_v32 = vmul.f32 %v15385_v41, %v4900_v59 }
 0x2ac   : > { %4627 = vmatprep.subr.bf16.mxu1 %v17467_v9  ;;  %v5189_v24 = vadd.f32 %v15083_v51, %v15231_v10  ;;  %v5125_v43 = vmul.f32 %v15323_v40, %v4997_v0  ;;  %v5030_v37 = vmul.f32 %v15397_v56, %v4902_v3  ;;  %v5029_v22 = vmul.f32 %v15405_v8, %v4901_v34  ;;  %v17471_v0 = vld [vmem:[#allocation60_spill] sm:$0xff]  ;;  %v17472_v3 = vld [vmem:[#allocation61_spill] sm:$0xff] }
 0x2ad   : > { %v5031_v55 = vmul.f32 %v15408_v31, %v4903_v35  ;;  %v17469_v9 = vcombine.low %v15122_v27, %v15124_v28  ;;  %v15478_v16 = vmul.f32 %v15351_v17, %v4999_v14  ;;  %v5044_v38 = vmul.f32 %v15416_v19, %v4916_v45  ;;  %v11969_v35 = vld [vmem:[#allocation8 + $0x4] ss:$16 sps:$4 sm:$0xff]  }
 0x2ae   : > { %v5046_v59 = vmul.f32 %v15419_v29, %v4918_v57  ;;  %v17470_v10 = vcombine.low %v17465_v52, %v17466_v63  ;;  %v17473_v34 = vcombine.high %v17471_v0, %v17472_v3  ;;  %v5317_v54 = vmul.f32 0.7978846, %v5189_v24  ;;  %v17474_v57 = vld [vmem:[#allocation62_spill] sm:$0xff]  ;;  %v11972_v52 = vld [vmem:[#allocation8 + $0xc] ss:$16 sps:$4 sm:$0xff]  }
 0x2af   : > { %4482 = vmatpush1.bf16.msra.mxu0 %v17469_v9  ;;  %v5140_v27 = vmul.f32 %v15354_v30, %v5012_v6  ;;  %v15490_v28 = vmul.f32 %v15370_v60, %v5014_v47  ;;  %v5045_v14 = vmul.f32 %v15430_v20, %v4917_v13  ;;  %v5047_v45 = vmul.f32 %v15439_v5, %v4919_v25  ;;  %v17475_v9 = vld [vmem:[#allocation63_spill] sm:$0xff] }
 0x2b0   : > { %4628 = vmatpush1.bf16.msra.mxu1 %v17470_v10  ;;  %4483 = vmatprep.subr.bf16.mxu0 %v17473_v34  ;;  %v17476_v17 = vcombine.high %v17474_v57, %v17475_v9  ;;  %v5141_v63 = vmul.f32 %v15379_v36, %v5013_v18  ;;  %v15499_v10 = vmul.f32 %v15382_v61, %v5015_v49  ;;  %v11967_v18 = vld [vmem:[#allocation8] ss:$16 sps:$4 sm:$0xff]   ;;  %12807 = vtanh.f32 %v5317_v54 }
 0x2b1   : > { %v5156_v24 = vmul.f32 %v15385_v41, %v5028_v32  ;;  %v5205_v6 = vadd.f32 %v15196_v42, %v15311_v7  ;;  %v15505_v47 = vmul.f32 %v15397_v56, %v5030_v37  ;;  %v5157_v13 = vmul.f32 %v15405_v8, %v5029_v22  ;;  %v11970_v22 = vld [vmem:[#allocation8 + $0x8] ss:$16 sps:$4 sm:$0xff]   ;;  %v11975_v37 = vld [vmem:[#allocation8 + $0x24] ss:$16 sps:$4 sm:$0xff]  }
 0x2b2   : > { %4629 = vmatprep.subr.bf16.mxu1 %v17476_v17  ;;  %v15509_v25 = vmul.f32 %v15408_v31, %v5031_v55  ;;  %v17477_v17 = vcombine.low %v17471_v0, %v17472_v3  ;;  %v5172_v49 = vmul.f32 %v15416_v19, %v5044_v38  ;;  %v15516_v32 = vmul.f32 %v15419_v29, %v5046_v59  ;;  %v11978_v59 = vld [vmem:[#allocation8 + $0x2c] ss:$16 sps:$4 sm:$0xff]  }
 0x2b3   : > { %v17478_v7 = vcombine.low %v17474_v57, %v17475_v9  ;;  %v15522_v55 = vmul.f32 0.5, %v15083_v51  ;;  %v5221_v0 = vadd.f32 %v15243_v1, %v15339_v46  ;;  %v5173_v54 = vmul.f32 %v15430_v20, %v5045_v14  ;;  %v11973_v14 = vld [vmem:[#allocation8 + $0x20] ss:$16 sps:$4 sm:$0xff]  }
 0x2b4   : > { %4484 = vmatpush1.bf16.msra.mxu0 %v17477_v17  ;;  %v15528_v38 = vmul.f32 %v15439_v5, %v5047_v45  ;;  %v5237_v3 = vadd.f32 %v15268_v33, %v15376_v62  ;;  %v5220_v34 = vadd.f32 %v15224_v50, %v15329_v4  ;;  %v5333_v51 = vmul.f32 0.7978846, %v5205_v6  ;;  %v17481_v17 = vld [vmem:[#allocation66_spill] sm:$0xff] }
 0x2b5   : > { %4630 = vmatpush1.bf16.msra.mxu1 %v17478_v7  ;;  %8982 = vmatprep.subr.bf16.mxu0 %v11969_v35  ;;  %v17479_v35 = vld [vmem:[#allocation25_spill] sm:$0xff]  ;;  %v5572_v57 = vadd.f32 1.0, %v15387_v11  ;;  %v5588_v9 = vadd.f32 1.0, %v12804_v26  ;;  %v5236_v46 = vadd.f32 %v15256_v53, %v15363_v12  ;;  %v15540_v45 = vmul.f32 0.5, %v15196_v42  ;;  %v11976_v11 = vld [vmem:[#allocation8 + $0x28] ss:$16 sps:$4 sm:$0xff]  }
 0x2b6   : > { %9566 = vmatprep.subr.bf16.mxu1 %v11972_v52  ;;  %v5253_v62 = vadd.f32 %v15323_v40, %v5125_v43  ;;  %v5269_v4 = vadd.f32 %v15379_v36, %v5141_v63  ;;  %v5252_v52 = vadd.f32 %v15278_v48, %v15393_v44  ;;  %v11981_v26 = vld [vmem:[#allocation8 + $0x44] ss:$16 sps:$4 sm:$0xff]   ;;  %12809 = vtanh.f32 %v5333_v51 }
 0x2b7   : > { %4486 = vmatmul.mubr.bf16.vlgmr.msra.gmra.mrb[48].mxu0 %v17479_v35  ;;  %v17480_v12 = vld [vmem:[#allocation64_spill] sm:$0xff]  ;;  %v5349_v7 = vmul.f32 0.7978846, %v5221_v0  ;;  %v17482_v42 = vld [vmem:[#allocation26_spill] sm:$0xff]  ;;  %v5365_v43 = vmul.f32 0.7978846, %v5237_v3  ;;  %v5268_v63 = vadd.f32 %v15354_v30, %v5140_v27  ;;  %v5285_v44 = vadd.f32 %v15405_v8, %v5157_v13 }
 0x2b8   : > { %4632 = vmatmul.mubr.bf16.vlgmr.msra.gmra.mrb[48].mxu1 %v17479_v35  ;;  %8983 = vmatpush1.bf16.msra.mxu0 %v11967_v18  ;;  %v5700_v6 = vmul.f32 %v5572_v57, %v17480_v12  ;;  %v5716_v18 = vmul.f32 %v5588_v9, %v17481_v17  ;;  %v11984_v35 = vld [vmem:[#allocation8 + $0x4c] ss:$16 sps:$4 sm:$0xff]   ;;  %v5348_v29 = vmul.f32 0.7978846, %v5220_v34  ;;  %v5284_v51 = vadd.f32 %v15385_v41, %v5156_v24  ;;  %v11979_v0 = vld [vmem:[#allocation8 + $0x40] ss:$16 sps:$4 sm:$0xff]  }
 0x2b9   : > { %9567 = vmatpush1.bf16.msra.mxu1 %v11970_v22  ;;  %8984 = vmatprep.subr.bf16.mxu0 %v11975_v37  ;;  %12811 = vtanh.f32 %v5349_v7  ;;  %v5301_v37 = vadd.f32 %v15430_v20, %v5173_v54  ;;  %v5364_v57 = vmul.f32 0.7978846, %v5236_v46  ;;  %v5300_v3 = vadd.f32 %v15416_v19, %v5172_v49  ;;  %v17484_v34 = vld [vmem:[#allocation70_spill] sm:$0xff]  ;;  %v17485_v27 = vld [vmem:[#allocation59_spill] sm:$0xff]  ;;  %v17490_v7 = vld [vmem:[#allocation69_spill] sm:$0xff] }
 0x2ba   : > { %9568 = vmatprep.subr.bf16.mxu1 %v11978_v59  ;;  %4495 = vmatprep.mubr.bf16.mxu0 %v17482_v42  ;;  %v15552_v22 = vpack.c.bf16 %v5716_v18, %v5700_v6  ;;  %v11982_v59 = vld [vmem:[#allocation8 + $0x48] ss:$16 sps:$4 sm:$0xff]   ;;  %12813 = vtanh.f32 %v5365_v43  ;;  %v5191_v9 = vadd.f32 %v17485_v27, %v17484_v34  ;;  %v11987_v13 = vld [vmem:[#allocation8 + $0x64] ss:$16 sps:$4 sm:$0xff]   ;;  %v5381_v12 = vmul.f32 0.7978846, %v5253_v62  ;;  %v12808_v24 = vpop.eup %12807 }
 0x2bb   : > { %4641 = vmatprep.mubr.bf16.mxu1 %v17482_v42  ;;  %12815 = vtanh.f32 %v5348_v29  ;;  %v5397_v6 = vmul.f32 0.7978846, %v5269_v4  ;;  %v5207_v54 = vadd.f32 %v15214_v2, %v15318_v39  ;;  %v5380_v17 = vmul.f32 0.7978846, %v5252_v52  ;;  %v11985_v29 = vld [vmem:[#allocation8 + $0x60] ss:$16 sps:$4 sm:$0xff]  }
 0x2bc   : > { %17483 = vst [vmem:[#allocation104_spill] sm:$0xff] %v15552_v22  ;;  %8985 = vmatpush1.bf16.msra.mxu0 %v11973_v14  ;;  %v11990_v14 = vld [vmem:[#allocation8 + $0x6c] ss:$16 sps:$4 sm:$0xff]   ;;  %12817 = vtanh.f32 %v5364_v57  ;;  %v15563_v49 = vadd.f32 %v15246_v15, %v15348_v58  ;;  %v15567_v46 = vadd.f32 %v15275_v21, %v15390_v23  ;;  %v5396_v62 = vmul.f32 0.7978846, %v5268_v63  ;;  %v17489_v18 = vld [vmem:[#allocation72_spill] sm:$0xff] }
 0x2bd   : > { %9569 = vmatpush1.bf16.msra.mxu1 %v11976_v11  ;;  %8986 = vmatprep.subr.bf16.mxu0 %v11981_v26  ;;  %v17486_v11 = vld [vmem:[#allocation27_spill] sm:$0xff]  ;;  %12819 = vtanh.f32 %v5381_v12  ;;  %v15576_v52 = vadd.f32 %v17490_v7, %v17489_v18  ;;  %v11988_v58 = vld [vmem:[#allocation8 + $0x68] ss:$16 sps:$4 sm:$0xff]   ;;  %v4709_v23 = vmul.f32 0.5, %v15243_v1  ;;  %v15581_v42 = vmul.f32 0.5, %v15268_v33 }
 0x2be   : > { %9570 = vmatprep.subr.bf16.mxu1 %v11984_v35  ;;  %v17487_v4 = vld [vmem:[#allocation39_spill] sm:$0xff]  ;;  %12821 = vtanh.f32 %v5397_v6  ;;  %v5413_v35 = vmul.f32 0.7978846, %v5285_v44  ;;  %v11993_v43 = vld [vmem:[#allocation8 + $0x84] ss:$16 sps:$4 sm:$0xff]   ;;  %v5573_v63 = vadd.f32 1.0, %v12808_v24  ;;  %v15593_v44 = vadd.f32 %v15382_v61, %v15499_v10 }
 0x2bf   : > { %4496 = vmatmul.mubr.bf16.gmra.mrb[52].mxu0 %v17486_v11  ;;  %v17488_v39 = vld [vmem:[#allocation67_spill] sm:$0xff]  ;;  %12823 = vtanh.f32 %v5380_v17  ;;  %v5429_v57 = vmul.f32 0.7978846, %v5301_v37  ;;  %v17491_v34 = vld [vmem:[#allocation102_spill] sm:$0xff]  ;;  %v15589_v1 = vmul.f32 0.5, %v15224_v50  ;;  %v17493_v6 = vld [vmem:[#allocation37_spill] sm:$0xff] }
 0x2c0   : > { %v15572_v26 = vadd.f32 %v17488_v39, %v17487_v4  ;;  %4642 = vmatmul.mubr.bf16.gmra.mrb[52].mxu1 %v17486_v11  ;;  %8987 = vmatpush1.bf16.msra.mxu0 %v11979_v0  ;;  %v15585_v12 = vadd.f32 %v17491_v34, %v15478_v16  ;;  %v17492_v0 = vld [vmem:[#allocation28_spill] sm:$0xff]  ;;  %v11996_v11 = vld [vmem:[#allocation8 + $0x8c] ss:$16 sps:$4 sm:$0xff]   ;;  %12825 = vtanh.f32 %v5396_v62  ;;  %v5412_v33 = vmul.f32 0.7978846, %v5284_v51 }
 0x2c1   : > { %9571 = vmatpush1.bf16.msra.mxu1 %v11982_v59  ;;  %8988 = vmatprep.subr.bf16.mxu0 %v11987_v13  ;;  %v12810_v59 = vpop.eup %12809  ;;  %v11991_v37 = vld [vmem:[#allocation8 + $0x80] ss:$16 sps:$4 sm:$0xff]   ;;  %v4724_v16 = vmul.f32 0.5, %v15256_v53  ;;  %v15598_v13 = vmul.f32 0.5, %v15323_v40  ;;  %12827 = vtanh.f32 %v5413_v35  ;;  %v11994_v51 = vld [vmem:[#allocation8 + $0x88] ss:$16 sps:$4 sm:$0xff]   ;;  %v5701_v40 = vmul.f32 %v5573_v63, %v15522_v55 }
 0x2c2   : > { %9572 = vmatprep.subr.bf16.mxu1 %v11990_v14  ;;  %4505 = vmatprep.mubr.bf16.mxu0 %v17492_v0  ;;  %v17494_v24 = vld [vmem:[#allocation71_spill] sm:$0xff]  ;;  %v5589_v14 = vadd.f32 1.0, %v12810_v59  ;;  %v15605_v10 = vmul.f32 0.5, %v15379_v36  ;;  %12829 = vtanh.f32 %v5429_v57  ;;  %v5428_v17 = vmul.f32 0.7978846, %v5300_v3  ;;  %v17495_v36 = vld [vmem:[#allocation42_spill] sm:$0xff] }
 0x2c3   : > { %4651 = vmatprep.mubr.bf16.mxu1 %v17492_v0  ;;  %v15602_v50 = vadd.f32 %v17494_v24, %v17493_v6  ;;  %v12812_v62 = vpop.eup %12811  ;;  %v11999_v53 = vld [vmem:[#allocation8 + $0xa4] ss:$16 sps:$4 sm:$0xff]   ;;  %12831 = vtanh.f32 %v5412_v33  ;;  %v5319_v4 = vmul.f32 0.7978846, %v5191_v9  ;;  %v5335_v18 = vmul.f32 0.7978846, %v5207_v54 }
 0x2c4   : > { %8989 = vmatpush1.bf16.msra.mxu0 %v11985_v29  ;;  %v12814_v35 = vpop.eup %12813  ;;  %v12002_v0 = vld [vmem:[#allocation8 + $0xac] ss:$16 sps:$4 sm:$0xff]   ;;  %v5717_v29 = vmul.f32 %v5589_v14, %v15540_v45  ;;  %v5605_v59 = vadd.f32 1.0, %v12812_v62  ;;  %12833 = vtanh.f32 %v5428_v17  ;;  %v5574_v6 = vadd.f32 1.0, %v17495_v36  ;;  %v17497_v55 = vld [vmem:[#allocation100_spill] sm:$0xff]  ;;  %v17501_v24 = vld [vmem:[#allocation30_spill] sm:$0xff] }
 0x2c5   : > { %9573 = vmatpush1.bf16.msra.mxu1 %v11988_v58  ;;  %8990 = vmatprep.subr.bf16.mxu0 %v11993_v43  ;;  %v12816_v57 = vpop.eup %12815  ;;  %v17496_v3 = vld [vmem:[#allocation29_spill] sm:$0xff]  ;;  %v5621_v58 = vadd.f32 1.0, %v12814_v35  ;;  %v4740_v43 = vmul.f32 0.5, %v15278_v48  ;;  %12835 = vtanh.f32 %v5319_v4  ;;  %v5590_v63 = vadd.f32 1.0, %v17497_v55  ;;  %v12005_v62 = vld [vmem:[#allocation8 + $0xc4] ss:$16 sps:$4 sm:$0xff]  }
 0x2c6   : > { %9574 = vmatprep.subr.bf16.mxu1 %v11996_v11  ;;  %v12818_v9 = vpop.eup %12817  ;;  %v11997_v54 = vld [vmem:[#allocation8 + $0xa0] ss:$16 sps:$4 sm:$0xff]   ;;  %v12000_v11 = vld [vmem:[#allocation8 + $0xa8] ss:$16 sps:$4 sm:$0xff]   ;;  %v15614_v45 = vpack.c.bf16 %v5717_v29, %v5701_v40  ;;  %v5733_v33 = vmul.f32 %v5605_v59, %v4709_v23  ;;  %v5604_v14 = vadd.f32 1.0, %v12816_v57  ;;  %12837 = vtanh.f32 %v5335_v18 }
 0x2c7   : > { %4506 = vmatmul.mubr.bf16.gmra.mrb[56].mxu0 %v17496_v3  ;;  %v12820_v17 = vpop.eup %12819  ;;  %v12008_v35 = vld [vmem:[#allocation8 + $0xcc] ss:$16 sps:$4 sm:$0xff]   ;;  %v5749_v48 = vmul.f32 %v5621_v58, %v15581_v42  ;;  %v5620_v4 = vadd.f32 1.0, %v12818_v9  ;;  %v17500_v22 = vld [vmem:[#allocation68_spill] sm:$0xff]  ;;  %v4756_v23 = vmul.f32 0.5, %v15354_v30  ;;  %v4773_v18 = vmul.f32 0.5, %v15405_v8 }
 0x2c8   : > { %4652 = vmatmul.mubr.bf16.gmra.mrb[56].mxu1 %v17496_v3  ;;  %8991 = vmatpush1.bf16.msra.mxu0 %v11991_v37  ;;  %17498 = vst [vmem:[#allocation74_spill] sm:$0xff] %v15614_v45  ;;  %v17499_v36 = vld [vmem:[#allocation65_spill] sm:$0xff]  ;;  %v5718_v3 = vmul.f32 %v5590_v63, %v17500_v22  ;;  %v12822_v37 = vpop.eup %12821  ;;  %v5637_v40 = vadd.f32 1.0, %v12820_v17  ;;  %v5732_v59 = vmul.f32 %v5604_v14, %v15589_v1  ;;  %v4789_v30 = vmul.f32 0.5, %v15430_v20  ;;  %v17505_v17 = vld [vmem:[#allocation31_spill] sm:$0xff] }
 0x2c9   : > { %9575 = vmatpush1.bf16.msra.mxu1 %v11994_v51  ;;  %8992 = vmatprep.subr.bf16.mxu0 %v11999_v53  ;;  %v5702_v55 = vmul.f32 %v5574_v6, %v17499_v36  ;;  %v5351_v51 = vmul.f32 0.7978846, %v15563_v49  ;;  %v12824_v53 = vpop.eup %12823  ;;  %v12003_v42 = vld [vmem:[#allocation8 + $0xc0] ss:$16 sps:$4 sm:$0xff]   ;;  %v15624_v29 = vpack.c.bf16 %v5749_v48, %v5733_v33  ;;  %v5748_v22 = vmul.f32 %v5620_v4, %v4724_v16  ;;  %v12011_v33 = vld [vmem:[#allocation8 + $0xe4] ss:$16 sps:$4 sm:$0xff]  }
 0x2ca   : > { %9576 = vmatprep.subr.bf16.mxu1 %v12002_v0  ;;  %4515 = vmatprep.mubr.bf16.mxu0 %v17501_v24  ;;  %v12826_v0 = vpop.eup %12825  ;;  %v5653_v57 = vadd.f32 1.0, %v12822_v37  ;;  %v5636_v58 = vadd.f32 1.0, %v12824_v53  ;;  %v5367_v8 = vmul.f32 0.7978846, %v15567_v46  ;;  %v4772_v1 = vmul.f32 0.5, %v15385_v41 }
 0x2cb   : > { %4661 = vmatprep.mubr.bf16.mxu1 %v17501_v24  ;;  %17502 = vst [vmem:[#allocation75_spill] sm:$0xff] %v15624_v29  ;;  %v15627_v6 = vpack.c.bf16 %v5718_v3, %v5702_v55  ;;  %v12828_v49 = vpop.eup %12827  ;;  %v12006_v24 = vld [vmem:[#allocation8 + $0xc8] ss:$16 sps:$4 sm:$0xff]   ;;  %v15631_v63 = vpack.c.bf16 %v5748_v22, %v5732_v59  ;;  %v5652_v9 = vadd.f32 1.0, %v12826_v0  ;;  %12839 = vtanh.f32 %v5351_v51  ;;  %v12141_v29 = vld [vmem:[#allocation8 + $0x3a0] ss:$16 sps:$4 sm:$0xff]  }
 0x2cc   : > { %8993 = vmatpush1.bf16.msra.mxu0 %v11997_v54  ;;  %v12830_v16 = vpop.eup %12829  ;;  %v5765_v54 = vmul.f32 %v5637_v40, %v15598_v13  ;;  %v5781_v14 = vmul.f32 %v5653_v57, %v15605_v10  ;;  %v5669_v20 = vadd.f32 1.0, %v12828_v49  ;;  %12841 = vtanh.f32 %v5367_v8  ;;  %v17507_v40 = vld [vmem:[#allocation46_spill] sm:$0xff]  ;;  %v12015_v49 = vld [vmem:[#allocation8 + $0x100] ss:$16 sps:$4 sm:$0xff]  }
 0x2cd   : > { %17503 = vst [vmem:[#allocation76_spill] sm:$0xff] %v15627_v6  ;;  %9577 = vmatpush1.bf16.msra.mxu1 %v12000_v11  ;;  %8994 = vmatprep.subr.bf16.mxu0 %v12005_v62  ;;  %17504 = vst [vmem:[#allocation77_spill] sm:$0xff] %v15631_v63  ;;  %v12832_v46 = vpop.eup %12831  ;;  %v12014_v11 = vld [vmem:[#allocation8 + $0xec] ss:$16 sps:$4 sm:$0xff]   ;;  %v5764_v62 = vmul.f32 %v5636_v58, %v4740_v43  ;;  %v5780_v48 = vmul.f32 %v5652_v9, %v4756_v23  ;;  %v5685_v4 = vadd.f32 1.0, %v12830_v16 }
 0x2ce   : > { %9578 = vmatprep.subr.bf16.mxu1 %v12008_v35  ;;  %v5350_v36 = vmul.f32 0.7978846, %v15572_v26  ;;  %v12834_v41 = vpop.eup %12833  ;;  %v12009_v35 = vld [vmem:[#allocation8 + $0xe0] ss:$16 sps:$4 sm:$0xff]   ;;  %v15639_v55 = vpack.c.bf16 %v5781_v14, %v5765_v54  ;;  %v5797_v13 = vmul.f32 %v5669_v20, %v4773_v18  ;;  %v4788_v10 = vmul.f32 0.5, %v15416_v19 }
 0x2cf   : > { %4516 = vmatmul.mubr.bf16.gmra.mrb[60].mxu0 %v17505_v17  ;;  %v5668_v3 = vadd.f32 1.0, %v12832_v46  ;;  %v12836_v37 = vpop.eup %12835  ;;  %v12012_v43 = vld [vmem:[#allocation8 + $0xe8] ss:$16 sps:$4 sm:$0xff]   ;;  %v12017_v23 = vld [vmem:[#allocation8 + $0x104] ss:$16 sps:$4 sm:$0xff]   ;;  %v15643_v51 = vpack.c.bf16 %v5780_v48, %v5764_v62  ;;  %v5813_v26 = vmul.f32 %v5685_v4, %v4789_v30  ;;  %v5684_v53 = vadd.f32 1.0, %v12834_v41 }
 0x2d0   : > { %4662 = vmatmul.mubr.bf16.gmra.mrb[60].mxu1 %v17505_v17  ;;  %8995 = vmatpush1.bf16.msra.mxu0 %v12003_v42  ;;  %17506 = vst [vmem:[#allocation16_spill] sm:$0xff] %v15639_v55  ;;  %12843 = vtanh.f32 %v5350_v36  ;;  %v12838_v59 = vpop.eup %12837  ;;  %v12020_v42 = vld [vmem:[#allocation8 + $0x10c] ss:$16 sps:$4 sm:$0xff]   ;;  %v5575_v18 = vadd.f32 1.0, %v12836_v37  ;;  %v5366_v19 = vmul.f32 0.7978846, %v15576_v52  ;;  %v5270_v22 = vadd.f32 %v15370_v60, %v15490_v28 }
 0x2d1   : > { %9014 = vmatprep.mubr.bf16.mxu0 %v17507_v40  ;;  %9579 = vmatpush1.bf16.msra.mxu1 %v12006_v24  ;;  %17508 = vst [vmem:[#allocation38_spill] sm:$0xff] %v15643_v51  ;;  %v5287_v0 = vadd.f32 %v15408_v31, %v15509_v25  ;;  %v15651_v57 = vpack.c.bf16 %v5813_v26, %v5797_v13  ;;  %v4679_v8 = vmul.f32 0.5, %v17485_v27  ;;  %v4695_v24 = vmul.f32 0.5, %v15214_v2  ;;  %v12018_v28 = vld [vmem:[#allocation8 + $0x108] ss:$16 sps:$4 sm:$0xff]   ;;  %v17511_v17 = vld [vmem:[#allocation73_spill] sm:$0xff] }
 0x2d2   : > { %9598 = vmatprep.mubr.bf16.mxu1 %v17507_v40  ;;  %8996 = vmatprep.subr.bf16.mxu0 %v12011_v33  ;;  %v5796_v58 = vmul.f32 %v5668_v3, %v4772_v1  ;;  %v5812_v30 = vmul.f32 %v5684_v53, %v4788_v10  ;;  %v5591_v9 = vadd.f32 1.0, %v12838_v59  ;;  %12845 = vtanh.f32 %v5366_v19  ;;  %v12023_v16 = vld [vmem:[#allocation8 + $0x124] ss:$16 sps:$4 sm:$0xff]   ;;  %v12026_v54 = vld [vmem:[#allocation8 + $0x12c] ss:$16 sps:$4 sm:$0xff]  }
 0x2d3   : > { %9580 = vmatprep.subr.bf16.mxu1 %v12014_v11  ;;  %17509 = vst [vmem:[#allocation101_spill] sm:$0xff] %v15651_v57  ;;  %v5383_v52 = vmul.f32 0.7978846, %v15585_v12  ;;  %v5703_v33 = vmul.f32 %v5575_v18, %v4679_v8  ;;  %v5399_v1 = vmul.f32 0.7978846, %v15593_v44  ;;  %v5303_v27 = vadd.f32 %v15439_v5, %v15528_v38 }
 0x2d4   : > { %8997 = vmatpush1.bf16.msra.mxu0 %v12009_v35  ;;  %v15656_v25 = vpack.c.bf16 %v5812_v30, %v5796_v58  ;;  %v5719_v14 = vmul.f32 %v5591_v9, %v4695_v24  ;;  %v5382_v2 = vmul.f32 0.7978846, %v15602_v50  ;;  %v5398_v20 = vmul.f32 0.7978846, %v5270_v22  ;;  %v12021_v44 = vld [vmem:[#allocation8 + $0x120] ss:$16 sps:$4 sm:$0xff]  }
 0x2d5   : > { %9581 = vmatpush1.bf16.msra.mxu1 %v12012_v43  ;;  %8998 = vmatprep.subr.bf16.mxu0 %v12017_v23  ;;  %12847 = vtanh.f32 %v5383_v52  ;;  %v12840_v12 = vpop.eup %12839  ;;  %v5286_v46 = vadd.f32 %v15397_v56, %v15505_v47  ;;  %v5302_v11 = vadd.f32 %v17511_v17, %v15516_v32  ;;  %v12024_v48 = vld [vmem:[#allocation8 + $0x128] ss:$16 sps:$4 sm:$0xff]   ;;  %v4711_v4 = vmul.f32 0.5, %v15246_v15  ;;  %v12029_v50 = vld [vmem:[#allocation8 + $0x144] ss:$16 sps:$4 sm:$0xff]  }
 0x2d6   : > { %17510 = vst [vmem:[#allocation78_spill] sm:$0xff] %v15656_v25  ;;  %9582 = vmatprep.subr.bf16.mxu1 %v12020_v42  ;;  %12849 = vtanh.f32 %v5399_v1  ;;  %v12842_v62 = vpop.eup %12841  ;;  %v15666_v38 = vpack.c.bf16 %v5719_v14, %v5703_v33  ;;  %v5607_v36 = vadd.f32 1.0, %v12840_v12  ;;  %v4727_v41 = vmul.f32 0.5, %v15275_v21  ;;  %v12032_v32 = vld [vmem:[#allocation8 + $0x14c] ss:$16 sps:$4 sm:$0xff]  }
 0x2d7   : > { %12851 = vtanh.f32 %v5382_v2  ;;  %v5623_v35 = vadd.f32 1.0, %v12842_v62  ;;  %v5415_v47 = vmul.f32 0.7978846, %v5287_v0  ;;  %v5431_v13 = vmul.f32 0.7978846, %v5303_v27 }
 0x2d8   : > { %8999 = vmatpush1.bf16.msra.mxu0 %v12015_v49  ;;  %17512 = vst [vmem:[#allocation79_spill] sm:$0xff] %v15666_v38  ;;  %12853 = vtanh.f32 %v5398_v20  ;;  %v5735_v3 = vmul.f32 %v5607_v36, %v4711_v4  ;;  %v12027_v40 = vld [vmem:[#allocation8 + $0x140] ss:$16 sps:$4 sm:$0xff]   ;;  %v5414_v15 = vmul.f32 0.7978846, %v5286_v46  ;;  %v4710_v22 = vmul.f32 0.5, %v17488_v39 }
 0x2d9   : > { %9583 = vmatpush1.bf16.msra.mxu1 %v12018_v28  ;;  %9000 = vmatprep.subr.bf16.mxu0 %v12023_v16  ;;  %v5751_v37 = vmul.f32 %v5623_v35, %v4727_v41  ;;  %12855 = vtanh.f32 %v5415_v47  ;;  %v12030_v43 = vld [vmem:[#allocation8 + $0x148] ss:$16 sps:$4 sm:$0xff]   ;;  %v12035_v23 = vld [vmem:[#allocation8 + $0x164] ss:$16 sps:$4 sm:$0xff]   ;;  %v5430_v21 = vmul.f32 0.7978846, %v5302_v11 }
 0x2da   : > { %9584 = vmatprep.subr.bf16.mxu1 %v12026_v54  ;;  %v12844_v10 = vpop.eup %12843  ;;  %12857 = vtanh.f32 %v5431_v13  ;;  %v12038_v59 = vld [vmem:[#allocation8 + $0x16c] ss:$16 sps:$4 sm:$0xff]   ;;  %v12033_v19 = vld [vmem:[#allocation8 + $0x160] ss:$16 sps:$4 sm:$0xff]   ;;  %v4726_v0 = vmul.f32 0.5, %v17490_v7  ;;  %v4743_v24 = vmul.f32 0.5, %v17491_v34 }
 0x2db   : > { %v15670_v26 = vpack.c.bf16 %v5751_v37, %v5735_v3  ;;  %v5606_v42 = vadd.f32 1.0, %v12844_v10  ;;  %12859 = vtanh.f32 %v5414_v15  ;;  %v12036_v8 = vld [vmem:[#allocation8 + $0x168] ss:$16 sps:$4 sm:$0xff]   ;;  %v12041_v49 = vld [vmem:[#allocation8 + $0x184] ss:$16 sps:$4 sm:$0xff]   ;;  %v4759_v1 = vmul.f32 0.5, %v15382_v61 }
 0x2dc   : > { %9001 = vmatpush1.bf16.msra.mxu0 %v12021_v44  ;;  %v12846_v53 = vpop.eup %12845  ;;  %12861 = vtanh.f32 %v5430_v21  ;;  %v12044_v28 = vld [vmem:[#allocation8 + $0x18c] ss:$16 sps:$4 sm:$0xff]   ;;  %v4758_v2 = vmul.f32 0.5, %v15370_v60  ;;  %v12039_v20 = vld [vmem:[#allocation8 + $0x180] ss:$16 sps:$4 sm:$0xff]   ;;  %v4775_v13 = vmul.f32 0.5, %v15408_v31 }
 0x2dd   : > { %9585 = vmatpush1.bf16.msra.mxu1 %v12024_v48  ;;  %9002 = vmatprep.subr.bf16.mxu0 %v12029_v50  ;;  %17513 = vst [vmem:[#allocation80_spill] sm:$0xff] %v15670_v26  ;;  %v5622_v58 = vadd.f32 1.0, %v12846_v53  ;;  %v5734_v16 = vmul.f32 %v5606_v42, %v4710_v22  ;;  %v17514_v7 = vld [vmem:[#allocation71_spill] sm:$0xff]  ;;  %v12042_v44 = vld [vmem:[#allocation8 + $0x188] ss:$16 sps:$4 sm:$0xff]   ;;  %v4791_v10 = vmul.f32 0.5, %v15439_v5 }
 0x2de   : > { %9586 = vmatprep.subr.bf16.mxu1 %v12032_v32  ;;  %v4742_v14 = vmul.f32 0.5, %v17514_v7  ;;  %v12047_v48 = vld [vmem:[#allocation8 + $0x1a4] ss:$16 sps:$4 sm:$0xff]   ;;  %v12050_v4 = vld [vmem:[#allocation8 + $0x1ac] ss:$16 sps:$4 sm:$0xff]   ;;  %v4790_v42 = vmul.f32 0.5, %v17511_v17 }
 0x2df   : > { %v12848_v18 = vpop.eup %12847  ;;  %v5750_v33 = vmul.f32 %v5622_v58, %v4726_v0  ;;  %v12045_v47 = vld [vmem:[#allocation8 + $0x1a0] ss:$16 sps:$4 sm:$0xff]   ;;  %v12053_v15 = vld [vmem:[#allocation8 + $0x1c4] ss:$16 sps:$4 sm:$0xff]   ;;  %v12056_v21 = vld [vmem:[#allocation8 + $0x1cc] ss:$16 sps:$4 sm:$0xff]  }
 0x2e0   : > { %9003 = vmatpush1.bf16.msra.mxu0 %v12027_v40  ;;  %v12850_v30 = vpop.eup %12849  ;;  %v5639_v9 = vadd.f32 1.0, %v12848_v18  ;;  %v12048_v40 = vld [vmem:[#allocation8 + $0x1a8] ss:$16 sps:$4 sm:$0xff]   ;;  %v12051_v31 = vld [vmem:[#allocation8 + $0x1c0] ss:$16 sps:$4 sm:$0xff]  }
 0x2e1   : > { %9587 = vmatpush1.bf16.msra.mxu1 %v12030_v43  ;;  %9004 = vmatprep.subr.bf16.mxu0 %v12035_v23  ;;  %v12852_v52 = vpop.eup %12851  ;;  %v5655_v27 = vadd.f32 1.0, %v12850_v30  ;;  %v15678_v12 = vpack.c.bf16 %v5750_v33, %v5734_v16  ;;  %v4774_v43 = vmul.f32 0.5, %v15397_v56  ;;  %v12054_v0 = vld [vmem:[#allocation8 + $0x1c8] ss:$16 sps:$4 sm:$0xff]   ;;  %v12059_v58 = vld [vmem:[#allocation8 + $0x1e4] ss:$16 sps:$4 sm:$0xff]  }
 0x2e2   : > { %9588 = vmatprep.subr.bf16.mxu1 %v12038_v59  ;;  %v12854_v39 = vpop.eup %12853  ;;  %v5767_v54 = vmul.f32 %v5639_v9, %v4743_v24  ;;  %v5638_v46 = vadd.f32 1.0, %v12852_v52  ;;  %v12062_v56 = vld [vmem:[#allocation8 + $0x1ec] ss:$16 sps:$4 sm:$0xff]   ;;  %v12060_v17 = vld [vmem:[#allocation8 + $0x1e8] ss:$16 sps:$4 sm:$0xff]  }
 0x2e3   : > { %17515 = vst [vmem:[#allocation81_spill] sm:$0xff] %v15678_v12  ;;  %v5783_v34 = vmul.f32 %v5655_v27, %v4759_v1  ;;  %v5654_v11 = vadd.f32 1.0, %v12854_v39  ;;  %v12856_v62 = vpop.eup %12855  ;;  %v12068_v24 = vld [vmem:[#allocation8 + $0x20c] ss:$16 sps:$4 sm:$0xff]   ;;  %v12063_v9 = vld [vmem:[#allocation8 + $0x200] ss:$16 sps:$4 sm:$0xff]  }
 0x2e4   : > { %9005 = vmatpush1.bf16.msra.mxu0 %v12033_v19  ;;  %v12858_v61 = vpop.eup %12857  ;;  %v5766_v50 = vmul.f32 %v5638_v46, %v4742_v14  ;;  %v5671_v60 = vadd.f32 1.0, %v12856_v62  ;;  %v12066_v52 = vld [vmem:[#allocation8 + $0x208] ss:$16 sps:$4 sm:$0xff]   ;;  %v12074_v33 = vld [vmem:[#allocation8 + $0x22c] ss:$16 sps:$4 sm:$0xff]  }
 0x2e5   : > { %9589 = vmatpush1.bf16.msra.mxu1 %v12036_v8  ;;  %9006 = vmatprep.subr.bf16.mxu0 %v12041_v49  ;;  %v15680_v36 = vpack.c.bf16 %v5783_v34, %v5767_v54  ;;  %v5782_v41 = vmul.f32 %v5654_v11, %v4758_v2  ;;  %v12860_v35 = vpop.eup %12859  ;;  %v5687_v3 = vadd.f32 1.0, %v12858_v61  ;;  %v12057_v8 = vld [vmem:[#allocation8 + $0x1e0] ss:$16 sps:$4 sm:$0xff]   ;;  %v12065_v49 = vld [vmem:[#allocation8 + $0x204] ss:$16 sps:$4 sm:$0xff]  }
 0x2e6   : > { %9590 = vmatprep.subr.bf16.mxu1 %v12044_v28  ;;  %v12862_v37 = vpop.eup %12861  ;;  %v5670_v23 = vadd.f32 1.0, %v12860_v35  ;;  %v5799_v53 = vmul.f32 %v5671_v60, %v4775_v13  ;;  %v12071_v28 = vld [vmem:[#allocation8 + $0x224] ss:$16 sps:$4 sm:$0xff]   ;;  %v17521_v1 = vld [vmem:[#allocation47_spill] sm:$0xff]  ;;  %v12072_v39 = vld [vmem:[#allocation8 + $0x228] ss:$16 sps:$4 sm:$0xff]  }
 0x2e7   : > { %17516 = vst [vmem:[#allocation40_spill] sm:$0xff] %v15680_v36  ;;  %v15682_v32 = vpack.c.bf16 %v5782_v41, %v5766_v50  ;;  %v5815_v59 = vmul.f32 %v5687_v3, %v4791_v10  ;;  %v5686_v18 = vadd.f32 1.0, %v12862_v37  ;;  %v17520_v16 = vld [vmem:[#allocation44_spill] sm:$0xff]  ;;  %v12069_v27 = vld [vmem:[#allocation8 + $0x220] ss:$16 sps:$4 sm:$0xff]   ;;  %v17524_v35 = vld [vmem:[#allocation50_spill] sm:$0xff] }
 0x2e8   : > { %9007 = vmatpush1.bf16.msra.mxu0 %v12039_v20  ;;  %v5798_v5 = vmul.f32 %v5670_v23, %v4774_v43  ;;  %v12077_v54 = vld [vmem:[#allocation8 + $0x244] ss:$16 sps:$4 sm:$0xff]   ;;  %v12080_v7 = vld [vmem:[#allocation8 + $0x24c] ss:$16 sps:$4 sm:$0xff]   ;;  %v12075_v14 = vld [vmem:[#allocation8 + $0x240] ss:$16 sps:$4 sm:$0xff]  }
 0x2e9   : > { %17517 = vst [vmem:[#allocation105_spill] sm:$0xff] %v15682_v32  ;;  %9591 = vmatpush1.bf16.msra.mxu1 %v12042_v44  ;;  %9008 = vmatprep.subr.bf16.mxu0 %v12047_v48  ;;  %v15688_v19 = vpack.c.bf16 %v5815_v59, %v5799_v53  ;;  %v5814_v22 = vmul.f32 %v5686_v18, %v4790_v42  ;;  %v12078_v2 = vld [vmem:[#allocation8 + $0x248] ss:$16 sps:$4 sm:$0xff]   ;;  %v12083_v20 = vld [vmem:[#allocation8 + $0x264] ss:$16 sps:$4 sm:$0xff]   ;;  %v17523_v11 = vld [vmem:[#allocation49_spill] sm:$0xff] }
 0x2ea   : > { %9592 = vmatprep.subr.bf16.mxu1 %v12050_v4  ;;  %v17522_v34 = vld [vmem:[#allocation48_spill] sm:$0xff]  ;;  %v12086_v46 = vld [vmem:[#allocation8 + $0x26c] ss:$16 sps:$4 sm:$0xff]   ;;  %v12081_v62 = vld [vmem:[#allocation8 + $0x260] ss:$16 sps:$4 sm:$0xff]  }
 0x2eb   : > { %17518 = vst [vmem:[#allocation82_spill] sm:$0xff] %v15688_v19  ;;  %v15690_v30 = vpack.c.bf16 %v5814_v22, %v5798_v5  ;;  %v12084_v44 = vld [vmem:[#allocation8 + $0x268] ss:$16 sps:$4 sm:$0xff]   ;;  %v12089_v48 = vld [vmem:[#allocation8 + $0x284] ss:$16 sps:$4 sm:$0xff]   ;;  %v17526_v3 = vld [vmem:[#allocation51_spill] sm:$0xff] }
 0x2ec   : > { %9009 = vmatpush1.bf16.msra.mxu0 %v12045_v47  ;;  %v12092_v61 = vld [vmem:[#allocation8 + $0x28c] ss:$16 sps:$4 sm:$0xff]   ;;  %v12087_v50 = vld [vmem:[#allocation8 + $0x280] ss:$16 sps:$4 sm:$0xff]   ;;  %v12090_v41 = vld [vmem:[#allocation8 + $0x288] ss:$16 sps:$4 sm:$0xff]  }
 0x2ed   : > { %9593 = vmatpush1.bf16.msra.mxu1 %v12048_v40  ;;  %9010 = vmatprep.subr.bf16.mxu0 %v12053_v15  ;;  %17519 = vst [vmem:[#allocation83_spill] sm:$0xff] %v15690_v30  ;;  %v861_v4 = vld [vmem:[#allocation7 + $0x8] sm:$0xff]  ;;  %v12095_v60 = vld [vmem:[#allocation8 + $0x2a4] ss:$16 sps:$4 sm:$0xff]   ;;  %v17525_v47 = vld [vmem:[#allocation33_spill] sm:$0xff] }
 0x2ee   : > { %9594 = vmatprep.subr.bf16.mxu1 %v12056_v21  ;;  %v15702_v13 = vrot.slane %v861_v4, %v17525_v47  ;;  %v12098_v10 = vld [vmem:[#allocation8 + $0x2ac] ss:$16 sps:$4 sm:$0xff]   ;;  %v17527_v37 = vld [vmem:[#allocation34_spill] sm:$0xff]  ;;  %v12093_v15 = vld [vmem:[#allocation8 + $0x2a0] ss:$16 sps:$4 sm:$0xff]  }
 0x2ef   : > { %v15707_v40 = vrot.slane %v861_v4, %v17527_v37  ;;  %v12096_v23 = vld [vmem:[#allocation8 + $0x2a8] ss:$16 sps:$4 sm:$0xff]   ;;  %v12101_v21 = vld [vmem:[#allocation8 + $0x2c4] ss:$16 sps:$4 sm:$0xff]   ;;  %v17528_v42 = vld [vmem:[#allocation35_spill] sm:$0xff] }
 0x2f0   : > { %9011 = vmatpush1.bf16.msra.mxu0 %v12051_v31  ;;  %v15714_v18 = vrot.slane %v861_v4, %v17528_v42  ;;  %v12104_v5 = vld [vmem:[#allocation8 + $0x2cc] ss:$16 sps:$4 sm:$0xff]   ;;  %v12144_v45 = vld [vmem:[#allocation8 + $0x3a8] ss:$16 sps:$4 sm:$0xff]  }
 0x2f1   : > { %9595 = vmatpush1.bf16.msra.mxu1 %v12054_v0  ;;  %9012 = vmatprep.subr.bf16.mxu0 %v12059_v58  ;;  %v12134_v26 = vld [vmem:[#allocation8 + $0x36c] ss:$16 sps:$4 sm:$0xff]  }
 0x2f2   : > { %9596 = vmatprep.subr.bf16.mxu1 %v12062_v56 }
 0x2f4   : > { %9013 = vmatpush1.bf16.msra.mxu0 %v12057_v8  ;;  %v17529_v8 = vld [vmem:[#allocation36_spill] sm:$0xff] }
 0x2f5   : > { %9597 = vmatpush1.bf16.msra.mxu1 %v12060_v17  ;;  %9055 = vmatprep.subr.bf16.mxu0 %v12065_v49  ;;  %v15721_v17 = vrot.slane %v861_v4, %v17529_v8 }
 0x2f6   : > { %9639 = vmatprep.subr.bf16.mxu1 %v12068_v24 }
 0x2f7   : > { %9015 = vmatmul.mubr.bf16.vlgmr.msra.gmra.mrb[64].mxu0 %v17520_v16 }
 0x2f8   : > { %9599 = vmatmul.mubr.bf16.vlgmr.msra.gmra.mrb[64].mxu1 %v17520_v16  ;;  %9024 = vmatprep.mubr.bf16.mxu0 %v17521_v1 }
 0x2f9   : > { %9056 = vmatpush1.bf16.msra.mxu0 %v12063_v9  ;;  %9608 = vmatprep.mubr.bf16.mxu1 %v17521_v1  ;;  %v4195_v43 = vpop.f32.mrb[32].mxu0  ;;  %v12102_v1 = vld [vmem:[#allocation8 + $0x2c8] ss:$16 sps:$4 sm:$0xff]  }
 0x2fa   : > { %9640 = vmatpush1.bf16.msra.mxu1 %v12066_v52  ;;  %9057 = vmatprep.subr.bf16.mxu0 %v12071_v28  ;;  %v15711_v53 = vadd.f32 %v4195_v43, %v15702_v13  ;;  %v4341_v59 = vpop.f32.mrb[32].mxu1  ;;  %v4197_v31 = vpop.f32.mrb[33].mxu0  ;;  %v12099_v52 = vld [vmem:[#allocation8 + $0x2c0] ss:$16 sps:$4 sm:$0xff]  }
 0x2fb   : > { %9641 = vmatprep.subr.bf16.mxu1 %v12074_v33  ;;  %v15717_v22 = vadd.f32 %v4341_v59, %v15707_v40  ;;  %v4343_v0 = vpop.f32.mrb[33].mxu1  ;;  %v4199_v58 = vpop.f32.mrb[34].mxu0 }
 0x2fc   : > { %v4808_v56 = vmul.f32 0.044715, %v15711_v53  ;;  %v15724_v49 = vadd.f32 %v4199_v58, %v15702_v13  ;;  %v4345_v24 = vpop.f32.mrb[34].mxu1  ;;  %v4201_v9 = vpop.f32.mrb[35].mxu0 }
 0x2fd   : > { %9058 = vmatpush1.bf16.msra.mxu0 %v12069_v27  ;;  %v4810_v28 = vmul.f32 0.044715, %v15717_v22  ;;  %v15728_v16 = vadd.f32 %v4345_v24, %v15707_v40  ;;  %v4347_v33 = vpop.f32.mrb[35].mxu1  ;;  %v15731_v27 = vadd.f32 %v4197_v31, %v15714_v18  ;;  %v12111_v31 = vld [vmem:[#allocation8 + $0x300] ss:$16 sps:$4 sm:$0xff]  }
 0x2fe   : > { %9642 = vmatpush1.bf16.msra.mxu1 %v12072_v39  ;;  %9059 = vmatprep.subr.bf16.mxu0 %v12077_v54  ;;  %v4824_v39 = vmul.f32 0.044715, %v15724_v49  ;;  %v17530_v54 = vld [vmem:[#allocation52_spill] sm:$0xff] }
 0x2ff   : > { %9025 = vmatmul.mubr.bf16.gmra.mrb[68].mxu0 %v17522_v34  ;;  %9643 = vmatprep.subr.bf16.mxu1 %v12080_v7  ;;  %v12107_v7 = vld [vmem:[#allocation8 + $0x2e4] ss:$16 sps:$4 sm:$0xff]   ;;  %v4809_v4 = vmul.f32 0.044715, %v15731_v27  ;;  %v12114_v24 = vld [vmem:[#allocation8 + $0x308] ss:$16 sps:$4 sm:$0xff]  }
 0x300   : > { %9609 = vmatmul.mubr.bf16.gmra.mrb[68].mxu1 %v17522_v34  ;;  %9034 = vmatprep.mubr.bf16.mxu0 %v17523_v11  ;;  %v15739_v34 = vadd.f32 %v4343_v0, %v15721_v17 }
 0x301   : > { %9060 = vmatpush1.bf16.msra.mxu0 %v12075_v14  ;;  %9618 = vmatprep.mubr.bf16.mxu1 %v17523_v11  ;;  %v4936_v14 = vmul.f32 %v15711_v53, %v4808_v56  ;;  %v12108_v11 = vld [vmem:[#allocation8 + $0x2e8] ss:$16 sps:$4 sm:$0xff]  }
 0x302   : > { %9644 = vmatpush1.bf16.msra.mxu1 %v12078_v2  ;;  %9061 = vmatprep.subr.bf16.mxu0 %v12083_v20  ;;  %v17531_v2 = vld [vmem:[#allocation53_spill] sm:$0xff] }
 0x303   : > { %9645 = vmatprep.subr.bf16.mxu1 %v12086_v46  ;;  %v12110_v20 = vld [vmem:[#allocation8 + $0x2ec] ss:$16 sps:$4 sm:$0xff]   ;;  %v12105_v46 = vld [vmem:[#allocation8 + $0x2e0] ss:$16 sps:$4 sm:$0xff]  }
 0x305   : > { %9062 = vmatpush1.bf16.msra.mxu0 %v12081_v62  ;;  %v4938_v62 = vmul.f32 %v15717_v22, %v4810_v28 }
 0x306   : > { %9646 = vmatpush1.bf16.msra.mxu1 %v12084_v44  ;;  %9063 = vmatprep.subr.bf16.mxu0 %v12089_v48  ;;  %v4826_v44 = vmul.f32 0.044715, %v15728_v16  ;;  %v4205_v48 = vpop.f32.mrb[36].mxu0 }
 0x307   : > { %9035 = vmatmul.mubr.bf16.gmra.mrb[72].mxu0 %v17524_v35  ;;  %9647 = vmatprep.subr.bf16.mxu1 %v12092_v61  ;;  %v12113_v61 = vld [vmem:[#allocation8 + $0x304] ss:$16 sps:$4 sm:$0xff]   ;;  %v5066_v0 = vmul.f32 %v15717_v22, %v4938_v62 }
 0x308   : > { %9619 = vmatmul.mubr.bf16.gmra.mrb[72].mxu1 %v17524_v35  ;;  %9044 = vmatprep.mubr.bf16.mxu0 %v17526_v3  ;;  %v12116_v35 = vld [vmem:[#allocation8 + $0x30c] ss:$16 sps:$4 sm:$0xff]   ;;  %v4954_v58 = vmul.f32 %v15728_v16, %v4826_v44  ;;  %v12120_v44 = vld [vmem:[#allocation8 + $0x328] ss:$16 sps:$4 sm:$0xff]  }
 0x309   : > { %9064 = vmatpush1.bf16.msra.mxu0 %v12087_v50  ;;  %9628 = vmatprep.mubr.bf16.mxu1 %v17526_v3  ;;  %v4952_v50 = vmul.f32 %v15724_v49, %v4824_v39  ;;  %v15748_v3 = vadd.f32 %v4201_v9, %v15714_v18  ;;  %v12119_v9 = vld [vmem:[#allocation8 + $0x324] ss:$16 sps:$4 sm:$0xff]   ;;  %v15762_v39 = vadd.f32 %v4205_v48, %v15702_v13 }
 0x30a   : > { %9648 = vmatpush1.bf16.msra.mxu1 %v12090_v41  ;;  %9065 = vmatprep.subr.bf16.mxu0 %v12095_v60  ;;  %v4351_v41 = vpop.f32.mrb[36].mxu1  ;;  %v4207_v60 = vpop.f32.mrb[37].mxu0  ;;  %v5194_v48 = vadd.f32 %v15717_v22, %v5066_v0 }
 0x30b   : > { %9649 = vmatprep.subr.bf16.mxu1 %v12098_v10  ;;  %v5064_v10 = vmul.f32 %v15711_v53, %v4936_v14  ;;  %v4209_v43 = vpop.f32.mrb[38].mxu0  ;;  %v5080_v28 = vmul.f32 %v15724_v49, %v4952_v50  ;;  %v15766_v14 = vmul.f32 0.5, %v15717_v22 }
 0x30c   : > { %v4211_v59 = vpop.f32.mrb[39].mxu0  ;;  %v15788_v50 = vadd.f32 %v4209_v43, %v15702_v13 }
 0x30d   : > { %9066 = vmatpush1.bf16.msra.mxu0 %v12093_v15  ;;  %v4353_v15 = vpop.f32.mrb[37].mxu1  ;;  %17532 = vst [vmem:[#allocation84_spill] sm:$0xff] %v15766_v14 }
 0x30e   : > { %9650 = vmatpush1.bf16.msra.mxu1 %v12096_v23  ;;  %9067 = vmatprep.subr.bf16.mxu0 %v12101_v21  ;;  %v4811_v23 = vmul.f32 0.044715, %v15739_v34  ;;  %v4355_v21 = vpop.f32.mrb[38].mxu1  ;;  %v15780_v62 = vadd.f32 %v4353_v15, %v15721_v17  ;;  %v5208_v15 = vadd.f32 %v15724_v49, %v5080_v28  ;;  %v4856_v19 = vmul.f32 0.044715, %v15788_v50 }
 0x30f   : > { %9045 = vmatmul.mubr.bf16.gmra.mrb[76].mxu0 %v17530_v54  ;;  %9651 = vmatprep.subr.bf16.mxu1 %v12104_v5  ;;  %v15752_v5 = vmul.f32 0.5, %v15711_v53  ;;  %v4357_v56 = vpop.f32.mrb[39].mxu1  ;;  %v15799_v8 = vadd.f32 %v4355_v21, %v15707_v40  ;;  %v5322_v21 = vmul.f32 0.7978846, %v5194_v48  ;;  %v12131_v48 = vld [vmem:[#allocation8 + $0x364] ss:$16 sps:$4 sm:$0xff]  }
 0x310   : > { %9629 = vmatmul.mubr.bf16.gmra.mrb[76].mxu1 %v17530_v54  ;;  %9087 = vmatprep.mubr.bf16.mxu0 %v17531_v2  ;;  %v12122_v54 = vld [vmem:[#allocation8 + $0x32c] ss:$16 sps:$4 sm:$0xff]   ;;  %v5336_v36 = vmul.f32 0.7978846, %v5208_v15 }
 0x311   : > { %9068 = vmatpush1.bf16.msra.mxu0 %v12099_v52  ;;  %9671 = vmatprep.mubr.bf16.mxu1 %v17531_v2  ;;  %v4937_v52 = vmul.f32 %v15731_v27, %v4809_v4  ;;  %v4825_v2 = vmul.f32 0.044715, %v15748_v3  ;;  %v5082_v4 = vmul.f32 %v15728_v16, %v4954_v58  ;;  %v12123_v58 = vld [vmem:[#allocation8 + $0x340] ss:$16 sps:$4 sm:$0xff]   ;;  %17535 = vst [vmem:[#allocation87_spill] sm:$0xff] %v15799_v8 }
 0x312   : > { %9652 = vmatpush1.bf16.msra.mxu1 %v12102_v1  ;;  %9069 = vmatprep.subr.bf16.mxu0 %v12107_v7  ;;  %v15759_v1 = vadd.f32 %v4347_v33, %v15721_v17  ;;  %v5192_v7 = vadd.f32 %v15711_v53, %v5064_v10  ;;  %v15774_v33 = vmul.f32 0.5, %v15724_v49  ;;  %v12117_v53 = vld [vmem:[#allocation8 + $0x320] ss:$16 sps:$4 sm:$0xff]   ;;  %v12126_v49 = vld [vmem:[#allocation8 + $0x348] ss:$16 sps:$4 sm:$0xff]  }
 0x313   : > { %9653 = vmatprep.subr.bf16.mxu1 %v12110_v20  ;;  %v15770_v20 = vadd.f32 %v4351_v41, %v15707_v40  ;;  %v4215_v41 = vpop.f32.mrb[40].mxu0  ;;  %v15791_v10 = vmul.f32 %v15731_v27, %v4937_v52  ;;  %v5210_v30 = vadd.f32 %v15728_v16, %v5082_v4  ;;  %v12129_v4 = vld [vmem:[#allocation8 + $0x360] ss:$16 sps:$4 sm:$0xff]  }
 0x314   : > { %v4827_v22 = vmul.f32 0.044715, %v15759_v1  ;;  %v4217_v0 = vpop.f32.mrb[41].mxu0  ;;  %v5320_v43 = vmul.f32 0.7978846, %v5192_v7  ;;  %v15809_v7 = vadd.f32 %v4211_v59, %v15714_v18 }
 0x315   : > { %9070 = vmatpush1.bf16.msra.mxu0 %v12105_v46  ;;  %17533 = vst [vmem:[#allocation85_spill] sm:$0xff] %v15770_v20  ;;  %v4939_v46 = vmul.f32 %v15739_v34, %v4811_v23  ;;  %v4840_v23 = vmul.f32 0.044715, %v15762_v39  ;;  %v15801_v42 = vpop.f32.mrb[42].mxu0 }
 0x316   : > { %9654 = vmatpush1.bf16.msra.mxu1 %v12108_v11  ;;  %9071 = vmatprep.subr.bf16.mxu0 %v12113_v61  ;;  %v15777_v11 = vadd.f32 %v4207_v60, %v15714_v18  ;;  %v15784_v61 = vmul.f32 0.5, %v15728_v16  ;;  %v12125_v60 = vld [vmem:[#allocation8 + $0x344] ss:$16 sps:$4 sm:$0xff]   ;;  %v15813_v47 = vpop.f32.mrb[43].mxu0  ;;  %v4955_v59 = vmul.f32 %v15759_v1, %v4827_v22  ;;  %12863 = vtanh.f32 %v5320_v43 }
 0x317   : > { %9655 = vmatprep.subr.bf16.mxu1 %v12116_v35  ;;  %v12128_v35 = vld [vmem:[#allocation8 + $0x34c] ss:$16 sps:$4 sm:$0xff]   ;;  %v15804_v28 = vmul.f32 %v15739_v34, %v4939_v46  ;;  %v15818_v46 = vadd.f32 %v4357_v56, %v15721_v17  ;;  %v4968_v12 = vmul.f32 %v15762_v39, %v4840_v23  ;;  %v4857_v22 = vmul.f32 0.044715, %v15809_v7  ;;  %v12137_v23 = vld [vmem:[#allocation8 + $0x384] ss:$16 sps:$4 sm:$0xff]  }
 0x318   : > { %17534 = vst [vmem:[#allocation86_spill] sm:$0xff] %v15784_v61  ;;  %v4841_v37 = vmul.f32 0.044715, %v15777_v11  ;;  %12865 = vtanh.f32 %v5322_v21  ;;  %v5338_v43 = vmul.f32 0.7978846, %v5210_v30  ;;  %v4225_v6 = vpop.f32.mrb[44].mxu0 }
 0x319   : > { %9072 = vmatpush1.bf16.msra.mxu0 %v12111_v31  ;;  %v4361_v31 = vpop.f32.mrb[40].mxu1  ;;  %17536 = vst [vmem:[#allocation88_spill] sm:$0xff] %v15818_v46  ;;  %12867 = vtanh.f32 %v5336_v36  ;;  %v4227_v38 = vpop.f32.mrb[45].mxu0  ;;  %v12140_v30 = vld [vmem:[#allocation8 + $0x38c] ss:$16 sps:$4 sm:$0xff]   ;;  %v15850_v36 = vadd.f32 %v4217_v0, %v15714_v18 }
 0x31a   : > { %9656 = vmatpush1.bf16.msra.mxu1 %v12114_v24  ;;  %9073 = vmatprep.subr.bf16.mxu0 %v12119_v9  ;;  %v4953_v24 = vmul.f32 %v15748_v3, %v4825_v2  ;;  %v4842_v9 = vmul.f32 0.044715, %v15770_v20  ;;  %v4363_v52 = vpop.f32.mrb[41].mxu1  ;;  %v12135_v0 = vld [vmem:[#allocation8 + $0x380] ss:$16 sps:$4 sm:$0xff]   ;;  %12869 = vtanh.f32 %v5338_v43  ;;  %v15878_v43 = vadd.f32 %v15813_v47, %v15714_v18 }
 0x31b   : > { %9657 = vmatprep.subr.bf16.mxu1 %v12122_v54  ;;  %v4843_v54 = vmul.f32 0.044715, %v15780_v62  ;;  %v15811_v2 = vpop.f32.mrb[42].mxu1  ;;  %v15853_v21 = vadd.f32 %v4363_v52, %v15721_v17 }
 0x31c   : > { %v4367_v32 = vpop.f32.mrb[43].mxu1  ;;  %v15826_v16 = vmul.f32 %v15748_v3, %v4953_v24  ;;  %v4970_v56 = vmul.f32 %v15770_v20, %v4842_v9  ;;  %v4984_v24 = vmul.f32 %v15788_v50, %v4856_v19  ;;  %v4859_v9 = vmul.f32 0.044715, %v15818_v46 }
 0x31d   : > { %9074 = vmatpush1.bf16.msra.mxu0 %v12117_v53  ;;  %v15823_v53 = vadd.f32 %v4215_v41, %v15702_v13  ;;  %v4971_v15 = vmul.f32 %v15780_v62, %v4843_v54  ;;  %v15834_v41 = vadd.f32 %v4361_v31, %v15707_v40  ;;  %v15842_v54 = vmul.f32 %v15762_v39, %v4968_v12 }
 0x31e   : > { %9658 = vmatpush1.bf16.msra.mxu1 %v12120_v44  ;;  %9075 = vmatprep.subr.bf16.mxu0 %v12125_v60  ;;  %v4858_v44 = vmul.f32 0.044715, %v15799_v8  ;;  %v4969_v60 = vmul.f32 %v15777_v11, %v4841_v37  ;;  %v15839_v37 = vmul.f32 %v15759_v1, %v4955_v59  ;;  %v15846_v19 = vmul.f32 %v15770_v20, %v4970_v56  ;;  %v4229_v59 = vpop.f32.mrb[46].mxu0 }
 0x31f   : > { %9659 = vmatprep.subr.bf16.mxu1 %v12128_v35  ;;  %17537 = vst [vmem:[#allocation89_spill] sm:$0xff] %v15834_v41  ;;  %v12132_v35 = vld [vmem:[#allocation8 + $0x368] ss:$16 sps:$4 sm:$0xff]   ;;  %v4872_v31 = vmul.f32 0.044715, %v15823_v53  ;;  %17539 = vst [vmem:[#allocation92_spill] sm:$0xff] %v15853_v21  ;;  %v15864_v52 = vmul.f32 %v15788_v50, %v4984_v24  ;;  %v4987_v51 = vmul.f32 %v15818_v46, %v4859_v9 }
 0x320   : > { %17538 = vst [vmem:[#allocation91_spill] sm:$0xff] %v15846_v19  ;;  %v15856_v25 = vmul.f32 %v15777_v11, %v4969_v60  ;;  %v4874_v56 = vmul.f32 0.044715, %v15834_v41  ;;  %v15869_v60 = vadd.f32 %v15801_v42, %v15702_v13  ;;  %v15881_v24 = vadd.f32 %v4367_v32, %v15721_v17  ;;  %v12143_v42 = vld [vmem:[#allocation8 + $0x3a4] ss:$16 sps:$4 sm:$0xff]   ;;  %v15901_v61 = vpop.eup %12863 }
 0x321   : > { %9076 = vmatpush1.bf16.msra.mxu0 %v12123_v58  ;;  %v4371_v58 = vpop.f32.mrb[44].mxu1  ;;  %v5000_v55 = vmul.f32 %v15823_v53, %v4872_v31  ;;  %v12146_v9 = vld [vmem:[#allocation8 + $0x3ac] ss:$16 sps:$4 sm:$0xff]   ;;  %v15886_v31 = vadd.f32 %v4225_v6, %v15702_v13  ;;  %v15904_v6 = vmul.f32 %v15818_v46, %v4987_v51 }
 0x322   : > { %9660 = vmatpush1.bf16.msra.mxu1 %v12126_v49  ;;  %9077 = vmatprep.subr.bf16.mxu0 %v12131_v48  ;;  %v4986_v49 = vmul.f32 %v15799_v8, %v4858_v44  ;;  %v4373_v12 = vpop.f32.mrb[45].mxu1  ;;  %v15859_v48 = vmul.f32 %v15780_v62, %v4971_v15  ;;  %v4231_v44 = vpop.f32.mrb[47].mxu0  ;;  %v5002_v32 = vmul.f32 %v15834_v41, %v4874_v56  ;;  %v12149_v56 = vld [vmem:[#allocation8 + $0x3c4] ss:$16 sps:$4 sm:$0xff]   ;;  %v4891_v51 = vmul.f32 0.044715, %v15881_v24 }
 0x323   : > { %9661 = vmatprep.subr.bf16.mxu1 %v12134_v26  ;;  %v4985_v26 = vmul.f32 %v15809_v7, %v4857_v22  ;;  %v4375_v57 = vpop.f32.mrb[46].mxu1  ;;  %v12138_v22 = vld [vmem:[#allocation8 + $0x388] ss:$16 sps:$4 sm:$0xff]   ;;  %17541 = vst [vmem:[#allocation94_spill] sm:$0xff] %v15904_v6 }
 0x324   : > { %v4377_v15 = vpop.f32.mrb[47].mxu1  ;;  %v15892_v63 = vmul.f32 %v15799_v8, %v4986_v49  ;;  %v15908_v49 = vadd.f32 %v4373_v12, %v15721_v17  ;;  %v4889_v8 = vmul.f32 0.044715, %v15878_v43  ;;  %v15928_v20 = vmul.f32 %v15834_v41, %v5002_v32  ;;  %v12155_v41 = vld [vmem:[#allocation8 + $0x3e4] ss:$16 sps:$4 sm:$0xff]  }
 0x325   : > { %9078 = vmatpush1.bf16.msra.mxu0 %v12129_v4  ;;  %v15874_v4 = vadd.f32 %v15811_v2, %v15707_v40  ;;  %v15889_v2 = vadd.f32 %v4371_v58, %v15707_v40  ;;  %v15895_v47 = vmul.f32 %v15809_v7, %v4985_v26  ;;  %v4888_v58 = vmul.f32 0.044715, %v15869_v60 }
 0x326   : > { %9662 = vmatpush1.bf16.msra.mxu1 %v12132_v35  ;;  %9079 = vmatprep.subr.bf16.mxu0 %v12137_v23  ;;  %v4873_v35 = vmul.f32 0.044715, %v15850_v36  ;;  %v4875_v23 = vmul.f32 0.044715, %v15853_v21  ;;  %17540 = vst [vmem:[#allocation93_spill] sm:$0xff] %v15892_v63  ;;  %v15911_v26 = vadd.f32 %v4229_v59, %v15702_v13  ;;  %v15919_v63 = vpop.eup %12865  ;;  %17543 = vst [vmem:[#allocation41_spill] sm:$0xff] %v15928_v20 }
 0x327   : > { %9663 = vmatprep.subr.bf16.mxu1 %v12140_v30  ;;  %v15899_v30 = vadd.f32 %v4227_v38, %v15714_v18  ;;  %v12152_v38 = vld [vmem:[#allocation8 + $0x3cc] ss:$16 sps:$4 sm:$0xff]   ;;  %v4890_v14 = vmul.f32 0.044715, %v15874_v4  ;;  %17542 = vst [vmem:[#allocation43_spill] sm:$0xff] %v15919_v63  ;;  %v5016_v63 = vmul.f32 %v15869_v60, %v4888_v58  ;;  %v15941_v32 = vadd.f32 %v4377_v15, %v15721_v17 }
 0x328   : > { %v5001_v12 = vmul.f32 %v15850_v36, %v4873_v35  ;;  %v5003_v13 = vmul.f32 %v15853_v21, %v4875_v23  ;;  %v4904_v59 = vmul.f32 0.044715, %v15886_v31  ;;  %v12147_v35 = vld [vmem:[#allocation8 + $0x3c0] ss:$16 sps:$4 sm:$0xff]   ;;  %v12150_v23 = vld [vmem:[#allocation8 + $0x3c8] ss:$16 sps:$4 sm:$0xff]  }
 0x329   : > { %9080 = vmatpush1.bf16.msra.mxu0 %v12135_v0  ;;  %v15914_v0 = vmul.f32 %v15823_v53, %v5000_v55  ;;  %v15925_v55 = vpop.eup %12867  ;;  %v4905_v19 = vmul.f32 0.044715, %v15899_v30  ;;  %v4907_v46 = vmul.f32 0.044715, %v15908_v49  ;;  %v4920_v6 = vmul.f32 0.044715, %v15911_v26 }
 0x32a   : > { %9664 = vmatpush1.bf16.msra.mxu1 %v12138_v22  ;;  %9081 = vmatprep.subr.bf16.mxu0 %v12143_v42  ;;  %v4906_v22 = vmul.f32 0.044715, %v15889_v2  ;;  %v15932_v42 = vadd.f32 %v4375_v57, %v15707_v40  ;;  %v5018_v57 = vmul.f32 %v15874_v4, %v4890_v14  ;;  %v5017_v40 = vmul.f32 %v15878_v43, %v4889_v8  ;;  %v15948_v58 = vpop.eup %12869  ;;  %v12153_v15 = vld [vmem:[#allocation8 + $0x3e0] ss:$16 sps:$4 sm:$0xff]  }
 0x32b   : > { %9665 = vmatprep.subr.bf16.mxu1 %v12146_v9  ;;  %v15935_v9 = vadd.f32 %v4231_v44, %v15714_v18  ;;  %v12158_v18 = vld [vmem:[#allocation8 + $0x3ec] ss:$16 sps:$4 sm:$0xff]   ;;  %v5193_v44 = vadd.f32 %v15731_v27, %v15791_v10  ;;  %17544 = vst [vmem:[#allocation96_spill] sm:$0xff] %v15948_v58  ;;  %v5129_v20 = vmul.f32 %v15850_v36, %v5001_v12  ;;  %v12161_v58 = vld [vmem:[#allocation8 + $0x404] ss:$16 sps:$4 sm:$0xff]  }
 0x32c   : > { %v15952_v17 = vmul.f32 %v15853_v21, %v5003_v13  ;;  %v5034_v14 = vmul.f32 %v15889_v2, %v4906_v22  ;;  %v5033_v8 = vmul.f32 %v15899_v30, %v4905_v19  ;;  %v5035_v12 = vmul.f32 %v15908_v49, %v4907_v46  ;;  %v12156_v22 = vld [vmem:[#allocation8 + $0x3e8] ss:$16 sps:$4 sm:$0xff]  }
 0x32d   : > { %9082 = vmatpush1.bf16.msra.mxu0 %v12141_v29  ;;  %v5019_v29 = vmul.f32 %v15881_v24, %v4891_v51  ;;  %v5321_v10 = vmul.f32 0.7978846, %v5193_v44  ;;  %v15960_v51 = vmul.f32 %v15869_v60, %v5016_v63  ;;  %v5048_v13 = vmul.f32 %v15911_v26, %v4920_v6  ;;  %v12164_v63 = vld [vmem:[#allocation8 + $0x40c] ss:$16 sps:$4 sm:$0xff]  }
 0x32e   : > { %9666 = vmatpush1.bf16.msra.mxu1 %v12144_v45  ;;  %9083 = vmatprep.subr.bf16.mxu0 %v12149_v56  ;;  %v5032_v45 = vmul.f32 %v15886_v31, %v4904_v59  ;;  %v4922_v56 = vmul.f32 0.044715, %v15932_v42  ;;  %v4923_v59 = vmul.f32 0.044715, %v15941_v32  ;;  %v15966_v19 = vmul.f32 %v15874_v4, %v5018_v57 }
 0x32f   : > { %9667 = vmatprep.subr.bf16.mxu1 %v12152_v38  ;;  %v4921_v38 = vmul.f32 0.044715, %v15935_v9  ;;  %v5145_v21 = vmul.f32 %v15878_v43, %v5017_v40  ;;  %v5209_v46 = vadd.f32 %v15748_v3, %v15826_v16  ;;  %12871 = vtanh.f32 %v5321_v10 }
 0x330   : > { %v5160_v6 = vmul.f32 %v15886_v31, %v5032_v45  ;;  %v15980_v57 = vmul.f32 %v15889_v2, %v5034_v14  ;;  %v5161_v40 = vmul.f32 %v15899_v30, %v5033_v8  ;;  %v15988_v16 = vmul.f32 %v15908_v49, %v5035_v12  ;;  %v12162_v45 = vld [vmem:[#allocation8 + $0x408] ss:$16 sps:$4 sm:$0xff]   ;;  %v12167_v8 = vld [vmem:[#allocation8 + $0x424] ss:$16 sps:$4 sm:$0xff]   ;;  %v17545_v12 = vld [vmem:[#allocation45_spill] sm:$0xff] }
 0x331   : > { %9084 = vmatpush1.bf16.msra.mxu0 %v12147_v35  ;;  %v15970_v35 = vmul.f32 %v15881_v24, %v5019_v29  ;;  %v15984_v29 = vmul.f32 %v15932_v42, %v4922_v56  ;;  %v5176_v44 = vmul.f32 %v15911_v26, %v5048_v13  ;;  %v15993_v14 = vmul.f32 0.5, %v15731_v27  ;;  %v12170_v13 = vld [vmem:[#allocation8 + $0x42c] ss:$16 sps:$4 sm:$0xff]  }
 0x332   : > { %9668 = vmatpush1.bf16.msra.mxu1 %v12150_v23  ;;  %9085 = vmatprep.subr.bf16.mxu0 %v12155_v41  ;;  %v5225_v41 = vadd.f32 %v15777_v11, %v15856_v25  ;;  %v5241_v23 = vadd.f32 %v15809_v7, %v15895_v47  ;;  %v5051_v25 = vmul.f32 %v15941_v32, %v4923_v59  ;;  %v12159_v47 = vld [vmem:[#allocation8 + $0x400] ss:$16 sps:$4 sm:$0xff]   ;;  %v5337_v56 = vmul.f32 0.7978846, %v5209_v46 }
 0x333   : > { %9669 = vmatprep.subr.bf16.mxu1 %v12158_v18  ;;  %v5049_v18 = vmul.f32 %v15935_v9, %v4921_v38  ;;  %v5576_v38 = vadd.f32 1.0, %v15901_v61  ;;  %v5224_v10 = vadd.f32 %v15762_v39, %v15842_v54  ;;  %v5257_v27 = vadd.f32 %v15850_v36, %v5129_v20  ;;  %v17546_v61 = vld [vmem:[#allocation54_spill] sm:$0xff]  ;;  %v12165_v46 = vld [vmem:[#allocation8 + $0x420] ss:$16 sps:$4 sm:$0xff]  }
 0x334   : > { %v5353_v59 = vmul.f32 0.7978846, %v5225_v41  ;;  %12873 = vtanh.f32 %v5337_v56  ;;  %v16010_v41 = vmul.f32 0.5, %v15748_v3  ;;  %v5273_v20 = vadd.f32 %v15878_v43, %v5145_v21  ;;  %v12176_v56 = vld [vmem:[#allocation8 + $0x44c] ss:$16 sps:$4 sm:$0xff]  }
 0x335   : > { %9086 = vmatpush1.bf16.msra.mxu0 %v12153_v15  ;;  %v5592_v15 = vadd.f32 1.0, %v15925_v55  ;;  %v5704_v55 = vmul.f32 %v5576_v38, %v15752_v5  ;;  %v16020_v3 = vmul.f32 %v15941_v32, %v5051_v25  ;;  %v5385_v38 = vmul.f32 0.7978846, %v5257_v27  ;;  %v12182_v27 = vld [vmem:[#allocation8 + $0x46c] ss:$16 sps:$4 sm:$0xff]  }
 0x336   : > { %9670 = vmatpush1.bf16.msra.mxu1 %v12156_v22  ;;  %9128 = vmatprep.subr.bf16.mxu0 %v12161_v58  ;;  %v5369_v22 = vmul.f32 0.7978846, %v5241_v23  ;;  %v5240_v58 = vadd.f32 %v15788_v50, %v15864_v52  ;;  %12875 = vtanh.f32 %v5353_v59  ;;  %v5256_v52 = vadd.f32 %v15823_v53, %v15914_v0  ;;  %v12168_v23 = vld [vmem:[#allocation8 + $0x428] ss:$16 sps:$4 sm:$0xff]  }
 0x337   : > { %9712 = vmatprep.subr.bf16.mxu1 %v12164_v63  ;;  %v5177_v63 = vmul.f32 %v15935_v9, %v5049_v18  ;;  %v5720_v54 = vmul.f32 %v5592_v15, %v15774_v33  ;;  %v12173_v18 = vld [vmem:[#allocation8 + $0x444] ss:$16 sps:$4 sm:$0xff]   ;;  %v5352_v33 = vmul.f32 0.7978846, %v5224_v10  ;;  %v5289_v0 = vadd.f32 %v15899_v30, %v5161_v40 }
 0x338   : > { %9088 = vmatmul.mubr.bf16.vlgmr.msra.gmra.mrb[64].mxu0 %v17545_v12  ;;  %12877 = vtanh.f32 %v5369_v22  ;;  %v5368_v21 = vmul.f32 0.7978846, %v5240_v58  ;;  %v5304_v15 = vadd.f32 %v15911_v26, %v5176_v44  ;;  %v5401_v25 = vmul.f32 0.7978846, %v5273_v20  ;;  %v12179_v40 = vld [vmem:[#allocation8 + $0x464] ss:$16 sps:$4 sm:$0xff]  }
 0x339   : > { %9672 = vmatmul.mubr.bf16.vlgmr.msra.gmra.mrb[64].mxu1 %v17545_v12  ;;  %9097 = vmatprep.mubr.bf16.mxu0 %v17546_v61  ;;  %v16015_v5 = vpack.c.bf16 %v5720_v54, %v5704_v55  ;;  %12879 = vtanh.f32 %v5352_v33  ;;  %v12872_v10 = vpop.eup %12871  ;;  %v12171_v12 = vld [vmem:[#allocation8 + $0x440] ss:$16 sps:$4 sm:$0xff]   ;;  %v5211_v59 = vadd.f32 %v15759_v1, %v15839_v37  ;;  %v5384_v22 = vmul.f32 0.7978846, %v5256_v52  ;;  %v17553_v20 = vld [vmem:[#allocation56_spill] sm:$0xff] }
 0x33a   : > { %9129 = vmatpush1.bf16.msra.mxu0 %v12159_v47  ;;  %9681 = vmatprep.mubr.bf16.mxu1 %v17546_v61  ;;  %v5272_v47 = vadd.f32 %v15869_v60, %v15960_v51  ;;  %v12174_v51 = vld [vmem:[#allocation8 + $0x448] ss:$16 sps:$4 sm:$0xff]   ;;  %12881 = vtanh.f32 %v5368_v21  ;;  %v16032_v44 = vadd.f32 %v15780_v62, %v15859_v48  ;;  %v17548_v58 = vld [vmem:[#allocation55_spill] sm:$0xff]  ;;  %v17552_v54 = vld [vmem:[#allocation85_spill] sm:$0xff]  ;;  %v5577_v52 = vadd.f32 1.0, %v12872_v10 }
 0x33b   : > { %9713 = vmatpush1.bf16.msra.mxu1 %v12162_v45  ;;  %9130 = vmatprep.subr.bf16.mxu0 %v12167_v8  ;;  %17547 = vst [vmem:[#allocation95_spill] sm:$0xff] %v16015_v5  ;;  %v5305_v45 = vadd.f32 %v15935_v9, %v5177_v63  ;;  %v5288_v8 = vadd.f32 %v15886_v31, %v5160_v6  ;;  %12883 = vtanh.f32 %v5385_v38  ;;  %v5417_v63 = vmul.f32 0.7978846, %v5289_v0  ;;  %v17550_v61 = vld [vmem:[#allocation88_spill] sm:$0xff]  ;;  %v17551_v37 = vld [vmem:[#allocation91_spill] sm:$0xff]  ;;  %v17559_v5 = vld [vmem:[#allocation57_spill] sm:$0xff] }
 0x33c   : > { %9714 = vmatprep.subr.bf16.mxu1 %v12170_v13  ;;  %v5195_v13 = vadd.f32 %v15739_v34, %v15804_v28  ;;  %v5400_v6 = vmul.f32 0.7978846, %v5272_v47  ;;  %12885 = vtanh.f32 %v5401_v25  ;;  %v17549_v28 = vld [vmem:[#allocation94_spill] sm:$0xff]  ;;  %v12177_v48 = vld [vmem:[#allocation8 + $0x460] ss:$16 sps:$4 sm:$0xff]   ;;  %v4729_v47 = vmul.f32 0.5, %v15809_v7 }
 0x33d   : > { %v16037_v55 = vadd.f32 %v17550_v61, %v17549_v28  ;;  %12887 = vtanh.f32 %v5384_v22  ;;  %v12180_v33 = vld [vmem:[#allocation8 + $0x468] ss:$16 sps:$4 sm:$0xff]   ;;  %v5416_v21 = vmul.f32 0.7978846, %v5288_v8  ;;  %v12185_v0 = vld [vmem:[#allocation8 + $0x484] ss:$16 sps:$4 sm:$0xff]  }
 0x33e   : > { %9131 = vmatpush1.bf16.msra.mxu0 %v12165_v46  ;;  %v16041_v46 = vadd.f32 %v17552_v54, %v17551_v37  ;;  %12889 = vtanh.f32 %v5400_v6  ;;  %v12874_v38 = vpop.eup %12873  ;;  %v4728_v10 = vmul.f32 0.5, %v15788_v50  ;;  %v12188_v25 = vld [vmem:[#allocation8 + $0x48c] ss:$16 sps:$4 sm:$0xff]   ;;  %v17556_v8 = vld [vmem:[#allocation92_spill] sm:$0xff]  ;;  %v12183_v50 = vld [vmem:[#allocation8 + $0x480] ss:$16 sps:$4 sm:$0xff]  }
 0x33f   : > { %9715 = vmatpush1.bf16.msra.mxu1 %v12168_v23  ;;  %9132 = vmatprep.subr.bf16.mxu0 %v12173_v18  ;;  %v4713_v23 = vmul.f32 0.5, %v15777_v11  ;;  %v5433_v18 = vmul.f32 0.7978846, %v5305_v45  ;;  %v16053_v11 = vmul.f32 0.5, %v15850_v36  ;;  %12891 = vtanh.f32 %v5417_v63  ;;  %v17555_v22 = vld [vmem:[#allocation87_spill] sm:$0xff] }
 0x340   : > { %9098 = vmatmul.mubr.bf16.gmra.mrb[68].mxu0 %v17548_v58  ;;  %9716 = vmatprep.subr.bf16.mxu1 %v12176_v56  ;;  %v16049_v56 = vmul.f32 0.5, %v15762_v39  ;;  %v5432_v45 = vmul.f32 0.7978846, %v5304_v15  ;;  %v5593_v7 = vadd.f32 1.0, %v12874_v38  ;;  %v17554_v39 = vld [vmem:[#allocation93_spill] sm:$0xff]  ;;  %v5705_v36 = vmul.f32 %v5577_v52, %v15993_v14  ;;  %v17557_v14 = vld [vmem:[#allocation43_spill] sm:$0xff] }
 0x341   : > { %9682 = vmatmul.mubr.bf16.gmra.mrb[68].mxu1 %v17548_v58  ;;  %9107 = vmatprep.mubr.bf16.mxu0 %v17553_v20  ;;  %12893 = vtanh.f32 %v5433_v18  ;;  %v16057_v6 = vadd.f32 %v17555_v22, %v17554_v39  ;;  %v4761_v58 = vmul.f32 0.5, %v15878_v43  ;;  %v16066_v15 = vmul.f32 0.5, %v15823_v53  ;;  %v12191_v63 = vld [vmem:[#allocation8 + $0x4a4] ss:$16 sps:$4 sm:$0xff]  }
 0x342   : > { %9133 = vmatpush1.bf16.msra.mxu0 %v12171_v12  ;;  %9691 = vmatprep.mubr.bf16.mxu1 %v17553_v20  ;;  %v12876_v12 = vpop.eup %12875  ;;  %12895 = vtanh.f32 %v5416_v21  ;;  %v5721_v28 = vmul.f32 %v5593_v7, %v16010_v41  ;;  %v5323_v18 = vmul.f32 0.7978846, %v5195_v13  ;;  %v5339_v38 = vmul.f32 0.7978846, %v5211_v59  ;;  %v17558_v43 = vld [vmem:[#allocation96_spill] sm:$0xff] }
 0x343   : > { %9717 = vmatpush1.bf16.msra.mxu1 %v12174_v51  ;;  %9134 = vmatprep.subr.bf16.mxu0 %v12179_v40  ;;  %v16061_v51 = vadd.f32 %v17556_v8, %v15952_v17  ;;  %v12878_v40 = vpop.eup %12877  ;;  %v5609_v37 = vadd.f32 1.0, %v12876_v12  ;;  %12897 = vtanh.f32 %v5432_v45  ;;  %v5578_v52 = vadd.f32 1.0, %v17557_v14  ;;  %v17562_v59 = vld [vmem:[#allocation84_spill] sm:$0xff] }
 0x344   : > { %9718 = vmatprep.subr.bf16.mxu1 %v12182_v27  ;;  %v12186_v27 = vld [vmem:[#allocation8 + $0x488] ss:$16 sps:$4 sm:$0xff]   ;;  %v5625_v20 = vadd.f32 1.0, %v12878_v40  ;;  %v12880_v17 = vpop.eup %12879  ;;  %v5594_v39 = vadd.f32 1.0, %v17558_v43  ;;  %v16072_v21 = vpack.c.bf16 %v5721_v28, %v5705_v36  ;;  %12899 = vtanh.f32 %v5323_v18 }
 0x345   : > { %v12882_v53 = vpop.eup %12881  ;;  %v5737_v41 = vmul.f32 %v5609_v37, %v4713_v23  ;;  %v5608_v7 = vadd.f32 1.0, %v12880_v17  ;;  %v17563_v40 = vld [vmem:[#allocation86_spill] sm:$0xff]  ;;  %12901 = vtanh.f32 %v5339_v38 }
 0x346   : > { %9135 = vmatpush1.bf16.msra.mxu0 %v12177_v48  ;;  %v12194_v48 = vld [vmem:[#allocation8 + $0x4ac] ss:$16 sps:$4 sm:$0xff]   ;;  %17560 = vst [vmem:[#allocation98_spill] sm:$0xff] %v16072_v21  ;;  %v5753_v12 = vmul.f32 %v5625_v20, %v4729_v47  ;;  %v12884_v45 = vpop.eup %12883  ;;  %v5624_v13 = vadd.f32 1.0, %v12882_v53  ;;  %v5722_v14 = vmul.f32 %v5594_v39, %v17563_v40  ;;  %v12192_v36 = vld [vmem:[#allocation8 + $0x4a8] ss:$16 sps:$4 sm:$0xff]  }
 0x347   : > { %9719 = vmatpush1.bf16.msra.mxu1 %v12180_v33  ;;  %9136 = vmatprep.subr.bf16.mxu0 %v12185_v0  ;;  %v17561_v33 = vld [vmem:[#allocation90_spill] sm:$0xff]  ;;  %v5706_v0 = vmul.f32 %v5578_v52, %v17562_v59  ;;  %v12886_v43 = vpop.eup %12885  ;;  %v5641_v47 = vadd.f32 1.0, %v12884_v45  ;;  %v12200_v20 = vld [vmem:[#allocation8 + $0x4cc] ss:$16 sps:$4 sm:$0xff]   ;;  %v5736_v17 = vmul.f32 %v5608_v7, %v16049_v56  ;;  %v4760_v53 = vmul.f32 0.5, %v15869_v60 }
 0x348   : > { %9108 = vmatmul.mubr.bf16.gmra.mrb[72].mxu0 %v17559_v5  ;;  %9720 = vmatprep.subr.bf16.mxu1 %v12188_v25  ;;  %v12189_v25 = vld [vmem:[#allocation8 + $0x4a0] ss:$16 sps:$4 sm:$0xff]   ;;  %v16079_v23 = vpack.c.bf16 %v5753_v12, %v5737_v41  ;;  %v12888_v28 = vpop.eup %12887  ;;  %v12197_v37 = vld [vmem:[#allocation8 + $0x4c4] ss:$16 sps:$4 sm:$0xff]   ;;  %v5657_v18 = vadd.f32 1.0, %v12886_v43  ;;  %v4777_v41 = vmul.f32 0.5, %v15899_v30 }
 0x349   : > { %9692 = vmatmul.mubr.bf16.gmra.mrb[72].mxu1 %v17559_v5  ;;  %9117 = vmatprep.mubr.bf16.mxu0 %v17561_v33  ;;  %v16083_v5 = vadd.f32 %v15881_v24, %v15970_v35  ;;  %v16086_v52 = vpack.c.bf16 %v5722_v14, %v5706_v0  ;;  %v12890_v39 = vpop.eup %12889  ;;  %v5640_v38 = vadd.f32 1.0, %v12888_v28  ;;  %v5355_v35 = vmul.f32 0.7978846, %v16032_v44  ;;  %v12198_v44 = vld [vmem:[#allocation8 + $0x4c8] ss:$16 sps:$4 sm:$0xff]  }
 0x34a   : > { %9137 = vmatpush1.bf16.msra.mxu0 %v12183_v50  ;;  %9701 = vmatprep.mubr.bf16.mxu1 %v17561_v33  ;;  %17564 = vst [vmem:[#allocation97_spill] sm:$0xff] %v16079_v23  ;;  %v5752_v50 = vmul.f32 %v5624_v13, %v4728_v10  ;;  %v12892_v12 = vpop.eup %12891  ;;  %v5769_v45 = vmul.f32 %v5641_v47, %v16053_v11  ;;  %v4793_v10 = vmul.f32 0.5, %v15935_v9  ;;  %v5656_v33 = vadd.f32 1.0, %v12890_v39  ;;  %v12203_v59 = vld [vmem:[#allocation8 + $0x4e4] ss:$16 sps:$4 sm:$0xff]  }
 0x34b   : > { %9721 = vmatpush1.bf16.msra.mxu1 %v12186_v27  ;;  %9138 = vmatprep.subr.bf16.mxu0 %v12191_v63  ;;  %17565 = vst [vmem:[#allocation17_spill] sm:$0xff] %v16086_v52  ;;  %v12195_v27 = vld [vmem:[#allocation8 + $0x4c0] ss:$16 sps:$4 sm:$0xff]   ;;  %v5785_v56 = vmul.f32 %v5657_v18, %v4761_v58  ;;  %v12894_v7 = vpop.eup %12893  ;;  %v4776_v60 = vmul.f32 0.5, %v15886_v31  ;;  %v5371_v13 = vmul.f32 0.7978846, %v16037_v55  ;;  %12903 = vtanh.f32 %v5355_v35 }
 0x34c   : > { %9722 = vmatprep.subr.bf16.mxu1 %v12194_v48  ;;  %v16091_v63 = vpack.c.bf16 %v5752_v50, %v5736_v17  ;;  %v5673_v48 = vadd.f32 1.0, %v12892_v12  ;;  %v12896_v30 = vpop.eup %12895  ;;  %v5689_v40 = vadd.f32 1.0, %v12894_v7  ;;  %v4792_v11 = vmul.f32 0.5, %v15911_v26  ;;  %v17568_v58 = vld [vmem:[#allocation99_spill] sm:$0xff]  ;;  %v17571_v17 = vld [vmem:[#allocation41_spill] sm:$0xff] }
 0x34d   : > { %v16097_v0 = vpack.c.bf16 %v5785_v56, %v5769_v45  ;;  %v12898_v9 = vpop.eup %12897  ;;  %v12206_v14 = vld [vmem:[#allocation8 + $0x4ec] ss:$16 sps:$4 sm:$0xff]   ;;  %v5768_v31 = vmul.f32 %v5640_v38, %v16066_v15  ;;  %v5784_v43 = vmul.f32 %v5656_v33, %v4760_v53  ;;  %v5672_v55 = vadd.f32 1.0, %v12896_v30  ;;  %v12204_v38 = vld [vmem:[#allocation8 + $0x4e8] ss:$16 sps:$4 sm:$0xff]  }
 0x34e   : > { %17566 = vst [vmem:[#allocation18_spill] sm:$0xff] %v16091_v63  ;;  %9139 = vmatpush1.bf16.msra.mxu0 %v12189_v25  ;;  %12905 = vtanh.f32 %v5371_v13  ;;  %v17569_v25 = vld [vmem:[#allocation74_spill] sm:$0xff]  ;;  %v5817_v47 = vmul.f32 %v5689_v40, %v4793_v10  ;;  %v5688_v28 = vadd.f32 1.0, %v12898_v9  ;;  %v5354_v26 = vmul.f32 0.7978846, %v16041_v46  ;;  %v17572_v50 = vld [vmem:[#allocation89_spill] sm:$0xff]  ;;  %v12900_v53 = vpop.eup %12899 }
 0x34f   : > { %9723 = vmatpush1.bf16.msra.mxu1 %v12192_v36  ;;  %9140 = vmatprep.subr.bf16.mxu0 %v12197_v37  ;;  %17567 = vst [vmem:[#allocation19_spill] sm:$0xff] %v16097_v0  ;;  %v5801_v36 = vmul.f32 %v5673_v48, %v4777_v41  ;;  %v12201_v37 = vld [vmem:[#allocation8 + $0x4e0] ss:$16 sps:$4 sm:$0xff]   ;;  %v5370_v15 = vmul.f32 0.7978846, %v16057_v6  ;;  %v5258_v18 = vadd.f32 %v17572_v50, %v17571_v17  ;;  %v5579_v56 = vadd.f32 1.0, %v12900_v53 }
 0x350   : > { %9118 = vmatmul.mubr.bf16.gmra.mrb[76].mxu0 %v17568_v58  ;;  %9724 = vmatprep.subr.bf16.mxu1 %v12200_v20  ;;  %v16106_v20 = vpack.c.bf16 %v5784_v43, %v5768_v31  ;;  %v5274_v39 = vadd.f32 %v15874_v4, %v15966_v19  ;;  %v12209_v41 = vld [vmem:[#allocation8 + $0x504] ss:$16 sps:$4 sm:$0xff]   ;;  %v5800_v35 = vmul.f32 %v5672_v55, %v4776_v60  ;;  %12907 = vtanh.f32 %v5354_v26  ;;  %v12212_v45 = vld [vmem:[#allocation8 + $0x50c] ss:$16 sps:$4 sm:$0xff]   ;;  %v12207_v10 = vld [vmem:[#allocation8 + $0x500] ss:$16 sps:$4 sm:$0xff]  }
 0x351   : > { %9702 = vmatmul.mubr.bf16.gmra.mrb[76].mxu1 %v17568_v58  ;;  %9160 = vmatprep.mubr.bf16.mxu0 %v17569_v25  ;;  %v16113_v46 = vpack.c.bf16 %v5817_v47, %v5801_v36  ;;  %v5816_v12 = vmul.f32 %v5688_v28, %v4792_v11  ;;  %v5178_v6 = vmul.f32 %v15932_v42, %v15984_v29  ;;  %12909 = vtanh.f32 %v5370_v15  ;;  %v12210_v60 = vld [vmem:[#allocation8 + $0x508] ss:$16 sps:$4 sm:$0xff]   ;;  %v12213_v58 = vld [vmem:[#allocation8 + $0x520] ss:$16 sps:$4 sm:$0xff]   ;;  %v12221_v43 = vld [vmem:[#allocation8 + $0x544] ss:$16 sps:$4 sm:$0xff]  }
 0x352   : > { %9141 = vmatpush1.bf16.msra.mxu0 %v12195_v27  ;;  %9744 = vmatprep.mubr.bf16.mxu1 %v17569_v25  ;;  %17570 = vst [vmem:[#allocation20_spill] sm:$0xff] %v16106_v20  ;;  %v12902_v27 = vpop.eup %12901  ;;  %v5387_v19 = vmul.f32 0.7978846, %v16061_v51  ;;  %v4683_v33 = vmul.f32 0.5, %v15739_v34  ;;  %v5291_v48 = vadd.f32 %v15908_v49, %v15988_v16  ;;  %v4699_v13 = vmul.f32 0.5, %v15759_v1 }
 0x353   : > { %9725 = vmatpush1.bf16.msra.mxu1 %v12198_v44  ;;  %9142 = vmatprep.subr.bf16.mxu0 %v12203_v59  ;;  %17573 = vst [vmem:[#allocation21_spill] sm:$0xff] %v16113_v46  ;;  %v16118_v7 = vpack.c.bf16 %v5816_v12, %v5800_v35  ;;  %v5595_v30 = vadd.f32 1.0, %v12902_v27  ;;  %v5403_v29 = vmul.f32 0.7978846, %v16083_v5  ;;  %v12215_v44 = vld [vmem:[#allocation8 + $0x524] ss:$16 sps:$4 sm:$0xff]   ;;  %v5307_v40 = vadd.f32 %v15941_v32, %v16020_v3 }
 0x354   : > { %9726 = vmatprep.subr.bf16.mxu1 %v12206_v14  ;;  %12911 = vtanh.f32 %v5387_v19  ;;  %v5386_v51 = vmul.f32 0.7978846, %v5258_v18  ;;  %v5402_v59 = vmul.f32 0.7978846, %v5274_v39  ;;  %v5290_v34 = vadd.f32 %v15889_v2, %v15980_v57  ;;  %v12218_v16 = vld [vmem:[#allocation8 + $0x52c] ss:$16 sps:$4 sm:$0xff]  }
 0x355   : > { %17574 = vst [vmem:[#allocation22_spill] sm:$0xff] %v16118_v7  ;;  %v5707_v11 = vmul.f32 %v5579_v56, %v4683_v33  ;;  %v5723_v9 = vmul.f32 %v5595_v30, %v4699_v13  ;;  %12913 = vtanh.f32 %v5403_v29  ;;  %v5306_v1 = vadd.f32 %v15932_v42, %v5178_v6  ;;  %v12904_v5 = vpop.eup %12903  ;;  %v12216_v14 = vld [vmem:[#allocation8 + $0x528] ss:$16 sps:$4 sm:$0xff]   ;;  %v12224_v26 = vld [vmem:[#allocation8 + $0x54c] ss:$16 sps:$4 sm:$0xff]  }
 0x356   : > { %9143 = vmatpush1.bf16.msra.mxu0 %v12201_v37  ;;  %12915 = vtanh.f32 %v5386_v51  ;;  %v5611_v3 = vadd.f32 1.0, %v12904_v5  ;;  %v5419_v25 = vmul.f32 0.7978846, %v5291_v48  ;;  %v4715_v57 = vmul.f32 0.5, %v15780_v62  ;;  %v12222_v62 = vld [vmem:[#allocation8 + $0x548] ss:$16 sps:$4 sm:$0xff]  }
 0x357   : > { %9727 = vmatpush1.bf16.msra.mxu1 %v12204_v38  ;;  %9144 = vmatprep.subr.bf16.mxu0 %v12209_v41  ;;  %v16130_v55 = vpack.c.bf16 %v5723_v9, %v5707_v11  ;;  %12917 = vtanh.f32 %v5402_v59  ;;  %v4731_v36 = vmul.f32 0.5, %v17550_v61  ;;  %v5435_v28 = vmul.f32 0.7978846, %v5307_v40  ;;  %v12219_v38 = vld [vmem:[#allocation8 + $0x540] ss:$16 sps:$4 sm:$0xff]  }
 0x358   : > { %9728 = vmatprep.subr.bf16.mxu1 %v12212_v45  ;;  %v12906_v31 = vpop.eup %12905  ;;  %12919 = vtanh.f32 %v5419_v25  ;;  %v5418_v37 = vmul.f32 0.7978846, %v5290_v34  ;;  %v5434_v15 = vmul.f32 0.7978846, %v5306_v1  ;;  %v5739_v18 = vmul.f32 %v5611_v3, %v4715_v57  ;;  %v12227_v61 = vld [vmem:[#allocation8 + $0x564] ss:$16 sps:$4 sm:$0xff]  }
 0x359   : > { %17575 = vst [vmem:[#allocation23_spill] sm:$0xff] %v16130_v55  ;;  %v5627_v47 = vadd.f32 1.0, %v12906_v31  ;;  %12921 = vtanh.f32 %v5435_v28  ;;  %v4714_v41 = vmul.f32 0.5, %v17552_v54  ;;  %v4730_v27 = vmul.f32 0.5, %v17555_v22  ;;  %v12230_v56 = vld [vmem:[#allocation8 + $0x56c] ss:$16 sps:$4 sm:$0xff]  }
 0x35a   : > { %9145 = vmatpush1.bf16.msra.mxu0 %v12207_v10  ;;  %v12908_v17 = vpop.eup %12907  ;;  %12923 = vtanh.f32 %v5418_v37  ;;  %v12225_v54 = vld [vmem:[#allocation8 + $0x560] ss:$16 sps:$4 sm:$0xff]   ;;  %v12228_v48 = vld [vmem:[#allocation8 + $0x568] ss:$16 sps:$4 sm:$0xff]   ;;  %v12233_v30 = vld [vmem:[#allocation8 + $0x584] ss:$16 sps:$4 sm:$0xff]  }
 0x35b   : > { %9729 = vmatpush1.bf16.msra.mxu1 %v12210_v60  ;;  %9146 = vmatprep.subr.bf16.mxu0 %v12215_v44  ;;  %v5755_v39 = vmul.f32 %v5627_v47, %v4731_v36  ;;  %v12910_v53 = vpop.eup %12909  ;;  %v5610_v35 = vadd.f32 1.0, %v12908_v17  ;;  %12925 = vtanh.f32 %v5434_v15  ;;  %v4747_v22 = vmul.f32 0.5, %v17556_v8  ;;  %v12236_v40 = vld [vmem:[#allocation8 + $0x58c] ss:$16 sps:$4 sm:$0xff]   ;;  %v12231_v1 = vld [vmem:[#allocation8 + $0x580] ss:$16 sps:$4 sm:$0xff]  }
 0x35c   : > { %9730 = vmatprep.subr.bf16.mxu1 %v12218_v16  ;;  %v5626_v6 = vadd.f32 1.0, %v12910_v53  ;;  %v4763_v44 = vmul.f32 0.5, %v15881_v24  ;;  %v4746_v5 = vmul.f32 0.5, %v17572_v50  ;;  %v12234_v8 = vld [vmem:[#allocation8 + $0x588] ss:$16 sps:$4 sm:$0xff]   ;;  %v4779_v3 = vmul.f32 0.5, %v15908_v49 }
 0x35d   : > { %v16135_v12 = vpack.c.bf16 %v5755_v39, %v5739_v18  ;;  %v5738_v19 = vmul.f32 %v5610_v35, %v4714_v41  ;;  %v12239_v24 = vld [vmem:[#allocation8 + $0x5a4] ss:$16 sps:$4 sm:$0xff]   ;;  %v12242_v36 = vld [vmem:[#allocation8 + $0x5ac] ss:$16 sps:$4 sm:$0xff]   ;;  %v4795_v50 = vmul.f32 0.5, %v15941_v32  ;;  %v4778_v15 = vmul.f32 0.5, %v15889_v2 }
 0x35e   : > { %9147 = vmatpush1.bf16.msra.mxu0 %v12213_v58  ;;  %v12912_v45 = vpop.eup %12911  ;;  %v5754_v10 = vmul.f32 %v5626_v6, %v4730_v27  ;;  %v4762_v58 = vmul.f32 0.5, %v15874_v4  ;;  %v4794_v17 = vmul.f32 0.5, %v15932_v42  ;;  %v12237_v18 = vld [vmem:[#allocation8 + $0x5a0] ss:$16 sps:$4 sm:$0xff]   ;;  %v12240_v41 = vld [vmem:[#allocation8 + $0x5a8] ss:$16 sps:$4 sm:$0xff]  }
 0x35f   : > { %9731 = vmatpush1.bf16.msra.mxu1 %v12216_v14  ;;  %9148 = vmatprep.subr.bf16.mxu0 %v12221_v43  ;;  %17576 = vst [vmem:[#allocation24_spill] sm:$0xff] %v16135_v12  ;;  %v12914_v33 = vpop.eup %12913  ;;  %v5643_v60 = vadd.f32 1.0, %v12912_v45  ;;  %v12245_v35 = vld [vmem:[#allocation8 + $0x5c4] ss:$16 sps:$4 sm:$0xff]   ;;  %v12248_v32 = vld [vmem:[#allocation8 + $0x5cc] ss:$16 sps:$4 sm:$0xff]  }
 0x360   : > { %9732 = vmatprep.subr.bf16.mxu1 %v12224_v26  ;;  %v12916_v13 = vpop.eup %12915  ;;  %v16138_v29 = vpack.c.bf16 %v5754_v10, %v5738_v19  ;;  %v5659_v51 = vadd.f32 1.0, %v12914_v33  ;;  %v12243_v2 = vld [vmem:[#allocation8 + $0x5c0] ss:$16 sps:$4 sm:$0xff]   ;;  %v12246_v6 = vld [vmem:[#allocation8 + $0x5c8] ss:$16 sps:$4 sm:$0xff]  }
 0x361   : > { %v12918_v59 = vpop.eup %12917  ;;  %v5642_v34 = vadd.f32 1.0, %v12916_v13  ;;  %v5771_v16 = vmul.f32 %v5643_v60, %v4747_v22  ;;  %v12251_v45 = vld [vmem:[#allocation8 + $0x5e4] ss:$16 sps:$4 sm:$0xff]   ;;  %v12249_v19 = vld [vmem:[#allocation8 + $0x5e0] ss:$16 sps:$4 sm:$0xff]  }
 0x362   : > { %9149 = vmatpush1.bf16.msra.mxu0 %v12219_v38  ;;  %17577 = vst [vmem:[#allocation103_spill] sm:$0xff] %v16138_v29  ;;  %v5787_v11 = vmul.f32 %v5659_v51, %v4763_v44  ;;  %v12920_v9 = vpop.eup %12919  ;;  %v5658_v14 = vadd.f32 1.0, %v12918_v59  ;;  %v12252_v10 = vld [vmem:[#allocation8 + $0x5e8] ss:$16 sps:$4 sm:$0xff]   ;;  %v12257_v33 = vld [vmem:[#allocation8 + $0x604] ss:$16 sps:$4 sm:$0xff]  }
 0x363   : > { %9733 = vmatpush1.bf16.msra.mxu1 %v12222_v62  ;;  %9150 = vmatprep.subr.bf16.mxu0 %v12227_v61  ;;  %v12922_v31 = vpop.eup %12921  ;;  %v5675_v25 = vadd.f32 1.0, %v12920_v9  ;;  %v5770_v47 = vmul.f32 %v5642_v34, %v4746_v5  ;;  %v12258_v60 = vld [vmem:[#allocation8 + $0x608] ss:$16 sps:$4 sm:$0xff]   ;;  %v12263_v13 = vld [vmem:[#allocation8 + $0x624] ss:$16 sps:$4 sm:$0xff]   ;;  %v17583_v44 = vld [vmem:[#allocation75_spill] sm:$0xff] }
 0x364   : > { %9734 = vmatprep.subr.bf16.mxu1 %v12230_v56  ;;  %v16144_v43 = vpack.c.bf16 %v5787_v11, %v5771_v16  ;;  %v12924_v57 = vpop.eup %12923  ;;  %v5786_v28 = vmul.f32 %v5658_v14, %v4762_v58  ;;  %v5691_v26 = vadd.f32 1.0, %v12922_v31  ;;  %v12254_v56 = vld [vmem:[#allocation8 + $0x5ec] ss:$16 sps:$4 sm:$0xff]   ;;  %v12261_v51 = vld [vmem:[#allocation8 + $0x620] ss:$16 sps:$4 sm:$0xff]   ;;  %v17585_v58 = vld [vmem:[#allocation16_spill] sm:$0xff] }
 0x365   : > { %v12926_v4 = vpop.eup %12925  ;;  %v5803_v37 = vmul.f32 %v5675_v25, %v4779_v3  ;;  %v5674_v53 = vadd.f32 1.0, %v12924_v57  ;;  %v12266_v22 = vld [vmem:[#allocation8 + $0x62c] ss:$16 sps:$4 sm:$0xff]   ;;  %v12264_v59 = vld [vmem:[#allocation8 + $0x628] ss:$16 sps:$4 sm:$0xff]  }
 0x366   : > { %9151 = vmatpush1.bf16.msra.mxu0 %v12225_v54  ;;  %17578 = vst [vmem:[#allocation58_spill] sm:$0xff] %v16144_v43  ;;  %v16150_v39 = vpack.c.bf16 %v5786_v28, %v5770_v47  ;;  %v5819_v49 = vmul.f32 %v5691_v26, %v4795_v50  ;;  %v5690_v38 = vadd.f32 1.0, %v12926_v4  ;;  %v12260_v54 = vld [vmem:[#allocation8 + $0x60c] ss:$16 sps:$4 sm:$0xff]   ;;  %v12267_v16 = vld [vmem:[#allocation8 + $0x640] ss:$16 sps:$4 sm:$0xff]  }
 0x367   : > { %9735 = vmatpush1.bf16.msra.mxu1 %v12228_v48  ;;  %9152 = vmatprep.subr.bf16.mxu0 %v12233_v30  ;;  %v5802_v61 = vmul.f32 %v5674_v53, %v4778_v15  ;;  %v12255_v48 = vld [vmem:[#allocation8 + $0x600] ss:$16 sps:$4 sm:$0xff]   ;;  %v17582_v30 = vld [vmem:[#allocation104_spill] sm:$0xff]  ;;  %v12272_v34 = vld [vmem:[#allocation8 + $0x64c] ss:$16 sps:$4 sm:$0xff]  }
 0x368   : > { %9736 = vmatprep.subr.bf16.mxu1 %v12236_v40  ;;  %17579 = vst [vmem:[#allocation60_spill] sm:$0xff] %v16150_v39  ;;  %v16152_v62 = vpack.c.bf16 %v5819_v49, %v5803_v37  ;;  %v5818_v27 = vmul.f32 %v5690_v38, %v4794_v17  ;;  %v12269_v40 = vld [vmem:[#allocation8 + $0x644] ss:$16 sps:$4 sm:$0xff]   ;;  %v12270_v11 = vld [vmem:[#allocation8 + $0x648] ss:$16 sps:$4 sm:$0xff]   ;;  %v17591_v49 = vld [vmem:[#allocation101_spill] sm:$0xff] }
 0x369   : > { %v12275_v9 = vld [vmem:[#allocation8 + $0x664] ss:$16 sps:$4 sm:$0xff]   ;;  %v12278_v5 = vld [vmem:[#allocation8 + $0x66c] ss:$16 sps:$4 sm:$0xff]   ;;  %v12273_v14 = vld [vmem:[#allocation8 + $0x660] ss:$16 sps:$4 sm:$0xff]  }
 0x36a   : > { %9153 = vmatpush1.bf16.msra.mxu0 %v12231_v1  ;;  %17580 = vst [vmem:[#allocation61_spill] sm:$0xff] %v16152_v62  ;;  %v16154_v42 = vpack.c.bf16 %v5818_v27, %v5802_v61  ;;  %v17584_v1 = vld [vmem:[#allocation77_spill] sm:$0xff]  ;;  %v12276_v31 = vld [vmem:[#allocation8 + $0x668] ss:$16 sps:$4 sm:$0xff]   ;;  %v12287_v15 = vld [vmem:[#allocation8 + $0x6a4] ss:$16 sps:$4 sm:$0xff]  }
 0x36b   : > { %9737 = vmatpush1.bf16.msra.mxu1 %v12234_v8  ;;  %9154 = vmatprep.subr.bf16.mxu0 %v12239_v24  ;;  %v12281_v8 = vld [vmem:[#allocation8 + $0x684] ss:$16 sps:$4 sm:$0xff]   ;;  %v12284_v24 = vld [vmem:[#allocation8 + $0x68c] ss:$16 sps:$4 sm:$0xff]   ;;  %v12279_v3 = vld [vmem:[#allocation8 + $0x680] ss:$16 sps:$4 sm:$0xff]  }
 0x36c   : > { %9738 = vmatprep.subr.bf16.mxu1 %v12242_v36  ;;  %17581 = vst [vmem:[#allocation62_spill] sm:$0xff] %v16154_v42  ;;  %v12992_v25 = vld [vmem:[#allocation7 + $0x8] sm:$0xff]  ;;  %v17586_v57 = vld [vmem:[#allocation32_spill] sm:$0xff]  ;;  %v12285_v27 = vld [vmem:[#allocation8 + $0x6a0] ss:$16 sps:$4 sm:$0xff]  }
 0x36d   : > { %v17587_v36 = vsub.s32 4, %v17586_v57  ;;  %v12282_v28 = vld [vmem:[#allocation8 + $0x688] ss:$16 sps:$4 sm:$0xff]   ;;  %v17588_v50 = vsub.s32 6, %v17586_v57  ;;  %v17589_v4 = vsub.s32 5, %v17586_v57  ;;  %v17592_v38 = vsub.s32 7, %v17586_v57 }
 0x36e   : > { %9155 = vmatpush1.bf16.msra.mxu0 %v12237_v18  ;;  %v17590_v17 = vld [vmem:[#allocation38_spill] sm:$0xff]  ;;  %v12290_v18 = vld [vmem:[#allocation8 + $0x6ac] ss:$16 sps:$4 sm:$0xff]  }
 0x36f   : > { %9739 = vmatpush1.bf16.msra.mxu1 %v12240_v41  ;;  %9156 = vmatprep.subr.bf16.mxu0 %v12245_v35  ;;  %v16166_v47 = vrot.slane %v12992_v25, %v17587_v36  ;;  %v16170_v26 = vrot.slane %v12992_v25, %v17588_v50  ;;  %v16174_v37 = vrot.slane %v12992_v25, %v17589_v4  ;;  %v12302_v50 = vld [vmem:[#allocation8 + $0x6ec] ss:$16 sps:$4 sm:$0xff]   ;;  %v12329_v46 = vld [vmem:[#allocation8 + $0x784] ss:$16 sps:$4 sm:$0xff]  }
 0x370   : > { %9740 = vmatprep.subr.bf16.mxu1 %v12248_v32  ;;  %v16181_v41 = vrot.slane %v12992_v25, %v17592_v38  ;;  %v12300_v38 = vld [vmem:[#allocation8 + $0x6e8] ss:$16 sps:$4 sm:$0xff]   ;;  %v12326_v12 = vld [vmem:[#allocation8 + $0x76c] ss:$16 sps:$4 sm:$0xff]  }
 0x372   : > { %9157 = vmatpush1.bf16.msra.mxu0 %v12243_v2 }
 0x373   : > { %9741 = vmatpush1.bf16.msra.mxu1 %v12246_v6  ;;  %9158 = vmatprep.subr.bf16.mxu0 %v12251_v45 }
 0x374   : > { %9742 = vmatprep.subr.bf16.mxu1 %v12254_v56  ;;  %v12288_v56 = vld [vmem:[#allocation8 + $0x6a8] ss:$16 sps:$4 sm:$0xff]  }
 0x376   : > { %9159 = vmatpush1.bf16.msra.mxu0 %v12249_v19 }
 0x377   : > { %9743 = vmatpush1.bf16.msra.mxu1 %v12252_v10  ;;  %9201 = vmatprep.subr.bf16.mxu0 %v12257_v33  ;;  %v12293_v10 = vld [vmem:[#allocation8 + $0x6c4] ss:$16 sps:$4 sm:$0xff]  }
 0x378   : > { %9785 = vmatprep.subr.bf16.mxu1 %v12260_v54 }
 0x379   : > { %9161 = vmatmul.mubr.bf16.vlgmr.msra.gmra.mrb[64].mxu0 %v17582_v30 }
 0x37a   : > { %9745 = vmatmul.mubr.bf16.vlgmr.msra.gmra.mrb[64].mxu1 %v17582_v30  ;;  %9170 = vmatprep.mubr.bf16.mxu0 %v17583_v44 }
 0x37b   : > { %9202 = vmatpush1.bf16.msra.mxu0 %v12255_v48  ;;  %9754 = vmatprep.mubr.bf16.mxu1 %v17583_v44 }
 0x37c   : > { %9786 = vmatpush1.bf16.msra.mxu1 %v12258_v60  ;;  %9203 = vmatprep.subr.bf16.mxu0 %v12263_v13 }
 0x37d   : > { %9787 = vmatprep.subr.bf16.mxu1 %v12266_v22 }
 0x37f   : > { %9204 = vmatpush1.bf16.msra.mxu0 %v12261_v51  ;;  %v12291_v51 = vld [vmem:[#allocation8 + $0x6c0] ss:$16 sps:$4 sm:$0xff]  }
 0x380   : > { %9788 = vmatpush1.bf16.msra.mxu1 %v12264_v59  ;;  %9205 = vmatprep.subr.bf16.mxu0 %v12269_v40 }
 0x381   : > { %9171 = vmatmul.mubr.bf16.gmra.mrb[68].mxu0 %v17584_v1  ;;  %9789 = vmatprep.subr.bf16.mxu1 %v12272_v34 }
 0x382   : > { %9755 = vmatmul.mubr.bf16.gmra.mrb[68].mxu1 %v17584_v1  ;;  %9180 = vmatprep.mubr.bf16.mxu0 %v17585_v58  ;;  %v12294_v1 = vld [vmem:[#allocation8 + $0x6c8] ss:$16 sps:$4 sm:$0xff]  }
 0x383   : > { %9206 = vmatpush1.bf16.msra.mxu0 %v12267_v16  ;;  %9764 = vmatprep.mubr.bf16.mxu1 %v17585_v58  ;;  %v12296_v16 = vld [vmem:[#allocation8 + $0x6cc] ss:$16 sps:$4 sm:$0xff]  }
 0x384   : > { %9790 = vmatpush1.bf16.msra.mxu1 %v12270_v11  ;;  %9207 = vmatprep.subr.bf16.mxu0 %v12275_v9 }
 0x385   : > { %9791 = vmatprep.subr.bf16.mxu1 %v12278_v5 }
 0x387   : > { %9208 = vmatpush1.bf16.msra.mxu0 %v12273_v14 }
 0x388   : > { %9792 = vmatpush1.bf16.msra.mxu1 %v12276_v31  ;;  %9209 = vmatprep.subr.bf16.mxu0 %v12281_v8  ;;  %v17593_v31 = vld [vmem:[#allocation78_spill] sm:$0xff]  ;;  %v12297_v8 = vld [vmem:[#allocation8 + $0x6e0] ss:$16 sps:$4 sm:$0xff]  }
 0x389   : > { %9181 = vmatmul.mubr.bf16.gmra.mrb[72].mxu0 %v17590_v17  ;;  %9793 = vmatprep.subr.bf16.mxu1 %v12284_v24  ;;  %v12299_v24 = vld [vmem:[#allocation8 + $0x6e4] ss:$16 sps:$4 sm:$0xff]  }
 0x38a   : > { %9765 = vmatmul.mubr.bf16.gmra.mrb[72].mxu1 %v17590_v17  ;;  %9190 = vmatprep.mubr.bf16.mxu0 %v17591_v49  ;;  %v4487_v53 = vpop.f32.mrb[48].mxu0 }
 0x38b   : > { %9210 = vmatpush1.bf16.msra.mxu0 %v12279_v3  ;;  %9774 = vmatprep.mubr.bf16.mxu1 %v17591_v49  ;;  %v16185_v35 = vadd.f32 %v4487_v53, %v16166_v47  ;;  %v4633_v32 = vpop.f32.mrb[48].mxu1  ;;  %v4489_v61 = vpop.f32.mrb[49].mxu0 }
 0x38c   : > { %9794 = vmatpush1.bf16.msra.mxu1 %v12282_v28  ;;  %v16188_v2 = vadd.f32 %v4633_v32, %v16170_v26  ;;  %v16191_v6 = vadd.f32 %v4489_v61, %v16174_v37  ;;  %v4635_v45 = vpop.f32.mrb[49].mxu1  ;;  %9211 = vmatprep.subr.bf16.mxu0 %v12287_v15  ;;  %v4491_v19 = vpop.f32.mrb[50].mxu0 }
 0x38d   : > { %v4812_v33 = vmul.f32 0.044715, %v16185_v35  ;;  %9795 = vmatprep.subr.bf16.mxu1 %v12290_v18  ;;  %v16195_v54 = vadd.f32 %v4491_v19, %v16166_v47  ;;  %v4637_v48 = vpop.f32.mrb[50].mxu1  ;;  %v4493_v60 = vpop.f32.mrb[51].mxu0  ;;  %v16199_v30 = vadd.f32 %v4635_v45, %v16181_v41  ;;  %v17594_v45 = vld [vmem:[#allocation79_spill] sm:$0xff] }
 0x38e   : > { %v4814_v13 = vmul.f32 0.044715, %v16188_v2  ;;  %v11474_v22 = vadd.f32 %v4637_v48, %v16170_v26  ;;  %v4639_v44 = vpop.f32.mrb[51].mxu1  ;;  %v4813_v40 = vmul.f32 0.044715, %v16191_v6  ;;  %v16209_v14 = vadd.f32 %v4493_v60, %v16174_v37 }
 0x38f   : > { %v4940_v59 = vmul.f32 %v16185_v35, %v4812_v33  ;;  %v4828_v34 = vmul.f32 0.044715, %v16195_v54  ;;  %9212 = vmatpush1.bf16.msra.mxu0 %v12285_v27  ;;  %v4815_v25 = vmul.f32 0.044715, %v16199_v30  ;;  %v16215_v36 = vadd.f32 %v4639_v44, %v16181_v41  ;;  %v12305_v33 = vld [vmem:[#allocation8 + $0x704] ss:$16 sps:$4 sm:$0xff]  }
 0x390   : > { %v4942_v11 = vmul.f32 %v16188_v2, %v4814_v13  ;;  %v4830_v9 = vmul.f32 0.044715, %v11474_v22  ;;  %9796 = vmatpush1.bf16.msra.mxu1 %v12288_v56  ;;  %9213 = vmatprep.subr.bf16.mxu0 %v12293_v10  ;;  %v4941_v15 = vmul.f32 %v16191_v6, %v4813_v40  ;;  %v4829_v18 = vmul.f32 0.044715, %v16209_v14 }
 0x391   : > { %v5068_v5 = vmul.f32 %v16185_v35, %v4940_v59  ;;  %v4956_v58 = vmul.f32 %v16195_v54, %v4828_v34  ;;  %9191 = vmatmul.mubr.bf16.gmra.mrb[76].mxu0 %v17593_v31  ;;  %9797 = vmatprep.subr.bf16.mxu1 %v12296_v16  ;;  %v4831_v27 = vmul.f32 0.044715, %v16215_v36  ;;  %v12308_v59 = vld [vmem:[#allocation8 + $0x70c] ss:$16 sps:$4 sm:$0xff]   ;;  %v16234_v40 = vmul.f32 0.5, %v16185_v35 }
 0x392   : > { %v5070_v3 = vmul.f32 %v16188_v2, %v4942_v11  ;;  %v4958_v57 = vmul.f32 %v11474_v22, %v4830_v9  ;;  %9775 = vmatmul.mubr.bf16.gmra.mrb[76].mxu1 %v17593_v31  ;;  %v4497_v28 = vpop.f32.mrb[52].mxu0  ;;  %9233 = vmatprep.mubr.bf16.mxu0 %v17594_v45  ;;  %v16237_v34 = vmul.f32 0.5, %v16188_v2 }
 0x393   : > { %v5196_v4 = vadd.f32 %v16185_v35, %v5068_v5  ;;  %v5084_v17 = vmul.f32 %v16195_v54, %v4956_v58  ;;  %9214 = vmatpush1.bf16.msra.mxu0 %v12291_v51  ;;  %v4643_v49 = vpop.f32.mrb[52].mxu1  ;;  %v4499_v53 = vpop.f32.mrb[53].mxu0  ;;  %v16226_v56 = vadd.f32 %v4497_v28, %v16166_v47  ;;  %9817 = vmatprep.mubr.bf16.mxu1 %v17594_v45  ;;  %v16242_v5 = vmul.f32 0.5, %v16195_v54  ;;  %v12303_v35 = vld [vmem:[#allocation8 + $0x700] ss:$16 sps:$4 sm:$0xff]  }
 0x394   : > { %v5198_v32 = vadd.f32 %v16188_v2, %v5070_v3  ;;  %v5086_v61 = vmul.f32 %v11474_v22, %v4958_v57  ;;  %9798 = vmatpush1.bf16.msra.mxu1 %v12294_v1  ;;  %v4645_v19 = vpop.f32.mrb[53].mxu1  ;;  %v4501_v10 = vpop.f32.mrb[54].mxu0  ;;  %v16231_v13 = vadd.f32 %v4643_v49, %v16170_v26  ;;  %9215 = vmatprep.subr.bf16.mxu0 %v12299_v24  ;;  %v16244_v58 = vmul.f32 0.5, %v11474_v22  ;;  %v12311_v28 = vld [vmem:[#allocation8 + $0x724] ss:$16 sps:$4 sm:$0xff]  }
 0x395   : > { %v5324_v48 = vmul.f32 0.7978846, %v5196_v4  ;;  %v5212_v60 = vadd.f32 %v16195_v54, %v5084_v17  ;;  %v4647_v44 = vpop.f32.mrb[54].mxu1  ;;  %v4503_v51 = vpop.f32.mrb[55].mxu0  ;;  %17596 = vst [vmem:[#allocation25_spill] sm:$0xff] %v16237_v34  ;;  %9799 = vmatprep.subr.bf16.mxu1 %v12302_v50  ;;  %v4943_v1 = vmul.f32 %v16199_v30, %v4815_v25  ;;  %v16248_v2 = vmul.f32 %v16191_v6, %v4941_v15 }
 0x396   : > { %17595 = vst [vmem:[#allocation63_spill] sm:$0xff] %v16231_v13  ;;  %v5214_v16 = vadd.f32 %v11474_v22, %v5086_v61  ;;  %v4844_v11 = vmul.f32 0.044715, %v16226_v56  ;;  %v4649_v9 = vpop.f32.mrb[55].mxu1  ;;  %17597 = vst [vmem:[#allocation64_spill] sm:$0xff] %v16244_v58  ;;  %v4957_v3 = vmul.f32 %v16209_v14, %v4829_v18  ;;  %v4959_v57 = vmul.f32 %v16215_v36, %v4831_v27 }
 0x397   : > { %v4846_v31 = vmul.f32 0.044715, %v16231_v13  ;;  %9216 = vmatpush1.bf16.msra.mxu0 %v12297_v8  ;;  %v5326_v24 = vmul.f32 0.7978846, %v5198_v32  ;;  %v12306_v25 = vld [vmem:[#allocation8 + $0x708] ss:$16 sps:$4 sm:$0xff]   ;;  %12927 = vtanh.f32 %v5324_v48  ;;  %v16253_v22 = vadd.f32 %v4499_v53, %v16174_v37 }
 0x398   : > { %9800 = vmatpush1.bf16.msra.mxu1 %v12300_v38  ;;  %9217 = vmatprep.subr.bf16.mxu0 %v12305_v33  ;;  %v5340_v54 = vmul.f32 0.7978846, %v5212_v60  ;;  %v16256_v8 = vadd.f32 %v4645_v19, %v16181_v41  ;;  %v12309_v50 = vld [vmem:[#allocation8 + $0x720] ss:$16 sps:$4 sm:$0xff]   ;;  %v12314_v4 = vld [vmem:[#allocation8 + $0x72c] ss:$16 sps:$4 sm:$0xff]   ;;  %v4972_v17 = vmul.f32 %v16226_v56, %v4844_v11  ;;  %v16260_v18 = vadd.f32 %v4501_v10, %v16166_v47 }
 0x399   : > { %9801 = vmatprep.subr.bf16.mxu1 %v12308_v59  ;;  %v5342_v15 = vmul.f32 0.7978846, %v5214_v16  ;;  %v16263_v49 = vadd.f32 %v4647_v44, %v16170_v26  ;;  %v12312_v32 = vld [vmem:[#allocation8 + $0x728] ss:$16 sps:$4 sm:$0xff]   ;;  %v4974_v53 = vmul.f32 %v16231_v13, %v4846_v31  ;;  %v4845_v61 = vmul.f32 0.044715, %v16253_v22 }
 0x39a   : > { %17598 = vst [vmem:[#allocation66_spill] sm:$0xff] %v16256_v8  ;;  %v4507_v38 = vpop.f32.mrb[56].mxu0  ;;  %v4847_v27 = vmul.f32 0.044715, %v16256_v8  ;;  %v16269_v45 = vadd.f32 %v4503_v51, %v16174_v37  ;;  %v4860_v10 = vmul.f32 0.044715, %v16260_v18  ;;  %v16274_v60 = vadd.f32 %v4649_v9, %v16181_v41 }
 0x39b   : > { %17599 = vst [vmem:[#allocation26_spill] sm:$0xff] %v16263_v49  ;;  %9218 = vmatpush1.bf16.msra.mxu0 %v12303_v35  ;;  %v4653_v19 = vpop.f32.mrb[56].mxu1  ;;  %v4509_v33 = vpop.f32.mrb[57].mxu0  ;;  %v4862_v48 = vmul.f32 0.044715, %v16263_v49  ;;  %v16277_v44 = vadd.f32 %v4507_v38, %v16166_v47  ;;  %12929 = vtanh.f32 %v5326_v24  ;;  %v16280_v51 = vmul.f32 %v16199_v30, %v4943_v1 }
 0x39c   : > { %17600 = vst [vmem:[#allocation70_spill] sm:$0xff] %v16274_v60  ;;  %9802 = vmatpush1.bf16.msra.mxu1 %v12306_v25  ;;  %v4655_v59 = vpop.f32.mrb[57].mxu1  ;;  %9219 = vmatprep.subr.bf16.mxu0 %v12311_v28  ;;  %v4511_v16 = vpop.f32.mrb[58].mxu0  ;;  %v4973_v11 = vmul.f32 %v16253_v22, %v4845_v61  ;;  %v4861_v31 = vmul.f32 0.044715, %v16269_v45  ;;  %12931 = vtanh.f32 %v5340_v54  ;;  %v16285_v25 = vmul.f32 %v16209_v14, %v4957_v3 }
 0x39d   : > { %9803 = vmatprep.subr.bf16.mxu1 %v12314_v4  ;;  %v4657_v35 = vpop.f32.mrb[58].mxu1  ;;  %v4513_v42 = vpop.f32.mrb[59].mxu0  ;;  %v12317_v9 = vld [vmem:[#allocation8 + $0x744] ss:$16 sps:$4 sm:$0xff]   ;;  %v4863_v38 = vmul.f32 0.044715, %v16274_v60  ;;  %v16289_v28 = vadd.f32 %v4653_v19, %v16170_v26  ;;  %12933 = vtanh.f32 %v5342_v15  ;;  %v16292_v61 = vmul.f32 %v16215_v36, %v4959_v57 }
 0x39e   : > { %v4659_v24 = vpop.f32.mrb[59].mxu1  ;;  %v12320_v1 = vld [vmem:[#allocation8 + $0x74c] ss:$16 sps:$4 sm:$0xff]   ;;  %v16295_v4 = vmul.f32 %v16226_v56, %v4972_v17  ;;  %v4876_v62 = vmul.f32 0.044715, %v16277_v44  ;;  %v16299_v3 = vmul.f32 %v16231_v13, %v4974_v53  ;;  %v4975_v39 = vmul.f32 %v16256_v8, %v4847_v27 }
 0x39f   : > { %9220 = vmatpush1.bf16.msra.mxu0 %v12309_v50  ;;  %v12315_v54 = vld [vmem:[#allocation8 + $0x740] ss:$16 sps:$4 sm:$0xff]   ;;  %v4988_v19 = vmul.f32 %v16260_v18, %v4860_v10  ;;  %v4990_v43 = vmul.f32 %v16263_v49, %v4862_v48  ;;  %v12318_v15 = vld [vmem:[#allocation8 + $0x748] ss:$16 sps:$4 sm:$0xff]   ;;  %v12323_v57 = vld [vmem:[#allocation8 + $0x764] ss:$16 sps:$4 sm:$0xff]   ;;  %v16305_v29 = vmul.f32 %v16253_v22, %v4973_v11  ;;  %v4989_v17 = vmul.f32 %v16269_v45, %v4861_v31 }
 0x3a0   : > { %17601 = vst [vmem:[#allocation59_spill] sm:$0xff] %v16299_v3  ;;  %9804 = vmatpush1.bf16.msra.mxu1 %v12312_v32  ;;  %v16309_v50 = vadd.f32 %v4509_v33, %v16174_v37  ;;  %v16312_v53 = vadd.f32 %v4655_v59, %v16181_v41  ;;  %9221 = vmatprep.subr.bf16.mxu0 %v12317_v9  ;;  %v12321_v27 = vld [vmem:[#allocation8 + $0x760] ss:$16 sps:$4 sm:$0xff]   ;;  %v4878_v32 = vmul.f32 0.044715, %v16289_v28 }
 0x3a1   : > { %v4991_v10 = vmul.f32 %v16274_v60, %v4863_v38  ;;  %v16317_v48 = vadd.f32 %v4511_v16, %v16166_v47  ;;  %v16320_v11 = vadd.f32 %v4657_v35, %v16170_v26  ;;  %9805 = vmatprep.subr.bf16.mxu1 %v12320_v1  ;;  %v12324_v33 = vld [vmem:[#allocation8 + $0x768] ss:$16 sps:$4 sm:$0xff]   ;;  %v16322_v52 = vpop.eup %12927  ;;  %v5004_v59 = vmul.f32 %v16277_v44, %v4876_v62  ;;  %v12332_v13 = vld [vmem:[#allocation8 + $0x78c] ss:$16 sps:$4 sm:$0xff]  }
 0x3a2   : > { %v4517_v31 = vpop.f32.mrb[60].mxu0  ;;  %v4877_v9 = vmul.f32 0.044715, %v16309_v50  ;;  %v4879_v55 = vmul.f32 0.044715, %v16312_v53  ;;  %v16328_v38 = vadd.f32 %v4513_v42, %v16174_v37  ;;  %v16333_v20 = vadd.f32 %v4659_v24, %v16181_v41 }
 0x3a3   : > { %17602 = vst [vmem:[#allocation27_spill] sm:$0xff] %v16320_v11  ;;  %9222 = vmatpush1.bf16.msra.mxu0 %v12315_v54  ;;  %v4663_v16 = vpop.f32.mrb[60].mxu1  ;;  %v4519_v7 = vpop.f32.mrb[61].mxu0  ;;  %v4892_v35 = vmul.f32 0.044715, %v16317_v48  ;;  %v16336_v62 = vadd.f32 %v4517_v31, %v16166_v47  ;;  %v16339_v42 = vmul.f32 %v16256_v8, %v4975_v39  ;;  %v16342_v54 = vmul.f32 %v16260_v18, %v4988_v19 }
 0x3a4   : > { %v4894_v1 = vmul.f32 0.044715, %v16320_v11  ;;  %9806 = vmatpush1.bf16.msra.mxu1 %v12318_v15  ;;  %v4665_v0 = vpop.f32.mrb[61].mxu1  ;;  %9223 = vmatprep.subr.bf16.mxu0 %v12323_v57  ;;  %v4521_v63 = vpop.f32.mrb[62].mxu0  ;;  %v4893_v23 = vmul.f32 0.044715, %v16328_v38  ;;  %v16346_v21 = vadd.f32 %v4663_v16, %v16170_v26  ;;  %v16349_v31 = vmul.f32 %v16263_v49, %v4990_v43 }
 0x3a5   : > { %17603 = vst [vmem:[#allocation39_spill] sm:$0xff] %v16339_v42  ;;  %9807 = vmatprep.subr.bf16.mxu1 %v12326_v12  ;;  %v4667_v24 = vpop.f32.mrb[62].mxu1  ;;  %v4523_v15 = vpop.f32.mrb[63].mxu0  ;;  %v16352_v57 = vmul.f32 %v16269_v45, %v4989_v17  ;;  %v4895_v39 = vmul.f32 0.044715, %v16333_v20  ;;  %v16359_v16 = vmul.f32 %v16274_v60, %v4991_v10  ;;  %v5006_v12 = vmul.f32 %v16289_v28, %v4878_v32 }
 0x3a6   : > { %17604 = vst [vmem:[#allocation67_spill] sm:$0xff] %v16346_v21  ;;  %17605 = vst [vmem:[#allocation72_spill] sm:$0xff] %v16349_v31  ;;  %v4908_v19 = vmul.f32 0.044715, %v16336_v62  ;;  %v4669_v3 = vpop.f32.mrb[63].mxu1  ;;  %v16356_v58 = vpop.eup %12929  ;;  %v5005_v34 = vmul.f32 %v16309_v50, %v4877_v9  ;;  %v16365_v31 = vmul.f32 %v16277_v44, %v5004_v59  ;;  %v5007_v8 = vmul.f32 %v16312_v53, %v4879_v55 }
 0x3a7   : > { %17606 = vst [vmem:[#allocation69_spill] sm:$0xff] %v16356_v58  ;;  %17607 = vst [vmem:[#allocation102_spill] sm:$0xff] %v16359_v16  ;;  %v4910_v43 = vmul.f32 0.044715, %v16346_v21  ;;  %9224 = vmatpush1.bf16.msra.mxu0 %v12321_v27  ;;  %v12327_v49 = vld [vmem:[#allocation8 + $0x780] ss:$16 sps:$4 sm:$0xff]   ;;  %v12932_v17 = vpop.eup %12931  ;;  %v5020_v42 = vmul.f32 %v16317_v48, %v4892_v35  ;;  %v5022_v58 = vmul.f32 %v16320_v11, %v4894_v1 }
 0x3a8   : > { %9808 = vmatpush1.bf16.msra.mxu1 %v12324_v33  ;;  %v12330_v10 = vld [vmem:[#allocation8 + $0x788] ss:$16 sps:$4 sm:$0xff]   ;;  %v12335_v60 = vld [vmem:[#allocation8 + $0x7a4] ss:$16 sps:$4 sm:$0xff]   ;;  %v16370_v32 = vpop.eup %12933  ;;  %v5021_v9 = vmul.f32 %v16328_v38, %v4893_v23  ;;  %v5023_v27 = vmul.f32 %v16333_v20, %v4895_v39  ;;  %v16375_v16 = vadd.f32 %v4519_v7, %v16174_v37  ;;  %v16378_v59 = vadd.f32 %v4665_v0, %v16181_v41  ;;  %v12338_v55 = vld [vmem:[#allocation8 + $0x7ac] ss:$16 sps:$4 sm:$0xff]  }
 0x3a9   : > { %17608 = vst [vmem:[#allocation28_spill] sm:$0xff] %v16370_v32  ;;  %9225 = vmatprep.subr.bf16.mxu0 %v12329_v46  ;;  %v5036_v35 = vmul.f32 %v16336_v62, %v4908_v19  ;;  %v5038_v33 = vmul.f32 %v16346_v21, %v4910_v43  ;;  %v16383_v1 = vadd.f32 %v4521_v63, %v16166_v47  ;;  %v12333_v39 = vld [vmem:[#allocation8 + $0x7a0] ss:$16 sps:$4 sm:$0xff]   ;;  %v12336_v19 = vld [vmem:[#allocation8 + $0x7a8] ss:$16 sps:$4 sm:$0xff]  }
 0x3aa   : > { %v16386_v32 = vadd.f32 %v4667_v24, %v16170_v26  ;;  %9809 = vmatprep.subr.bf16.mxu1 %v12332_v13  ;;  %v16389_v23 = vmul.f32 %v16289_v28, %v5006_v12  ;;  %v16392_v7 = vmul.f32 %v16309_v50, %v5005_v34  ;;  %v4909_v0 = vmul.f32 0.044715, %v16375_v16  ;;  %v12341_v34 = vld [vmem:[#allocation8 + $0x7c4] ss:$16 sps:$4 sm:$0xff]  }
 0x3ab   : > { %v16396_v46 = vadd.f32 %v4523_v15, %v16174_v37  ;;  %9226 = vmatpush1.bf16.msra.mxu0 %v12327_v49  ;;  %v16399_v63 = vmul.f32 %v16312_v53, %v5007_v8  ;;  %v16402_v47 = vmul.f32 %v16317_v48, %v5020_v42  ;;  %v4911_v26 = vmul.f32 0.044715, %v16378_v59  ;;  %v12344_v42 = vld [vmem:[#allocation8 + $0x7cc] ss:$16 sps:$4 sm:$0xff]  }
 0x3ac   : > { %v4924_v13 = vmul.f32 0.044715, %v16383_v1  ;;  %9810 = vmatpush1.bf16.msra.mxu1 %v12330_v10  ;;  %9227 = vmatprep.subr.bf16.mxu0 %v12335_v60  ;;  %v16407_v24 = vmul.f32 %v16320_v11, %v5022_v58  ;;  %v5149_v37 = vmul.f32 %v16328_v38, %v5021_v9  ;;  %v16411_v49 = vmul.f32 %v16333_v20, %v5023_v27  ;;  %v12339_v9 = vld [vmem:[#allocation8 + $0x7c0] ss:$16 sps:$4 sm:$0xff]   ;;  %v12342_v27 = vld [vmem:[#allocation8 + $0x7c8] ss:$16 sps:$4 sm:$0xff]  }
 0x3ad   : > { %v4925_v8 = vmul.f32 0.044715, %v16396_v46  ;;  %9811 = vmatprep.subr.bf16.mxu1 %v12338_v55  ;;  %v16415_v15 = vmul.f32 %v16336_v62, %v5036_v35  ;;  %v16418_v12 = vmul.f32 %v16346_v21, %v5038_v33  ;;  %v4926_v60 = vmul.f32 0.044715, %v16386_v32 }
 0x3ae   : > { %v5197_v58 = vadd.f32 %v16191_v6, %v16248_v2  ;;  %v5037_v43 = vmul.f32 %v16375_v16, %v4909_v0  ;;  %v16425_v10 = vadd.f32 %v4669_v3, %v16181_v41  ;;  %v16428_v55 = vmul.f32 0.5, %v16191_v6  ;;  %v12347_v2 = vld [vmem:[#allocation8 + $0x7e4] ss:$16 sps:$4 sm:$0xff]  }
 0x3af   : > { %17609 = vst [vmem:[#allocation37_spill] sm:$0xff] %v16418_v12  ;;  %9228 = vmatpush1.bf16.msra.mxu0 %v12333_v39  ;;  %v5213_v35 = vadd.f32 %v16209_v14, %v16285_v25  ;;  %v5039_v33 = vmul.f32 %v16378_v59, %v4911_v26  ;;  %v5052_v21 = vmul.f32 %v16383_v1, %v4924_v13  ;;  %v16435_v0 = vmul.f32 0.5, %v16209_v14  ;;  %v12350_v39 = vld [vmem:[#allocation8 + $0x7ec] ss:$16 sps:$4 sm:$0xff]   ;;  %v12345_v13 = vld [vmem:[#allocation8 + $0x7e0] ss:$16 sps:$4 sm:$0xff]  }
 0x3b0   : > { %9812 = vmatpush1.bf16.msra.mxu1 %v12336_v19  ;;  %9229 = vmatprep.subr.bf16.mxu0 %v12341_v34  ;;  %v5325_v41 = vmul.f32 0.7978846, %v5197_v58  ;;  %v5053_v3 = vmul.f32 %v16396_v46, %v4925_v8  ;;  %v5580_v12 = vadd.f32 1.0, %v16322_v52  ;;  %v5596_v11 = vadd.f32 1.0, %v12932_v17  ;;  %v12348_v34 = vld [vmem:[#allocation8 + $0x7e8] ss:$16 sps:$4 sm:$0xff]  }
 0x3b1   : > { %9813 = vmatprep.subr.bf16.mxu1 %v12344_v42  ;;  %v5341_v6 = vmul.f32 0.7978846, %v5213_v35  ;;  %v16440_v25 = vmul.f32 %v16386_v32, %v4926_v60  ;;  %v5229_v19 = vadd.f32 %v16253_v22, %v16305_v29  ;;  %v5245_v14 = vadd.f32 %v16269_v45, %v16352_v57  ;;  %v12353_v29 = vld [vmem:[#allocation8 + $0x804] ss:$16 sps:$4 sm:$0xff]  }
 0x3b2   : > { %12935 = vtanh.f32 %v5325_v41  ;;  %v4927_v26 = vmul.f32 0.044715, %v16425_v10  ;;  %v5708_v8 = vmul.f32 %v5580_v12, %v16234_v40  ;;  %v5724_v52 = vmul.f32 %v5596_v11, %v16242_v5 }
 0x3b3   : > { %9230 = vmatpush1.bf16.msra.mxu0 %v12339_v9  ;;  %12937 = vtanh.f32 %v5341_v6  ;;  %v5165_v17 = vmul.f32 %v16375_v16, %v5037_v43  ;;  %v16451_v42 = vmul.f32 %v16378_v59, %v5039_v33  ;;  %v5357_v60 = vmul.f32 0.7978846, %v5229_v19  ;;  %v12356_v9 = vld [vmem:[#allocation8 + $0x80c] ss:$16 sps:$4 sm:$0xff]   ;;  %v17610_v19 = vld [vmem:[#allocation76_spill] sm:$0xff] }
 0x3b4   : > { %9814 = vmatpush1.bf16.msra.mxu1 %v12342_v27  ;;  %9231 = vmatprep.subr.bf16.mxu0 %v12347_v2  ;;  %v5373_v57 = vmul.f32 0.7978846, %v5245_v14  ;;  %v5181_v58 = vmul.f32 %v16396_v46, %v5053_v3  ;;  %v16454_v35 = vpack.c.bf16 %v5724_v52, %v5708_v8  ;;  %v5228_v40 = vadd.f32 %v16226_v56, %v16295_v4  ;;  %v12351_v27 = vld [vmem:[#allocation8 + $0x800] ss:$16 sps:$4 sm:$0xff]  }
 0x3b5   : > { %9815 = vmatprep.subr.bf16.mxu1 %v12350_v39  ;;  %v5244_v5 = vadd.f32 %v16260_v18, %v16342_v54  ;;  %12939 = vtanh.f32 %v5357_v60  ;;  %v5261_v11 = vadd.f32 %v16309_v50, %v16392_v7  ;;  %v5277_v12 = vadd.f32 %v16328_v38, %v5149_v37  ;;  %v12354_v7 = vld [vmem:[#allocation8 + $0x808] ss:$16 sps:$4 sm:$0xff]  }
 0x3b6   : > { %v5260_v43 = vadd.f32 %v16277_v44, %v16365_v31  ;;  %12941 = vtanh.f32 %v5373_v57  ;;  %v5356_v33 = vmul.f32 0.7978846, %v5228_v40  ;;  %v5276_v4 = vadd.f32 %v16317_v48, %v16402_v47  ;;  %v12359_v31 = vld [vmem:[#allocation8 + $0x824] ss:$16 sps:$4 sm:$0xff]  }
 0x3b7   : > { %9232 = vmatpush1.bf16.msra.mxu0 %v12345_v13  ;;  %v5372_v2 = vmul.f32 0.7978846, %v5244_v5  ;;  %v5180_v41 = vmul.f32 %v16383_v1, %v5052_v21  ;;  %v16469_v54 = vmul.f32 %v16425_v10, %v4927_v26  ;;  %v5389_v37 = vmul.f32 0.7978846, %v5261_v11  ;;  %v12362_v21 = vld [vmem:[#allocation8 + $0x82c] ss:$16 sps:$4 sm:$0xff]  }
 0x3b8   : > { %9816 = vmatpush1.bf16.msra.mxu1 %v12348_v34  ;;  %9274 = vmatprep.subr.bf16.mxu0 %v12353_v29  ;;  %v5405_v3 = vmul.f32 0.7978846, %v5277_v12  ;;  %v16472_v39 = vmul.f32 0.5, %v16253_v22  ;;  %v16475_v6 = vmul.f32 0.5, %v16269_v45  ;;  %12943 = vtanh.f32 %v5356_v33  ;;  %v17611_v22 = vld [vmem:[#allocation80_spill] sm:$0xff] }
 0x3b9   : > { %9858 = vmatprep.subr.bf16.mxu1 %v12356_v9  ;;  %v5388_v47 = vmul.f32 0.7978846, %v5260_v43  ;;  %v16479_v14 = vmul.f32 0.5, %v16226_v56  ;;  %v16482_v26 = vmul.f32 0.5, %v16260_v18  ;;  %12945 = vtanh.f32 %v5372_v2  ;;  %v12357_v56 = vld [vmem:[#allocation8 + $0x820] ss:$16 sps:$4 sm:$0xff]  }
 0x3ba   : > { %9234 = vmatmul.mubr.bf16.vlgmr.msra.gmra.mrb[64].mxu0 %v17610_v19  ;;  %v5404_v13 = vmul.f32 0.7978846, %v5276_v4  ;;  %v16487_v45 = vmul.f32 0.5, %v16309_v50  ;;  %12947 = vtanh.f32 %v5389_v37  ;;  %v5293_v34 = vadd.f32 %v16375_v16, %v5165_v17  ;;  %v12360_v18 = vld [vmem:[#allocation8 + $0x828] ss:$16 sps:$4 sm:$0xff]  }
 0x3bb   : > { %9818 = vmatmul.mubr.bf16.vlgmr.msra.gmra.mrb[64].mxu1 %v17610_v19  ;;  %9243 = vmatprep.mubr.bf16.mxu0 %v17611_v22  ;;  %v5309_v8 = vadd.f32 %v16396_v46, %v5181_v58  ;;  %v16493_v29 = vmul.f32 0.5, %v16328_v38  ;;  %12949 = vtanh.f32 %v5405_v3  ;;  %v5292_v60 = vadd.f32 %v16336_v62, %v16415_v15  ;;  %v12365_v17 = vld [vmem:[#allocation8 + $0x844] ss:$16 sps:$4 sm:$0xff]   ;;  %v12368_v58 = vld [vmem:[#allocation8 + $0x84c] ss:$16 sps:$4 sm:$0xff]  }
 0x3bc   : > { %v12936_v52 = vpop.eup %12935  ;;  %9275 = vmatpush1.bf16.msra.mxu0 %v12351_v27  ;;  %9827 = vmatprep.mubr.bf16.mxu1 %v17611_v22  ;;  %v5308_v50 = vadd.f32 %v16383_v1, %v5180_v41  ;;  %v16499_v40 = vmul.f32 0.5, %v16277_v44  ;;  %12951 = vtanh.f32 %v5388_v47  ;;  %v5199_v38 = vadd.f32 %v16199_v30, %v16280_v51  ;;  %v12363_v12 = vld [vmem:[#allocation8 + $0x840] ss:$16 sps:$4 sm:$0xff]   ;;  %v12366_v51 = vld [vmem:[#allocation8 + $0x848] ss:$16 sps:$4 sm:$0xff]  }
 0x3bd   : > { %v12938_v57 = vpop.eup %12937  ;;  %9859 = vmatpush1.bf16.msra.mxu1 %v12354_v7  ;;  %9276 = vmatprep.subr.bf16.mxu0 %v12359_v31  ;;  %v5581_v9 = vadd.f32 1.0, %v12936_v52  ;;  %12953 = vtanh.f32 %v5404_v13  ;;  %v5421_v11 = vmul.f32 0.7978846, %v5293_v34  ;;  %v5437_v15 = vmul.f32 0.7978846, %v5309_v8  ;;  %v17613_v31 = vld [vmem:[#allocation66_spill] sm:$0xff] }
 0x3be   : > { %9860 = vmatprep.subr.bf16.mxu1 %v12362_v21  ;;  %v5597_v5 = vadd.f32 1.0, %v12938_v57  ;;  %v16505_v27 = vmul.f32 0.5, %v16317_v48  ;;  %v16508_v33 = vmul.f32 0.5, %v16375_v16  ;;  %v5215_v44 = vadd.f32 %v16215_v36, %v16292_v61  ;;  %v17612_v16 = vld [vmem:[#allocation39_spill] sm:$0xff]  ;;  %v17614_v19 = vld [vmem:[#allocation81_spill] sm:$0xff]  ;;  %v17615_v34 = vld [vmem:[#allocation40_spill] sm:$0xff] }
 0x3bf   : > { %v5709_v43 = vmul.f32 %v5581_v9, %v16428_v55  ;;  %v12940_v2 = vpop.eup %12939  ;;  %12955 = vtanh.f32 %v5421_v11  ;;  %v5420_v41 = vmul.f32 0.7978846, %v5292_v60  ;;  %v5436_v7 = vmul.f32 0.7978846, %v5308_v50  ;;  %v12371_v55 = vld [vmem:[#allocation8 + $0x864] ss:$16 sps:$4 sm:$0xff]  }
 0x3c0   : > { %9277 = vmatpush1.bf16.msra.mxu0 %v12357_v56  ;;  %v5725_v4 = vmul.f32 %v5597_v5, %v16435_v0  ;;  %v12942_v37 = vpop.eup %12941  ;;  %v5613_v48 = vadd.f32 1.0, %v12940_v2  ;;  %12957 = vtanh.f32 %v5437_v15  ;;  %v5327_v3 = vmul.f32 0.7978846, %v5199_v38  ;;  %v12374_v61 = vld [vmem:[#allocation8 + $0x86c] ss:$16 sps:$4 sm:$0xff]   ;;  %v17617_v56 = vld [vmem:[#allocation28_spill] sm:$0xff] }
 0x3c1   : > { %9861 = vmatpush1.bf16.msra.mxu1 %v12360_v18  ;;  %9278 = vmatprep.subr.bf16.mxu0 %v12365_v17  ;;  %v5231_v47 = vadd.f32 %v17613_v31, %v17612_v16  ;;  %v5629_v0 = vadd.f32 1.0, %v12942_v37  ;;  %12959 = vtanh.f32 %v5420_v41  ;;  %v5343_v13 = vmul.f32 0.7978846, %v5215_v44  ;;  %v17616_v8 = vld [vmem:[#allocation69_spill] sm:$0xff]  ;;  %v17618_v60 = vld [vmem:[#allocation102_spill] sm:$0xff]  ;;  %v17621_v41 = vld [vmem:[#allocation64_spill] sm:$0xff] }
 0x3c2   : > { %9244 = vmatmul.mubr.bf16.gmra.mrb[68].mxu0 %v17614_v19  ;;  %9862 = vmatprep.subr.bf16.mxu1 %v12368_v58  ;;  %v16516_v21 = vpack.c.bf16 %v5725_v4, %v5709_v43  ;;  %v12944_v22 = vpop.eup %12943  ;;  %12961 = vtanh.f32 %v5436_v7  ;;  %v5582_v52 = vadd.f32 1.0, %v17616_v8  ;;  %v5598_v18 = vadd.f32 1.0, %v17617_v56  ;;  %v17619_v50 = vld [vmem:[#allocation70_spill] sm:$0xff]  ;;  %v12369_v58 = vld [vmem:[#allocation8 + $0x860] ss:$16 sps:$4 sm:$0xff]  }
 0x3c3   : > { %9828 = vmatmul.mubr.bf16.gmra.mrb[68].mxu1 %v17614_v19  ;;  %9253 = vmatprep.mubr.bf16.mxu0 %v17615_v34  ;;  %v5247_v57 = vadd.f32 %v17619_v50, %v17618_v60  ;;  %v12946_v17 = vpop.eup %12945  ;;  %v5741_v9 = vmul.f32 %v5613_v48, %v16472_v39  ;;  %v5757_v38 = vmul.f32 %v5629_v0, %v16475_v6  ;;  %v5612_v5 = vadd.f32 1.0, %v12944_v22  ;;  %v12372_v15 = vld [vmem:[#allocation8 + $0x868] ss:$16 sps:$4 sm:$0xff]   ;;  %v12377_v43 = vld [vmem:[#allocation8 + $0x884] ss:$16 sps:$4 sm:$0xff]   ;;  %v17620_v2 = vld [vmem:[#allocation25_spill] sm:$0xff] }
 0x3c4   : > { %9279 = vmatpush1.bf16.msra.mxu0 %v12363_v12  ;;  %9837 = vmatprep.mubr.bf16.mxu1 %v17615_v34  ;;  %12963 = vtanh.f32 %v5327_v3  ;;  %v12948_v11 = vpop.eup %12947  ;;  %v5628_v44 = vadd.f32 1.0, %v12946_v17  ;;  %v5710_v4 = vmul.f32 %v5582_v52, %v17620_v2  ;;  %v5726_v12 = vmul.f32 %v5598_v18, %v17621_v41  ;;  %v12380_v37 = vld [vmem:[#allocation8 + $0x88c] ss:$16 sps:$4 sm:$0xff]   ;;  %v12378_v3 = vld [vmem:[#allocation8 + $0x888] ss:$16 sps:$4 sm:$0xff]  }
 0x3c5   : > { %9863 = vmatpush1.bf16.msra.mxu1 %v12366_v51  ;;  %9280 = vmatprep.subr.bf16.mxu0 %v12371_v55  ;;  %12965 = vtanh.f32 %v5343_v13  ;;  %v12950_v7 = vpop.eup %12949  ;;  %v16529_v16 = vpack.c.bf16 %v5757_v38, %v5741_v9  ;;  %v5645_v39 = vadd.f32 1.0, %v12948_v11  ;;  %v4797_v6 = vmul.f32 0.5, %v16396_v46  ;;  %v12375_v55 = vld [vmem:[#allocation8 + $0x880] ss:$16 sps:$4 sm:$0xff]   ;;  %v17625_v9 = vld [vmem:[#allocation26_spill] sm:$0xff] }
 0x3c6   : > { %9864 = vmatprep.subr.bf16.mxu1 %v12374_v61  ;;  %v4780_v48 = vmul.f32 0.5, %v16336_v62  ;;  %v12952_v51 = vpop.eup %12951  ;;  %v5740_v19 = vmul.f32 %v5612_v5, %v16479_v14  ;;  %v5756_v0 = vmul.f32 %v5628_v44, %v16482_v26  ;;  %v16535_v13 = vpack.c.bf16 %v5726_v12, %v5710_v4  ;;  %v17622_v22 = vld [vmem:[#allocation59_spill] sm:$0xff]  ;;  %v12383_v62 = vld [vmem:[#allocation8 + $0x8a4] ss:$16 sps:$4 sm:$0xff]   ;;  %v17626_v11 = vld [vmem:[#allocation105_spill] sm:$0xff] }
 0x3c7   : > { %v17623_v34 = vld [vmem:[#allocation63_spill] sm:$0xff]  ;;  %v12954_v8 = vpop.eup %12953  ;;  %v5661_v52 = vadd.f32 1.0, %v12950_v7  ;;  %v5644_v56 = vadd.f32 1.0, %v12952_v51  ;;  %v4796_v46 = vmul.f32 0.5, %v16383_v1  ;;  %v5359_v18 = vmul.f32 0.7978846, %v5231_v47 }
 0x3c8   : > { %v5230_v61 = vadd.f32 %v17623_v34, %v17622_v22  ;;  %9281 = vmatpush1.bf16.msra.mxu0 %v12369_v58  ;;  %v16540_v60 = vpack.c.bf16 %v5756_v0, %v5740_v19  ;;  %v5660_v14 = vadd.f32 1.0, %v12954_v8  ;;  %v5375_v17 = vmul.f32 0.7978846, %v5247_v57  ;;  %v17624_v26 = vld [vmem:[#allocation72_spill] sm:$0xff]  ;;  %v12386_v58 = vld [vmem:[#allocation8 + $0x8ac] ss:$16 sps:$4 sm:$0xff]  }
 0x3c9   : > { %9865 = vmatpush1.bf16.msra.mxu1 %v12372_v15  ;;  %9282 = vmatprep.subr.bf16.mxu0 %v12377_v43  ;;  %v5246_v38 = vadd.f32 %v17625_v9, %v17624_v26  ;;  %v12956_v5 = vpop.eup %12955  ;;  %v5773_v44 = vmul.f32 %v5645_v39, %v16487_v45  ;;  %v5789_v1 = vmul.f32 %v5661_v52, %v16493_v29  ;;  %12967 = vtanh.f32 %v5359_v18  ;;  %v17627_v43 = vld [vmem:[#allocation82_spill] sm:$0xff]  ;;  %v12381_v45 = vld [vmem:[#allocation8 + $0x8a0] ss:$16 sps:$4 sm:$0xff]   ;;  %v12392_v22 = vld [vmem:[#allocation8 + $0x8cc] ss:$16 sps:$4 sm:$0xff]  }
 0x3ca   : > { %9254 = vmatmul.mubr.bf16.gmra.mrb[72].mxu0 %v17626_v11  ;;  %9866 = vmatprep.subr.bf16.mxu1 %v12380_v37  ;;  %v5772_v47 = vmul.f32 %v5644_v56, %v16499_v40  ;;  %v12958_v15 = vpop.eup %12957  ;;  %v5788_v57 = vmul.f32 %v5660_v14, %v16505_v27  ;;  %v5677_v2 = vadd.f32 1.0, %v12956_v5  ;;  %12969 = vtanh.f32 %v5375_v17  ;;  %v12384_v39 = vld [vmem:[#allocation8 + $0x8a8] ss:$16 sps:$4 sm:$0xff]   ;;  %v12389_v27 = vld [vmem:[#allocation8 + $0x8c4] ss:$16 sps:$4 sm:$0xff]  }
 0x3cb   : > { %9838 = vmatmul.mubr.bf16.gmra.mrb[72].mxu1 %v17626_v11  ;;  %9263 = vmatprep.mubr.bf16.mxu0 %v17627_v43  ;;  %v5358_v4 = vmul.f32 0.7978846, %v5230_v61  ;;  %v12960_v41 = vpop.eup %12959  ;;  %v16552_v12 = vpack.c.bf16 %v5789_v1, %v5773_v44  ;;  %v5693_v29 = vadd.f32 1.0, %v12958_v15  ;;  %v4687_v40 = vmul.f32 0.5, %v16199_v30  ;;  %v12390_v17 = vld [vmem:[#allocation8 + $0x8c8] ss:$16 sps:$4 sm:$0xff]  }
 0x3cc   : > { %9283 = vmatpush1.bf16.msra.mxu0 %v12375_v55  ;;  %9847 = vmatprep.mubr.bf16.mxu1 %v17627_v43  ;;  %v4703_v7 = vmul.f32 0.5, %v16215_v36  ;;  %v12962_v37 = vpop.eup %12961  ;;  %v16556_v51 = vpack.c.bf16 %v5788_v57, %v5772_v47  ;;  %v5676_v19 = vadd.f32 1.0, %v12960_v41  ;;  %v5263_v55 = vadd.f32 %v16312_v53, %v16399_v63  ;;  %v12387_v63 = vld [vmem:[#allocation8 + $0x8c0] ss:$16 sps:$4 sm:$0xff]  }
 0x3cd   : > { %9867 = vmatpush1.bf16.msra.mxu1 %v12378_v3  ;;  %9284 = vmatprep.subr.bf16.mxu0 %v12383_v62  ;;  %12971 = vtanh.f32 %v5358_v4  ;;  %v5805_v61 = vmul.f32 %v5677_v2, %v16508_v33  ;;  %v5821_v30 = vmul.f32 %v5693_v29, %v4797_v6  ;;  %v5692_v8 = vadd.f32 1.0, %v12962_v37  ;;  %v17628_v62 = vld [vmem:[#allocation27_spill] sm:$0xff] }
 0x3ce   : > { %v12964_v0 = vpop.eup %12963  ;;  %9868 = vmatprep.subr.bf16.mxu1 %v12386_v58  ;;  %v5374_v36 = vmul.f32 0.7978846, %v5246_v38  ;;  %v5804_v3 = vmul.f32 %v5676_v19, %v4780_v48  ;;  %v5279_v56 = vadd.f32 %v16333_v20, %v16411_v49  ;;  %v5262_v18 = vadd.f32 %v16289_v28, %v16389_v23  ;;  %v12395_v49 = vld [vmem:[#allocation8 + $0x8e4] ss:$16 sps:$4 sm:$0xff]   ;;  %v17629_v11 = vld [vmem:[#allocation83_spill] sm:$0xff] }
 0x3cf   : > { %v12966_v52 = vpop.eup %12965  ;;  %v5278_v14 = vadd.f32 %v17628_v62, %v16407_v24  ;;  %v16567_v26 = vpack.c.bf16 %v5821_v30, %v5805_v61  ;;  %v5820_v33 = vmul.f32 %v5692_v8, %v4796_v46  ;;  %v5583_v6 = vadd.f32 1.0, %v12964_v0  ;;  %v12398_v24 = vld [vmem:[#allocation8 + $0x8ec] ss:$16 sps:$4 sm:$0xff]   ;;  %v12393_v57 = vld [vmem:[#allocation8 + $0x8e0] ss:$16 sps:$4 sm:$0xff]  }
 0x3d0   : > { %9285 = vmatpush1.bf16.msra.mxu0 %v12381_v45  ;;  %v5599_v5 = vadd.f32 1.0, %v12966_v52  ;;  %v5183_v48 = vmul.f32 %v16425_v10, %v16469_v54  ;;  %12973 = vtanh.f32 %v5374_v36  ;;  %v5391_v38 = vmul.f32 0.7978846, %v5263_v55  ;;  %v17630_v54 = vld [vmem:[#allocation98_spill] sm:$0xff]  ;;  %v12404_v37 = vld [vmem:[#allocation8 + $0x90c] ss:$16 sps:$4 sm:$0xff]  }
 0x3d1   : > { %9869 = vmatpush1.bf16.msra.mxu1 %v12384_v39  ;;  %9286 = vmatprep.subr.bf16.mxu0 %v12389_v27  ;;  %v5407_v23 = vmul.f32 0.7978846, %v5279_v56  ;;  %v16572_v58 = vpack.c.bf16 %v5820_v33, %v5804_v3  ;;  %v5711_v44 = vmul.f32 %v5583_v6, %v4687_v40  ;;  %v5182_v46 = vmul.f32 %v16386_v32, %v16440_v25  ;;  %v12396_v25 = vld [vmem:[#allocation8 + $0x8e8] ss:$16 sps:$4 sm:$0xff]   ;;  %v12401_v45 = vld [vmem:[#allocation8 + $0x904] ss:$16 sps:$4 sm:$0xff]  }
 0x3d2   : > { %9264 = vmatmul.mubr.bf16.gmra.mrb[76].mxu0 %v17629_v11  ;;  %9870 = vmatprep.subr.bf16.mxu1 %v12392_v22  ;;  %v5727_v1 = vmul.f32 %v5599_v5, %v4703_v7  ;;  %12975 = vtanh.f32 %v5391_v38  ;;  %v5390_v47 = vmul.f32 0.7978846, %v5262_v18  ;;  %v5406_v15 = vmul.f32 0.7978846, %v5278_v14  ;;  %v17632_v0 = vld [vmem:[#allocation67_spill] sm:$0xff] }
 0x3d3   : > { %9848 = vmatmul.mubr.bf16.gmra.mrb[76].mxu1 %v17629_v11  ;;  %9306 = vmatprep.mubr.bf16.mxu0 %v17630_v54  ;;  %v12968_v43 = vpop.eup %12967  ;;  %12977 = vtanh.f32 %v5407_v23  ;;  %v5295_v4 = vadd.f32 %v16378_v59, %v16451_v42  ;;  %v4719_v29 = vmul.f32 0.5, %v17613_v31  ;;  %v5311_v7 = vadd.f32 %v16425_v10, %v5183_v48  ;;  %v17631_v42 = vld [vmem:[#allocation37_spill] sm:$0xff]  ;;  %v12402_v31 = vld [vmem:[#allocation8 + $0x908] ss:$16 sps:$4 sm:$0xff]   ;;  %v12407_v3 = vld [vmem:[#allocation8 + $0x924] ss:$16 sps:$4 sm:$0xff]  }
 0x3d4   : > { %9287 = vmatpush1.bf16.msra.mxu0 %v12387_v63  ;;  %9890 = vmatprep.mubr.bf16.mxu1 %v17630_v54  ;;  %v16579_v2 = vpack.c.bf16 %v5727_v1, %v5711_v44  ;;  %v12970_v41 = vpop.eup %12969  ;;  %v5615_v40 = vadd.f32 1.0, %v12968_v43  ;;  %12979 = vtanh.f32 %v5390_v47  ;;  %v4735_v39 = vmul.f32 0.5, %v17619_v50  ;;  %v12399_v30 = vld [vmem:[#allocation8 + $0x900] ss:$16 sps:$4 sm:$0xff]   ;;  %v12410_v18 = vld [vmem:[#allocation8 + $0x92c] ss:$16 sps:$4 sm:$0xff]  }
 0x3d5   : > { %9871 = vmatpush1.bf16.msra.mxu1 %v12390_v17  ;;  %9288 = vmatprep.subr.bf16.mxu0 %v12395_v49  ;;  %v5631_v27 = vadd.f32 1.0, %v12970_v41  ;;  %12981 = vtanh.f32 %v5406_v15  ;;  %v5423_v19 = vmul.f32 0.7978846, %v5295_v4  ;;  %v5294_v22 = vadd.f32 %v17632_v0, %v17631_v42  ;;  %v12405_v33 = vld [vmem:[#allocation8 + $0x920] ss:$16 sps:$4 sm:$0xff]  }
 0x3d6   : > { %9872 = vmatprep.subr.bf16.mxu1 %v12398_v24  ;;  %v5310_v61 = vadd.f32 %v16386_v32, %v5182_v46  ;;  %v5743_v8 = vmul.f32 %v5615_v40, %v4719_v29  ;;  %v5439_v52 = vmul.f32 0.7978846, %v5311_v7  ;;  %v4718_v6 = vmul.f32 0.5, %v17623_v34  ;;  %v12408_v38 = vld [vmem:[#allocation8 + $0x928] ss:$16 sps:$4 sm:$0xff]  }
 0x3d7   : > { %v12972_v55 = vpop.eup %12971  ;;  %v5759_v36 = vmul.f32 %v5631_v27, %v4735_v39  ;;  %12983 = vtanh.f32 %v5423_v19  ;;  %v5422_v50 = vmul.f32 0.7978846, %v5294_v22  ;;  %v4734_v5 = vmul.f32 0.5, %v17625_v9  ;;  %v12413_v23 = vld [vmem:[#allocation8 + $0x944] ss:$16 sps:$4 sm:$0xff]  }
 0x3d8   : > { %9289 = vmatpush1.bf16.msra.mxu0 %v12393_v57  ;;  %v5438_v56 = vmul.f32 0.7978846, %v5310_v61  ;;  %v5614_v63 = vadd.f32 1.0, %v12972_v55  ;;  %12985 = vtanh.f32 %v5439_v52  ;;  %v12416_v24 = vld [vmem:[#allocation8 + $0x94c] ss:$16 sps:$4 sm:$0xff]   ;;  %v4751_v15 = vmul.f32 0.5, %v16312_v53 }
 0x3d9   : > { %9873 = vmatpush1.bf16.msra.mxu1 %v12396_v25  ;;  %9290 = vmatprep.subr.bf16.mxu0 %v12401_v45  ;;  %v16589_v14 = vpack.c.bf16 %v5759_v36, %v5743_v8  ;;  %12987 = vtanh.f32 %v5422_v50  ;;  %v12411_v47 = vld [vmem:[#allocation8 + $0x940] ss:$16 sps:$4 sm:$0xff]   ;;  %v12414_v9 = vld [vmem:[#allocation8 + $0x948] ss:$16 sps:$4 sm:$0xff]   ;;  %v4767_v57 = vmul.f32 0.5, %v16333_v20  ;;  %v4750_v45 = vmul.f32 0.5, %v16289_v28 }
 0x3da   : > { %9874 = vmatprep.subr.bf16.mxu1 %v12404_v37  ;;  %v12974_v17 = vpop.eup %12973  ;;  %12989 = vtanh.f32 %v5438_v56  ;;  %v5742_v44 = vmul.f32 %v5614_v63, %v4718_v6  ;;  %v12419_v25 = vld [vmem:[#allocation8 + $0x964] ss:$16 sps:$4 sm:$0xff]   ;;  %v4766_v29 = vmul.f32 0.5, %v17628_v62  ;;  %v12422_v53 = vld [vmem:[#allocation8 + $0x96c] ss:$16 sps:$4 sm:$0xff]   ;;  %v4799_v8 = vmul.f32 0.5, %v16425_v10 }
 0x3db   : > { %v5630_v48 = vadd.f32 1.0, %v12974_v17  ;;  %v12417_v20 = vld [vmem:[#allocation8 + $0x960] ss:$16 sps:$4 sm:$0xff]   ;;  %v12420_v42 = vld [vmem:[#allocation8 + $0x968] ss:$16 sps:$4 sm:$0xff]   ;;  %v4782_v17 = vmul.f32 0.5, %v17632_v0 }
 0x3dc   : > { %9291 = vmatpush1.bf16.msra.mxu0 %v12399_v30  ;;  %v12976_v49 = vpop.eup %12975  ;;  %v12425_v28 = vld [vmem:[#allocation8 + $0x984] ss:$16 sps:$4 sm:$0xff]   ;;  %v12423_v63 = vld [vmem:[#allocation8 + $0x980] ss:$16 sps:$4 sm:$0xff]   ;;  %v12434_v10 = vld [vmem:[#allocation8 + $0x9ac] ss:$16 sps:$4 sm:$0xff]  }
 0x3dd   : > { %9875 = vmatpush1.bf16.msra.mxu1 %v12402_v31  ;;  %9292 = vmatprep.subr.bf16.mxu0 %v12407_v3  ;;  %v12978_v11 = vpop.eup %12977  ;;  %v5758_v1 = vmul.f32 %v5630_v48, %v4734_v5  ;;  %v5647_v46 = vadd.f32 1.0, %v12976_v49  ;;  %v4783_v31 = vmul.f32 0.5, %v16378_v59  ;;  %v12428_v3 = vld [vmem:[#allocation8 + $0x98c] ss:$16 sps:$4 sm:$0xff]   ;;  %v12426_v5 = vld [vmem:[#allocation8 + $0x988] ss:$16 sps:$4 sm:$0xff]  }
 0x3de   : > { %9876 = vmatprep.subr.bf16.mxu1 %v12410_v18  ;;  %v12980_v54 = vpop.eup %12979  ;;  %v5663_v4 = vadd.f32 1.0, %v12978_v11  ;;  %v12431_v59 = vld [vmem:[#allocation8 + $0x9a4] ss:$16 sps:$4 sm:$0xff]   ;;  %v12432_v0 = vld [vmem:[#allocation8 + $0x9a8] ss:$16 sps:$4 sm:$0xff]  }
 0x3df   : > { %v12982_v34 = vpop.eup %12981  ;;  %v16594_v43 = vpack.c.bf16 %v5758_v1, %v5742_v44  ;;  %v5646_v41 = vadd.f32 1.0, %v12980_v54  ;;  %v5775_v37 = vmul.f32 %v5647_v46, %v4751_v15  ;;  %v12435_v44 = vld [vmem:[#allocation8 + $0x9c0] ss:$16 sps:$4 sm:$0xff]   ;;  %v12438_v1 = vld [vmem:[#allocation8 + $0x9c8] ss:$16 sps:$4 sm:$0xff]  }
 0x3e0   : > { %9293 = vmatpush1.bf16.msra.mxu0 %v12405_v33  ;;  %v5662_v40 = vadd.f32 1.0, %v12982_v34  ;;  %v5791_v39 = vmul.f32 %v5663_v4, %v4767_v57  ;;  %v4798_v33 = vmul.f32 0.5, %v16386_v32  ;;  %v12440_v32 = vld [vmem:[#allocation8 + $0x9cc] ss:$16 sps:$4 sm:$0xff]   ;;  %v12443_v46 = vld [vmem:[#allocation8 + $0x9e4] ss:$16 sps:$4 sm:$0xff]  }
 0x3e1   : > { %9877 = vmatpush1.bf16.msra.mxu1 %v12408_v38  ;;  %9294 = vmatprep.subr.bf16.mxu0 %v12413_v23  ;;  %v12984_v7 = vpop.eup %12983  ;;  %v5774_v27 = vmul.f32 %v5646_v41, %v4750_v45  ;;  %v12429_v23 = vld [vmem:[#allocation8 + $0x9a0] ss:$16 sps:$4 sm:$0xff]   ;;  %v12446_v54 = vld [vmem:[#allocation8 + $0x9ec] ss:$16 sps:$4 sm:$0xff]   ;;  %v12444_v15 = vld [vmem:[#allocation8 + $0x9e8] ss:$16 sps:$4 sm:$0xff]  }
 0x3e2   : > { %9878 = vmatprep.subr.bf16.mxu1 %v12416_v24  ;;  %v5790_v19 = vmul.f32 %v5662_v40, %v4766_v29  ;;  %v12986_v55 = vpop.eup %12985  ;;  %v16599_v22 = vpack.c.bf16 %v5791_v39, %v5775_v37  ;;  %v5679_v61 = vadd.f32 1.0, %v12984_v7  ;;  %v12437_v24 = vld [vmem:[#allocation8 + $0x9c4] ss:$16 sps:$4 sm:$0xff]   ;;  %v12447_v57 = vld [vmem:[#allocation8 + $0xa00] ss:$16 sps:$4 sm:$0xff]  }
 0x3e3   : > { %v12988_v30 = vpop.eup %12987  ;;  %v5695_v36 = vadd.f32 1.0, %v12986_v55  ;;  %v12449_v34 = vld [vmem:[#allocation8 + $0xa04] ss:$16 sps:$4 sm:$0xff]   ;;  %v12450_v4 = vld [vmem:[#allocation8 + $0xa08] ss:$16 sps:$4 sm:$0xff]   ;;  %v17634_v29 = vld [vmem:[#allocation97_spill] sm:$0xff] }
 0x3e4   : > { %9295 = vmatpush1.bf16.msra.mxu0 %v12411_v47  ;;  %v16601_v62 = vpack.c.bf16 %v5790_v19, %v5774_v27  ;;  %v12990_v52 = vpop.eup %12989  ;;  %v5678_v50 = vadd.f32 1.0, %v12988_v30  ;;  %v5807_v56 = vmul.f32 %v5679_v61, %v4783_v31  ;;  %v12441_v47 = vld [vmem:[#allocation8 + $0x9e0] ss:$16 sps:$4 sm:$0xff]   ;;  %v12455_v41 = vld [vmem:[#allocation8 + $0xa24] ss:$16 sps:$4 sm:$0xff]  }
 0x3e5   : > { %9879 = vmatpush1.bf16.msra.mxu1 %v12414_v9  ;;  %9296 = vmatprep.subr.bf16.mxu0 %v12419_v25  ;;  %v5823_v18 = vmul.f32 %v5695_v36, %v4799_v8  ;;  %v5694_v6 = vadd.f32 1.0, %v12990_v52  ;;  %v12452_v9 = vld [vmem:[#allocation8 + $0xa0c] ss:$16 sps:$4 sm:$0xff]   ;;  %v12453_v40 = vld [vmem:[#allocation8 + $0xa20] ss:$16 sps:$4 sm:$0xff]   ;;  %v17635_v55 = vld [vmem:[#allocation18_spill] sm:$0xff] }
 0x3e6   : > { %9880 = vmatprep.subr.bf16.mxu1 %v12422_v53  ;;  %v5806_v49 = vmul.f32 %v5678_v50, %v4782_v17  ;;  %v17633_v25 = vld [vmem:[#allocation95_spill] sm:$0xff]  ;;  %v12456_v7 = vld [vmem:[#allocation8 + $0xa28] ss:$16 sps:$4 sm:$0xff]   ;;  %v12461_v53 = vld [vmem:[#allocation8 + $0xa44] ss:$16 sps:$4 sm:$0xff]  }
 0x3e7   : > { %v16607_v48 = vpack.c.bf16 %v5823_v18, %v5807_v56  ;;  %v5822_v38 = vmul.f32 %v5694_v6, %v4798_v33  ;;  %v12458_v45 = vld [vmem:[#allocation8 + $0xa2c] ss:$16 sps:$4 sm:$0xff]   ;;  %v12459_v39 = vld [vmem:[#allocation8 + $0xa40] ss:$16 sps:$4 sm:$0xff]   ;;  %v12462_v27 = vld [vmem:[#allocation8 + $0xa48] ss:$16 sps:$4 sm:$0xff]  }
 0x3e8   : > { %9297 = vmatpush1.bf16.msra.mxu0 %v12417_v20  ;;  %v12464_v37 = vld [vmem:[#allocation8 + $0xa4c] ss:$16 sps:$4 sm:$0xff]   ;;  %v12467_v19 = vld [vmem:[#allocation8 + $0xa64] ss:$16 sps:$4 sm:$0xff]   ;;  %v12465_v61 = vld [vmem:[#allocation8 + $0xa60] ss:$16 sps:$4 sm:$0xff]  }
 0x3e9   : > { %9881 = vmatpush1.bf16.msra.mxu1 %v12420_v42  ;;  %9298 = vmatprep.subr.bf16.mxu0 %v12425_v28  ;;  %v16609_v11 = vpack.c.bf16 %v5822_v38, %v5806_v49  ;;  %v12470_v20 = vld [vmem:[#allocation8 + $0xa6c] ss:$16 sps:$4 sm:$0xff]   ;;  %v12468_v30 = vld [vmem:[#allocation8 + $0xa68] ss:$16 sps:$4 sm:$0xff]   ;;  %v12473_v28 = vld [vmem:[#allocation8 + $0xa84] ss:$16 sps:$4 sm:$0xff]  }
 0x3ea   : > { %9882 = vmatprep.subr.bf16.mxu1 %v12428_v3  ;;  %v17636_v42 = vld [vmem:[#allocation19_spill] sm:$0xff]  ;;  %v12474_v36 = vld [vmem:[#allocation8 + $0xa88] ss:$16 sps:$4 sm:$0xff]   ;;  %v12479_v52 = vld [vmem:[#allocation8 + $0xaa4] ss:$16 sps:$4 sm:$0xff]  }
 0x3eb   : > { %v12476_v31 = vld [vmem:[#allocation8 + $0xa8c] ss:$16 sps:$4 sm:$0xff]   ;;  %v12471_v8 = vld [vmem:[#allocation8 + $0xa80] ss:$16 sps:$4 sm:$0xff]   ;;  %v17637_v3 = vld [vmem:[#allocation20_spill] sm:$0xff] }
 0x3ec   : > { %9299 = vmatpush1.bf16.msra.mxu0 %v12423_v63  ;;  %v12482_v50 = vld [vmem:[#allocation8 + $0xaac] ss:$16 sps:$4 sm:$0xff]   ;;  %v12477_v18 = vld [vmem:[#allocation8 + $0xaa0] ss:$16 sps:$4 sm:$0xff]   ;;  %v12480_v63 = vld [vmem:[#allocation8 + $0xaa8] ss:$16 sps:$4 sm:$0xff]  }
 0x3ed   : > { %9883 = vmatpush1.bf16.msra.mxu1 %v12426_v5  ;;  %9300 = vmatprep.subr.bf16.mxu0 %v12431_v59  ;;  %v17638_v56 = vld [vmem:[#allocation21_spill] sm:$0xff]  ;;  %v12485_v17 = vld [vmem:[#allocation8 + $0xac4] ss:$16 sps:$4 sm:$0xff]   ;;  %v12486_v5 = vld [vmem:[#allocation8 + $0xac8] ss:$16 sps:$4 sm:$0xff]  }
 0x3ee   : > { %9884 = vmatprep.subr.bf16.mxu1 %v12434_v10  ;;  %v12488_v33 = vld [vmem:[#allocation8 + $0xacc] ss:$16 sps:$4 sm:$0xff]   ;;  %v12483_v6 = vld [vmem:[#allocation8 + $0xac0] ss:$16 sps:$4 sm:$0xff]   ;;  %v12491_v59 = vld [vmem:[#allocation8 + $0xae4] ss:$16 sps:$4 sm:$0xff]  }
 0x3ef   : > { %v17639_v10 = vld [vmem:[#allocation22_spill] sm:$0xff]  ;;  %v12494_v49 = vld [vmem:[#allocation8 + $0xaec] ss:$16 sps:$4 sm:$0xff]  }
 0x3f0   : > { %9301 = vmatpush1.bf16.msra.mxu0 %v12429_v23  ;;  %v17640_v38 = vld [vmem:[#allocation23_spill] sm:$0xff] }
 0x3f1   : > { %9885 = vmatpush1.bf16.msra.mxu1 %v12432_v0  ;;  %9302 = vmatprep.subr.bf16.mxu0 %v12437_v24  ;;  %v12489_v23 = vld [vmem:[#allocation8 + $0xae0] ss:$16 sps:$4 sm:$0xff]   ;;  %v12492_v0 = vld [vmem:[#allocation8 + $0xae8] ss:$16 sps:$4 sm:$0xff]   ;;  %v12497_v24 = vld [vmem:[#allocation8 + $0xb04] ss:$16 sps:$4 sm:$0xff]  }
 0x3f2   : > { %9886 = vmatprep.subr.bf16.mxu1 %v12440_v32  ;;  %v12500_v32 = vld [vmem:[#allocation8 + $0xb0c] ss:$16 sps:$4 sm:$0xff]  }
 0x3f4   : > { %9303 = vmatpush1.bf16.msra.mxu0 %v12435_v44  ;;  %v12495_v44 = vld [vmem:[#allocation8 + $0xb00] ss:$16 sps:$4 sm:$0xff]  }
 0x3f5   : > { %9887 = vmatpush1.bf16.msra.mxu1 %v12438_v1  ;;  %9304 = vmatprep.subr.bf16.mxu0 %v12443_v46  ;;  %v12498_v1 = vld [vmem:[#allocation8 + $0xb08] ss:$16 sps:$4 sm:$0xff]   ;;  %v12503_v46 = vld [vmem:[#allocation8 + $0xb24] ss:$16 sps:$4 sm:$0xff]  }
 0x3f6   : > { %9888 = vmatprep.subr.bf16.mxu1 %v12446_v54  ;;  %v12506_v54 = vld [vmem:[#allocation8 + $0xb2c] ss:$16 sps:$4 sm:$0xff]  }
 0x3f8   : > { %9305 = vmatpush1.bf16.msra.mxu0 %v12441_v47  ;;  %v12501_v47 = vld [vmem:[#allocation8 + $0xb20] ss:$16 sps:$4 sm:$0xff]  }
 0x3f9   : > { %9889 = vmatpush1.bf16.msra.mxu1 %v12444_v15  ;;  %9347 = vmatprep.subr.bf16.mxu0 %v12449_v34  ;;  %v12504_v15 = vld [vmem:[#allocation8 + $0xb28] ss:$16 sps:$4 sm:$0xff]   ;;  %v12509_v34 = vld [vmem:[#allocation8 + $0xb44] ss:$16 sps:$4 sm:$0xff]  }
 0x3fa   : > { %9931 = vmatprep.subr.bf16.mxu1 %v12452_v9  ;;  %v12512_v9 = vld [vmem:[#allocation8 + $0xb4c] ss:$16 sps:$4 sm:$0xff]  }
 0x3fb   : > { %9307 = vmatmul.mubr.bf16.vlgmr.msra.gmra.mrb[64].mxu0 %v17633_v25 }
 0x3fc   : > { %9891 = vmatmul.mubr.bf16.vlgmr.msra.gmra.mrb[64].mxu1 %v17633_v25  ;;  %9316 = vmatprep.mubr.bf16.mxu0 %v17634_v29  ;;  %v12518_v25 = vld [vmem:[#allocation8 + $0xb6c] ss:$16 sps:$4 sm:$0xff]  }
 0x3fd   : > { %9348 = vmatpush1.bf16.msra.mxu0 %v12447_v57  ;;  %9900 = vmatprep.mubr.bf16.mxu1 %v17634_v29  ;;  %v12507_v57 = vld [vmem:[#allocation8 + $0xb40] ss:$16 sps:$4 sm:$0xff]   ;;  %v12516_v29 = vld [vmem:[#allocation8 + $0xb68] ss:$16 sps:$4 sm:$0xff]  }
 0x3fe   : > { %9932 = vmatpush1.bf16.msra.mxu1 %v12450_v4  ;;  %9349 = vmatprep.subr.bf16.mxu0 %v12455_v41  ;;  %v12510_v4 = vld [vmem:[#allocation8 + $0xb48] ss:$16 sps:$4 sm:$0xff]   ;;  %v12515_v41 = vld [vmem:[#allocation8 + $0xb64] ss:$16 sps:$4 sm:$0xff]  }
 0x3ff   : > { %9933 = vmatprep.subr.bf16.mxu1 %v12458_v45  ;;  %v12513_v45 = vld [vmem:[#allocation8 + $0xb60] ss:$16 sps:$4 sm:$0xff]  }
 0x401   : > { %9350 = vmatpush1.bf16.msra.mxu0 %v12453_v40  ;;  %v12521_v40 = vld [vmem:[#allocation8 + $0xb84] ss:$16 sps:$4 sm:$0xff]  }
 0x402   : > { %9934 = vmatpush1.bf16.msra.mxu1 %v12456_v7  ;;  %9351 = vmatprep.subr.bf16.mxu0 %v12461_v53  ;;  %v12524_v7 = vld [vmem:[#allocation8 + $0xb8c] ss:$16 sps:$4 sm:$0xff]   ;;  %v12519_v53 = vld [vmem:[#allocation8 + $0xb80] ss:$16 sps:$4 sm:$0xff]  }
 0x403   : > { %9317 = vmatmul.mubr.bf16.gmra.mrb[68].mxu0 %v17635_v55  ;;  %9935 = vmatprep.subr.bf16.mxu1 %v12464_v37  ;;  %v12522_v37 = vld [vmem:[#allocation8 + $0xb88] ss:$16 sps:$4 sm:$0xff]  }
 0x404   : > { %9901 = vmatmul.mubr.bf16.gmra.mrb[68].mxu1 %v17635_v55  ;;  %9326 = vmatprep.mubr.bf16.mxu0 %v17636_v42  ;;  %v12528_v55 = vld [vmem:[#allocation8 + $0xba8] ss:$16 sps:$4 sm:$0xff]  }
 0x405   : > { %9352 = vmatpush1.bf16.msra.mxu0 %v12459_v39  ;;  %9910 = vmatprep.mubr.bf16.mxu1 %v17636_v42  ;;  %v12527_v39 = vld [vmem:[#allocation8 + $0xba4] ss:$16 sps:$4 sm:$0xff]   ;;  %v12536_v42 = vld [vmem:[#allocation8 + $0xbcc] ss:$16 sps:$4 sm:$0xff]  }
 0x406   : > { %9936 = vmatpush1.bf16.msra.mxu1 %v12462_v27  ;;  %9353 = vmatprep.subr.bf16.mxu0 %v12467_v19  ;;  %v12530_v27 = vld [vmem:[#allocation8 + $0xbac] ss:$16 sps:$4 sm:$0xff]   ;;  %v12525_v19 = vld [vmem:[#allocation8 + $0xba0] ss:$16 sps:$4 sm:$0xff]  }
 0x407   : > { %9937 = vmatprep.subr.bf16.mxu1 %v12470_v20  ;;  %v12533_v20 = vld [vmem:[#allocation8 + $0xbc4] ss:$16 sps:$4 sm:$0xff]  }
 0x409   : > { %9354 = vmatpush1.bf16.msra.mxu0 %v12465_v61  ;;  %v12531_v61 = vld [vmem:[#allocation8 + $0xbc0] ss:$16 sps:$4 sm:$0xff]  }
 0x40a   : > { %9938 = vmatpush1.bf16.msra.mxu1 %v12468_v30  ;;  %9355 = vmatprep.subr.bf16.mxu0 %v12473_v28  ;;  %v12534_v30 = vld [vmem:[#allocation8 + $0xbc8] ss:$16 sps:$4 sm:$0xff]   ;;  %v12539_v28 = vld [vmem:[#allocation8 + $0xbe4] ss:$16 sps:$4 sm:$0xff]  }
 0x40b   : > { %9327 = vmatmul.mubr.bf16.gmra.mrb[72].mxu0 %v17637_v3  ;;  %9939 = vmatprep.subr.bf16.mxu1 %v12476_v31  ;;  %v12542_v31 = vld [vmem:[#allocation8 + $0xbec] ss:$16 sps:$4 sm:$0xff]  }
 0x40c   : > { %9911 = vmatmul.mubr.bf16.gmra.mrb[72].mxu1 %v17637_v3  ;;  %9336 = vmatprep.mubr.bf16.mxu0 %v17638_v56  ;;  %v12548_v3 = vld [vmem:[#allocation8 + $0xc0c] ss:$16 sps:$4 sm:$0xff]  }
 0x40d   : > { %9356 = vmatpush1.bf16.msra.mxu0 %v12471_v8  ;;  %9920 = vmatprep.mubr.bf16.mxu1 %v17638_v56  ;;  %v12537_v8 = vld [vmem:[#allocation8 + $0xbe0] ss:$16 sps:$4 sm:$0xff]   ;;  %v12546_v56 = vld [vmem:[#allocation8 + $0xc08] ss:$16 sps:$4 sm:$0xff]  }
 0x40e   : > { %9940 = vmatpush1.bf16.msra.mxu1 %v12474_v36  ;;  %9357 = vmatprep.subr.bf16.mxu0 %v12479_v52  ;;  %v12540_v36 = vld [vmem:[#allocation8 + $0xbe8] ss:$16 sps:$4 sm:$0xff]   ;;  %v12545_v52 = vld [vmem:[#allocation8 + $0xc04] ss:$16 sps:$4 sm:$0xff]  }
 0x40f   : > { %9941 = vmatprep.subr.bf16.mxu1 %v12482_v50  ;;  %v12543_v50 = vld [vmem:[#allocation8 + $0xc00] ss:$16 sps:$4 sm:$0xff]  }
 0x411   : > { %9358 = vmatpush1.bf16.msra.mxu0 %v12477_v18  ;;  %v12551_v18 = vld [vmem:[#allocation8 + $0xc24] ss:$16 sps:$4 sm:$0xff]  }
 0x412   : > { %9942 = vmatpush1.bf16.msra.mxu1 %v12480_v63  ;;  %9359 = vmatprep.subr.bf16.mxu0 %v12485_v17  ;;  %v17641_v63 = vld [vmem:[#allocation17_spill] sm:$0xff] }
 0x413   : > { %9337 = vmatmul.mubr.bf16.gmra.mrb[76].mxu0 %v17639_v10  ;;  %9943 = vmatprep.subr.bf16.mxu1 %v12488_v33  ;;  %v12554_v17 = vld [vmem:[#allocation8 + $0xc2c] ss:$16 sps:$4 sm:$0xff]   ;;  %v17642_v33 = vld [vmem:[#allocation24_spill] sm:$0xff] }
 0x414   : > { %9921 = vmatmul.mubr.bf16.gmra.mrb[76].mxu1 %v17639_v10  ;;  %9379 = vmatprep.mubr.bf16.mxu0 %v17640_v38  ;;  %v12560_v10 = vld [vmem:[#allocation8 + $0xc4c] ss:$16 sps:$4 sm:$0xff]  }
 0x415   : > { %9360 = vmatpush1.bf16.msra.mxu0 %v12483_v6  ;;  %9963 = vmatprep.mubr.bf16.mxu1 %v17640_v38  ;;  %v12549_v6 = vld [vmem:[#allocation8 + $0xc20] ss:$16 sps:$4 sm:$0xff]   ;;  %v12558_v38 = vld [vmem:[#allocation8 + $0xc48] ss:$16 sps:$4 sm:$0xff]  }
 0x416   : > { %9944 = vmatpush1.bf16.msra.mxu1 %v12486_v5  ;;  %9361 = vmatprep.subr.bf16.mxu0 %v12491_v59  ;;  %v12552_v5 = vld [vmem:[#allocation8 + $0xc28] ss:$16 sps:$4 sm:$0xff]   ;;  %v12557_v59 = vld [vmem:[#allocation8 + $0xc44] ss:$16 sps:$4 sm:$0xff]  }
 0x417   : > { %9945 = vmatprep.subr.bf16.mxu1 %v12494_v49  ;;  %v12555_v49 = vld [vmem:[#allocation8 + $0xc40] ss:$16 sps:$4 sm:$0xff]  }
 0x419   : > { %9362 = vmatpush1.bf16.msra.mxu0 %v12489_v23  ;;  %v12563_v23 = vld [vmem:[#allocation8 + $0xc64] ss:$16 sps:$4 sm:$0xff]  }
 0x41a   : > { %9946 = vmatpush1.bf16.msra.mxu1 %v12492_v0  ;;  %9363 = vmatprep.subr.bf16.mxu0 %v12497_v24  ;;  %v17643_v0 = vld [vmem:[#allocation103_spill] sm:$0xff] }
 0x41b   : > { %9947 = vmatprep.subr.bf16.mxu1 %v12500_v32  ;;  %v12566_v24 = vld [vmem:[#allocation8 + $0xc6c] ss:$16 sps:$4 sm:$0xff]   ;;  %v17644_v32 = vld [vmem:[#allocation58_spill] sm:$0xff] }
 0x41d   : > { %9364 = vmatpush1.bf16.msra.mxu0 %v12495_v44  ;;  %v12561_v44 = vld [vmem:[#allocation8 + $0xc60] ss:$16 sps:$4 sm:$0xff]  }
 0x41e   : > { %9948 = vmatpush1.bf16.msra.mxu1 %v12498_v1  ;;  %9365 = vmatprep.subr.bf16.mxu0 %v12503_v46  ;;  %v12564_v1 = vld [vmem:[#allocation8 + $0xc68] ss:$16 sps:$4 sm:$0xff]   ;;  %v12569_v46 = vld [vmem:[#allocation8 + $0xc84] ss:$16 sps:$4 sm:$0xff]  }
 0x41f   : > { %9949 = vmatprep.subr.bf16.mxu1 %v12506_v54  ;;  %v12572_v54 = vld [vmem:[#allocation8 + $0xc8c] ss:$16 sps:$4 sm:$0xff]  }
 0x421   : > { %9366 = vmatpush1.bf16.msra.mxu0 %v12501_v47  ;;  %v12567_v47 = vld [vmem:[#allocation8 + $0xc80] ss:$16 sps:$4 sm:$0xff]  }
 0x422   : > { %9950 = vmatpush1.bf16.msra.mxu1 %v12504_v15  ;;  %9367 = vmatprep.subr.bf16.mxu0 %v12509_v34  ;;  %v12570_v15 = vld [vmem:[#allocation8 + $0xc88] ss:$16 sps:$4 sm:$0xff]   ;;  %v12575_v34 = vld [vmem:[#allocation8 + $0xca4] ss:$16 sps:$4 sm:$0xff]  }
 0x423   : > { %9951 = vmatprep.subr.bf16.mxu1 %v12512_v9  ;;  %v17645_v9 = vld [vmem:[#allocation60_spill] sm:$0xff] }
 0x425   : > { %9368 = vmatpush1.bf16.msra.mxu0 %v12507_v57  ;;  %v12578_v57 = vld [vmem:[#allocation8 + $0xcac] ss:$16 sps:$4 sm:$0xff]  }
 0x426   : > { %9952 = vmatpush1.bf16.msra.mxu1 %v12510_v4  ;;  %9369 = vmatprep.subr.bf16.mxu0 %v12515_v41  ;;  %v17646_v4 = vld [vmem:[#allocation61_spill] sm:$0xff] }
 0x427   : > { %9953 = vmatprep.subr.bf16.mxu1 %v12518_v25  ;;  %v12573_v41 = vld [vmem:[#allocation8 + $0xca0] ss:$16 sps:$4 sm:$0xff]   ;;  %v12576_v25 = vld [vmem:[#allocation8 + $0xca8] ss:$16 sps:$4 sm:$0xff]  }
 0x429   : > { %9370 = vmatpush1.bf16.msra.mxu0 %v12513_v45  ;;  %v12581_v45 = vld [vmem:[#allocation8 + $0xcc4] ss:$16 sps:$4 sm:$0xff]  }
 0x42a   : > { %9954 = vmatpush1.bf16.msra.mxu1 %v12516_v29  ;;  %9371 = vmatprep.subr.bf16.mxu0 %v12521_v40  ;;  %v12584_v29 = vld [vmem:[#allocation8 + $0xccc] ss:$16 sps:$4 sm:$0xff]   ;;  %v12579_v40 = vld [vmem:[#allocation8 + $0xcc0] ss:$16 sps:$4 sm:$0xff]  }
 0x42b   : > { %9955 = vmatprep.subr.bf16.mxu1 %v12524_v7  ;;  %v12582_v7 = vld [vmem:[#allocation8 + $0xcc8] ss:$16 sps:$4 sm:$0xff]  }
 0x42d   : > { %9372 = vmatpush1.bf16.msra.mxu0 %v12519_v53  ;;  %v12587_v53 = vld [vmem:[#allocation8 + $0xce4] ss:$16 sps:$4 sm:$0xff]  }
 0x42e   : > { %9956 = vmatpush1.bf16.msra.mxu1 %v12522_v37  ;;  %9373 = vmatprep.subr.bf16.mxu0 %v12527_v39  ;;  %v17647_v37 = vld [vmem:[#allocation62_spill] sm:$0xff]  ;;  %v12590_v39 = vld [vmem:[#allocation8 + $0xcec] ss:$16 sps:$4 sm:$0xff]  }
 0x42f   : > { %9957 = vmatprep.subr.bf16.mxu1 %v12530_v27  ;;  %v12585_v27 = vld [vmem:[#allocation8 + $0xce0] ss:$16 sps:$4 sm:$0xff]  }
 0x431   : > { %9374 = vmatpush1.bf16.msra.mxu0 %v12525_v19  ;;  %v12588_v19 = vld [vmem:[#allocation8 + $0xce8] ss:$16 sps:$4 sm:$0xff]  }
 0x432   : > { %9958 = vmatpush1.bf16.msra.mxu1 %v12528_v55  ;;  %9375 = vmatprep.subr.bf16.mxu0 %v12533_v20  ;;  %v12593_v55 = vld [vmem:[#allocation8 + $0xd04] ss:$16 sps:$4 sm:$0xff]   ;;  %v12596_v20 = vld [vmem:[#allocation8 + $0xd0c] ss:$16 sps:$4 sm:$0xff]  }
 0x433   : > { %9959 = vmatprep.subr.bf16.mxu1 %v12536_v42  ;;  %v12591_v42 = vld [vmem:[#allocation8 + $0xd00] ss:$16 sps:$4 sm:$0xff]  }
 0x435   : > { %9376 = vmatpush1.bf16.msra.mxu0 %v12531_v61  ;;  %v12594_v61 = vld [vmem:[#allocation8 + $0xd08] ss:$16 sps:$4 sm:$0xff]  }
 0x436   : > { %9960 = vmatpush1.bf16.msra.mxu1 %v12534_v30  ;;  %9377 = vmatprep.subr.bf16.mxu0 %v12539_v28  ;;  %v12599_v30 = vld [vmem:[#allocation8 + $0xd24] ss:$16 sps:$4 sm:$0xff]   ;;  %v12602_v28 = vld [vmem:[#allocation8 + $0xd2c] ss:$16 sps:$4 sm:$0xff]  }
 0x437   : > { %9961 = vmatprep.subr.bf16.mxu1 %v12542_v31  ;;  %v12597_v31 = vld [vmem:[#allocation8 + $0xd20] ss:$16 sps:$4 sm:$0xff]  }
 0x439   : > { %9378 = vmatpush1.bf16.msra.mxu0 %v12537_v8  ;;  %v12605_v8 = vld [vmem:[#allocation8 + $0xd44] ss:$16 sps:$4 sm:$0xff]  }
 0x43a   : > { %9962 = vmatpush1.bf16.msra.mxu1 %v12540_v36  ;;  %9420 = vmatprep.subr.bf16.mxu0 %v12545_v52  ;;  %v12608_v36 = vld [vmem:[#allocation8 + $0xd4c] ss:$16 sps:$4 sm:$0xff]   ;;  %v12603_v52 = vld [vmem:[#allocation8 + $0xd40] ss:$16 sps:$4 sm:$0xff]  }
 0x43b   : > { %10004 = vmatprep.subr.bf16.mxu1 %v12548_v3  ;;  %v12606_v3 = vld [vmem:[#allocation8 + $0xd48] ss:$16 sps:$4 sm:$0xff]  }
 0x43c   : > { %9380 = vmatmul.mubr.bf16.vlgmr.msra.gmra.mrb[64].mxu0 %v17641_v63 }
 0x43d   : > { %9964 = vmatmul.mubr.bf16.vlgmr.msra.gmra.mrb[64].mxu1 %v17641_v63  ;;  %9389 = vmatprep.mubr.bf16.mxu0 %v17642_v33  ;;  %v12612_v63 = vld [vmem:[#allocation8 + $0xd68] ss:$16 sps:$4 sm:$0xff]  }
 0x43e   : > { %9421 = vmatpush1.bf16.msra.mxu0 %v12543_v50  ;;  %9973 = vmatprep.mubr.bf16.mxu1 %v17642_v33  ;;  %v12611_v50 = vld [vmem:[#allocation8 + $0xd64] ss:$16 sps:$4 sm:$0xff]   ;;  %v12620_v33 = vld [vmem:[#allocation8 + $0xd8c] ss:$16 sps:$4 sm:$0xff]  }
 0x43f   : > { %10005 = vmatpush1.bf16.msra.mxu1 %v12546_v56  ;;  %9422 = vmatprep.subr.bf16.mxu0 %v12551_v18  ;;  %v12614_v56 = vld [vmem:[#allocation8 + $0xd6c] ss:$16 sps:$4 sm:$0xff]   ;;  %v12609_v18 = vld [vmem:[#allocation8 + $0xd60] ss:$16 sps:$4 sm:$0xff]  }
 0x440   : > { %10006 = vmatprep.subr.bf16.mxu1 %v12554_v17  ;;  %v12617_v17 = vld [vmem:[#allocation8 + $0xd84] ss:$16 sps:$4 sm:$0xff]  }
 0x442   : > { %9423 = vmatpush1.bf16.msra.mxu0 %v12549_v6  ;;  %v12615_v6 = vld [vmem:[#allocation8 + $0xd80] ss:$16 sps:$4 sm:$0xff]  }
 0x443   : > { %10007 = vmatpush1.bf16.msra.mxu1 %v12552_v5  ;;  %9424 = vmatprep.subr.bf16.mxu0 %v12557_v59  ;;  %v12618_v5 = vld [vmem:[#allocation8 + $0xd88] ss:$16 sps:$4 sm:$0xff]   ;;  %v12623_v59 = vld [vmem:[#allocation8 + $0xda4] ss:$16 sps:$4 sm:$0xff]  }
 0x444   : > { %9390 = vmatmul.mubr.bf16.gmra.mrb[68].mxu0 %v17643_v0  ;;  %10008 = vmatprep.subr.bf16.mxu1 %v12560_v10  ;;  %v12626_v10 = vld [vmem:[#allocation8 + $0xdac] ss:$16 sps:$4 sm:$0xff]  }
 0x445   : > { %9974 = vmatmul.mubr.bf16.gmra.mrb[68].mxu1 %v17643_v0  ;;  %9399 = vmatprep.mubr.bf16.mxu0 %v17644_v32  ;;  %v12632_v0 = vld [vmem:[#allocation8 + $0xdcc] ss:$16 sps:$4 sm:$0xff]  }
 0x446   : > { %9425 = vmatpush1.bf16.msra.mxu0 %v12555_v49  ;;  %9983 = vmatprep.mubr.bf16.mxu1 %v17644_v32  ;;  %v12621_v49 = vld [vmem:[#allocation8 + $0xda0] ss:$16 sps:$4 sm:$0xff]   ;;  %v12630_v32 = vld [vmem:[#allocation8 + $0xdc8] ss:$16 sps:$4 sm:$0xff]  }
 0x447   : > { %10009 = vmatpush1.bf16.msra.mxu1 %v12558_v38  ;;  %9426 = vmatprep.subr.bf16.mxu0 %v12563_v23  ;;  %v12624_v38 = vld [vmem:[#allocation8 + $0xda8] ss:$16 sps:$4 sm:$0xff]   ;;  %v12629_v23 = vld [vmem:[#allocation8 + $0xdc4] ss:$16 sps:$4 sm:$0xff]  }
 0x448   : > { %10010 = vmatprep.subr.bf16.mxu1 %v12566_v24  ;;  %v12627_v24 = vld [vmem:[#allocation8 + $0xdc0] ss:$16 sps:$4 sm:$0xff]  }
 0x44a   : > { %9427 = vmatpush1.bf16.msra.mxu0 %v12561_v44  ;;  %v12635_v44 = vld [vmem:[#allocation8 + $0xde4] ss:$16 sps:$4 sm:$0xff]  }
 0x44b   : > { %10011 = vmatpush1.bf16.msra.mxu1 %v12564_v1  ;;  %9428 = vmatprep.subr.bf16.mxu0 %v12569_v46  ;;  %v12638_v1 = vld [vmem:[#allocation8 + $0xdec] ss:$16 sps:$4 sm:$0xff]   ;;  %v12633_v46 = vld [vmem:[#allocation8 + $0xde0] ss:$16 sps:$4 sm:$0xff]  }
 0x44c   : > { %9400 = vmatmul.mubr.bf16.gmra.mrb[72].mxu0 %v17645_v9  ;;  %10012 = vmatprep.subr.bf16.mxu1 %v12572_v54  ;;  %v12636_v54 = vld [vmem:[#allocation8 + $0xde8] ss:$16 sps:$4 sm:$0xff]  }
 0x44d   : > { %9984 = vmatmul.mubr.bf16.gmra.mrb[72].mxu1 %v17645_v9  ;;  %9409 = vmatprep.mubr.bf16.mxu0 %v17646_v4  ;;  %v12642_v9 = vld [vmem:[#allocation8 + $0xe08] ss:$16 sps:$4 sm:$0xff]  }
 0x44e   : > { %9429 = vmatpush1.bf16.msra.mxu0 %v12567_v47  ;;  %9993 = vmatprep.mubr.bf16.mxu1 %v17646_v4  ;;  %v12641_v47 = vld [vmem:[#allocation8 + $0xe04] ss:$16 sps:$4 sm:$0xff]   ;;  %v12650_v4 = vld [vmem:[#allocation8 + $0xe2c] ss:$16 sps:$4 sm:$0xff]  }
 0x44f   : > { %10013 = vmatpush1.bf16.msra.mxu1 %v12570_v15  ;;  %9430 = vmatprep.subr.bf16.mxu0 %v12575_v34  ;;  %v12644_v15 = vld [vmem:[#allocation8 + $0xe0c] ss:$16 sps:$4 sm:$0xff]   ;;  %v12639_v34 = vld [vmem:[#allocation8 + $0xe00] ss:$16 sps:$4 sm:$0xff]  }
 0x450   : > { %10014 = vmatprep.subr.bf16.mxu1 %v12578_v57  ;;  %v12647_v57 = vld [vmem:[#allocation8 + $0xe24] ss:$16 sps:$4 sm:$0xff]  }
 0x452   : > { %9431 = vmatpush1.bf16.msra.mxu0 %v12573_v41  ;;  %v12645_v41 = vld [vmem:[#allocation8 + $0xe20] ss:$16 sps:$4 sm:$0xff]  }
 0x453   : > { %10015 = vmatpush1.bf16.msra.mxu1 %v12576_v25  ;;  %9432 = vmatprep.subr.bf16.mxu0 %v12581_v45  ;;  %v12648_v25 = vld [vmem:[#allocation8 + $0xe28] ss:$16 sps:$4 sm:$0xff]   ;;  %v12653_v45 = vld [vmem:[#allocation8 + $0xe44] ss:$16 sps:$4 sm:$0xff]  }
 0x454   : > { %9410 = vmatmul.mubr.bf16.gmra.mrb[76].mxu0 %v17647_v37  ;;  %10016 = vmatprep.subr.bf16.mxu1 %v12584_v29  ;;  %v12656_v29 = vld [vmem:[#allocation8 + $0xe4c] ss:$16 sps:$4 sm:$0xff]  }
 0x455   : > { %9994 = vmatmul.mubr.bf16.gmra.mrb[76].mxu1 %v17647_v37  ;;  %9452 = vmatprep.mubr.bf16.mxu0 %v16516_v21  ;;  %v12660_v37 = vld [vmem:[#allocation8 + $0xe68] ss:$16 sps:$4 sm:$0xff]  }
 0x456   : > { %9433 = vmatpush1.bf16.msra.mxu0 %v12579_v40  ;;  %10036 = vmatprep.mubr.bf16.mxu1 %v16516_v21  ;;  %v12600_v21 = vld [vmem:[#allocation8 + $0xd28] ss:$16 sps:$4 sm:$0xff]   ;;  %v12651_v40 = vld [vmem:[#allocation8 + $0xe40] ss:$16 sps:$4 sm:$0xff]  }
 0x457   : > { %10017 = vmatpush1.bf16.msra.mxu1 %v12582_v7  ;;  %9434 = vmatprep.subr.bf16.mxu0 %v12587_v53  ;;  %v12654_v7 = vld [vmem:[#allocation8 + $0xe48] ss:$16 sps:$4 sm:$0xff]   ;;  %v12659_v53 = vld [vmem:[#allocation8 + $0xe64] ss:$16 sps:$4 sm:$0xff]  }
 0x458   : > { %10018 = vmatprep.subr.bf16.mxu1 %v12590_v39  ;;  %v12665_v39 = vld [vmem:[#allocation8 + $0xe84] ss:$16 sps:$4 sm:$0xff]  }
 0x45a   : > { %9435 = vmatpush1.bf16.msra.mxu0 %v12585_v27  ;;  %v12668_v27 = vld [vmem:[#allocation8 + $0xe8c] ss:$16 sps:$4 sm:$0xff]  }
 0x45b   : > { %10019 = vmatpush1.bf16.msra.mxu1 %v12588_v19  ;;  %9436 = vmatprep.subr.bf16.mxu0 %v12593_v55  ;;  %v12663_v19 = vld [vmem:[#allocation8 + $0xe80] ss:$16 sps:$4 sm:$0xff]   ;;  %v12666_v55 = vld [vmem:[#allocation8 + $0xe88] ss:$16 sps:$4 sm:$0xff]  }
 0x45c   : > { %10020 = vmatprep.subr.bf16.mxu1 %v12596_v20  ;;  %v12671_v20 = vld [vmem:[#allocation8 + $0xea4] ss:$16 sps:$4 sm:$0xff]  }
 0x45e   : > { %9437 = vmatpush1.bf16.msra.mxu0 %v12591_v42  ;;  %v12672_v42 = vld [vmem:[#allocation8 + $0xea8] ss:$16 sps:$4 sm:$0xff]  }
 0x45f   : > { %10021 = vmatpush1.bf16.msra.mxu1 %v12594_v61  ;;  %9438 = vmatprep.subr.bf16.mxu0 %v12599_v30  ;;  %v12677_v61 = vld [vmem:[#allocation8 + $0xec4] ss:$16 sps:$4 sm:$0xff]   ;;  %v12680_v30 = vld [vmem:[#allocation8 + $0xecc] ss:$16 sps:$4 sm:$0xff]  }
 0x460   : > { %10022 = vmatprep.subr.bf16.mxu1 %v12602_v28  ;;  %v12675_v28 = vld [vmem:[#allocation8 + $0xec0] ss:$16 sps:$4 sm:$0xff]  }
 0x462   : > { %9439 = vmatpush1.bf16.msra.mxu0 %v12597_v31  ;;  %v12678_v31 = vld [vmem:[#allocation8 + $0xec8] ss:$16 sps:$4 sm:$0xff]  }
 0x463   : > { %10023 = vmatpush1.bf16.msra.mxu1 %v12600_v21  ;;  %9440 = vmatprep.subr.bf16.mxu0 %v12605_v8  ;;  %v12683_v21 = vld [vmem:[#allocation8 + $0xee4] ss:$16 sps:$4 sm:$0xff]   ;;  %v12684_v8 = vld [vmem:[#allocation8 + $0xee8] ss:$16 sps:$4 sm:$0xff]  }
 0x464   : > { %10024 = vmatprep.subr.bf16.mxu1 %v12608_v36  ;;  %v12689_v36 = vld [vmem:[#allocation8 + $0xf04] ss:$16 sps:$4 sm:$0xff]  }
 0x466   : > { %9441 = vmatpush1.bf16.msra.mxu0 %v12603_v52  ;;  %v12692_v52 = vld [vmem:[#allocation8 + $0xf0c] ss:$16 sps:$4 sm:$0xff]  }
 0x467   : > { %10025 = vmatpush1.bf16.msra.mxu1 %v12606_v3  ;;  %9442 = vmatprep.subr.bf16.mxu0 %v12611_v50  ;;  %v12687_v3 = vld [vmem:[#allocation8 + $0xf00] ss:$16 sps:$4 sm:$0xff]   ;;  %v12690_v50 = vld [vmem:[#allocation8 + $0xf08] ss:$16 sps:$4 sm:$0xff]  }
 0x468   : > { %10026 = vmatprep.subr.bf16.mxu1 %v12614_v56  ;;  %v12695_v56 = vld [vmem:[#allocation8 + $0xf24] ss:$16 sps:$4 sm:$0xff]  }
 0x46a   : > { %9443 = vmatpush1.bf16.msra.mxu0 %v12609_v18  ;;  %v12693_v18 = vld [vmem:[#allocation8 + $0xf20] ss:$16 sps:$4 sm:$0xff]  }
 0x46b   : > { %10027 = vmatpush1.bf16.msra.mxu1 %v12612_v63  ;;  %9444 = vmatprep.subr.bf16.mxu0 %v12617_v17  ;;  %v12701_v63 = vld [vmem:[#allocation8 + $0xf44] ss:$16 sps:$4 sm:$0xff]   ;;  %v12704_v17 = vld [vmem:[#allocation8 + $0xf4c] ss:$16 sps:$4 sm:$0xff]  }
 0x46c   : > { %10028 = vmatprep.subr.bf16.mxu1 %v12620_v33  ;;  %v12699_v33 = vld [vmem:[#allocation8 + $0xf40] ss:$16 sps:$4 sm:$0xff]  }
 0x46e   : > { %9445 = vmatpush1.bf16.msra.mxu0 %v12615_v6  ;;  %v12702_v6 = vld [vmem:[#allocation8 + $0xf48] ss:$16 sps:$4 sm:$0xff]  }
 0x46f   : > { %10029 = vmatpush1.bf16.msra.mxu1 %v12618_v5  ;;  %9446 = vmatprep.subr.bf16.mxu0 %v12623_v59  ;;  %v12707_v5 = vld [vmem:[#allocation8 + $0xf64] ss:$16 sps:$4 sm:$0xff]   ;;  %v12710_v59 = vld [vmem:[#allocation8 + $0xf6c] ss:$16 sps:$4 sm:$0xff]  }
 0x470   : > { %10030 = vmatprep.subr.bf16.mxu1 %v12626_v10  ;;  %v12705_v10 = vld [vmem:[#allocation8 + $0xf60] ss:$16 sps:$4 sm:$0xff]  }
 0x472   : > { %9447 = vmatpush1.bf16.msra.mxu0 %v12621_v49  ;;  %v12708_v49 = vld [vmem:[#allocation8 + $0xf68] ss:$16 sps:$4 sm:$0xff]  }
 0x473   : > { %10031 = vmatpush1.bf16.msra.mxu1 %v12624_v38  ;;  %9448 = vmatprep.subr.bf16.mxu0 %v12629_v23  ;;  %v12713_v38 = vld [vmem:[#allocation8 + $0xf84] ss:$16 sps:$4 sm:$0xff]   ;;  %v12716_v23 = vld [vmem:[#allocation8 + $0xf8c] ss:$16 sps:$4 sm:$0xff]  }
 0x474   : > { %10032 = vmatprep.subr.bf16.mxu1 %v12632_v0  ;;  %v12711_v0 = vld [vmem:[#allocation8 + $0xf80] ss:$16 sps:$4 sm:$0xff]  }
 0x476   : > { %9449 = vmatpush1.bf16.msra.mxu0 %v12627_v24  ;;  %v12714_v24 = vld [vmem:[#allocation8 + $0xf88] ss:$16 sps:$4 sm:$0xff]  }
 0x477   : > { %10033 = vmatpush1.bf16.msra.mxu1 %v12630_v32  ;;  %9450 = vmatprep.subr.bf16.mxu0 %v12635_v44  ;;  %v12719_v32 = vld [vmem:[#allocation8 + $0xfa4] ss:$16 sps:$4 sm:$0xff]   ;;  %v12722_v44 = vld [vmem:[#allocation8 + $0xfac] ss:$16 sps:$4 sm:$0xff]  }
 0x478   : > { %10034 = vmatprep.subr.bf16.mxu1 %v12638_v1  ;;  %v12717_v1 = vld [vmem:[#allocation8 + $0xfa0] ss:$16 sps:$4 sm:$0xff]  }
 0x47a   : > { %9451 = vmatpush1.bf16.msra.mxu0 %v12633_v46  ;;  %v12720_v46 = vld [vmem:[#allocation8 + $0xfa8] ss:$16 sps:$4 sm:$0xff]  }
 0x47b   : > { %10035 = vmatpush1.bf16.msra.mxu1 %v12636_v54  ;;  %9493 = vmatprep.subr.bf16.mxu0 %v12641_v47  ;;  %v12725_v54 = vld [vmem:[#allocation8 + $0xfc4] ss:$16 sps:$4 sm:$0xff]   ;;  %v12728_v47 = vld [vmem:[#allocation8 + $0xfcc] ss:$16 sps:$4 sm:$0xff]  }
 0x47c   : > { %10077 = vmatprep.subr.bf16.mxu1 %v12644_v15  ;;  %v12723_v15 = vld [vmem:[#allocation8 + $0xfc0] ss:$16 sps:$4 sm:$0xff]  }
 0x47d   : > { %9453 = vmatmul.mubr.bf16.vlgmr.msra.gmra.mrb[64].mxu0 %v16454_v35 }
 0x47e   : > { %10037 = vmatmul.mubr.bf16.vlgmr.msra.gmra.mrb[64].mxu1 %v16454_v35  ;;  %9462 = vmatprep.mubr.bf16.mxu0 %v16529_v16  ;;  %v12662_v35 = vld [vmem:[#allocation8 + $0xe6c] ss:$16 sps:$4 sm:$0xff]  }
 0x47f   : > { %9494 = vmatpush1.bf16.msra.mxu0 %v12639_v34  ;;  %10046 = vmatprep.mubr.bf16.mxu1 %v16529_v16  ;;  %v12657_v16 = vld [vmem:[#allocation8 + $0xe60] ss:$16 sps:$4 sm:$0xff]   ;;  %v12726_v34 = vld [vmem:[#allocation8 + $0xfc8] ss:$16 sps:$4 sm:$0xff]  }
 0x480   : > { %10078 = vmatpush1.bf16.msra.mxu1 %v12642_v9  ;;  %9495 = vmatprep.subr.bf16.mxu0 %v12647_v57  ;;  %v12731_v9 = vld [vmem:[#allocation8 + $0xfe4] ss:$16 sps:$4 sm:$0xff]   ;;  %v12734_v57 = vld [vmem:[#allocation8 + $0xfec] ss:$16 sps:$4 sm:$0xff]  }
 0x481   : > { %10079 = vmatprep.subr.bf16.mxu1 %v12650_v4  ;;  %v12729_v4 = vld [vmem:[#allocation8 + $0xfe0] ss:$16 sps:$4 sm:$0xff]  }
 0x483   : > { %9496 = vmatpush1.bf16.msra.mxu0 %v12645_v41  ;;  %v12732_v41 = vld [vmem:[#allocation8 + $0xfe8] ss:$16 sps:$4 sm:$0xff]  }
 0x484   : > { %10080 = vmatpush1.bf16.msra.mxu1 %v12648_v25  ;;  %9497 = vmatprep.subr.bf16.mxu0 %v12653_v45  ;;  %v17649_v25 = vld [vmem:[#allocation34_spill] sm:$0xff] }
 0x485   : > { %9463 = vmatmul.mubr.bf16.gmra.mrb[68].mxu0 %v16540_v60  ;;  %10081 = vmatprep.subr.bf16.mxu1 %v12656_v29 }
 0x486   : > { %10047 = vmatmul.mubr.bf16.gmra.mrb[68].mxu1 %v16540_v60  ;;  %9472 = vmatprep.mubr.bf16.mxu0 %v16552_v12  ;;  %v12674_v60 = vld [vmem:[#allocation8 + $0xeac] ss:$16 sps:$4 sm:$0xff]  }
 0x487   : > { %9498 = vmatpush1.bf16.msra.mxu0 %v12651_v40  ;;  %10056 = vmatprep.mubr.bf16.mxu1 %v16552_v12  ;;  %v12669_v12 = vld [vmem:[#allocation8 + $0xea0] ss:$16 sps:$4 sm:$0xff]  }
 0x488   : > { %10082 = vmatpush1.bf16.msra.mxu1 %v12654_v7  ;;  %9499 = vmatprep.subr.bf16.mxu0 %v12659_v53 }
 0x489   : > { %10083 = vmatprep.subr.bf16.mxu1 %v12662_v35 }
 0x48b   : > { %9500 = vmatpush1.bf16.msra.mxu0 %v12657_v16 }
 0x48c   : > { %10084 = vmatpush1.bf16.msra.mxu1 %v12660_v37  ;;  %9501 = vmatprep.subr.bf16.mxu0 %v12665_v39 }
 0x48d   : > { %9473 = vmatmul.mubr.bf16.gmra.mrb[72].mxu0 %v16556_v51  ;;  %10085 = vmatprep.subr.bf16.mxu1 %v12668_v27 }
 0x48e   : > { %10057 = vmatmul.mubr.bf16.gmra.mrb[72].mxu1 %v16556_v51  ;;  %9482 = vmatprep.mubr.bf16.mxu0 %v16567_v26  ;;  %v12686_v51 = vld [vmem:[#allocation8 + $0xeec] ss:$16 sps:$4 sm:$0xff]  }
 0x48f   : > { %9502 = vmatpush1.bf16.msra.mxu0 %v12663_v19  ;;  %10066 = vmatprep.mubr.bf16.mxu1 %v16567_v26  ;;  %v12681_v26 = vld [vmem:[#allocation8 + $0xee0] ss:$16 sps:$4 sm:$0xff]  }
 0x490   : > { %10086 = vmatpush1.bf16.msra.mxu1 %v12666_v55  ;;  %9503 = vmatprep.subr.bf16.mxu0 %v12671_v20 }
 0x491   : > { %10087 = vmatprep.subr.bf16.mxu1 %v12674_v60 }
 0x493   : > { %9504 = vmatpush1.bf16.msra.mxu0 %v12669_v12 }
 0x494   : > { %10088 = vmatpush1.bf16.msra.mxu1 %v12672_v42  ;;  %9505 = vmatprep.subr.bf16.mxu0 %v12677_v61 }
 0x495   : > { %9483 = vmatmul.mubr.bf16.gmra.mrb[76].mxu0 %v16572_v58  ;;  %10089 = vmatprep.subr.bf16.mxu1 %v12680_v30 }
 0x496   : > { %10067 = vmatmul.mubr.bf16.gmra.mrb[76].mxu1 %v16572_v58  ;;  %9525 = vmatprep.mubr.bf16.mxu0 %v16579_v2  ;;  %v12698_v58 = vld [vmem:[#allocation8 + $0xf2c] ss:$16 sps:$4 sm:$0xff]  }
 0x497   : > { %9506 = vmatpush1.bf16.msra.mxu0 %v12675_v28  ;;  %10109 = vmatprep.mubr.bf16.mxu1 %v16579_v2  ;;  %v12696_v2 = vld [vmem:[#allocation8 + $0xf28] ss:$16 sps:$4 sm:$0xff]  }
 0x498   : > { %10090 = vmatpush1.bf16.msra.mxu1 %v12678_v31  ;;  %9507 = vmatprep.subr.bf16.mxu0 %v12683_v21 }
 0x499   : > { %10091 = vmatprep.subr.bf16.mxu1 %v12686_v51 }
 0x49b   : > { %9508 = vmatpush1.bf16.msra.mxu0 %v12681_v26 }
 0x49c   : > { %10092 = vmatpush1.bf16.msra.mxu1 %v12684_v8  ;;  %9509 = vmatprep.subr.bf16.mxu0 %v12689_v36 }
 0x49d   : > { %10093 = vmatprep.subr.bf16.mxu1 %v12692_v52 }
 0x49f   : > { %9510 = vmatpush1.bf16.msra.mxu0 %v12687_v3 }
 0x4a0   : > { %10094 = vmatpush1.bf16.msra.mxu1 %v12690_v50  ;;  %9511 = vmatprep.subr.bf16.mxu0 %v12695_v56 }
 0x4a1   : > { %10095 = vmatprep.subr.bf16.mxu1 %v12698_v58 }
 0x4a3   : > { %9512 = vmatpush1.bf16.msra.mxu0 %v12693_v18 }
 0x4a4   : > { %10096 = vmatpush1.bf16.msra.mxu1 %v12696_v2  ;;  %9513 = vmatprep.subr.bf16.mxu0 %v12701_v63 }
 0x4a5   : > { %10097 = vmatprep.subr.bf16.mxu1 %v12704_v17 }
 0x4a7   : > { %9514 = vmatpush1.bf16.msra.mxu0 %v12699_v33 }
 0x4a8   : > { %10098 = vmatpush1.bf16.msra.mxu1 %v12702_v6  ;;  %9515 = vmatprep.subr.bf16.mxu0 %v12707_v5 }
 0x4a9   : > { %10099 = vmatprep.subr.bf16.mxu1 %v12710_v59 }
 0x4ab   : > { %9516 = vmatpush1.bf16.msra.mxu0 %v12705_v10 }
 0x4ac   : > { %10100 = vmatpush1.bf16.msra.mxu1 %v12708_v49  ;;  %9517 = vmatprep.subr.bf16.mxu0 %v12713_v38 }
 0x4ad   : > { %10101 = vmatprep.subr.bf16.mxu1 %v12716_v23 }
 0x4af   : > { %9518 = vmatpush1.bf16.msra.mxu0 %v12711_v0 }
 0x4b0   : > { %10102 = vmatpush1.bf16.msra.mxu1 %v12714_v24  ;;  %9519 = vmatprep.subr.bf16.mxu0 %v12719_v32 }
 0x4b1   : > { %10103 = vmatprep.subr.bf16.mxu1 %v12722_v44 }
 0x4b3   : > { %9520 = vmatpush1.bf16.msra.mxu0 %v12717_v1 }
 0x4b4   : > { %10104 = vmatpush1.bf16.msra.mxu1 %v12720_v46  ;;  %9521 = vmatprep.subr.bf16.mxu0 %v12725_v54 }
 0x4b5   : > { %10105 = vmatprep.subr.bf16.mxu1 %v12728_v47 }
 0x4b7   : > { %9522 = vmatpush1.bf16.msra.mxu0 %v12723_v15 }
 0x4b8   : > { %10106 = vmatpush1.bf16.msra.mxu1 %v12726_v34  ;;  %9523 = vmatprep.subr.bf16.mxu0 %v12731_v9 }
 0x4b9   : > { %10107 = vmatprep.subr.bf16.mxu1 %v12734_v57 }
 0x4bb   : > { %9524 = vmatpush1.bf16.msra.mxu0 %v12729_v4 }
 0x4bc   : > { %10108 = vmatpush1.bf16.msra.mxu1 %v12732_v41 }
 0x4be   : > { %9526 = vmatmul.mubr.bf16.vlgmr.msra.gmra.mrb[64].mxu0 %v16535_v13 }
 0x4bf   : > { %10110 = vmatmul.mubr.bf16.vlgmr.msra.gmra.mrb[64].mxu1 %v16535_v13  ;;  %9535 = vmatprep.mubr.bf16.mxu0 %v16589_v14  ;;  %v6400_v13 = vld [vmem:[#allocation10] sm:$0xf] }
 0x4c0   : > { %10119 = vmatprep.mubr.bf16.mxu1 %v16589_v14  ;;  %v17648_v14 = vld [vmem:[#allocation33_spill] sm:$0xff]  ;;  %v16677_v45 = vrot.slane %v6400_v13, %v17649_v25 }
 0x4c6   : > { %9536 = vmatmul.mubr.bf16.gmra.mrb[68].mxu0 %v16594_v43 }
 0x4c7   : > { %10120 = vmatmul.mubr.bf16.gmra.mrb[68].mxu1 %v16594_v43  ;;  %9545 = vmatprep.mubr.bf16.mxu0 %v16599_v22  ;;  %v16674_v43 = vrot.slane %v6400_v13, %v17648_v14 }
 0x4c8   : > { %10129 = vmatprep.mubr.bf16.mxu1 %v16599_v22  ;;  %v17650_v22 = vld [vmem:[#allocation35_spill] sm:$0xff] }
 0x4c9   : > { %v16680_v29 = vrot.slane %v6400_v13, %v17650_v22 }
 0x4ce   : > { %9546 = vmatmul.mubr.bf16.gmra.mrb[72].mxu0 %v16601_v62 }
 0x4cf   : > { %10130 = vmatmul.mubr.bf16.gmra.mrb[72].mxu1 %v16601_v62  ;;  %9555 = vmatprep.mubr.bf16.mxu0 %v16607_v48  ;;  %v17651_v62 = vld [vmem:[#allocation36_spill] sm:$0xff] }
 0x4d0   : > { %10139 = vmatprep.mubr.bf16.mxu1 %v16607_v48  ;;  %v16683_v40 = vrot.slane %v6400_v13, %v17651_v62 }
 0x4d6   : > { %9556 = vmatmul.mubr.bf16.gmra.mrb[76].mxu0 %v16609_v11 }
 0x4d7   : > { %10140 = vmatmul.mubr.bf16.gmra.mrb[76].mxu1 %v16609_v11 }
 0x591   : > { %v9527_v7 = vpop.f32.mrb[64].mxu0 }
 0x592   : > { %v11488_v48 = vadd.f32 %v9527_v7, %v16674_v43  ;;  %v10111_v53 = vpop.f32.mrb[64].mxu1  ;;  %v9529_v35 = vpop.f32.mrb[65].mxu0 }
 0x593   : > { %v11504_v11 = vadd.f32 %v10111_v53, %v16677_v45  ;;  %v11489_v16 = vadd.f32 %v9529_v35, %v16680_v29  ;;  %v10113_v37 = vpop.f32.mrb[65].mxu1  ;;  %v9531_v39 = vpop.f32.mrb[66].mxu0 }
 0x594   : > { %10150 = vst [vmem:[%s16690_s24] sm:$0xff] %v11488_v48  ;;  %v11505_v27 = vadd.f32 %v10113_v37, %v16683_v40  ;;  %v11490_v19 = vadd.f32 %v9531_v39, %v16674_v43  ;;  %v10115_v55 = vpop.f32.mrb[66].mxu1  ;;  %v9533_v20 = vpop.f32.mrb[67].mxu0 }
 0x595   : > { %10152 = vst [vmem:[%s16690_s24 + $0x10] sm:$0xff] %v11504_v11  ;;  %10151 = vst [vmem:[%s16690_s24 + $0x8] sm:$0xff] %v11489_v16  ;;  %v11506_v60 = vadd.f32 %v10115_v55, %v16677_v45  ;;  %v11491_v12 = vadd.f32 %v9533_v20, %v16680_v29  ;;  %v10117_v42 = vpop.f32.mrb[67].mxu1 }
 0x596   : > { %10153 = vst [vmem:[%s16690_s24 + $0x18] sm:$0xff] %v11505_v27  ;;  %10154 = vst [vmem:[%s16690_s24 + $0x20] sm:$0xff] %v11490_v19  ;;  %v11507_v61 = vadd.f32 %v10117_v42, %v16683_v40 }
 0x597   : > { %10156 = vst [vmem:[%s16690_s24 + $0x30] sm:$0xff] %v11506_v60  ;;  %10155 = vst [vmem:[%s16690_s24 + $0x28] sm:$0xff] %v11491_v12 }
 0x598   : > { %10157 = vst [vmem:[%s16690_s24 + $0x38] sm:$0xff] %v11507_v61 }
 0x599   : > { %v9537_v30 = vpop.f32.mrb[68].mxu0 }
 0x59a   : > { %v11492_v28 = vadd.f32 %v9537_v30, %v16674_v43  ;;  %v10121_v31 = vpop.f32.mrb[68].mxu1  ;;  %v9539_v21 = vpop.f32.mrb[69].mxu0 }
 0x59b   : > { %v11508_v51 = vadd.f32 %v10121_v31, %v16677_v45  ;;  %v11493_v26 = vadd.f32 %v9539_v21, %v16680_v29  ;;  %v10123_v8 = vpop.f32.mrb[69].mxu1  ;;  %v9541_v36 = vpop.f32.mrb[70].mxu0 }
 0x59c   : > { %10158 = vst [vmem:[%s16690_s24 + $0x40] sm:$0xff] %v11492_v28  ;;  %v11509_v52 = vadd.f32 %v10123_v8, %v16683_v40  ;;  %v11494_v3 = vadd.f32 %v9541_v36, %v16674_v43  ;;  %v10125_v50 = vpop.f32.mrb[70].mxu1  ;;  %v9543_v56 = vpop.f32.mrb[71].mxu0 }
 0x59d   : > { %10160 = vst [vmem:[%s16690_s24 + $0x50] sm:$0xff] %v11508_v51  ;;  %10159 = vst [vmem:[%s16690_s24 + $0x48] sm:$0xff] %v11493_v26  ;;  %v11510_v58 = vadd.f32 %v10125_v50, %v16677_v45  ;;  %v11495_v18 = vadd.f32 %v9543_v56, %v16680_v29  ;;  %v10127_v2 = vpop.f32.mrb[71].mxu1 }
 0x59e   : > { %10161 = vst [vmem:[%s16690_s24 + $0x58] sm:$0xff] %v11509_v52  ;;  %10162 = vst [vmem:[%s16690_s24 + $0x60] sm:$0xff] %v11494_v3  ;;  %v11511_v63 = vadd.f32 %v10127_v2, %v16683_v40 }
 0x59f   : > { %10164 = vst [vmem:[%s16690_s24 + $0x70] sm:$0xff] %v11510_v58  ;;  %10163 = vst [vmem:[%s16690_s24 + $0x68] sm:$0xff] %v11495_v18 }
 0x5a0   : > { %10165 = vst [vmem:[%s16690_s24 + $0x78] sm:$0xff] %v11511_v63 }
 0x5a1   : > { %v9547_v17 = vpop.f32.mrb[72].mxu0 }
 0x5a2   : > { %v11496_v33 = vadd.f32 %v9547_v17, %v16674_v43  ;;  %v10131_v6 = vpop.f32.mrb[72].mxu1  ;;  %v9549_v5 = vpop.f32.mrb[73].mxu0 }
 0x5a3   : > { %v11512_v59 = vadd.f32 %v10131_v6, %v16677_v45  ;;  %v11497_v10 = vadd.f32 %v9549_v5, %v16680_v29  ;;  %v10133_v49 = vpop.f32.mrb[73].mxu1  ;;  %v9551_v38 = vpop.f32.mrb[74].mxu0 }
 0x5a4   : > { %10166 = vst [vmem:[%s16690_s24 + $0x80] sm:$0xff] %v11496_v33  ;;  %v11513_v23 = vadd.f32 %v10133_v49, %v16683_v40  ;;  %v11498_v0 = vadd.f32 %v9551_v38, %v16674_v43  ;;  %v10135_v24 = vpop.f32.mrb[74].mxu1  ;;  %v9553_v32 = vpop.f32.mrb[75].mxu0 }
 0x5a5   : > { %10168 = vst [vmem:[%s16690_s24 + $0x90] sm:$0xff] %v11512_v59  ;;  %10167 = vst [vmem:[%s16690_s24 + $0x88] sm:$0xff] %v11497_v10  ;;  %v11514_v44 = vadd.f32 %v10135_v24, %v16677_v45  ;;  %v11499_v1 = vadd.f32 %v9553_v32, %v16680_v29  ;;  %v10137_v46 = vpop.f32.mrb[75].mxu1 }
 0x5a6   : > { %10169 = vst [vmem:[%s16690_s24 + $0x98] sm:$0xff] %v11513_v23  ;;  %10170 = vst [vmem:[%s16690_s24 + $0xa0] sm:$0xff] %v11498_v0  ;;  %v11515_v54 = vadd.f32 %v10137_v46, %v16683_v40 }
 0x5a7   : > { %10172 = vst [vmem:[%s16690_s24 + $0xb0] sm:$0xff] %v11514_v44  ;;  %10171 = vst [vmem:[%s16690_s24 + $0xa8] sm:$0xff] %v11499_v1 }
 0x5a8   : > { %10173 = vst [vmem:[%s16690_s24 + $0xb8] sm:$0xff] %v11515_v54 }
 0x5a9   : > { %v9557_v47 = vpop.f32.mrb[76].mxu0 }
 0x5aa   : > { %v11500_v15 = vadd.f32 %v9557_v47, %v16674_v43  ;;  %v10141_v34 = vpop.f32.mrb[76].mxu1  ;;  %v9559_v9 = vpop.f32.mrb[77].mxu0 }
 0x5ab   : > { %v11516_v57 = vadd.f32 %v10141_v34, %v16677_v45  ;;  %v11501_v4 = vadd.f32 %v9559_v9, %v16680_v29  ;;  %v10143_v41 = vpop.f32.mrb[77].mxu1  ;;  %v9561_v13 = vpop.f32.mrb[78].mxu0 }
 0x5ac   : > { %10174 = vst [vmem:[%s16690_s24 + $0xc0] sm:$0xff] %v11500_v15  ;;  %v11517_v14 = vadd.f32 %v10143_v41, %v16683_v40  ;;  %v11502_v25 = vadd.f32 %v9561_v13, %v16674_v43  ;;  %v10145_v22 = vpop.f32.mrb[78].mxu1  ;;  %v9563_v62 = vpop.f32.mrb[79].mxu0 }
 0x5ad   : > { %10176 = vst [vmem:[%s16690_s24 + $0xd0] sm:$0xff] %v11516_v57  ;;  %10175 = vst [vmem:[%s16690_s24 + $0xc8] sm:$0xff] %v11501_v4  ;;  %v11518_v7 = vadd.f32 %v10145_v22, %v16677_v45  ;;  %v11503_v48 = vadd.f32 %v9563_v62, %v16680_v29  ;;  %v10147_v53 = vpop.f32.mrb[79].mxu1 }
 0x5ae   : > { %10177 = vst [vmem:[%s16690_s24 + $0xd8] sm:$0xff] %v11517_v14  ;;  %10178 = vst [vmem:[%s16690_s24 + $0xe0] sm:$0xff] %v11502_v25  ;;  %v11519_v43 = vadd.f32 %v10147_v53, %v16683_v40 }
 0x5af   : > { %10180 = vst [vmem:[%s16690_s24 + $0xf0] sm:$0xff] %v11518_v7  ;;  %10179 = vst [vmem:[%s16690_s24 + $0xe8] sm:$0xff] %v11503_v48 }
 0x5b0   : > { %10181 = vst [vmem:[%s16690_s24 + $0xf8] sm:$0xff] %v11519_v43 }
 0x5b1   : > { %13148 = shalt.err (!%p13145_p12)
}
 0x5b2   : > { %s13149_s13 = scalar_lea.hbm %s16752_s11, 4096  ;;  %s13153_s17 = scalar_lea.hbm %s16808_s5, 32768 }
 0x5b3   : > { %p13150_p0 = scmp.ne.s32.totalorder %s16752_s11, %s13149_s13  ;;  %p13154_p11 = scmp.lt.u32.totalorder %s16752_s11, %s16808_s5 }
 0x5b4   : > { %p13155_p1 = scmp.lt.u32.totalorder %s13153_s17, %s13149_s13  ;;  %p13157_p4 = scmp.lt.u32.totalorder %s13149_s13, %s16752_s11 }
 0x5b5   : > { %p13151_p5 = pnand %p13150_p0, %p13413_p6 }
 0x5b6   : > { %p13156_p2 = por %p13155_p1, %p13154_p11 }
 0x5b7   : > { %p13152_p10 = pneg %p13151_p5 }
 0x5b8   : > { %p13158_p8 = por %p13157_p4, %p13156_p2 }
 0x5ba   : > { %p13159_p13 = pnand %p13158_p8, %p13152_p10 }
 0x5bc   : > { %13162 = shalt.err (!%p13159_p13)
}
 0x5bd   : > { %s13223_s26 = smov 512   ;;  %s13224_s22 = smov 32  }
 0x5be   : > { %11890 = dma.vmem_to_hbm [thread:$0]  (%p13413_p6), %s16754_s8, 4096, %s16752_s11, %s10183_s27, %s13223_s26, %s13223_s26, %s13224_s22  }
 0x5bf PF: > { %p11922_p3 = scmp.ge.s32.totalorder %s13209_s21, 2  ;;  %s10212_s10 = sand.u32 1, %s13197_s18  }
 0x5c0   : > { %p17652_p7 = scmp.ne.s32.totalorder %s17095_s25, 0  ;;  %s10213_s16 = scalar_lea.sflag [#allocation4], %s10212_s10 }
 0x5c2   : > { %p11910_p9 = pnand %p11922_p3, %p17652_p7 }
 0x5c4   : > { %13192 = dma.done.wait (!%p11910_p9), %s10213_s16, 4096  }
 0x5c5   : > { %13194 = vsyncadd (!%p11910_p9), %s10213_s16, 4294963200  ;;  %p20_p12 = scmp.ge.s32.totalorder %s13400_s12, 10   ;;  %s17653_s18 = smov %s13201_s19 }
 0x5c6   : > { %s17654_s19 = smov %s13205_s20  ;;  %s17655_s20 = smov %s13409_s14 }
 0x5c7   : > { %s17656_s21 = smov %s13400_s12  ;;  %22 = sbr.rel (!%p20_p12) target bundleno = 7 (0x7), region = 101 }
 0x5ce   :  { %10218 = vsyncpa [#allocation3], 1 }
 0x5cf   :  { %10220 = vsyncpa [#allocation3 + $0x1], 1 }
 0x5d0   :  { %10221 = vsyncpa [#allocation6], 1 }
 0x5d1   :  { %10222 = vsyncpa [#allocation9], 1 }
 0x5d2   :  { %10223 = vsyncpa [#allocation4], 1 }
 0x5d3   :  { %10225 = vsyncpa [#allocation4 + $0x1], 1 }

</bundles_post_ra>
